<compile_context>
chip_gen: v7x
topology: tpu7x:2x2x1
jax: 0.10.0
libtpu: 0.0.40
codegen_flags: <defaults>
</compile_context>

<pallas_src>
import numpy as np
import jax
import jax.numpy as jnp
from jax.experimental import pallas as pl
from jax.experimental.pallas import tpu as pltpu

_EPS = 1e-5  # torch InstanceNorm3d default


# ------------------------------- Pallas kernels -------------------------------

def _mm_in_prelu_kernel(a_ref, b_ref, alpha_ref, o_ref):
    # One grid step = one sample; rows = output voxels, columns = output channels.
    # Bias omitted: a per-channel constant is exactly cancelled by the affine-free
    # InstanceNorm mean subtraction that follows.
    y = jnp.dot(a_ref[...], b_ref[...], preferred_element_type=jnp.float32)
    mu = jnp.mean(y, axis=0, keepdims=True)
    yc = y - mu
    var = jnp.mean(yc * yc, axis=0, keepdims=True)       # biased var (torch semantics)
    z = yc * jax.lax.rsqrt(var + _EPS)
    alpha = alpha_ref[0]                                  # SMEM scalar -> vector splat
    o_ref[...] = jnp.where(z >= 0.0, z, alpha * z).astype(o_ref.dtype)


def _mm_group_in_prelu_kernel(a_ref, b_ref, p_ref, pt_ref, alpha_ref, o_ref):
    # Sub-pixel ConvTranspose tile: columns are (phase, channel), phase-major.
    # Per-channel IN stats aggregate the 8 phase columns of each channel via two tiny
    # 0/1 selector matmuls; two-pass centered variance (no E[x^2]-mu^2 cancellation).
    y = jnp.dot(a_ref[...], b_ref[...], preferred_element_type=jnp.float32)
    inv_n = 1.0 / (y.shape[0] * 8.0)
    colsum = jnp.sum(y, axis=0, keepdims=True)                              # (1, 8C)
    mu = jnp.dot(colsum, p_ref[...], preferred_element_type=jnp.float32) * inv_n   # (1, C)
    mu_full = jnp.dot(mu, pt_ref[...], preferred_element_type=jnp.float32)         # (1, 8C)
    yc = y - mu_full
    sqsum = jnp.sum(yc * yc, axis=0, keepdims=True)
    var = jnp.dot(sqsum, p_ref[...], preferred_element_type=jnp.float32) * inv_n
    var_full = jnp.dot(var, pt_ref[...], preferred_element_type=jnp.float32)
    z = yc * jax.lax.rsqrt(var_full + _EPS)
    alpha = alpha_ref[0]
    o_ref[...] = jnp.where(z >= 0.0, z, alpha * z).astype(o_ref.dtype)


def _mmT_bias_kernel(bT_ref, aT_ref, bias_ref, o_ref):
    # Transposed GEMM for the final ConvTranspose (Cout=1): output rows = 8 phases,
    # columns = 512 voxels -> lane-dense stores instead of 8-lane masked stores.
    y = jnp.dot(bT_ref[...], aT_ref[...], preferred_element_type=jnp.float32)
    o_ref[...] = (y + bias_ref[...]).astype(o_ref.dtype)


# --------------------------- pallas_call wrappers ---------------------------

def _smem_spec():
    return pl.BlockSpec(memory_space=pltpu.MemorySpace.SMEM)


def _gemm_in_prelu(a, b, alpha, *, batch, out_dtype):
    M, K = a.shape
    _, Nout = b.shape
    S = M // batch
    cost = pl.CostEstimate(
        flops=2 * M * K * Nout,
        transcendentals=batch * Nout,
        bytes_accessed=int(M * K * 2 + K * Nout * 2
                           + M * Nout * jnp.dtype(out_dtype).itemsize))
    return pl.pallas_call(
        _mm_in_prelu_kernel,
        out_shape=jax.ShapeDtypeStruct((M, Nout), out_dtype),
        grid_spec=pltpu.PrefetchScalarGridSpec(
            num_scalar_prefetch=0,
            grid=(batch,),
            in_specs=[pl.BlockSpec((S, K), lambda n: (n, 0)),
                      pl.BlockSpec((K, Nout), lambda n: (0, 0)),
                      _smem_spec()],
            out_specs=pl.BlockSpec((S, Nout), lambda n: (n, 0)),
        ),
        compiler_params=pltpu.CompilerParams(dimension_semantics=("parallel",)),
        cost_estimate=cost,
    )(a, b, alpha)


def _gemm_group_in_prelu(a, b, p_mat, pt_mat, alpha, *, batch, out_dtype):
    M, K = a.shape
    _, Nout = b.shape
    C = Nout // 8
    S = M // batch
    cost = pl.CostEstimate(
        flops=2 * M * K * Nout + 8 * batch * Nout * C,
        transcendentals=batch * Nout,
        bytes_accessed=int(M * K * 2 + K * Nout * 2 + 2 * Nout * C * 4
                           + M * Nout * jnp.dtype(out_dtype).itemsize))
    return pl.pallas_call(
        _mm_group_in_prelu_kernel,
        out_shape=jax.ShapeDtypeStruct((M, Nout), out_dtype),
        grid_spec=pltpu.PrefetchScalarGridSpec(
            num_scalar_prefetch=0,
            grid=(batch,),
            in_specs=[pl.BlockSpec((S, K), lambda n: (n, 0)),
                      pl.BlockSpec((K, Nout), lambda n: (0, 0)),
                      pl.BlockSpec((Nout, C), lambda n: (0, 0)),
                      pl.BlockSpec((C, Nout), lambda n: (0, 0)),
                      _smem_spec()],
            out_specs=pl.BlockSpec((S, Nout), lambda n: (n, 0)),
        ),
        compiler_params=pltpu.CompilerParams(dimension_semantics=("parallel",)),
        cost_estimate=cost,
    )(a, b, p_mat, pt_mat, alpha)


def _gemm_t_bias(bT, aT, bias_rows, *, batch, out_dtype):
    R, K = bT.shape
    _, S = aT.shape
    cost = pl.CostEstimate(
        flops=2 * batch * R * K * S,
        transcendentals=0,
        bytes_accessed=int(R * K * 2 + batch * K * S * 2
                           + batch * R * S * jnp.dtype(out_dtype).itemsize))
    return pl.pallas_call(
        _mmT_bias_kernel,
        out_shape=jax.ShapeDtypeStruct((batch * R, S), out_dtype),
        grid_spec=pltpu.PrefetchScalarGridSpec(
            num_scalar_prefetch=0,
            grid=(batch,),
            in_specs=[pl.BlockSpec((R, K), lambda n: (0, 0)),
                      pl.BlockSpec((K, S), lambda n: (n, 0)),
                      pl.BlockSpec((R, 1), lambda n: (0, 0))],
            out_specs=pl.BlockSpec((R, S), lambda n: (n, 0)),
        ),
        compiler_params=pltpu.CompilerParams(dimension_semantics=("parallel",)),
        cost_estimate=cost,
    )(bT, aT, bias_rows)


# ----------------------- conv lowering (XLA slicing glue, no MACs) -----------------------

def _im2col_conv(x, k, stride, pad):
    """x: (N,D,H,W,C) channel-last -> ((N*od*oh*ow, k^3*C), (od,oh,ow)). Pure slicing."""
    N, D, H, W, C = x.shape
    xp = jnp.pad(x, ((0, 0), (pad, pad), (pad, pad), (pad, pad), (0, 0)))
    Dp, Hp, Wp = xp.shape[1:4]
    od = (Dp - k) // stride + 1
    oh = (Hp - k) // stride + 1
    ow = (Wp - k) // stride + 1
    pats = []
    for kd in range(k):
        for kh in range(k):
            for kw in range(k):
                pats.append(xp[:,
                               kd:kd + (od - 1) * stride + 1:stride,
                               kh:kh + (oh - 1) * stride + 1:stride,
                               kw:kw + (ow - 1) * stride + 1:stride, :])
    p = jnp.stack(pats, axis=4)                      # (N, od, oh, ow, k^3, C)
    return p.reshape(N * od * oh * ow, k ** 3 * C), (od, oh, ow)


def conv3d_in_prelu(x, bm, alpha, *, stride, pad):
    """PyTorch Conv3d(k=3) + InstanceNorm3d + PReLU; channel-last in/out. bm: (27*Cin, Cout) bf16."""
    N = x.shape[0]
    Cout = bm.shape[1]
    a, (od, oh, ow) = _im2col_conv(x, 3, stride, pad)
    y = _gemm_in_prelu(a, bm, alpha, batch=N, out_dtype=jnp.bfloat16)
    return y.reshape(N, od, oh, ow, Cout)


# (output phase p, input tap t) -> kernel index for k=3, stride=2, pad=1, output_pad=1:
#   out index o = 2*m + p pulls from input j = m + t with weight w[..., 2(m-j)+p+1].
_KMAP = {(0, 0): 1, (1, 0): 2, (1, 1): 0}


def _im2col_tap2(x):
    """x: (N,D,H,W,C) -> (N*D*H*W, 8*C) patches over the 2x2x2 forward taps (right-padded)."""
    N, D, H, W, C = x.shape
    xp = jnp.pad(x, ((0, 0), (0, 1), (0, 1), (0, 1), (0, 0)))
    pats = [xp[:, td:td + D, th:th + H, tw:tw + W, :]
            for td in (0, 1) for th in (0, 1) for tw in (0, 1)]
    p = jnp.stack(pats, axis=4)                      # (N, D, H, W, 8, C)
    return p.reshape(N * D * H * W, 8 * C)


def conv_transpose3d_in_prelu(x, bm, p_mat, pt_mat, alpha):
    """ConvTranspose3d(k=3,s=2,p=1,op=1) + IN + PReLU via sub-pixel decomposition (channel-last)."""
    N, D, H, W, _ = x.shape
    Cout = bm.shape[1] // 8
    a = _im2col_tap2(x)                                              # (N*DHW, 8*Cin)
    y = _gemm_group_in_prelu(a, bm, p_mat, pt_mat, alpha, batch=N, out_dtype=jnp.bfloat16)
    y = y.reshape(N, D, H, W, 2, 2, 2, Cout)                         # (n, d, h, w, pd, ph, pw, c)
    y = y.transpose(0, 1, 4, 2, 5, 3, 6, 7)                          # (n, d, pd, h, ph, w, pw, c)
    return y.reshape(N, 2 * D, 2 * H, 2 * W, Cout)


def conv_transpose3d_final(x, bmT, bias_rows):
    """Final ConvTranspose3d(k=3,s=2,p=1,op=1), conv-only with bias. Lane-dense transposed GEMM:
    per-sample output tile (8 phases x Cout, D*H*W voxels). Returns NCDHW f32."""
    N, D, H, W, Cin = x.shape
    R = bmT.shape[0]                                                 # 8 * Cout
    Cout = R // 8
    xt = x.transpose(0, 4, 1, 2, 3)                                  # tiny channel-first relayout
    xp = jnp.pad(xt, ((0, 0), (0, 0), (0, 1), (0, 1), (0, 1)))
    pats = [xp[:, :, td:td + D, th:th + H, tw:tw + W]
            for td in (0, 1) for th in (0, 1) for tw in (0, 1)]
    p = jnp.stack(pats, axis=1)                                      # (N, 8, Cin, D, H, W)
    aT = p.reshape(N * 8 * Cin, D * H * W)                           # rows (tap, ci), cols voxels
    y = _gemm_t_bias(bmT, aT, bias_rows, batch=N, out_dtype=jnp.float32)   # (N*8*Cout, DHW)
    y = y.reshape(N, 2, 2, 2, Cout, D, H, W)                         # (n, pd, ph, pw, c, d, h, w)
    y = y.transpose(0, 4, 5, 1, 6, 2, 7, 3)                          # (n, c, d, pd, h, ph, w, pw)
    return y.reshape(N, Cout, 2 * D, 2 * H, 2 * W)


# ------------------------------- parameters -------------------------------

def init_params(key):
    """Raw parameters in PyTorch layouts (Conv3d: (Cout,Cin,k,k,k); ConvT3d: (Cin,Cout,k,k,k))."""
    def conv_w(k, shape):
        fan_in = shape[1] * shape[2] * shape[3] * shape[4]
        return jax.random.normal(k, shape, jnp.float32) / jnp.sqrt(float(fan_in))

    def convt_w(k, shape):
        fan_in = shape[0] * shape[2] * shape[3] * shape[4]
        return jax.random.normal(k, shape, jnp.float32) / jnp.sqrt(float(fan_in))

    ks = jax.random.split(key, 10)
    prelu = jnp.full((1,), 0.25, jnp.float32)        # nn.PReLU() default
    return {
        "d1_w": conv_w(ks[0], (32, 1, 3, 3, 3)),
        "d1_b": 0.01 * jax.random.normal(ks[1], (32,), jnp.float32),
        "d1_a": prelu,
        "d2_w": conv_w(ks[2], (64, 32, 3, 3, 3)),
        "d2_b": 0.01 * jax.random.normal(ks[3], (64,), jnp.float32),
        "d2_a": prelu,
        "bt_w": conv_w(ks[4], (128, 64, 3, 3, 3)),
        "bt_b": 0.01 * jax.random.normal(ks[5], (128,), jnp.float32),
        "bt_a": prelu,
        "u2_w": convt_w(ks[6], (192, 32, 3, 3, 3)),
        "u2_b": 0.01 * jax.random.normal(ks[7], (32,), jnp.float32),
        "u2_a": prelu,
        "u1_w": convt_w(ks[8], (64, 1, 3, 3, 3)),
        "u1_b": 0.01 * jax.random.normal(ks[9], (1,), jnp.float32),
    }


def _pack_conv_weight(w):
    """(Cout,Cin,3,3,3) -> (27*Cin, Cout); row order (kd,kh,kw,cin) matches _im2col_conv cols."""
    w = np.asarray(w, np.float32)
    cin = w.shape[1]
    return np.transpose(w, (2, 3, 4, 1, 0)).reshape(27 * cin, w.shape[0])


def _pack_convT_weight(w):
    """ConvTranspose3d weight (Cin,Cout,3,3,3) -> (8*Cin, 8*Cout) sub-pixel matmul matrix.
    Rows = (td,th,tw,ci) (matches _im2col_tap2 cols); cols = (pd,ph,pw,co) phase-major."""
    w = np.asarray(w, np.float32)
    cin, cout = w.shape[0], w.shape[1]
    m = np.zeros((8, cin, 8, cout), np.float32)
    for pd in (0, 1):
        for ph in (0, 1):
            for pw in (0, 1):
                for td in (0, 1):
                    for th in (0, 1):
                        for tw in (0, 1):
                            if (pd, td) in _KMAP and (ph, th) in _KMAP and (pw, tw) in _KMAP:
                                tap = (td * 2 + th) * 2 + tw
                                phase = (pd * 2 + ph) * 2 + pw
                                m[tap, :, phase, :] = w[:, :, _KMAP[(pd, td)],
                                                        _KMAP[(ph, th)], _KMAP[(pw, tw)]]
    return m.reshape(8 * cin, 8 * cout)


def pack_params(raw):
    """One-time host-side packing into GEMM-ready bf16 matrices + small f32 tables.
    Biases of layers followed by affine-free InstanceNorm (d1,d2,bt,u2) are dropped —
    a per-channel constant is exactly cancelled by the mean subtraction."""
    c_u2 = raw["u2_w"].shape[1]
    p_mat = np.tile(np.eye(c_u2, dtype=np.float32), (8, 1))        # (8*C, C) phase-sum selector
    u1_packed = _pack_convT_weight(raw["u1_w"])                    # (8*Cin, 8*Cout)
    return {
        "d1_bm": jnp.asarray(_pack_conv_weight(raw["d1_w"]), jnp.bfloat16),
        "d1_a": jnp.asarray(raw["d1_a"], jnp.float32),
        "d2_bm": jnp.asarray(_pack_conv_weight(raw["d2_w"]), jnp.bfloat16),
        "d2_a": jnp.asarray(raw["d2_a"], jnp.float32),
        "bt_bm": jnp.asarray(_pack_conv_weight(raw["bt_w"]), jnp.bfloat16),
        "bt_a": jnp.asarray(raw["bt_a"], jnp.float32),
        "u2_bm": jnp.asarray(_pack_convT_weight(raw["u2_w"]), jnp.bfloat16),
        "u2_a": jnp.asarray(raw["u2_a"], jnp.float32),
        "u2_p": jnp.asarray(p_mat),                                # (8C, C) f32
        "u2_pt": jnp.asarray(np.ascontiguousarray(p_mat.T)),       # (C, 8C) f32
        "u1_bmT": jnp.asarray(np.ascontiguousarray(u1_packed.T), jnp.bfloat16),   # (8*Cout, 8*Cin)
        "u1_bias": jnp.asarray(np.tile(np.asarray(raw["u1_b"], np.float32), 8).reshape(-1, 1)),
    }


# --------------------------------- model ---------------------------------

def custom_unet_forward(x, pp):
    """x: (N, 1, 16, 16, 16) f32 NCDHW -> (N, 1, 16, 16, 16) f32."""
    N, _, D, H, W = x.shape
    xl = x.reshape(N, D, H, W, 1).astype(jnp.bfloat16)   # C=1: NCDHW->NDHWC is a pure reshape
    # Encoder
    h1 = conv3d_in_prelu(xl, pp["d1_bm"], pp["d1_a"], stride=2, pad=1)   # (N,8,8,8,32)  bf16
    h2 = conv3d_in_prelu(h1, pp["d2_bm"], pp["d2_a"], stride=2, pad=1)   # (N,4,4,4,64)  bf16
    # Bottleneck
    h3 = conv3d_in_prelu(h2, pp["bt_bm"], pp["bt_a"], stride=1, pad=1)   # (N,4,4,4,128) bf16
    # Decoder (MONAI SkipConnection: cat([input, submodule(input)], channel dim))
    c2 = jnp.concatenate([h2, h3], axis=-1)                              # (N,4,4,4,192)
    u2 = conv_transpose3d_in_prelu(c2, pp["u2_bm"], pp["u2_p"], pp["u2_pt"], pp["u2_a"])
    c1 = jnp.concatenate([h1, u2], axis=-1)                              # (N,8,8,8,64)
    return conv_transpose3d_final(c1, pp["u1_bmT"], pp["u1_bias"])       # (N,1,16,16,16) f32


if __name__ == "__main__":
    x = jax.random.normal(jax.random.PRNGKey(0), (2, 1, 16, 16, 16), jnp.float32)
    raw = init_params(jax.random.PRNGKey(42))
    packed = pack_params(raw)              # one-time host-side packing (outside jit)
    fwd = jax.jit(custom_unet_forward)
    y = fwd(x, packed)
    jax.block_until_ready(y)
    assert y.shape == (2, 1, 16, 16, 16), y.shape
    assert bool(jnp.all(jnp.isfinite(y)))
    print("KERNEL_OK")
</pallas_src>

<mosaic_0001>
module attributes {stable_mosaic.version = 11 : i64} {
  func.func @_mm_in_prelu_kernel(%arg0: i32, %arg1: memref<512x27xbf16, #tpu.memory_space<vmem>>, %arg2: memref<27x32xbf16, #tpu.memory_space<vmem>>, %arg3: memref<1xf32, #tpu.memory_space<smem>>, %arg4: memref<512x32xbf16, #tpu.memory_space<vmem>>) attributes {dimension_semantics = [#tpu.dimension_semantics<parallel>], iteration_bounds = array<i64: 2>, scalar_prefetch = 0 : i64, scratch_operands = 0 : i64, tpu.core_type = #tpu.core_type<tc>, window_params = [{transform_indices = @transform_0, window_bounds = array<i64: 512, 27>}, {pipeline_mode = #tpu.pipeline_mode<synchronous>, transform_indices = @transform_1, window_bounds = array<i64: 27, 32>}, {transform_indices = @transform_2, window_bounds = array<i64: 1>}, {transform_indices = @transform_3, window_bounds = array<i64: 512, 32>}]} {
    %c0 = arith.constant 0 : index
    %c0_0 = arith.constant 0 : index
    %0 = vector.load %arg1[%c0, %c0_0] : memref<512x27xbf16, #tpu.memory_space<vmem>>, vector<512x27xbf16>
    %c0_1 = arith.constant 0 : index
    %c0_2 = arith.constant 0 : index
    %1 = vector.load %arg2[%c0_1, %c0_2] : memref<27x32xbf16, #tpu.memory_space<vmem>>, vector<27x32xbf16>
    %cst = arith.constant dense<0.000000e+00> : vector<512x32xf32>
    %2 = tpu.matmul %0, %1, %cst {dimension_numbers = #tpu.dot_dimension_numbers<[1], [0], [0], [1], [0, 0, 1, 1], [], []>} : vector<512x27xbf16>, vector<27x32xbf16>, vector<512x32xf32> -> vector<512x32xf32>
    %cst_3 = arith.constant dense<0.000000e+00> : vector<32xf32>
    %3 = vector.multi_reduction <add>, %2, %cst_3 [0] : vector<512x32xf32> to vector<32xf32>
    %4 = vector.shape_cast %3 : vector<32xf32> to vector<1x32xf32>
    %cst_4 = arith.constant 5.120000e+02 : f32
    %5 = vector.broadcast %cst_4 : f32 to vector<1x32xf32>
    %6 = arith.divf %4, %5 : vector<1x32xf32>
    %7 = vector.broadcast %6 : vector<1x32xf32> to vector<512x32xf32>
    %8 = arith.subf %2, %7 : vector<512x32xf32>
    %9 = arith.mulf %8, %8 : vector<512x32xf32>
    %cst_5 = arith.constant dense<0.000000e+00> : vector<32xf32>
    %10 = vector.multi_reduction <add>, %9, %cst_5 [0] : vector<512x32xf32> to vector<32xf32>
    %11 = vector.shape_cast %10 : vector<32xf32> to vector<1x32xf32>
    %cst_6 = arith.constant 5.120000e+02 : f32
    %12 = vector.broadcast %cst_6 : f32 to vector<1x32xf32>
    %13 = arith.divf %11, %12 : vector<1x32xf32>
    %cst_7 = arith.constant 9.99999974E-6 : f32
    %14 = vector.broadcast %cst_7 : f32 to vector<1x32xf32>
    %15 = arith.addf %13, %14 : vector<1x32xf32>
    %16 = math.rsqrt %15 : vector<1x32xf32>
    %17 = vector.broadcast %16 : vector<1x32xf32> to vector<512x32xf32>
    %18 = arith.mulf %8, %17 : vector<512x32xf32>
    %c0_8 = arith.constant 0 : index
    %19 = memref.load %arg3[%c0_8] : memref<1xf32, #tpu.memory_space<smem>>
    %cst_9 = arith.constant 0.000000e+00 : f32
    %20 = vector.broadcast %cst_9 : f32 to vector<512x32xf32>
    %21 = arith.cmpf oge, %18, %20 : vector<512x32xf32>
    %22 = vector.broadcast %19 : f32 to vector<512x32xf32>
    %23 = arith.mulf %22, %18 : vector<512x32xf32>
    %24 = arith.select %21, %18, %23 : vector<512x32xi1>, vector<512x32xf32>
    %25 = arith.truncf %24 : vector<512x32xf32> to vector<512x32xbf16>
    %c0_10 = arith.constant 0 : index
    %c0_11 = arith.constant 0 : index
    %26 = vector.load %arg4[%c0_10, %c0_11] : memref<512x32xbf16, #tpu.memory_space<vmem>>, vector<512x32xbf16>
    tpu.vector_store %arg4[%c0_10, %c0_11], %25 {strides = array<i32>} : memref<512x32xbf16, #tpu.memory_space<vmem>>, vector<512x32xbf16>,
    return
  }
  func.func @transform_0(%arg0: i32) -> (i32, i32) {
    %c0_i32 = arith.constant 0 : i32
    %c0_i32_0 = arith.constant 0 : i32
    return %arg0, %c0_i32 : i32, i32
  }
  func.func @transform_1(%arg0: i32) -> (i32, i32) {
    %c0_i32 = arith.constant 0 : i32
    %c0_i32_0 = arith.constant 0 : i32
    %c0_i32_1 = arith.constant 0 : i32
    return %c0_i32, %c0_i32_0 : i32, i32
  }
  func.func @transform_2(%arg0: i32) -> i32 {
    %c0_i32 = arith.constant 0 : i32
    %c0_i32_0 = arith.constant 0 : i32
    return %c0_i32 : i32
  }
  func.func @transform_3(%arg0: i32) -> (i32, i32) {
    %c0_i32 = arith.constant 0 : i32
    %c0_i32_0 = arith.constant 0 : i32
    return %arg0, %c0_i32 : i32, i32
  }
}

module attributes {stable_mosaic.version = 11 : i64} {
  func.func @_mm_in_prelu_kernel(%arg0: i32, %arg1: memref<64x864xbf16, #tpu.memory_space<vmem>>, %arg2: memref<864x64xbf16, #tpu.memory_space<vmem>>, %arg3: memref<1xf32, #tpu.memory_space<smem>>, %arg4: memref<64x64xbf16, #tpu.memory_space<vmem>>) attributes {dimension_semantics = [#tpu.dimension_semantics<parallel>], iteration_bounds = array<i64: 2>, scalar_prefetch = 0 : i64, scratch_operands = 0 : i64, tpu.core_type = #tpu.core_type<tc>, window_params = [{transform_indices = @transform_0, window_bounds = array<i64: 64, 864>}, {pipeline_mode = #tpu.pipeline_mode<synchronous>, transform_indices = @transform_1, window_bounds = array<i64: 864, 64>}, {transform_indices = @transform_2, window_bounds = array<i64: 1>}, {transform_indices = @transform_3, window_bounds = array<i64: 64, 64>}]} {
    %c0 = arith.constant 0 : index
    %c0_0 = arith.constant 0 : index
    %0 = vector.load %arg1[%c0, %c0_0] : memref<64x864xbf16, #tpu.memory_space<vmem>>, vector<64x864xbf16>
    %c0_1 = arith.constant 0 : index
    %c0_2 = arith.constant 0 : index
    %1 = vector.load %arg2[%c0_1, %c0_2] : memref<864x64xbf16, #tpu.memory_space<vmem>>, vector<864x64xbf16>
    %cst = arith.constant dense<0.000000e+00> : vector<64x64xf32>
    %2 = tpu.matmul %0, %1, %cst {dimension_numbers = #tpu.dot_dimension_numbers<[1], [0], [0], [1], [0, 0, 1, 1], [], []>} : vector<64x864xbf16>, vector<864x64xbf16>, vector<64x64xf32> -> vector<64x64xf32>
    %cst_3 = arith.constant dense<0.000000e+00> : vector<64xf32>
    %3 = vector.multi_reduction <add>, %2, %cst_3 [0] : vector<64x64xf32> to vector<64xf32>
    %4 = vector.shape_cast %3 : vector<64xf32> to vector<1x64xf32>
    %cst_4 = arith.constant 6.400000e+01 : f32
    %5 = vector.broadcast %cst_4 : f32 to vector<1x64xf32>
    %6 = arith.divf %4, %5 : vector<1x64xf32>
    %7 = vector.broadcast %6 : vector<1x64xf32> to vector<64x64xf32>
    %8 = arith.subf %2, %7 : vector<64x64xf32>
    %9 = arith.mulf %8, %8 : vector<64x64xf32>
    %cst_5 = arith.constant dense<0.000000e+00> : vector<64xf32>
    %10 = vector.multi_reduction <add>, %9, %cst_5 [0] : vector<64x64xf32> to vector<64xf32>
    %11 = vector.shape_cast %10 : vector<64xf32> to vector<1x64xf32>
    %cst_6 = arith.constant 6.400000e+01 : f32
    %12 = vector.broadcast %cst_6 : f32 to vector<1x64xf32>
    %13 = arith.divf %11, %12 : vector<1x64xf32>
    %cst_7 = arith.constant 9.99999974E-6 : f32
    %14 = vector.broadcast %cst_7 : f32 to vector<1x64xf32>
    %15 = arith.addf %13, %14 : vector<1x64xf32>
    %16 = math.rsqrt %15 : vector<1x64xf32>
    %17 = vector.broadcast %16 : vector<1x64xf32> to vector<64x64xf32>
    %18 = arith.mulf %8, %17 : vector<64x64xf32>
    %c0_8 = arith.constant 0 : index
    %19 = memref.load %arg3[%c0_8] : memref<1xf32, #tpu.memory_space<smem>>
    %cst_9 = arith.constant 0.000000e+00 : f32
    %20 = vector.broadcast %cst_9 : f32 to vector<64x64xf32>
    %21 = arith.cmpf oge, %18, %20 : vector<64x64xf32>
    %22 = vector.broadcast %19 : f32 to vector<64x64xf32>
    %23 = arith.mulf %22, %18 : vector<64x64xf32>
    %24 = arith.select %21, %18, %23 : vector<64x64xi1>, vector<64x64xf32>
    %25 = arith.truncf %24 : vector<64x64xf32> to vector<64x64xbf16>
    %c0_10 = arith.constant 0 : index
    %c0_11 = arith.constant 0 : index
    %26 = vector.load %arg4[%c0_10, %c0_11] : memref<64x64xbf16, #tpu.memory_space<vmem>>, vector<64x64xbf16>
    tpu.vector_store %arg4[%c0_10, %c0_11], %25 {strides = array<i32>} : memref<64x64xbf16, #tpu.memory_space<vmem>>, vector<64x64xbf16>,
    return
  }
  func.func @transform_0(%arg0: i32) -> (i32, i32) {
    %c0_i32 = arith.constant 0 : i32
    %c0_i32_0 = arith.constant 0 : i32
    return %arg0, %c0_i32 : i32, i32
  }
  func.func @transform_1(%arg0: i32) -> (i32, i32) {
    %c0_i32 = arith.constant 0 : i32
    %c0_i32_0 = arith.constant 0 : i32
    %c0_i32_1 = arith.constant 0 : i32
    return %c0_i32, %c0_i32_0 : i32, i32
  }
  func.func @transform_2(%arg0: i32) -> i32 {
    %c0_i32 = arith.constant 0 : i32
    %c0_i32_0 = arith.constant 0 : i32
    return %c0_i32 : i32
  }
  func.func @transform_3(%arg0: i32) -> (i32, i32) {
    %c0_i32 = arith.constant 0 : i32
    %c0_i32_0 = arith.constant 0 : i32
    return %arg0, %c0_i32 : i32, i32
  }
}

module attributes {stable_mosaic.version = 11 : i64} {
  func.func @_mm_in_prelu_kernel(%arg0: i32, %arg1: memref<64x1728xbf16, #tpu.memory_space<vmem>>, %arg2: memref<1728x128xbf16, #tpu.memory_space<vmem>>, %arg3: memref<1xf32, #tpu.memory_space<smem>>, %arg4: memref<64x128xbf16, #tpu.memory_space<vmem>>) attributes {dimension_semantics = [#tpu.dimension_semantics<parallel>], iteration_bounds = array<i64: 2>, scalar_prefetch = 0 : i64, scratch_operands = 0 : i64, tpu.core_type = #tpu.core_type<tc>, window_params = [{transform_indices = @transform_0, window_bounds = array<i64: 64, 1728>}, {pipeline_mode = #tpu.pipeline_mode<synchronous>, transform_indices = @transform_1, window_bounds = array<i64: 1728, 128>}, {transform_indices = @transform_2, window_bounds = array<i64: 1>}, {transform_indices = @transform_3, window_bounds = array<i64: 64, 128>}]} {
    %c0 = arith.constant 0 : index
    %c0_0 = arith.constant 0 : index
    %0 = vector.load %arg1[%c0, %c0_0] : memref<64x1728xbf16, #tpu.memory_space<vmem>>, vector<64x1728xbf16>
    %c0_1 = arith.constant 0 : index
    %c0_2 = arith.constant 0 : index
    %1 = vector.load %arg2[%c0_1, %c0_2] : memref<1728x128xbf16, #tpu.memory_space<vmem>>, vector<1728x128xbf16>
    %cst = arith.constant dense<0.000000e+00> : vector<64x128xf32>
    %2 = tpu.matmul %0, %1, %cst {dimension_numbers = #tpu.dot_dimension_numbers<[1], [0], [0], [1], [0, 0, 1, 1], [], []>} : vector<64x1728xbf16>, vector<1728x128xbf16>, vector<64x128xf32> -> vector<64x128xf32>
    %cst_3 = arith.constant dense<0.000000e+00> : vector<128xf32>
    %3 = vector.multi_reduction <add>, %2, %cst_3 [0] : vector<64x128xf32> to vector<128xf32>
    %4 = vector.shape_cast %3 : vector<128xf32> to vector<1x128xf32>
    %cst_4 = arith.constant 6.400000e+01 : f32
    %5 = vector.broadcast %cst_4 : f32 to vector<1x128xf32>
    %6 = arith.divf %4, %5 : vector<1x128xf32>
    %7 = vector.broadcast %6 : vector<1x128xf32> to vector<64x128xf32>
    %8 = arith.subf %2, %7 : vector<64x128xf32>
    %9 = arith.mulf %8, %8 : vector<64x128xf32>
    %cst_5 = arith.constant dense<0.000000e+00> : vector<128xf32>
    %10 = vector.multi_reduction <add>, %9, %cst_5 [0] : vector<64x128xf32> to vector<128xf32>
    %11 = vector.shape_cast %10 : vector<128xf32> to vector<1x128xf32>
    %cst_6 = arith.constant 6.400000e+01 : f32
    %12 = vector.broadcast %cst_6 : f32 to vector<1x128xf32>
    %13 = arith.divf %11, %12 : vector<1x128xf32>
    %cst_7 = arith.constant 9.99999974E-6 : f32
    %14 = vector.broadcast %cst_7 : f32 to vector<1x128xf32>
    %15 = arith.addf %13, %14 : vector<1x128xf32>
    %16 = math.rsqrt %15 : vector<1x128xf32>
    %17 = vector.broadcast %16 : vector<1x128xf32> to vector<64x128xf32>
    %18 = arith.mulf %8, %17 : vector<64x128xf32>
    %c0_8 = arith.constant 0 : index
    %19 = memref.load %arg3[%c0_8] : memref<1xf32, #tpu.memory_space<smem>>
    %cst_9 = arith.constant 0.000000e+00 : f32
    %20 = vector.broadcast %cst_9 : f32 to vector<64x128xf32>
    %21 = arith.cmpf oge, %18, %20 : vector<64x128xf32>
    %22 = vector.broadcast %19 : f32 to vector<64x128xf32>
    %23 = arith.mulf %22, %18 : vector<64x128xf32>
    %24 = arith.select %21, %18, %23 : vector<64x128xi1>, vector<64x128xf32>
    %25 = arith.truncf %24 : vector<64x128xf32> to vector<64x128xbf16>
    %c0_10 = arith.constant 0 : index
    %c0_11 = arith.constant 0 : index
    %26 = vector.load %arg4[%c0_10, %c0_11] : memref<64x128xbf16, #tpu.memory_space<vmem>>, vector<64x128xbf16>
    tpu.vector_store %arg4[%c0_10, %c0_11], %25 {strides = array<i32>} : memref<64x128xbf16, #tpu.memory_space<vmem>>, vector<64x128xbf16>,
    return
  }
  func.func @transform_0(%arg0: i32) -> (i32, i32) {
    %c0_i32 = arith.constant 0 : i32
    %c0_i32_0 = arith.constant 0 : i32
    return %arg0, %c0_i32 : i32, i32
  }
  func.func @transform_1(%arg0: i32) -> (i32, i32) {
    %c0_i32 = arith.constant 0 : i32
    %c0_i32_0 = arith.constant 0 : i32
    %c0_i32_1 = arith.constant 0 : i32
    return %c0_i32, %c0_i32_0 : i32, i32
  }
  func.func @transform_2(%arg0: i32) -> i32 {
    %c0_i32 = arith.constant 0 : i32
    %c0_i32_0 = arith.constant 0 : i32
    return %c0_i32 : i32
  }
  func.func @transform_3(%arg0: i32) -> (i32, i32) {
    %c0_i32 = arith.constant 0 : i32
    %c0_i32_0 = arith.constant 0 : i32
    return %arg0, %c0_i32 : i32, i32
  }
}

module attributes {stable_mosaic.version = 11 : i64} {
  func.func @_mm_group_in_prelu_kernel(%arg0: i32, %arg1: memref<64x1536xbf16, #tpu.memory_space<vmem>>, %arg2: memref<1536x256xbf16, #tpu.memory_space<vmem>>, %arg3: memref<256x32xf32, #tpu.memory_space<vmem>>, %arg4: memref<32x256xf32, #tpu.memory_space<vmem>>, %arg5: memref<1xf32, #tpu.memory_space<smem>>, %arg6: memref<64x256xbf16, #tpu.memory_space<vmem>>) attributes {dimension_semantics = [#tpu.dimension_semantics<parallel>], iteration_bounds = array<i64: 2>, scalar_prefetch = 0 : i64, scratch_operands = 0 : i64, tpu.core_type = #tpu.core_type<tc>, window_params = [{transform_indices = @transform_0, window_bounds = array<i64: 64, 1536>}, {pipeline_mode = #tpu.pipeline_mode<synchronous>, transform_indices = @transform_1, window_bounds = array<i64: 1536, 256>}, {pipeline_mode = #tpu.pipeline_mode<synchronous>, transform_indices = @transform_2, window_bounds = array<i64: 256, 32>}, {pipeline_mode = #tpu.pipeline_mode<synchronous>, transform_indices = @transform_3, window_bounds = array<i64: 32, 256>}, {transform_indices = @transform_4, window_bounds = array<i64: 1>}, {transform_indices = @transform_5, window_bounds = array<i64: 64, 256>}]} {
    %c0 = arith.constant 0 : index
    %c0_0 = arith.constant 0 : index
    %0 = vector.load %arg1[%c0, %c0_0] : memref<64x1536xbf16, #tpu.memory_space<vmem>>, vector<64x1536xbf16>
    %c0_1 = arith.constant 0 : index
    %c0_2 = arith.constant 0 : index
    %1 = vector.load %arg2[%c0_1, %c0_2] : memref<1536x256xbf16, #tpu.memory_space<vmem>>, vector<1536x256xbf16>
    %cst = arith.constant dense<0.000000e+00> : vector<64x256xf32>
    %2 = tpu.matmul %0, %1, %cst {dimension_numbers = #tpu.dot_dimension_numbers<[1], [0], [0], [1], [0, 0, 1, 1], [], []>} : vector<64x1536xbf16>, vector<1536x256xbf16>, vector<64x256xf32> -> vector<64x256xf32>
    %cst_3 = arith.constant dense<0.000000e+00> : vector<256xf32>
    %3 = vector.multi_reduction <add>, %2, %cst_3 [0] : vector<64x256xf32> to vector<256xf32>
    %4 = vector.shape_cast %3 : vector<256xf32> to vector<1x256xf32>
    %c0_4 = arith.constant 0 : index
    %c0_5 = arith.constant 0 : index
    %5 = vector.load %arg3[%c0_4, %c0_5] : memref<256x32xf32, #tpu.memory_space<vmem>>, vector<256x32xf32>
    %cst_6 = arith.constant dense<0.000000e+00> : vector<1x32xf32>
    %6 = tpu.matmul %4, %5, %cst_6 {dimension_numbers = #tpu.dot_dimension_numbers<[1], [0], [0], [1], [0, 0, 1, 1], [], []>} : vector<1x256xf32>, vector<256x32xf32>, vector<1x32xf32> -> vector<1x32xf32>
    %cst_7 = arith.constant 0.001953125 : f32
    %7 = vector.broadcast %cst_7 : f32 to vector<1x32xf32>
    %8 = arith.mulf %6, %7 : vector<1x32xf32>
    %c0_8 = arith.constant 0 : index
    %c0_9 = arith.constant 0 : index
    %9 = vector.load %arg4[%c0_8, %c0_9] : memref<32x256xf32, #tpu.memory_space<vmem>>, vector<32x256xf32>
    %cst_10 = arith.constant dense<0.000000e+00> : vector<1x256xf32>
    %10 = tpu.matmul %8, %9, %cst_10 {dimension_numbers = #tpu.dot_dimension_numbers<[1], [0], [0], [1], [0, 0, 1, 1], [], []>} : vector<1x32xf32>, vector<32x256xf32>, vector<1x256xf32> -> vector<1x256xf32>
    %11 = vector.broadcast %10 : vector<1x256xf32> to vector<64x256xf32>
    %12 = arith.subf %2, %11 : vector<64x256xf32>
    %13 = arith.mulf %12, %12 : vector<64x256xf32>
    %cst_11 = arith.constant dense<0.000000e+00> : vector<256xf32>
    %14 = vector.multi_reduction <add>, %13, %cst_11 [0] : vector<64x256xf32> to vector<256xf32>
    %15 = vector.shape_cast %14 : vector<256xf32> to vector<1x256xf32>
    %c0_12 = arith.constant 0 : index
    %c0_13 = arith.constant 0 : index
    %16 = vector.load %arg3[%c0_12, %c0_13] : memref<256x32xf32, #tpu.memory_space<vmem>>, vector<256x32xf32>
    %cst_14 = arith.constant dense<0.000000e+00> : vector<1x32xf32>
    %17 = tpu.matmul %15, %16, %cst_14 {dimension_numbers = #tpu.dot_dimension_numbers<[1], [0], [0], [1], [0, 0, 1, 1], [], []>} : vector<1x256xf32>, vector<256x32xf32>, vector<1x32xf32> -> vector<1x32xf32>
    %cst_15 = arith.constant 0.001953125 : f32
    %18 = vector.broadcast %cst_15 : f32 to vector<1x32xf32>
    %19 = arith.mulf %17, %18 : vector<1x32xf32>
    %c0_16 = arith.constant 0 : index
    %c0_17 = arith.constant 0 : index
    %20 = vector.load %arg4[%c0_16, %c0_17] : memref<32x256xf32, #tpu.memory_space<vmem>>, vector<32x256xf32>
    %cst_18 = arith.constant dense<0.000000e+00> : vector<1x256xf32>
    %21 = tpu.matmul %19, %20, %cst_18 {dimension_numbers = #tpu.dot_dimension_numbers<[1], [0], [0], [1], [0, 0, 1, 1], [], []>} : vector<1x32xf32>, vector<32x256xf32>, vector<1x256xf32> -> vector<1x256xf32>
    %cst_19 = arith.constant 9.99999974E-6 : f32
    %22 = vector.broadcast %cst_19 : f32 to vector<1x256xf32>
    %23 = arith.addf %21, %22 : vector<1x256xf32>
    %24 = math.rsqrt %23 : vector<1x256xf32>
    %25 = vector.broadcast %24 : vector<1x256xf32> to vector<64x256xf32>
    %26 = arith.mulf %12, %25 : vector<64x256xf32>
    %c0_20 = arith.constant 0 : index
    %27 = memref.load %arg5[%c0_20] : memref<1xf32, #tpu.memory_space<smem>>
    %cst_21 = arith.constant 0.000000e+00 : f32
    %28 = vector.broadcast %cst_21 : f32 to vector<64x256xf32>
    %29 = arith.cmpf oge, %26, %28 : vector<64x256xf32>
    %30 = vector.broadcast %27 : f32 to vector<64x256xf32>
    %31 = arith.mulf %30, %26 : vector<64x256xf32>
    %32 = arith.select %29, %26, %31 : vector<64x256xi1>, vector<64x256xf32>
    %33 = arith.truncf %32 : vector<64x256xf32> to vector<64x256xbf16>
    %c0_22 = arith.constant 0 : index
    %c0_23 = arith.constant 0 : index
    %34 = vector.load %arg6[%c0_22, %c0_23] : memref<64x256xbf16, #tpu.memory_space<vmem>>, vector<64x256xbf16>
    tpu.vector_store %arg6[%c0_22, %c0_23], %33 {strides = array<i32>} : memref<64x256xbf16, #tpu.memory_space<vmem>>, vector<64x256xbf16>,
    return
  }
  func.func @transform_0(%arg0: i32) -> (i32, i32) {
    %c0_i32 = arith.constant 0 : i32
    %c0_i32_0 = arith.constant 0 : i32
    return %arg0, %c0_i32 : i32, i32
  }
  func.func @transform_1(%arg0: i32) -> (i32, i32) {
    %c0_i32 = arith.constant 0 : i32
    %c0_i32_0 = arith.constant 0 : i32
    %c0_i32_1 = arith.constant 0 : i32
    return %c0_i32, %c0_i32_0 : i32, i32
  }
  func.func @transform_2(%arg0: i32) -> (i32, i32) {
    %c0_i32 = arith.constant 0 : i32
    %c0_i32_0 = arith.constant 0 : i32
    %c0_i32_1 = arith.constant 0 : i32
    return %c0_i32, %c0_i32_0 : i32, i32
  }
  func.func @transform_3(%arg0: i32) -> (i32, i32) {
    %c0_i32 = arith.constant 0 : i32
    %c0_i32_0 = arith.constant 0 : i32
    %c0_i32_1 = arith.constant 0 : i32
    return %c0_i32, %c0_i32_0 : i32, i32
  }
  func.func @transform_4(%arg0: i32) -> i32 {
    %c0_i32 = arith.constant 0 : i32
    %c0_i32_0 = arith.constant 0 : i32
    return %c0_i32 : i32
  }
  func.func @transform_5(%arg0: i32) -> (i32, i32) {
    %c0_i32 = arith.constant 0 : i32
    %c0_i32_0 = arith.constant 0 : i32
    return %arg0, %c0_i32 : i32, i32
  }
}

module attributes {stable_mosaic.version = 11 : i64} {
  func.func @_mmT_bias_kernel(%arg0: i32, %arg1: memref<8x512xbf16, #tpu.memory_space<vmem>>, %arg2: memref<512x512xbf16, #tpu.memory_space<vmem>>, %arg3: memref<8x1xf32, #tpu.memory_space<vmem>>, %arg4: memref<8x512xf32, #tpu.memory_space<vmem>>) attributes {dimension_semantics = [#tpu.dimension_semantics<parallel>], iteration_bounds = array<i64: 2>, scalar_prefetch = 0 : i64, scratch_operands = 0 : i64, tpu.core_type = #tpu.core_type<tc>, window_params = [{pipeline_mode = #tpu.pipeline_mode<synchronous>, transform_indices = @transform_0, window_bounds = array<i64: 8, 512>}, {transform_indices = @transform_1, window_bounds = array<i64: 512, 512>}, {pipeline_mode = #tpu.pipeline_mode<synchronous>, transform_indices = @transform_2, window_bounds = array<i64: 8, 1>}, {transform_indices = @transform_3, window_bounds = array<i64: 8, 512>}]} {
    %c0 = arith.constant 0 : index
    %c0_0 = arith.constant 0 : index
    %0 = vector.load %arg1[%c0, %c0_0] : memref<8x512xbf16, #tpu.memory_space<vmem>>, vector<8x512xbf16>
    %c0_1 = arith.constant 0 : index
    %c0_2 = arith.constant 0 : index
    %1 = vector.load %arg2[%c0_1, %c0_2] : memref<512x512xbf16, #tpu.memory_space<vmem>>, vector<512x512xbf16>
    %cst = arith.constant dense<0.000000e+00> : vector<8x512xf32>
    %2 = tpu.matmul %0, %1, %cst {dimension_numbers = #tpu.dot_dimension_numbers<[1], [0], [0], [1], [0, 0, 1, 1], [], []>} : vector<8x512xbf16>, vector<512x512xbf16>, vector<8x512xf32> -> vector<8x512xf32>
    %c0_3 = arith.constant 0 : index
    %c0_4 = arith.constant 0 : index
    %3 = vector.load %arg3[%c0_3, %c0_4] : memref<8x1xf32, #tpu.memory_space<vmem>>, vector<8x1xf32>
    %4 = vector.broadcast %3 : vector<8x1xf32> to vector<8x512xf32>
    %5 = arith.addf %2, %4 : vector<8x512xf32>
    %c0_5 = arith.constant 0 : index
    %c0_6 = arith.constant 0 : index
    %6 = vector.load %arg4[%c0_5, %c0_6] : memref<8x512xf32, #tpu.memory_space<vmem>>, vector<8x512xf32>
    tpu.vector_store %arg4[%c0_5, %c0_6], %5 {strides = array<i32>} : memref<8x512xf32, #tpu.memory_space<vmem>>, vector<8x512xf32>,
    return
  }
  func.func @transform_0(%arg0: i32) -> (i32, i32) {
    %c0_i32 = arith.constant 0 : i32
    %c0_i32_0 = arith.constant 0 : i32
    %c0_i32_1 = arith.constant 0 : i32
    return %c0_i32, %c0_i32_0 : i32, i32
  }
  func.func @transform_1(%arg0: i32) -> (i32, i32) {
    %c0_i32 = arith.constant 0 : i32
    %c0_i32_0 = arith.constant 0 : i32
    return %arg0, %c0_i32 : i32, i32
  }
  func.func @transform_2(%arg0: i32) -> (i32, i32) {
    %c0_i32 = arith.constant 0 : i32
    %c0_i32_0 = arith.constant 0 : i32
    %c0_i32_1 = arith.constant 0 : i32
    return %c0_i32, %c0_i32_0 : i32, i32
  }
  func.func @transform_3(%arg0: i32) -> (i32, i32) {
    %c0_i32 = arith.constant 0 : i32
    %c0_i32_0 = arith.constant 0 : i32
    return %arg0, %c0_i32 : i32, i32
  }
}

</mosaic_0001>

<bundles_post_ra>
// kernel: custom_unet_forward.5
= control target key start
LH: loop header
LB: loop body
LE: loop exit
PB: predicated region body
PF: predicated region fallthrough
CT: control target
= control target key end

     0   :  { %s2231_s14 = smov 0   ;;  %s4255_s0 = inlined_call_operand.vmem [shape: bf16[1024,27], index: 0, kind: input, shape index: {}]   ;;  %s4256_s1 = inlined_call_operand.vmem [shape: bf16[27,32], index: 1, kind: input, shape index: {}]   ;;  %s4257_s2 = inlined_call_operand.<no memory space> [shape: f32[1], index: 2, kind: input, shape index: {}]   ;;  %s4258_s3 = inlined_call_operand.vmem [shape: bf16[1024,32], index: 3, kind: output, shape index: {}]  }
   0x1   :  { %8 = sst [smem:[#allocation2]] %s4257_s2 }
   0x2 LB: > { %s1843_s15 = sadd.s32 4294967295, %s2205_s14   ;;  %p1847_p0 = scmp.ge.s32.totalorder %s2205_s14, 1  ;;  %s2205_s14 = sphi %s2231_s14, %s14_s14  }
   0x3   : > { %p139_p1 = scmp.lt.s32.totalorder %s2205_s14, 3 }
   0x5   : > { %p140_p2 = pnand %p1847_p0, %p139_p1 }
   0x7   : > { %143 = sbr.rel (%p140_p2) target bundleno = 672 (0x2a0), region = 32 }
   0xe   : > { %v2163_v0 = vld [vmem:[%s4256_s1] sm:$0xff]   ;;  %vm512_vm0 = vcmask 1044480   ;;  %v2164_v1 = vld [vmem:[%s4256_s1 + $0x8] sm:$0x3f]   ;;  %vm513_vm1 = vcmask 1045504   ;;  %s1848_s19 = sshll.u32 %s1843_s15, 6 }
   0xf   : > { %2082 = vmatprep.subr.bf16.mxu0 %v2163_v0  ;;  %2150 = vmatprep.subr.bf16.mxu1 %v2163_v0  ;;  %v2207_v2 = vmov 65535   ;;  %p164_p3 = scmp.lt.s32.totalorder %s1848_s19, 127  ;;  %vm415_vm2 = vcmask 220160   ;;  %vm808_vm3 = vcmask 261120   ;;  %s1272_s24 = sld [smem:[#allocation2]] }
  0x10   : > { %2083 = vmatpush3.bf16.msra.mxu0 %v2163_v0  ;;  %v514_v3 = vsel %vm512_vm0, 4294967295, %v2207_v2  ;;  %2152 = vmatpush3.bf16.msra.mxu1 %v2163_v0 }
  0x11   : > { %v515_v4 = vsel %vm513_vm1, %v514_v3, 0  ;;  %s4637_s19 = smov (!%p164_p3, %s1848_s19), 127 }
  0x12   : > { %v517_v5 = vand.u32 %v2164_v1, %v515_v4  ;;  %s1849_s20 = sshll.u32 %s4637_s19, 2 }
  0x13   : > { %s2253_s23 = scalar_lea.vmem %s4255_s0, %s1849_s20  ;;  %s3970_s27 = scalar_lea.vmem %s4258_s3, %s1849_s20 }
  0x14   : > { %2084 = vmatprep.subr.bf16.mxu0 %v517_v5  ;;  %2151 = vmatprep.subr.bf16.mxu1 %v517_v5  ;;  %v2165_v6 = vld [vmem:[%s2253_s23] sm:$0xff]   ;;  %v2166_v7 = vld [vmem:[%s2253_s23 + $0x8] sm:$0xff]   ;;  %v2167_v8 = vld [vmem:[%s2253_s23 + $0x10] sm:$0xff]  }
  0x15   : > { %2085 = vmatpush3.bf16.msra.mxu0 %v517_v5  ;;  %2153 = vmatpush3.bf16.msra.mxu1 %v517_v5  ;;  %v2168_v9 = vld [vmem:[%s2253_s23 + $0x18] sm:$0xff]   ;;  %v2169_v10 = vld [vmem:[%s2253_s23 + $0x20] sm:$0xff]   ;;  %v2170_v11 = vld [vmem:[%s2253_s23 + $0x28] sm:$0xff]  }
  0x16   : > { %2086 = vmatprep.mubr.msk.bf16.mxu0 %vm415_vm2, %v2165_v6  ;;  %v2171_v12 = vld [vmem:[%s2253_s23 + $0x30] sm:$0xff]   ;;  %v2181_v13 = vld [vmem:[%s2253_s23 + $0x80] sm:$0xff]   ;;  %v2182_v14 = vld [vmem:[%s2253_s23 + $0x88] sm:$0xff]  }
  0x17   : > { %2118 = vmatprep.mubr.msk.bf16.mxu1 %vm415_vm2, %v2181_v13  ;;  %v2183_v15 = vld [vmem:[%s2253_s23 + $0x90] sm:$0xff]   ;;  %v2172_v16 = vld [vmem:[%s2253_s23 + $0x38] sm:$0xff]   ;;  %v2173_v17 = vld [vmem:[%s2253_s23 + $0x40] sm:$0xff]  }
  0x18   : > { %2087 = vmatmul.mubr.msk.bf16.vlgmr.msra.gmra.mrb[0].mxu0 %vm415_vm2, %v2166_v7  ;;  %2119 = vmatmul.mubr.msk.bf16.vlgmr.msra.gmra.mrb[0].mxu1 %vm415_vm2, %v2182_v14  ;;  %v2184_v18 = vld [vmem:[%s2253_s23 + $0x98] sm:$0xff]   ;;  %v2185_v19 = vld [vmem:[%s2253_s23 + $0xa0] sm:$0xff]   ;;  %v2174_v20 = vld [vmem:[%s2253_s23 + $0x48] sm:$0xff]  }
  0x19   : > { %2090 = vmatprep.mubr.msk.bf16.mxu0 %vm415_vm2, %v2167_v8  ;;  %2122 = vmatprep.mubr.msk.bf16.mxu1 %vm415_vm2, %v2183_v15  ;;  %v2186_v21 = vld [vmem:[%s2253_s23 + $0xa8] sm:$0xff]   ;;  %v2175_v22 = vld [vmem:[%s2253_s23 + $0x50] sm:$0xff]   ;;  %v2176_v24 = vld [vmem:[%s2253_s23 + $0x58] sm:$0xff]  }
  0x1a   : > { %v2187_v23 = vld [vmem:[%s2253_s23 + $0xb0] sm:$0xff]   ;;  %v2188_v25 = vld [vmem:[%s2253_s23 + $0xb8] sm:$0xff]   ;;  %v2177_v26 = vld [vmem:[%s2253_s23 + $0x60] sm:$0xff]  }
  0x1b   : > { %v2189_v27 = vld [vmem:[%s2253_s23 + $0xc0] sm:$0xff]   ;;  %v2178_v28 = vld [vmem:[%s2253_s23 + $0x68] sm:$0xff]   ;;  %v2179_v30 = vld [vmem:[%s2253_s23 + $0x70] sm:$0xff]  }
  0x1c   : > { %v2190_v29 = vld [vmem:[%s2253_s23 + $0xc8] sm:$0xff]   ;;  %v2191_v31 = vld [vmem:[%s2253_s23 + $0xd0] sm:$0xff]   ;;  %v2180_v32 = vld [vmem:[%s2253_s23 + $0x78] sm:$0xff]  }
  0x1d   : > { %v2192_v33 = vld [vmem:[%s2253_s23 + $0xd8] sm:$0xff]   ;;  %v2193_v34 = vld [vmem:[%s2253_s23 + $0xe0] sm:$0xff]   ;;  %v2194_v35 = vld [vmem:[%s2253_s23 + $0xe8] sm:$0xff]  }
  0x1e   : > { %v2195_v36 = vld [vmem:[%s2253_s23 + $0xf0] sm:$0xff]   ;;  %v2196_v37 = vld [vmem:[%s2253_s23 + $0xf8] sm:$0xff]  }
  0x20   : > { %2091 = vmatmul.mubr.msk.bf16.gmra.mrb[4].mxu0 %vm415_vm2, %v2168_v9  ;;  %2123 = vmatmul.mubr.msk.bf16.gmra.mrb[4].mxu1 %vm415_vm2, %v2184_v18 }
  0x21   : > { %2094 = vmatprep.mubr.msk.bf16.mxu0 %vm415_vm2, %v2169_v10  ;;  %2126 = vmatprep.mubr.msk.bf16.mxu1 %vm415_vm2, %v2185_v19 }
  0x28   : > { %2095 = vmatmul.mubr.msk.bf16.gmra.mrb[8].mxu0 %vm415_vm2, %v2170_v11  ;;  %2127 = vmatmul.mubr.msk.bf16.gmra.mrb[8].mxu1 %vm415_vm2, %v2186_v21 }
  0x29   : > { %2098 = vmatprep.mubr.msk.bf16.mxu0 %vm415_vm2, %v2171_v12  ;;  %2130 = vmatprep.mubr.msk.bf16.mxu1 %vm415_vm2, %v2187_v23 }
  0x30   : > { %2099 = vmatmul.mubr.msk.bf16.gmra.mrb[12].mxu0 %vm415_vm2, %v2172_v16  ;;  %2131 = vmatmul.mubr.msk.bf16.gmra.mrb[12].mxu1 %vm415_vm2, %v2188_v25 }
  0x31   : > { %2102 = vmatprep.mubr.msk.bf16.mxu0 %vm415_vm2, %v2173_v17  ;;  %2134 = vmatprep.mubr.msk.bf16.mxu1 %vm415_vm2, %v2189_v27 }
  0x38   : > { %2103 = vmatmul.mubr.msk.bf16.gmra.mrb[16].mxu0 %vm415_vm2, %v2174_v20  ;;  %2135 = vmatmul.mubr.msk.bf16.gmra.mrb[16].mxu1 %vm415_vm2, %v2190_v29 }
  0x39   : > { %2106 = vmatprep.mubr.msk.bf16.mxu0 %vm415_vm2, %v2175_v22  ;;  %2138 = vmatprep.mubr.msk.bf16.mxu1 %vm415_vm2, %v2191_v31 }
  0x40   : > { %2107 = vmatmul.mubr.msk.bf16.gmra.mrb[20].mxu0 %vm415_vm2, %v2176_v24  ;;  %2139 = vmatmul.mubr.msk.bf16.gmra.mrb[20].mxu1 %vm415_vm2, %v2192_v33 }
  0x41   : > { %2110 = vmatprep.mubr.msk.bf16.mxu0 %vm415_vm2, %v2177_v26  ;;  %2142 = vmatprep.mubr.msk.bf16.mxu1 %vm415_vm2, %v2193_v34 }
  0x48   : > { %2111 = vmatmul.mubr.msk.bf16.gmra.mrb[24].mxu0 %vm415_vm2, %v2178_v28  ;;  %2143 = vmatmul.mubr.msk.bf16.gmra.mrb[24].mxu1 %vm415_vm2, %v2194_v35 }
  0x49   : > { %2114 = vmatprep.mubr.msk.bf16.mxu0 %vm415_vm2, %v2179_v30  ;;  %2146 = vmatprep.mubr.msk.bf16.mxu1 %vm415_vm2, %v2195_v36 }
  0x50   : > { %2115 = vmatmul.mubr.msk.bf16.gmra.mrb[28].mxu0 %vm415_vm2, %v2180_v32  ;;  %2147 = vmatmul.mubr.msk.bf16.gmra.mrb[28].mxu1 %vm415_vm2, %v2196_v37 }
  0xeb   : > { %v2319_v38 = vpop.f32.mrb[0].mxu0  ;;  %v2353_v61 = vpop.f32.mrb[0].mxu1 }
  0xec   : > { %v2321_v39 = vpop.f32.mrb[1].mxu0  ;;  %v812_v45 = vsel %vm808_vm3, %v2319_v38, 0.0  ;;  %v2357_v0 = vpop.f32.mrb[1].mxu1 }
  0xed   : > { %v2323_v40 = vpop.f32.mrb[2].mxu0  ;;  %v809_v42 = vsel %vm808_vm3, %v2321_v39, 0.0  ;;  %4330 = vst [vmem:[#allocation3_spill] sm:$0xff] %v2357_v0  ;;  %v2363_v3 = vpop.f32.mrb[2].mxu1 }
  0xee   : > { %v2325_v41 = vpop.f32.mrb[3].mxu0  ;;  %v814_v47 = vsel %vm808_vm3, %v2323_v40, 0.0  ;;  %4331 = vst [vmem:[#allocation4_spill] sm:$0xff] %v2363_v3  ;;  %v2367_v6 = vpop.f32.mrb[3].mxu1 }
  0xef   : > { %v810_v43 = vsel %vm808_vm3, %v2325_v41, 0.0  ;;  %4332 = vst [vmem:[#allocation5_spill] sm:$0xff] %v2367_v6 }
  0xf0   : > { %v811_v44 = vadd.f32 %v810_v43, %v809_v42 }
  0xf2   : > { %v813_v46 = vadd.f32 %v812_v45, %v811_v44 }
  0xf3   : > { %v2335_v48 = vpop.f32.mrb[4].mxu0  ;;  %v2377_v13 = vpop.f32.mrb[4].mxu1 }
  0xf4   : > { %v2337_v49 = vpop.f32.mrb[5].mxu0  ;;  %v815_v50 = vadd.f32 %v814_v47, %v813_v46  ;;  %v820_v57 = vsel %vm808_vm3, %v2335_v48, 0.0  ;;  %v2381_v16 = vpop.f32.mrb[5].mxu1 }
  0xf5   : > { %v816_v51 = vsel %vm808_vm3, %v2337_v49, 0.0  ;;  %v2341_v52 = vpop.f32.mrb[6].mxu0  ;;  %4333 = vst [vmem:[#allocation6_spill] sm:$0xff] %v2381_v16  ;;  %v2387_v19 = vpop.f32.mrb[6].mxu1 }
  0xf6   : > { %v817_v53 = vadd.f32 %v816_v51, %v815_v50  ;;  %v2343_v54 = vpop.f32.mrb[7].mxu0  ;;  %v822_v59 = vsel %vm808_vm3, %v2341_v52, 0.0  ;;  %4334 = vst [vmem:[#allocation7_spill] sm:$0xff] %v2387_v19  ;;  %v2391_v22 = vpop.f32.mrb[7].mxu1 }
  0xf7   : > { %v818_v55 = vsel %vm808_vm3, %v2343_v54, 0.0  ;;  %4335 = vst [vmem:[#allocation8_spill] sm:$0xff] %v2391_v22 }
  0xf8   : > { %v819_v56 = vadd.f32 %v818_v55, %v817_v53 }
  0xfa   : > { %v821_v58 = vadd.f32 %v820_v57, %v819_v56 }
  0xfb   : > { %v2351_v60 = vpop.f32.mrb[8].mxu0  ;;  %v2401_v29 = vpop.f32.mrb[8].mxu1 }
  0xfc   : > { %v2355_v62 = vpop.f32.mrb[9].mxu0  ;;  %v823_v63 = vadd.f32 %v822_v59, %v821_v58  ;;  %v828_v9 = vsel %vm808_vm3, %v2351_v60, 0.0  ;;  %v2405_v32 = vpop.f32.mrb[9].mxu1 }
  0xfd   : > { %v824_v1 = vsel %vm808_vm3, %v2355_v62, 0.0  ;;  %v2361_v2 = vpop.f32.mrb[10].mxu0  ;;  %v2411_v35 = vpop.f32.mrb[10].mxu1 }
  0xfe   : > { %v825_v4 = vadd.f32 %v824_v1, %v823_v63  ;;  %v2365_v5 = vpop.f32.mrb[11].mxu0  ;;  %v830_v11 = vsel %vm808_vm3, %v2361_v2, 0.0  ;;  %v2415_v42 = vpop.f32.mrb[11].mxu1 }
  0xff   : > { %v826_v7 = vsel %vm808_vm3, %v2365_v5, 0.0 }
 0x100   : > { %v827_v8 = vadd.f32 %v826_v7, %v825_v4 }
 0x102   : > { %v829_v10 = vadd.f32 %v828_v9, %v827_v8 }
 0x103   : > { %v2375_v12 = vpop.f32.mrb[12].mxu0  ;;  %v2425_v51 = vpop.f32.mrb[12].mxu1 }
 0x104   : > { %v2379_v14 = vpop.f32.mrb[13].mxu0  ;;  %v831_v15 = vadd.f32 %v830_v11, %v829_v10  ;;  %v836_v25 = vsel %vm808_vm3, %v2375_v12, 0.0  ;;  %v2429_v56 = vpop.f32.mrb[13].mxu1 }
 0x105   : > { %v832_v17 = vsel %vm808_vm3, %v2379_v14, 0.0  ;;  %v2385_v18 = vpop.f32.mrb[14].mxu0  ;;  %v2435_v59 = vpop.f32.mrb[14].mxu1 }
 0x106   : > { %v833_v20 = vadd.f32 %v832_v17, %v831_v15  ;;  %v2389_v21 = vpop.f32.mrb[15].mxu0  ;;  %v838_v27 = vsel %vm808_vm3, %v2385_v18, 0.0  ;;  %v2439_v4 = vpop.f32.mrb[15].mxu1 }
 0x107   : > { %v834_v23 = vsel %vm808_vm3, %v2389_v21, 0.0 }
 0x108   : > { %v835_v24 = vadd.f32 %v834_v23, %v833_v20 }
 0x10a   : > { %v837_v26 = vadd.f32 %v836_v25, %v835_v24 }
 0x10b   : > { %v2399_v28 = vpop.f32.mrb[16].mxu0  ;;  %v2449_v17 = vpop.f32.mrb[16].mxu1 }
 0x10c   : > { %v2403_v30 = vpop.f32.mrb[17].mxu0  ;;  %v839_v31 = vadd.f32 %v838_v27, %v837_v26  ;;  %v844_v45 = vsel %vm808_vm3, %v2399_v28, 0.0  ;;  %v2453_v24 = vpop.f32.mrb[17].mxu1 }
 0x10d   : > { %v840_v33 = vsel %vm808_vm3, %v2403_v30, 0.0  ;;  %v2409_v34 = vpop.f32.mrb[18].mxu0  ;;  %v2459_v27 = vpop.f32.mrb[18].mxu1 }
 0x10e   : > { %v841_v36 = vadd.f32 %v840_v33, %v839_v31  ;;  %v2413_v37 = vpop.f32.mrb[19].mxu0  ;;  %v846_v47 = vsel %vm808_vm3, %v2409_v34, 0.0 }
 0x10f   : > { %v842_v43 = vsel %vm808_vm3, %v2413_v37, 0.0 }
 0x110   : > { %v843_v44 = vadd.f32 %v842_v43, %v841_v36  ;;  %v2463_v36 = vpop.f32.mrb[19].mxu1 }
 0x112   : > { %v845_v46 = vadd.f32 %v844_v45, %v843_v44 }
 0x113   : > { %v2423_v50 = vpop.f32.mrb[20].mxu0 }
 0x114   : > { %v2427_v53 = vpop.f32.mrb[21].mxu0  ;;  %v847_v55 = vadd.f32 %v846_v47, %v845_v46  ;;  %v852_v9 = vsel %vm808_vm3, %v2423_v50, 0.0 }
 0x115   : > { %v848_v57 = vsel %vm808_vm3, %v2427_v53, 0.0  ;;  %v2433_v58 = vpop.f32.mrb[22].mxu0 }
 0x116   : > { %v849_v63 = vadd.f32 %v848_v57, %v847_v55  ;;  %v2437_v1 = vpop.f32.mrb[23].mxu0  ;;  %v854_v11 = vsel %vm808_vm3, %v2433_v58, 0.0  ;;  %v2473_v57 = vpop.f32.mrb[20].mxu1 }
 0x117   : > { %v850_v7 = vsel %vm808_vm3, %v2437_v1, 0.0 }
 0x118   : > { %v851_v8 = vadd.f32 %v850_v7, %v849_v63 }
 0x11a   : > { %v853_v10 = vadd.f32 %v852_v9, %v851_v8  ;;  %v2477_v8 = vpop.f32.mrb[21].mxu1 }
 0x11b   : > { %v2447_v15 = vpop.f32.mrb[24].mxu0 }
 0x11c   : > { %4336 = vst [vmem:[#allocation9_spill] sm:$0xff] %v2447_v15  ;;  %v2451_v20 = vpop.f32.mrb[25].mxu0  ;;  %v855_v23 = vadd.f32 %v854_v11, %v853_v10  ;;  %v860_v45 = vsel %vm808_vm3, %v2447_v15, 0.0  ;;  %v2483_v11 = vpop.f32.mrb[22].mxu1 }
 0x11d   : > { %v856_v25 = vsel %vm808_vm3, %v2451_v20, 0.0  ;;  %v2457_v26 = vpop.f32.mrb[26].mxu0 }
 0x11e   : > { %4337 = vst [vmem:[#allocation10_spill] sm:$0xff] %v2457_v26  ;;  %v857_v31 = vadd.f32 %v856_v25, %v855_v23  ;;  %v2461_v33 = vpop.f32.mrb[27].mxu0  ;;  %v862_v47 = vsel %vm808_vm3, %v2457_v26, 0.0 }
 0x11f   : > { %4338 = vst [vmem:[#allocation11_spill] sm:$0xff] %v2461_v33  ;;  %v858_v43 = vsel %vm808_vm3, %v2461_v33, 0.0 }
 0x120   : > { %v859_v44 = vadd.f32 %v858_v43, %v857_v31  ;;  %v2487_v31 = vpop.f32.mrb[23].mxu1 }
 0x121   : > { %v2497_v26 = vpop.f32.mrb[24].mxu1 }
 0x122   : > { %v861_v46 = vadd.f32 %v860_v45, %v859_v44  ;;  %4343 = vst [vmem:[#allocation16_spill] sm:$0xff] %v2497_v26 }
 0x123   : > { %v2471_v55 = vpop.f32.mrb[28].mxu0 }
 0x124   : > { %4339 = vst [vmem:[#allocation12_spill] sm:$0xff] %v2471_v55  ;;  %v2475_v63 = vpop.f32.mrb[29].mxu0  ;;  %v863_v7 = vadd.f32 %v862_v47, %v861_v46  ;;  %v868_v45 = vsel %vm808_vm3, %v2471_v55, 0.0 }
 0x125   : > { %4340 = vst [vmem:[#allocation13_spill] sm:$0xff] %v2475_v63  ;;  %v864_v9 = vsel %vm808_vm3, %v2475_v63, 0.0  ;;  %v2481_v10 = vpop.f32.mrb[30].mxu0  ;;  %v872_v63 = vsel %vm808_vm3, %v2357_v0, 0.0  ;;  %v878_v0 = vsel %vm808_vm3, %v2363_v3, 0.0 }
 0x126   : > { %4341 = vst [vmem:[#allocation14_spill] sm:$0xff] %v2481_v10  ;;  %v865_v23 = vadd.f32 %v864_v9, %v863_v7  ;;  %v2485_v25 = vpop.f32.mrb[31].mxu0  ;;  %v870_v47 = vsel %vm808_vm3, %v2481_v10, 0.0  ;;  %v2499_v9 = vpop.f32.mrb[25].mxu1 }
 0x127   : > { %4342 = vst [vmem:[#allocation15_spill] sm:$0xff] %v2485_v25  ;;  %v866_v43 = vsel %vm808_vm3, %v2485_v25, 0.0  ;;  %v2501_v15 = vpop.f32.mrb[26].mxu1 }
 0x128   : > { %v867_v44 = vadd.f32 %v866_v43, %v865_v23  ;;  %4344 = vst [vmem:[#allocation17_spill] sm:$0xff] %v2501_v15  ;;  %v2503_v25 = vpop.f32.mrb[27].mxu1  ;;  %v874_v23 = vsel %vm808_vm3, %v2367_v6, 0.0 }
 0x129   : > { %4345 = vst [vmem:[#allocation18_spill] sm:$0xff] %v2503_v25 }
 0x12a   : > { %v869_v46 = vadd.f32 %v868_v45, %v867_v44  ;;  %v876_v44 = vsel %vm808_vm3, %v2353_v61, 0.0 }
 0x12c   : > { %v871_v7 = vadd.f32 %v870_v47, %v869_v46  ;;  %v880_v46 = vsel %vm808_vm3, %v2381_v16, 0.0  ;;  %v2513_v47 = vpop.f32.mrb[28].mxu1  ;;  %v886_v16 = vsel %vm808_vm3, %v2387_v19, 0.0 }
 0x12e   : > { %v873_v33 = vadd.f32 %v872_v63, %v871_v7  ;;  %v2515_v63 = vpop.f32.mrb[29].mxu1 }
 0x12f   : > { %4346 = vst [vmem:[#allocation19_spill] sm:$0xff] %v2515_v63  ;;  %v2517_v7 = vpop.f32.mrb[30].mxu1 }
 0x130   : > { %v875_v43 = vadd.f32 %v874_v23, %v873_v33  ;;  %v2519_v6 = vpop.f32.mrb[31].mxu1  ;;  %v882_v33 = vsel %vm808_vm3, %v2391_v22, 0.0  ;;  %v892_v22 = vsel %vm808_vm3, %v2401_v29, 0.0 }
 0x132   : > { %v877_v45 = vadd.f32 %v876_v44, %v875_v43  ;;  %v884_v43 = vsel %vm808_vm3, %v2377_v13, 0.0 }
 0x134   : > { %v879_v10 = vadd.f32 %v878_v0, %v877_v45  ;;  %v888_v0 = vsel %vm808_vm3, %v2405_v32, 0.0 }
 0x136   : > { %v881_v55 = vadd.f32 %v880_v46, %v879_v10  ;;  %v890_v10 = vsel %vm808_vm3, %v2415_v42, 0.0 }
 0x138   : > { %v883_v23 = vadd.f32 %v882_v33, %v881_v55  ;;  %v894_v33 = vsel %vm808_vm3, %v2411_v35, 0.0 }
 0x13a   : > { %v885_v44 = vadd.f32 %v884_v43, %v883_v23  ;;  %v896_v23 = vsel %vm808_vm3, %v2429_v56, 0.0 }
 0x13c   : > { %v887_v45 = vadd.f32 %v886_v16, %v885_v44  ;;  %v898_v16 = vsel %vm808_vm3, %v2439_v4, 0.0 }
 0x13e   : > { %v889_v3 = vadd.f32 %v888_v0, %v887_v45  ;;  %v900_v0 = vsel %vm808_vm3, %v2425_v51, 0.0  ;;  %v902_v45 = vsel %vm808_vm3, %v2435_v59, 0.0 }
 0x140   : > { %v891_v46 = vadd.f32 %v890_v10, %v889_v3 }
 0x142   : > { %v893_v55 = vadd.f32 %v892_v22, %v891_v46  ;;  %v904_v22 = vsel %vm808_vm3, %v2453_v24, 0.0 }
 0x144   : > { %v895_v43 = vadd.f32 %v894_v33, %v893_v55  ;;  %v906_v55 = vsel %vm808_vm3, %v2463_v36, 0.0 }
 0x146   : > { %v897_v19 = vadd.f32 %v896_v23, %v895_v43  ;;  %v908_v23 = vsel %vm808_vm3, %v2449_v17, 0.0  ;;  %v910_v43 = vsel %vm808_vm3, %v2459_v27, 0.0 }
 0x148   : > { %v899_v44 = vadd.f32 %v898_v16, %v897_v19  ;;  %v912_v16 = vsel %vm808_vm3, %v2477_v8, 0.0 }
 0x14a   : > { %v901_v3 = vadd.f32 %v900_v0, %v899_v44 }
 0x14c   : > { %v903_v10 = vadd.f32 %v902_v45, %v901_v3  ;;  %v914_v3 = vsel %vm808_vm3, %v2487_v31, 0.0 }
 0x14e   : > { %v905_v46 = vadd.f32 %v904_v22, %v903_v10  ;;  %v916_v22 = vsel %vm808_vm3, %v2473_v57, 0.0 }
 0x150   : > { %v907_v33 = vadd.f32 %v906_v55, %v905_v46  ;;  %v918_v46 = vsel %vm808_vm3, %v2483_v11, 0.0  ;;  %v920_v55 = vsel %vm808_vm3, %v2499_v9, 0.0 }
 0x152   : > { %v909_v19 = vadd.f32 %v908_v23, %v907_v33 }
 0x154   : > { %v911_v44 = vadd.f32 %v910_v43, %v909_v19  ;;  %v922_v19 = vsel %vm808_vm3, %v2503_v25, 0.0 }
 0x156   : > { %v913_v0 = vadd.f32 %v912_v16, %v911_v44  ;;  %v924_v16 = vsel %vm808_vm3, %v2497_v26, 0.0 }
 0x158   : > { %v915_v45 = vadd.f32 %v914_v3, %v913_v0  ;;  %v926_v0 = vsel %vm808_vm3, %v2501_v15, 0.0  ;;  %v928_v3 = vsel %vm808_vm3, %v2515_v63, 0.0 }
 0x15a   : > { %v917_v10 = vadd.f32 %v916_v22, %v915_v45 }
 0x15c   : > { %v919_v33 = vadd.f32 %v918_v46, %v917_v10  ;;  %v930_v10 = vsel %vm808_vm3, %v2519_v6, 0.0 }
 0x15e   : > { %v921_v23 = vadd.f32 %v920_v55, %v919_v33  ;;  %v932_v55 = vsel %vm808_vm3, %v2513_v47, 0.0 }
 0x160   : > { %v923_v43 = vadd.f32 %v922_v19, %v921_v23  ;;  %v934_v23 = vsel %vm808_vm3, %v2517_v7, 0.0 }
 0x162   : > { %v925_v44 = vadd.f32 %v924_v16, %v923_v43 }
 0x164   : > { %v927_v45 = vadd.f32 %v926_v0, %v925_v44 }
 0x166   : > { %v929_v22 = vadd.f32 %v928_v3, %v927_v45 }
 0x168   : > { %v931_v46 = vadd.f32 %v930_v10, %v929_v22  ;;  %v4354_v10 = vld [vmem:[#allocation13_spill] sm:$0xff] }
 0x16a   : > { %v933_v33 = vadd.f32 %v932_v55, %v931_v46  ;;  %v4356_v46 = vld [vmem:[#allocation15_spill] sm:$0xff]  ;;  %v4357_v55 = vld [vmem:[#allocation12_spill] sm:$0xff] }
 0x16c   : > { %v935_v19 = vadd.f32 %v934_v23, %v933_v33  ;;  %v4359_v23 = vld [vmem:[#allocation14_spill] sm:$0xff] }
 0x16e   : > { %v936_v43 = vrot.slane %v935_v19, 4 }
 0x170   : > { %v937_v16 = vadd.f32 %v936_v43, %v935_v19  ;;  %v4361_v43 = vld [vmem:[#allocation3_spill] sm:$0xff] }
 0x172   : > { %v938_v15 = vrot.slane %v937_v16, 2 }
 0x174   : > { %v939_v26 = vadd.f32 %v938_v15, %v937_v16 }
 0x176   : > { %v940_v25 = vrot.slane %v939_v26, 1 }
 0x178   : > { %v941_v63 = vadd.f32 %v940_v25, %v939_v26  ;;  %v4351_v26 = vld [vmem:[#allocation11_spill] sm:$0xff]  ;;  %v4352_v25 = vld [vmem:[#allocation9_spill] sm:$0xff] }
 0x17a   : > { %v2575_v44 = vmul.f32 0.001953125, %v941_v63  ;;  %v4353_v63 = vld [vmem:[#allocation10_spill] sm:$0xff] }
 0x17c   : > { %v2579_v0 = vsub.f32 %v2321_v39, %v2575_v44  ;;  %v2583_v3 = vsub.f32 %v2325_v41, %v2575_v44  ;;  %v2587_v45 = vsub.f32 %v2319_v38, %v2575_v44  ;;  %v2591_v22 = vsub.f32 %v2323_v40, %v2575_v44 }
 0x17d   : > { %v2595_v15 = vsub.f32 %v2337_v49, %v2575_v44  ;;  %v2599_v39 = vsub.f32 %v2343_v54, %v2575_v44  ;;  %v2603_v41 = vsub.f32 %v2335_v48, %v2575_v44  ;;  %v2607_v38 = vsub.f32 %v2341_v52, %v2575_v44 }
 0x17e   : > { %4347 = vst [vmem:[#allocation20_spill] sm:$0xff] %v2579_v0  ;;  %4348 = vst [vmem:[#allocation21_spill] sm:$0xff] %v2583_v3  ;;  %v2611_v40 = vsub.f32 %v2355_v62, %v2575_v44  ;;  %v2615_v49 = vsub.f32 %v2365_v5, %v2575_v44  ;;  %v2619_v54 = vsub.f32 %v2351_v60, %v2575_v44 }
 0x17f   : > { %4349 = vst [vmem:[#allocation22_spill] sm:$0xff] %v2587_v45  ;;  %4350 = vst [vmem:[#allocation23_spill] sm:$0xff] %v2591_v22  ;;  %v2623_v48 = vsub.f32 %v2361_v2, %v2575_v44  ;;  %v2627_v52 = vsub.f32 %v2379_v14, %v2575_v44  ;;  %v2631_v62 = vsub.f32 %v2389_v21, %v2575_v44 }
 0x180   : > { %v2635_v5 = vsub.f32 %v2375_v12, %v2575_v44  ;;  %v2639_v60 = vsub.f32 %v2385_v18, %v2575_v44  ;;  %v2643_v2 = vsub.f32 %v2403_v30, %v2575_v44  ;;  %v2647_v14 = vsub.f32 %v2413_v37, %v2575_v44 }
 0x181   : > { %v2651_v21 = vsub.f32 %v2399_v28, %v2575_v44  ;;  %v2655_v12 = vsub.f32 %v2409_v34, %v2575_v44  ;;  %v2659_v18 = vsub.f32 %v2427_v53, %v2575_v44  ;;  %v2663_v30 = vsub.f32 %v2437_v1, %v2575_v44 }
 0x182   : > { %v2667_v37 = vsub.f32 %v2423_v50, %v2575_v44  ;;  %v2671_v28 = vsub.f32 %v2433_v58, %v2575_v44  ;;  %v2675_v34 = vsub.f32 %v2451_v20, %v2575_v44  ;;  %v2679_v53 = vsub.f32 %v4351_v26, %v2575_v44  ;;  %v4362_v26 = vld [vmem:[#allocation5_spill] sm:$0xff] }
 0x183   : > { %v2683_v1 = vsub.f32 %v4352_v25, %v2575_v44  ;;  %v2687_v50 = vsub.f32 %v4353_v63, %v2575_v44  ;;  %v2691_v58 = vsub.f32 %v4354_v10, %v2575_v44  ;;  %v2695_v20 = vsub.f32 %v4356_v46, %v2575_v44  ;;  %v4364_v10 = vld [vmem:[#allocation4_spill] sm:$0xff] }
 0x184   : > { %v2699_v33 = vsub.f32 %v4357_v55, %v2575_v44  ;;  %v2703_v19 = vsub.f32 %v4359_v23, %v2575_v44  ;;  %v2707_v16 = vsub.f32 %v4361_v43, %v2575_v44  ;;  %v2711_v25 = vsub.f32 %v4362_v26, %v2575_v44  ;;  %v4365_v55 = vld [vmem:[#allocation6_spill] sm:$0xff] }
 0x185   : > { %4355 = vst [vmem:[#allocation11_spill] sm:$0xff] %v2691_v58  ;;  %v2715_v63 = vsub.f32 %v2353_v61, %v2575_v44  ;;  %v2719_v46 = vsub.f32 %v4364_v10, %v2575_v44  ;;  %v2723_v23 = vsub.f32 %v4365_v55, %v2575_v44  ;;  %v2731_v26 = vsub.f32 %v2377_v13, %v2575_v44 }
 0x186   : > { %4358 = vst [vmem:[#allocation9_spill] sm:$0xff] %v2699_v33  ;;  %4360 = vst [vmem:[#allocation10_spill] sm:$0xff] %v2703_v19  ;;  %v4366_v19 = vld [vmem:[#allocation8_spill] sm:$0xff]  ;;  %v2739_v10 = vsub.f32 %v2405_v32, %v2575_v44  ;;  %v2743_v55 = vsub.f32 %v2415_v42, %v2575_v44  ;;  %v2751_v13 = vsub.f32 %v2411_v35, %v2575_v44 }
 0x187   : > { %4363 = vst [vmem:[#allocation13_spill] sm:$0xff] %v2711_v25  ;;  %v2727_v43 = vsub.f32 %v4366_v19, %v2575_v44  ;;  %v4367_v25 = vld [vmem:[#allocation7_spill] sm:$0xff]  ;;  %v2747_v19 = vsub.f32 %v2401_v29, %v2575_v44  ;;  %v2759_v32 = vsub.f32 %v2439_v4, %v2575_v44  ;;  %v2763_v42 = vsub.f32 %v2425_v51, %v2575_v44 }
 0x188   : > { %v2735_v61 = vsub.f32 %v4367_v25, %v2575_v44  ;;  %4368 = vst [vmem:[#allocation15_spill] sm:$0xff] %v2743_v55  ;;  %4370 = vst [vmem:[#allocation14_spill] sm:$0xff] %v2751_v13  ;;  %v2755_v25 = vsub.f32 %v2429_v56, %v2575_v44  ;;  %v2767_v29 = vsub.f32 %v2435_v59, %v2575_v44 }
 0x189   : > { %4369 = vst [vmem:[#allocation12_spill] sm:$0xff] %v2747_v19  ;;  %4372 = vst [vmem:[#allocation5_spill] sm:$0xff] %v2759_v32  ;;  %v2771_v35 = vsub.f32 %v2453_v24, %v2575_v44  ;;  %v2775_v56 = vsub.f32 %v2463_v36, %v2575_v44  ;;  %v2779_v4 = vsub.f32 %v2449_v17, %v2575_v44 }
 0x18a   : > { %4371 = vst [vmem:[#allocation3_spill] sm:$0xff] %v2755_v25  ;;  %4373 = vst [vmem:[#allocation4_spill] sm:$0xff] %v2763_v42  ;;  %v2783_v51 = vsub.f32 %v2459_v27, %v2575_v44  ;;  %v2787_v59 = vsub.f32 %v2477_v8, %v2575_v44  ;;  %v2791_v24 = vsub.f32 %v2487_v31, %v2575_v44 }
 0x18b   : > { %4374 = vst [vmem:[#allocation6_spill] sm:$0xff] %v2767_v29  ;;  %4375 = vst [vmem:[#allocation8_spill] sm:$0xff] %v2771_v35  ;;  %v2795_v36 = vsub.f32 %v2473_v57, %v2575_v44  ;;  %v2799_v17 = vsub.f32 %v2483_v11, %v2575_v44  ;;  %v2803_v27 = vsub.f32 %v2499_v9, %v2575_v44 }
 0x18c   : > { %4376 = vst [vmem:[#allocation7_spill] sm:$0xff] %v2775_v56  ;;  %4377 = vst [vmem:[#allocation24_spill] sm:$0xff] %v2779_v4  ;;  %v2823_v9 = vsub.f32 %v2519_v6, %v2575_v44  ;;  %v1011_v6 = vmul.f32 %v2591_v22, %v2591_v22  ;;  %v1014_v22 = vmul.f32 %v2603_v41, %v2603_v41 }
 0x18d   : > { %4378 = vst [vmem:[#allocation25_spill] sm:$0xff] %v2783_v51  ;;  %4379 = vst [vmem:[#allocation26_spill] sm:$0xff] %v2787_v59  ;;  %v4382_v51 = vld [vmem:[#allocation18_spill] sm:$0xff]  ;;  %v4383_v59 = vld [vmem:[#allocation16_spill] sm:$0xff] }
 0x18e   : > { %4380 = vst [vmem:[#allocation27_spill] sm:$0xff] %v2791_v24  ;;  %4381 = vst [vmem:[#allocation28_spill] sm:$0xff] %v2795_v36  ;;  %v2807_v8 = vsub.f32 %v4382_v51, %v2575_v44  ;;  %v2811_v31 = vsub.f32 %v4383_v59, %v2575_v44  ;;  %v4384_v24 = vld [vmem:[#allocation17_spill] sm:$0xff]  ;;  %v4386_v36 = vld [vmem:[#allocation19_spill] sm:$0xff]  ;;  %v2827_v51 = vsub.f32 %v2513_v47, %v2575_v44 }
 0x18f   : > { %v2815_v57 = vsub.f32 %v4384_v24, %v2575_v44  ;;  %v2819_v11 = vsub.f32 %v4386_v36, %v2575_v44  ;;  %4388 = vst [vmem:[#allocation17_spill] sm:$0xff] %v2823_v9  ;;  %v2831_v59 = vsub.f32 %v2517_v7, %v2575_v44  ;;  %v1008_v24 = vmul.f32 %v2579_v0, %v2579_v0 }
 0x190   : > { %4389 = vst [vmem:[#allocation19_spill] sm:$0xff] %v2827_v51  ;;  %v1010_v36 = vmul.f32 %v2587_v45, %v2587_v45  ;;  %v1012_v7 = vmul.f32 %v2595_v15, %v2595_v15 }
 0x191   : > { %4385 = vst [vmem:[#allocation18_spill] sm:$0xff] %v2815_v57  ;;  %4387 = vst [vmem:[#allocation16_spill] sm:$0xff] %v2819_v11  ;;  %v1009_v57 = vmul.f32 %v2583_v3, %v2583_v3  ;;  %v1072_v9 = vsel %vm808_vm3, %v1008_v24, 0.0  ;;  %v1013_v3 = vmul.f32 %v2599_v39, %v2599_v39 }
 0x192   : > { %4390 = vst [vmem:[#allocation29_spill] sm:$0xff] %v2831_v59  ;;  %v1075_v44 = vsel %vm808_vm3, %v1010_v36, 0.0  ;;  %v1077_v59 = vsel %vm808_vm3, %v1011_v6, 0.0  ;;  %v1079_v24 = vsel %vm808_vm3, %v1012_v7, 0.0  ;;  %v1083_v36 = vsel %vm808_vm3, %v1014_v22, 0.0 }
 0x193   : > { %v1073_v47 = vsel %vm808_vm3, %v1009_v57, 0.0  ;;  %v1015_v57 = vmul.f32 %v2607_v38, %v2607_v38  ;;  %v1020_v22 = vmul.f32 %v2627_v52, %v2627_v52 }
 0x194   : > { %v1074_v51 = vadd.f32 %v1073_v47, %v1072_v9  ;;  %v1081_v9 = vsel %vm808_vm3, %v1013_v3, 0.0  ;;  %v1019_v3 = vmul.f32 %v2623_v48, %v2623_v48 }
 0x196   : > { %v1076_v0 = vadd.f32 %v1075_v44, %v1074_v51  ;;  %v1016_v51 = vmul.f32 %v2611_v40, %v2611_v40 }
 0x198   : > { %v1078_v45 = vadd.f32 %v1077_v59, %v1076_v0  ;;  %v1017_v0 = vmul.f32 %v2615_v49, %v2615_v49  ;;  %v1085_v59 = vsel %vm808_vm3, %v1015_v57, 0.0  ;;  %v1087_v7 = vsel %vm808_vm3, %v1016_v51, 0.0 }
 0x199   : > { %v1021_v57 = vmul.f32 %v2631_v62, %v2631_v62  ;;  %v1022_v51 = vmul.f32 %v2635_v5, %v2635_v5 }
 0x19a   : > { %v1080_v11 = vadd.f32 %v1079_v24, %v1078_v45  ;;  %v1018_v45 = vmul.f32 %v2619_v54, %v2619_v54 }
 0x19c   : > { %v1082_v47 = vadd.f32 %v1081_v9, %v1080_v11  ;;  %v1089_v11 = vsel %vm808_vm3, %v1017_v0, 0.0  ;;  %v1023_v0 = vmul.f32 %v2639_v60, %v2639_v60 }
 0x19e   : > { %v1084_v44 = vadd.f32 %v1083_v36, %v1082_v47  ;;  %v1091_v47 = vsel %vm808_vm3, %v1018_v45, 0.0  ;;  %v1024_v45 = vmul.f32 %v2643_v2, %v2643_v2 }
 0x1a0   : > { %v1086_v6 = vadd.f32 %v1085_v59, %v1084_v44  ;;  %v1093_v44 = vsel %vm808_vm3, %v1019_v3, 0.0  ;;  %v1025_v3 = vmul.f32 %v2647_v14, %v2647_v14 }
 0x1a2   : > { %v1088_v24 = vadd.f32 %v1087_v7, %v1086_v6  ;;  %v1095_v6 = vsel %vm808_vm3, %v1020_v22, 0.0  ;;  %v1026_v22 = vmul.f32 %v2651_v21, %v2651_v21 }
 0x1a4   : > { %v1090_v9 = vadd.f32 %v1089_v11, %v1088_v24  ;;  %v1097_v24 = vsel %vm808_vm3, %v1021_v57, 0.0  ;;  %v1027_v57 = vmul.f32 %v2655_v12, %v2655_v12 }
 0x1a6   : > { %v1092_v36 = vadd.f32 %v1091_v47, %v1090_v9  ;;  %v1099_v9 = vsel %vm808_vm3, %v1022_v51, 0.0  ;;  %v1028_v51 = vmul.f32 %v2659_v18, %v2659_v18 }
 0x1a8   : > { %v1094_v59 = vadd.f32 %v1093_v44, %v1092_v36  ;;  %v1101_v36 = vsel %vm808_vm3, %v1023_v0, 0.0  ;;  %v1029_v0 = vmul.f32 %v2663_v30, %v2663_v30 }
 0x1aa   : > { %v1096_v7 = vadd.f32 %v1095_v6, %v1094_v59  ;;  %v1103_v59 = vsel %vm808_vm3, %v1024_v45, 0.0  ;;  %v1030_v45 = vmul.f32 %v2667_v37, %v2667_v37 }
 0x1ac   : > { %v1098_v11 = vadd.f32 %v1097_v24, %v1096_v7  ;;  %v1105_v7 = vsel %vm808_vm3, %v1025_v3, 0.0  ;;  %v1031_v3 = vmul.f32 %v2671_v28, %v2671_v28 }
 0x1ae   : > { %v1100_v47 = vadd.f32 %v1099_v9, %v1098_v11  ;;  %v1107_v11 = vsel %vm808_vm3, %v1026_v22, 0.0  ;;  %v1032_v22 = vmul.f32 %v2675_v34, %v2675_v34 }
 0x1b0   : > { %v1102_v44 = vadd.f32 %v1101_v36, %v1100_v47  ;;  %v1109_v47 = vsel %vm808_vm3, %v1027_v57, 0.0  ;;  %v1033_v57 = vmul.f32 %v2679_v53, %v2679_v53 }
 0x1b2   : > { %v1104_v6 = vadd.f32 %v1103_v59, %v1102_v44  ;;  %v1111_v44 = vsel %vm808_vm3, %v1028_v51, 0.0  ;;  %v1034_v51 = vmul.f32 %v2683_v1, %v2683_v1 }
 0x1b4   : > { %v1106_v24 = vadd.f32 %v1105_v7, %v1104_v6  ;;  %v1113_v6 = vsel %vm808_vm3, %v1029_v0, 0.0  ;;  %v1035_v0 = vmul.f32 %v2687_v50, %v2687_v50 }
 0x1b6   : > { %v1108_v9 = vadd.f32 %v1107_v11, %v1106_v24  ;;  %v1115_v24 = vsel %vm808_vm3, %v1030_v45, 0.0  ;;  %v1036_v45 = vmul.f32 %v2691_v58, %v2691_v58 }
 0x1b8   : > { %v1110_v36 = vadd.f32 %v1109_v47, %v1108_v9  ;;  %v1117_v9 = vsel %vm808_vm3, %v1031_v3, 0.0  ;;  %v1037_v3 = vmul.f32 %v2695_v20, %v2695_v20 }
 0x1ba   : > { %v1112_v59 = vadd.f32 %v1111_v44, %v1110_v36  ;;  %v1119_v36 = vsel %vm808_vm3, %v1032_v22, 0.0  ;;  %v1038_v22 = vmul.f32 %v2699_v33, %v2699_v33 }
 0x1bc   : > { %v1114_v7 = vadd.f32 %v1113_v6, %v1112_v59  ;;  %v1121_v59 = vsel %vm808_vm3, %v1033_v57, 0.0  ;;  %v4391_v57 = vld [vmem:[#allocation10_spill] sm:$0xff] }
 0x1be   : > { %v1116_v11 = vadd.f32 %v1115_v24, %v1114_v7  ;;  %v1123_v7 = vsel %vm808_vm3, %v1034_v51, 0.0  ;;  %v1040_v51 = vmul.f32 %v2707_v16, %v2707_v16 }
 0x1c0   : > { %v1118_v47 = vadd.f32 %v1117_v9, %v1116_v11  ;;  %v1125_v11 = vsel %vm808_vm3, %v1035_v0, 0.0  ;;  %v4392_v0 = vld [vmem:[#allocation13_spill] sm:$0xff] }
 0x1c2   : > { %v1120_v44 = vadd.f32 %v1119_v36, %v1118_v47  ;;  %v1127_v47 = vsel %vm808_vm3, %v1036_v45, 0.0  ;;  %v1042_v45 = vmul.f32 %v2715_v63, %v2715_v63 }
 0x1c4   : > { %v1122_v6 = vadd.f32 %v1121_v59, %v1120_v44  ;;  %v1039_v44 = vmul.f32 %v4391_v57, %v4391_v57  ;;  %v1129_v59 = vsel %vm808_vm3, %v1037_v3, 0.0  ;;  %v1043_v3 = vmul.f32 %v2719_v46, %v2719_v46 }
 0x1c6   : > { %v1124_v24 = vadd.f32 %v1123_v7, %v1122_v6  ;;  %v1131_v6 = vsel %vm808_vm3, %v1038_v22, 0.0  ;;  %v1139_v22 = vsel %vm808_vm3, %v1042_v45, 0.0  ;;  %v1048_v45 = vmul.f32 %v2739_v10, %v2739_v10 }
 0x1c8   : > { %v1126_v9 = vadd.f32 %v1125_v11, %v1124_v24  ;;  %v1041_v24 = vmul.f32 %v4392_v0, %v4392_v0  ;;  %v1133_v11 = vsel %vm808_vm3, %v1039_v44, 0.0  ;;  %v1045_v44 = vmul.f32 %v2727_v43, %v2727_v43 }
 0x1ca   : > { %v1128_v36 = vadd.f32 %v1127_v47, %v1126_v9  ;;  %v1135_v9 = vsel %vm808_vm3, %v1040_v51, 0.0 }
 0x1cc   : > { %v1130_v58 = vadd.f32 %v1129_v59, %v1128_v36  ;;  %v1137_v36 = vsel %vm808_vm3, %v1041_v24, 0.0  ;;  %v1047_v24 = vmul.f32 %v2735_v61, %v2735_v61 }
 0x1ce   : > { %v1132_v7 = vadd.f32 %v1131_v6, %v1130_v58  ;;  %v1044_v58 = vmul.f32 %v2723_v23, %v2723_v23 }
 0x1d0   : > { %v1134_v33 = vadd.f32 %v1133_v11, %v1132_v7  ;;  %v1141_v7 = vsel %vm808_vm3, %v1043_v3, 0.0  ;;  %v1143_v51 = vsel %vm808_vm3, %v1044_v58, 0.0  ;;  %v1049_v3 = vmul.f32 %v2743_v55, %v2743_v55 }
 0x1d1   : > { %v1050_v58 = vmul.f32 %v2747_v19, %v2747_v19 }
 0x1d2   : > { %v1136_v47 = vadd.f32 %v1135_v9, %v1134_v33  ;;  %v1046_v33 = vmul.f32 %v2731_v26, %v2731_v26 }
 0x1d4   : > { %v1138_v59 = vadd.f32 %v1137_v36, %v1136_v47  ;;  %v1145_v47 = vsel %vm808_vm3, %v1045_v44, 0.0  ;;  %v1051_v44 = vmul.f32 %v2751_v13, %v2751_v13 }
 0x1d6   : > { %v1140_v6 = vadd.f32 %v1139_v22, %v1138_v59  ;;  %v1147_v59 = vsel %vm808_vm3, %v1046_v33, 0.0  ;;  %v1052_v33 = vmul.f32 %v2755_v25, %v2755_v25 }
 0x1d8   : > { %v1142_v11 = vadd.f32 %v1141_v7, %v1140_v6  ;;  %v1149_v6 = vsel %vm808_vm3, %v1047_v24, 0.0  ;;  %v1053_v24 = vmul.f32 %v2759_v32, %v2759_v32 }
 0x1da   : > { %v1144_v9 = vadd.f32 %v1143_v51, %v1142_v11  ;;  %v1151_v11 = vsel %vm808_vm3, %v1048_v45, 0.0  ;;  %v1054_v45 = vmul.f32 %v2763_v42, %v2763_v42 }
 0x1dc   : > { %v1146_v36 = vadd.f32 %v1145_v47, %v1144_v9  ;;  %v1153_v9 = vsel %vm808_vm3, %v1049_v3, 0.0  ;;  %v1055_v3 = vmul.f32 %v2767_v29, %v2767_v29 }
 0x1de   : > { %v1148_v22 = vadd.f32 %v1147_v59, %v1146_v36  ;;  %v1155_v36 = vsel %vm808_vm3, %v1050_v58, 0.0  ;;  %v1056_v58 = vmul.f32 %v2771_v35, %v2771_v35 }
 0x1e0   : > { %v1150_v7 = vadd.f32 %v1149_v6, %v1148_v22  ;;  %v1157_v22 = vsel %vm808_vm3, %v1051_v44, 0.0  ;;  %v1057_v44 = vmul.f32 %v2775_v56, %v2775_v56 }
 0x1e2   : > { %v1152_v51 = vadd.f32 %v1151_v11, %v1150_v7  ;;  %v1159_v7 = vsel %vm808_vm3, %v1052_v33, 0.0  ;;  %v1058_v33 = vmul.f32 %v2779_v4, %v2779_v4 }
 0x1e4   : > { %v1154_v47 = vadd.f32 %v1153_v9, %v1152_v51  ;;  %v1161_v51 = vsel %vm808_vm3, %v1053_v24, 0.0  ;;  %v4393_v24 = vld [vmem:[#allocation25_spill] sm:$0xff] }
 0x1e6   : > { %v1156_v59 = vadd.f32 %v1155_v36, %v1154_v47  ;;  %v1163_v47 = vsel %vm808_vm3, %v1054_v45, 0.0  ;;  %v4394_v45 = vld [vmem:[#allocation26_spill] sm:$0xff] }
 0x1e8   : > { %v1158_v6 = vadd.f32 %v1157_v22, %v1156_v59  ;;  %v1165_v59 = vsel %vm808_vm3, %v1055_v3, 0.0  ;;  %v4395_v3 = vld [vmem:[#allocation27_spill] sm:$0xff] }
 0x1ea   : > { %v1160_v11 = vadd.f32 %v1159_v7, %v1158_v6  ;;  %v1167_v6 = vsel %vm808_vm3, %v1056_v58, 0.0  ;;  %v4396_v58 = vld [vmem:[#allocation28_spill] sm:$0xff] }
 0x1ec   : > { %v1162_v9 = vadd.f32 %v1161_v51, %v1160_v11  ;;  %v1059_v11 = vmul.f32 %v4393_v24, %v4393_v24  ;;  %v1169_v51 = vsel %vm808_vm3, %v1057_v44, 0.0  ;;  %v1063_v44 = vmul.f32 %v2799_v17, %v2799_v17 }
 0x1ee   : > { %v1164_v36 = vadd.f32 %v1163_v47, %v1162_v9  ;;  %v1060_v9 = vmul.f32 %v4394_v45, %v4394_v45  ;;  %v1171_v47 = vsel %vm808_vm3, %v1058_v33, 0.0 }
 0x1f0   : > { %v1166_v22 = vadd.f32 %v1165_v59, %v1164_v36  ;;  %v1061_v36 = vmul.f32 %v4395_v3, %v4395_v3  ;;  %v1173_v59 = vsel %vm808_vm3, %v1059_v11, 0.0  ;;  %v1181_v11 = vsel %vm808_vm3, %v1063_v44, 0.0  ;;  %v4399_v44 = vld [vmem:[#allocation17_spill] sm:$0xff] }
 0x1f2   : > { %v1168_v7 = vadd.f32 %v1167_v6, %v1166_v22  ;;  %v1062_v22 = vmul.f32 %v4396_v58, %v4396_v58  ;;  %v1175_v6 = vsel %vm808_vm3, %v1060_v9, 0.0 }
 0x1f4   : > { %v1170_v35 = vadd.f32 %v1169_v51, %v1168_v7  ;;  %v1177_v7 = vsel %vm808_vm3, %v1061_v36, 0.0  ;;  %v1179_v33 = vsel %vm808_vm3, %v1062_v22, 0.0  ;;  %v4397_v36 = vld [vmem:[#allocation18_spill] sm:$0xff]  ;;  %v4398_v22 = vld [vmem:[#allocation16_spill] sm:$0xff] }
 0x1f6   : > { %v1172_v56 = vadd.f32 %v1171_v47, %v1170_v35  ;;  %v1064_v35 = vmul.f32 %v2803_v27, %v2803_v27 }
 0x1f8   : > { %v1174_v4 = vadd.f32 %v1173_v59, %v1172_v56  ;;  %v1065_v56 = vmul.f32 %v2807_v8, %v2807_v8  ;;  %v1183_v9 = vsel %vm808_vm3, %v1064_v35, 0.0  ;;  %v4400_v35 = vld [vmem:[#allocation19_spill] sm:$0xff] }
 0x1fa   : > { %v1176_v24 = vadd.f32 %v1175_v6, %v1174_v4  ;;  %v1066_v4 = vmul.f32 %v2811_v31, %v2811_v31 }
 0x1fc   : > { %v1178_v51 = vadd.f32 %v1177_v7, %v1176_v24  ;;  %v1067_v24 = vmul.f32 %v4397_v36, %v4397_v36  ;;  %v1185_v7 = vsel %vm808_vm3, %v1065_v56, 0.0  ;;  %v4401_v56 = vld [vmem:[#allocation29_spill] sm:$0xff] }
 0x1fe   : > { %v1180_v47 = vadd.f32 %v1179_v33, %v1178_v51  ;;  %v1068_v51 = vmul.f32 %v4398_v22, %v4398_v22  ;;  %v1187_v33 = vsel %vm808_vm3, %v1066_v4, 0.0 }
 0x200   : > { %v1182_v59 = vadd.f32 %v1181_v11, %v1180_v47  ;;  %v1069_v47 = vmul.f32 %v4399_v44, %v4399_v44  ;;  %v1189_v11 = vsel %vm808_vm3, %v1067_v24, 0.0 }
 0x202   : > { %v1184_v6 = vadd.f32 %v1183_v9, %v1182_v59  ;;  %v1070_v59 = vmul.f32 %v4400_v35, %v4400_v35  ;;  %v1191_v9 = vsel %vm808_vm3, %v1068_v51, 0.0 }
 0x204   : > { %v1186_v3 = vadd.f32 %v1185_v7, %v1184_v6  ;;  %v1071_v6 = vmul.f32 %v4401_v56, %v4401_v56  ;;  %v1193_v7 = vsel %vm808_vm3, %v1069_v47, 0.0  ;;  %v4410_v47 = vld [vmem:[#allocation21_spill] sm:$0xff] }
 0x206   : > { %v1188_v45 = vadd.f32 %v1187_v33, %v1186_v3  ;;  %v1195_v3 = vsel %vm808_vm3, %v1070_v59, 0.0  ;;  %v1197_v33 = vsel %vm808_vm3, %v1071_v6, 0.0  ;;  %v3075_v59 = vstv %s1272_s24 }
 0x208   : > { %v1190_v29 = vadd.f32 %v1189_v11, %v1188_v45 }
 0x20a   : > { %v1192_v42 = vadd.f32 %v1191_v9, %v1190_v29 }
 0x20c   : > { %v1194_v32 = vadd.f32 %v1193_v7, %v1192_v42 }
 0x20e   : > { %v1196_v4 = vadd.f32 %v1195_v3, %v1194_v32 }
 0x210   : > { %v1198_v25 = vadd.f32 %v1197_v33, %v1196_v4 }
 0x212   : > { %v1199_v24 = vrot.slane %v1198_v25, 4 }
 0x214   : > { %v1200_v45 = vadd.f32 %v1199_v24, %v1198_v25 }
 0x216   : > { %v1201_v11 = vrot.slane %v1200_v45, 2 }
 0x218   : > { %v1202_v13 = vadd.f32 %v1201_v11, %v1200_v45  ;;  %v4413_v45 = vld [vmem:[#allocation11_spill] sm:$0xff]  ;;  %v4414_v11 = vld [vmem:[#allocation9_spill] sm:$0xff] }
 0x21a   : > { %v1203_v19 = vrot.slane %v1202_v13, 1 }
 0x21c   : > { %v1204_v55 = vadd.f32 %v1203_v19, %v1202_v13 }
 0x21e   : > { %v1205_v51 = vmul.f32 0.001953125, %v1204_v55 }
 0x220   : > { %v1206_v29 = vadd.f32 1e-05, %v1205_v51 }
 0x222   : > { %2197 = vrsqrt.f32 %v1206_v29 }
 0x22c   : > { %v3025_v9 = vpop.eup %2197 }
 0x22d   : > { %v3029_v42 = vmul.f32 %v3025_v9, %v4396_v58  ;;  %v3033_v32 = vmul.f32 %v3025_v9, %v2799_v17  ;;  %v3037_v25 = vmul.f32 %v3025_v9, %v2803_v27  ;;  %v3041_v55 = vmul.f32 %v3025_v9, %v2807_v8  ;;  %v4409_v58 = vld [vmem:[#allocation20_spill] sm:$0xff] }
 0x22e   : > { %v3045_v19 = vmul.f32 %v3025_v9, %v2811_v31  ;;  %v3049_v13 = vmul.f32 %v3025_v9, %v4397_v36  ;;  %v3053_v17 = vmul.f32 %v3025_v9, %v4398_v22  ;;  %v3057_v27 = vmul.f32 %v3025_v9, %v4399_v44  ;;  %v4411_v44 = vld [vmem:[#allocation22_spill] sm:$0xff] }
 0x22f   : > { %4402 = vst [vmem:[#allocation10_spill] sm:$0xff] %v3041_v55  ;;  %v3061_v8 = vmul.f32 %v3025_v9, %v4400_v35  ;;  %v3065_v31 = vmul.f32 %v3025_v9, %v4401_v56  ;;  %v3069_v36 = vmul.f32 %v3025_v9, %v4409_v58  ;;  %v3073_v22 = vmul.f32 %v3025_v9, %v4410_v47  ;;  %v4412_v35 = vld [vmem:[#allocation23_spill] sm:$0xff]  ;;  %v4423_v47 = vld [vmem:[#allocation12_spill] sm:$0xff] }
 0x230   : > { %4403 = vst [vmem:[#allocation13_spill] sm:$0xff] %v3045_v19  ;;  %4404 = vst [vmem:[#allocation28_spill] sm:$0xff] %v3049_v13  ;;  %v3079_v6 = vmul.f32 %v3025_v9, %v4411_v44  ;;  %v3083_v7 = vmul.f32 %v3025_v9, %v4412_v35  ;;  %v3087_v56 = vmul.f32 %v3025_v9, %v2595_v15  ;;  %v4422_v58 = vld [vmem:[#allocation15_spill] sm:$0xff]  ;;  %v4424_v44 = vld [vmem:[#allocation14_spill] sm:$0xff] }
 0x231   : > { %4405 = vst [vmem:[#allocation18_spill] sm:$0xff] %v3053_v17  ;;  %4406 = vst [vmem:[#allocation16_spill] sm:$0xff] %v3057_v27  ;;  %v3091_v3 = vmul.f32 %v3025_v9, %v2599_v39  ;;  %v3095_v4 = vmul.f32 %v3025_v9, %v2603_v41  ;;  %v3099_v33 = vmul.f32 %v3025_v9, %v2607_v38  ;;  %v4426_v35 = vld [vmem:[#allocation3_spill] sm:$0xff]  ;;  %v4434_v17 = vld [vmem:[#allocation24_spill] sm:$0xff]  ;;  %vm1273_vm4 = vcmp.ge.f32.partialorder %v3069_v36, 0.0 }
 0x232   : > { %4407 = vst [vmem:[#allocation17_spill] sm:$0xff] %v3061_v8  ;;  %4408 = vst [vmem:[#allocation19_spill] sm:$0xff] %v3065_v31  ;;  %v3103_v24 = vmul.f32 %v3025_v9, %v2611_v40  ;;  %v3107_v15 = vmul.f32 %v3025_v9, %v2615_v49  ;;  %v3111_v39 = vmul.f32 %v3025_v9, %v2619_v54  ;;  %v4430_v31 = vld [vmem:[#allocation6_spill] sm:$0xff]  ;;  %v4432_v8 = vld [vmem:[#allocation8_spill] sm:$0xff]  ;;  %vm1274_vm5 = vcmp.ge.f32.partialorder %v3073_v22, 0.0 }
 0x233   : > { %v3115_v41 = vmul.f32 %v3025_v9, %v2623_v48  ;;  %v3119_v38 = vmul.f32 %v3025_v9, %v2627_v52  ;;  %v3123_v40 = vmul.f32 %v3025_v9, %v2631_v62  ;;  %v3127_v49 = vmul.f32 %v3025_v9, %v2635_v5  ;;  %v4433_v27 = vld [vmem:[#allocation7_spill] sm:$0xff]  ;;  %v4435_v13 = vld [vmem:[#allocation25_spill] sm:$0xff]  ;;  %v4436_v19 = vld [vmem:[#allocation26_spill] sm:$0xff] }
 0x234   : > { %v3131_v54 = vmul.f32 %v3025_v9, %v2639_v60  ;;  %v3135_v48 = vmul.f32 %v3025_v9, %v2643_v2  ;;  %v3139_v52 = vmul.f32 %v3025_v9, %v2647_v14  ;;  %v3143_v62 = vmul.f32 %v3025_v9, %v2651_v21  ;;  %v4437_v55 = vld [vmem:[#allocation27_spill] sm:$0xff] }
 0x235   : > { %v3147_v5 = vmul.f32 %v3025_v9, %v2655_v12  ;;  %v3151_v60 = vmul.f32 %v3025_v9, %v2659_v18  ;;  %v3155_v2 = vmul.f32 %v3025_v9, %v2663_v30  ;;  %v3159_v14 = vmul.f32 %v3025_v9, %v2667_v37 }
 0x236   : > { %v3163_v21 = vmul.f32 %v3025_v9, %v2671_v28  ;;  %v3167_v12 = vmul.f32 %v3025_v9, %v2675_v34  ;;  %v3171_v18 = vmul.f32 %v3025_v9, %v2679_v53  ;;  %v3175_v30 = vmul.f32 %v3025_v9, %v2683_v1 }
 0x237   : > { %v3179_v37 = vmul.f32 %v3025_v9, %v2687_v50  ;;  %v3183_v28 = vmul.f32 %v3025_v9, %v4413_v45  ;;  %v3187_v34 = vmul.f32 %v3025_v9, %v2695_v20  ;;  %v3191_v53 = vmul.f32 %v3025_v9, %v4414_v11  ;;  %v4427_v45 = vld [vmem:[#allocation5_spill] sm:$0xff]  ;;  %v4428_v11 = vld [vmem:[#allocation4_spill] sm:$0xff] }
 0x238   : > { %v3195_v1 = vmul.f32 %v3025_v9, %v4391_v57  ;;  %v3199_v50 = vmul.f32 %v3025_v9, %v2707_v16  ;;  %v3203_v51 = vmul.f32 %v3025_v9, %v4392_v0  ;;  %v3207_v20 = vmul.f32 %v3025_v9, %v2715_v63 }
 0x239   : > { %v3211_v29 = vmul.f32 %v3025_v9, %v2719_v46  ;;  %v3215_v57 = vmul.f32 %v3025_v9, %v2723_v23  ;;  %v3219_v16 = vmul.f32 %v3025_v9, %v2727_v43  ;;  %v3223_v0 = vmul.f32 %v3025_v9, %v2731_v26 }
 0x23a   : > { %4415 = vst [vmem:[#allocation29_spill] sm:$0xff] %v3207_v20  ;;  %v3227_v63 = vmul.f32 %v3025_v9, %v2735_v61  ;;  %v3231_v46 = vmul.f32 %v3025_v9, %v2739_v10  ;;  %v3235_v23 = vmul.f32 %v3025_v9, %v4422_v58  ;;  %v3239_v43 = vmul.f32 %v3025_v9, %v4423_v47 }
 0x23b   : > { %4416 = vst [vmem:[#allocation20_spill] sm:$0xff] %v3211_v29  ;;  %4417 = vst [vmem:[#allocation21_spill] sm:$0xff] %v3215_v57  ;;  %v3243_v26 = vmul.f32 %v3025_v9, %v4424_v44  ;;  %v3247_v61 = vmul.f32 %v3025_v9, %v4426_v35  ;;  %v3251_v10 = vmul.f32 %v3025_v9, %v4427_v45  ;;  %vm1275_vm6 = vcmp.ge.f32.partialorder %v3079_v6, 0.0 }
 0x23c   : > { %4418 = vst [vmem:[#allocation22_spill] sm:$0xff] %v3219_v16  ;;  %4419 = vst [vmem:[#allocation23_spill] sm:$0xff] %v3223_v0  ;;  %v3255_v58 = vmul.f32 %v3025_v9, %v4428_v11  ;;  %v3259_v47 = vmul.f32 %v3025_v9, %v4430_v31  ;;  %v3263_v44 = vmul.f32 %v3025_v9, %v4432_v8  ;;  %vm1276_vm7 = vcmp.ge.f32.partialorder %v3083_v7, 0.0 }
 0x23d   : > { %4420 = vst [vmem:[#allocation11_spill] sm:$0xff] %v3227_v63  ;;  %4421 = vst [vmem:[#allocation9_spill] sm:$0xff] %v3231_v46  ;;  %v3267_v35 = vmul.f32 %v3025_v9, %v4433_v27  ;;  %v3271_v45 = vmul.f32 %v3025_v9, %v4434_v17  ;;  %v3275_v11 = vmul.f32 %v3025_v9, %v4435_v13  ;;  %vm1277_vm8 = vcmp.ge.f32.partialorder %v3087_v56, 0.0 }
 0x23e   : > { %4425 = vst [vmem:[#allocation15_spill] sm:$0xff] %v3243_v26  ;;  %4429 = vst [vmem:[#allocation12_spill] sm:$0xff] %v3255_v58  ;;  %v3279_v31 = vmul.f32 %v3025_v9, %v4436_v19  ;;  %v3283_v8 = vmul.f32 %v3025_v9, %v4437_v55  ;;  %v3287_v27 = vmul.f32 %v3075_v59, %v3069_v36  ;;  %vm1278_vm9 = vcmp.ge.f32.partialorder %v3091_v3, 0.0 }
 0x23f   : > { %4431 = vst [vmem:[#allocation14_spill] sm:$0xff] %v3259_v47  ;;  %v3291_v17 = vmul.f32 %v3075_v59, %v3073_v22  ;;  %v3295_v13 = vmul.f32 %v3075_v59, %v3079_v6  ;;  %v3299_v19 = vmul.f32 %v3075_v59, %v3083_v7  ;;  %v3303_v9 = vmul.f32 %v3075_v59, %v3087_v56 }
 0x240   : > { %4438 = vst [vmem:[#allocation3_spill] sm:$0xff] %v3287_v27  ;;  %v3307_v55 = vmul.f32 %v3075_v59, %v3091_v3  ;;  %v3311_v27 = vmul.f32 %v3075_v59, %v3095_v4  ;;  %vm1279_vm10 = vcmp.ge.f32.partialorder %v3095_v4, 0.0  ;;  %vm1280_vm11 = vcmp.ge.f32.partialorder %v3099_v33, 0.0 }
 0x241   : > { %4439 = vst [vmem:[#allocation5_spill] sm:$0xff] %v3291_v17  ;;  %4440 = vst [vmem:[#allocation4_spill] sm:$0xff] %v3295_v13  ;;  %v3315_v17 = vmul.f32 %v3075_v59, %v3099_v33  ;;  %v3319_v13 = vmul.f32 %v3075_v59, %v3103_v24  ;;  %vm1281_vm12 = vcmp.ge.f32.partialorder %v3103_v24, 0.0  ;;  %vm1282_vm13 = vcmp.ge.f32.partialorder %v3107_v15, 0.0 }
 0x242   : > { %4441 = vst [vmem:[#allocation6_spill] sm:$0xff] %v3299_v19  ;;  %4442 = vst [vmem:[#allocation8_spill] sm:$0xff] %v3303_v9  ;;  %v3323_v19 = vmul.f32 %v3075_v59, %v3107_v15  ;;  %v3327_v9 = vmul.f32 %v3075_v59, %v3111_v39  ;;  %vm1283_vm14 = vcmp.ge.f32.partialorder %v3111_v39, 0.0  ;;  %vm1284_vm15 = vcmp.ge.f32.partialorder %v3115_v41, 0.0 }
 0x243   : > { %4443 = vst [vmem:[#allocation7_spill] sm:$0xff] %v3307_v55  ;;  %4444 = vst [vmem:[#allocation24_spill] sm:$0xff] %v3311_v27  ;;  %v3331_v55 = vmul.f32 %v3075_v59, %v3115_v41  ;;  %v3335_v27 = vmul.f32 %v3075_v59, %v3119_v38  ;;  %vm1317_vm0 = vcmp.ge.f32.partialorder %v3247_v61, 0.0  ;;  %vm1318_vm1 = vcmp.ge.f32.partialorder %v3251_v10, 0.0 }
 0x244   : > { %4445 = vst [vmem:[#allocation25_spill] sm:$0xff] %v3315_v17  ;;  %4446 = vst [vmem:[#allocation26_spill] sm:$0xff] %v3319_v13  ;;  %v3339_v17 = vmul.f32 %v3075_v59, %v3123_v40  ;;  %v3343_v13 = vmul.f32 %v3075_v59, %v3127_v49  ;;  %vm1322_vm3 = vcmp.ge.f32.partialorder %v3267_v35, 0.0  ;;  %vm1323_vm2 = vcmp.ge.f32.partialorder %v3271_v45, 0.0 }
 0x245   : > { %4447 = vst [vmem:[#allocation27_spill] sm:$0xff] %v3323_v19  ;;  %4448 = vst [vmem:[#allocation30_spill] sm:$0xff] %v3327_v9  ;;  %v3347_v19 = vmul.f32 %v3075_v59, %v3131_v54  ;;  %v3351_v9 = vmul.f32 %v3075_v59, %v3135_v48 }
 0x246   : > { %4449 = vst [vmem:[#allocation31_spill] sm:$0xff] %v3331_v55  ;;  %4450 = vst [vmem:[#allocation32_spill] sm:$0xff] %v3335_v27  ;;  %v3355_v55 = vmul.f32 %v3075_v59, %v3139_v52  ;;  %v3359_v27 = vmul.f32 %v3075_v59, %v3143_v62 }
 0x247   : > { %4451 = vst [vmem:[#allocation33_spill] sm:$0xff] %v3339_v17  ;;  %4452 = vst [vmem:[#allocation34_spill] sm:$0xff] %v3351_v9  ;;  %v3363_v17 = vmul.f32 %v3075_v59, %v3147_v5  ;;  %v3371_v9 = vmul.f32 %v3075_v59, %v3151_v60 }
 0x248   : > { %4453 = vst [vmem:[#allocation35_spill] sm:$0xff] %v3355_v55  ;;  %4454 = vst [vmem:[#allocation36_spill] sm:$0xff] %v3359_v27  ;;  %v3375_v55 = vmul.f32 %v3075_v59, %v3155_v2  ;;  %v3379_v27 = vmul.f32 %v3075_v59, %v3159_v14 }
 0x249   : > { %4455 = vst [vmem:[#allocation37_spill] sm:$0xff] %v3363_v17  ;;  %4456 = vst [vmem:[#allocation38_spill] sm:$0xff] %v3371_v9  ;;  %v3383_v17 = vmul.f32 %v3075_v59, %v3163_v21  ;;  %v3391_v9 = vmul.f32 %v3075_v59, %v3167_v12 }
 0x24a   : > { %4457 = vst [vmem:[#allocation39_spill] sm:$0xff] %v3375_v55  ;;  %4458 = vst [vmem:[#allocation40_spill] sm:$0xff] %v3379_v27  ;;  %v3395_v55 = vmul.f32 %v3075_v59, %v3171_v18  ;;  %v3399_v27 = vmul.f32 %v3075_v59, %v3175_v30 }
 0x24b   : > { %4459 = vst [vmem:[#allocation41_spill] sm:$0xff] %v3383_v17  ;;  %4460 = vst [vmem:[#allocation42_spill] sm:$0xff] %v3391_v9  ;;  %v3403_v17 = vmul.f32 %v3075_v59, %v3179_v37  ;;  %v3411_v9 = vmul.f32 %v3075_v59, %v3183_v28 }
 0x24c   : > { %4461 = vst [vmem:[#allocation43_spill] sm:$0xff] %v3395_v55  ;;  %4462 = vst [vmem:[#allocation44_spill] sm:$0xff] %v3399_v27  ;;  %v3415_v55 = vmul.f32 %v3075_v59, %v3187_v34  ;;  %v3419_v27 = vmul.f32 %v3075_v59, %v3191_v53 }
 0x24d   : > { %4463 = vst [vmem:[#allocation45_spill] sm:$0xff] %v3403_v17  ;;  %4464 = vst [vmem:[#allocation46_spill] sm:$0xff] %v3411_v9  ;;  %v3423_v17 = vmul.f32 %v3075_v59, %v3195_v1  ;;  %v3431_v9 = vmul.f32 %v3075_v59, %v3199_v50 }
 0x24e   : > { %4465 = vst [vmem:[#allocation47_spill] sm:$0xff] %v3415_v55  ;;  %4466 = vst [vmem:[#allocation48_spill] sm:$0xff] %v3419_v27  ;;  %v3435_v55 = vmul.f32 %v3075_v59, %v3203_v51  ;;  %v3439_v27 = vmul.f32 %v3075_v59, %v3207_v20 }
 0x24f   : > { %4467 = vst [vmem:[#allocation49_spill] sm:$0xff] %v3423_v17  ;;  %4468 = vst [vmem:[#allocation50_spill] sm:$0xff] %v3431_v9  ;;  %v3443_v17 = vmul.f32 %v3075_v59, %v3211_v29  ;;  %v3451_v9 = vmul.f32 %v3075_v59, %v3215_v57 }
 0x250   : > { %4469 = vst [vmem:[#allocation51_spill] sm:$0xff] %v3435_v55  ;;  %4470 = vst [vmem:[#allocation52_spill] sm:$0xff] %v3439_v27  ;;  %v3455_v55 = vmul.f32 %v3075_v59, %v3219_v16  ;;  %v3459_v27 = vmul.f32 %v3075_v59, %v3223_v0 }
 0x251   : > { %4471 = vst [vmem:[#allocation53_spill] sm:$0xff] %v3443_v17  ;;  %4472 = vst [vmem:[#allocation54_spill] sm:$0xff] %v3451_v9  ;;  %v3463_v17 = vmul.f32 %v3075_v59, %v3227_v63  ;;  %v3471_v9 = vmul.f32 %v3075_v59, %v3231_v46 }
 0x252   : > { %4473 = vst [vmem:[#allocation55_spill] sm:$0xff] %v3455_v55  ;;  %4474 = vst [vmem:[#allocation56_spill] sm:$0xff] %v3459_v27  ;;  %v3475_v55 = vmul.f32 %v3075_v59, %v3235_v23  ;;  %v3479_v27 = vmul.f32 %v3075_v59, %v3239_v43 }
 0x253   : > { %4475 = vst [vmem:[#allocation57_spill] sm:$0xff] %v3463_v17  ;;  %4476 = vst [vmem:[#allocation58_spill] sm:$0xff] %v3471_v9  ;;  %v3483_v17 = vmul.f32 %v3075_v59, %v3243_v26  ;;  %v3491_v9 = vmul.f32 %v3075_v59, %v3247_v61  ;;  %v4508_v26 = vld [vmem:[#allocation5_spill] sm:$0xff] }
 0x254   : > { %4477 = vst [vmem:[#allocation59_spill] sm:$0xff] %v3475_v55  ;;  %4478 = vst [vmem:[#allocation60_spill] sm:$0xff] %v3479_v27  ;;  %v3495_v55 = vmul.f32 %v3075_v59, %v3251_v10  ;;  %v3499_v27 = vmul.f32 %v3075_v59, %v3255_v58  ;;  %v4510_v58 = vld [vmem:[#allocation6_spill] sm:$0xff] }
 0x255   : > { %4479 = vst [vmem:[#allocation61_spill] sm:$0xff] %v3483_v17  ;;  %4480 = vst [vmem:[#allocation62_spill] sm:$0xff] %v3491_v9  ;;  %v3503_v17 = vmul.f32 %v3075_v59, %v3259_v47  ;;  %v3511_v9 = vmul.f32 %v3075_v59, %v3263_v44  ;;  %v3611_v47 = vsel %vm1276_vm7, %v3083_v7, %v4510_v58  ;;  %vm1326_vm7 = vcmp.ge.f32.partialorder %v3283_v8, 0.0 }
 0x256   : > { %4481 = vst [vmem:[#allocation63_spill] sm:$0xff] %v3495_v55  ;;  %4482 = vst [vmem:[#allocation64_spill] sm:$0xff] %v3499_v27  ;;  %v3515_v55 = vmul.f32 %v3075_v59, %v3267_v35  ;;  %v3519_v27 = vmul.f32 %v3075_v59, %v3271_v45 }
 0x257   : > { %4483 = vst [vmem:[#allocation65_spill] sm:$0xff] %v3503_v17  ;;  %4484 = vst [vmem:[#allocation66_spill] sm:$0xff] %v3511_v9  ;;  %v3523_v17 = vmul.f32 %v3075_v59, %v3275_v11  ;;  %v3531_v9 = vmul.f32 %v3075_v59, %v3279_v31 }
 0x258   : > { %4485 = vst [vmem:[#allocation67_spill] sm:$0xff] %v3515_v55  ;;  %4486 = vst [vmem:[#allocation68_spill] sm:$0xff] %v3519_v27  ;;  %v3535_v55 = vmul.f32 %v3075_v59, %v3283_v8  ;;  %v3539_v27 = vmul.f32 %v3075_v59, %v3029_v42 }
 0x259   : > { %4487 = vst [vmem:[#allocation69_spill] sm:$0xff] %v3523_v17  ;;  %4488 = vst [vmem:[#allocation70_spill] sm:$0xff] %v3531_v9  ;;  %v3543_v17 = vmul.f32 %v3075_v59, %v3033_v32  ;;  %v3551_v9 = vmul.f32 %v3075_v59, %v3037_v25 }
 0x25a   : > { %4489 = vst [vmem:[#allocation71_spill] sm:$0xff] %v3535_v55  ;;  %4490 = vst [vmem:[#allocation72_spill] sm:$0xff] %v3539_v27  ;;  %v4493_v55 = vld [vmem:[#allocation10_spill] sm:$0xff]  ;;  %v4495_v27 = vld [vmem:[#allocation13_spill] sm:$0xff] }
 0x25b   : > { %4491 = vst [vmem:[#allocation73_spill] sm:$0xff] %v3543_v17  ;;  %4492 = vst [vmem:[#allocation74_spill] sm:$0xff] %v3551_v9  ;;  %v3555_v29 = vmul.f32 %v3075_v59, %v4493_v55  ;;  %v3559_v20 = vmul.f32 %v3075_v59, %v4495_v27  ;;  %v4497_v17 = vld [vmem:[#allocation28_spill] sm:$0xff]  ;;  %v4499_v9 = vld [vmem:[#allocation18_spill] sm:$0xff] }
 0x25c   : > { %v3563_v57 = vmul.f32 %v3075_v59, %v4497_v17  ;;  %v3571_v63 = vmul.f32 %v3075_v59, %v4499_v9 }
 0x25d   : > { %4494 = vst [vmem:[#allocation10_spill] sm:$0xff] %v3555_v29  ;;  %4496 = vst [vmem:[#allocation13_spill] sm:$0xff] %v3559_v20  ;;  %v4501_v29 = vld [vmem:[#allocation16_spill] sm:$0xff]  ;;  %v4503_v20 = vld [vmem:[#allocation17_spill] sm:$0xff] }
 0x25e   : > { %4498 = vst [vmem:[#allocation28_spill] sm:$0xff] %v3563_v57  ;;  %4500 = vst [vmem:[#allocation18_spill] sm:$0xff] %v3571_v63  ;;  %v3575_v0 = vmul.f32 %v3075_v59, %v4501_v29  ;;  %v3579_v16 = vmul.f32 %v3075_v59, %v4503_v20  ;;  %v4505_v57 = vld [vmem:[#allocation19_spill] sm:$0xff] }
 0x25f   : > { %v3583_v46 = vmul.f32 %v3075_v59, %v4505_v57  ;;  %v4507_v63 = vld [vmem:[#allocation3_spill] sm:$0xff]  ;;  %v3599_v59 = vsel %vm1274_vm5, %v3073_v22, %v4508_v26  ;;  %vm1324_vm5 = vcmp.ge.f32.partialorder %v3275_v11, 0.0  ;;  %v4514_v26 = vld [vmem:[#allocation25_spill] sm:$0xff] }
 0x260   : > { %4502 = vst [vmem:[#allocation16_spill] sm:$0xff] %v3575_v0  ;;  %4504 = vst [vmem:[#allocation17_spill] sm:$0xff] %v3579_v16  ;;  %v3593_v0 = vsel %vm1273_vm4, %v3069_v36, %v4507_v63  ;;  %vm1321_vm4 = vcmp.ge.f32.partialorder %v3263_v44, 0.0  ;;  %v4511_v36 = vld [vmem:[#allocation8_spill] sm:$0xff]  ;;  %v3639_v58 = vsel %vm1280_vm11, %v3099_v33, %v4514_v26  ;;  %vm4558_vm11 = vcmp.ge.f32.partialorder %v3199_v50, 0.0 }
 0x261   : > { %4506 = vst [vmem:[#allocation19_spill] sm:$0xff] %v3583_v46  ;;  %v4509_v46 = vld [vmem:[#allocation4_spill] sm:$0xff]  ;;  %v3621_v22 = vsel %vm1277_vm8, %v3087_v56, %v4511_v36  ;;  %vm1327_vm8 = vcmp.ge.f32.partialorder %v3029_v42, 0.0  ;;  %v4515_v56 = vld [vmem:[#allocation26_spill] sm:$0xff] }
 0x262   : > { %v3605_v16 = vsel %vm1275_vm6, %v3079_v6, %v4509_v46  ;;  %v4512_v6 = vld [vmem:[#allocation7_spill] sm:$0xff]  ;;  %v4513_v63 = vld [vmem:[#allocation24_spill] sm:$0xff]  ;;  %vm1325_vm6 = vcmp.ge.f32.partialorder %v3279_v31, 0.0  ;;  %v4517_v36 = vld [vmem:[#allocation30_spill] sm:$0xff] }
 0x263   : > { %v3627_v7 = vsel %vm1278_vm9, %v3091_v3, %v4512_v6  ;;  %v3633_v46 = vsel %vm1279_vm10, %v3095_v4, %v4513_v63  ;;  %v3649_v3 = vsel %vm1281_vm12, %v3103_v24, %v4515_v56  ;;  %v4516_v4 = vld [vmem:[#allocation27_spill] sm:$0xff]  ;;  %v3661_v6 = vsel %vm1283_vm14, %v3111_v39, %v4517_v36  ;;  %v4519_v24 = vld [vmem:[#allocation32_spill] sm:$0xff]  ;;  %v4521_v39 = vld [vmem:[#allocation33_spill] sm:$0xff] }
 0x264   : > { %v3655_v33 = vsel %vm1282_vm13, %v3107_v15, %v4516_v4  ;;  %v4518_v63 = vld [vmem:[#allocation31_spill] sm:$0xff]  ;;  %vm4520_vm9 = vcmp.ge.f32.partialorder %v3119_v38, 0.0  ;;  %vm4522_vm14 = vcmp.ge.f32.partialorder %v3123_v40, 0.0  ;;  %vm4524_vm13 = vcmp.ge.f32.partialorder %v3131_v54, 0.0  ;;  %v4531_v36 = vld [vmem:[#allocation37_spill] sm:$0xff] }
 0x265   : > { %v3667_v26 = vsel %vm1284_vm15, %v3115_v41, %v4518_v63  ;;  %v3677_v15 = vsel %vm4520_vm9, %v3119_v38, %v4519_v24  ;;  %v3683_v41 = vsel %vm4522_vm14, %v3123_v40, %v4521_v39  ;;  %vm4523_vm15 = vcmp.ge.f32.partialorder %v3127_v49, 0.0  ;;  %v4525_v38 = vld [vmem:[#allocation34_spill] sm:$0xff] }
 0x266   : > { %v3689_v56 = vsel %vm4523_vm15, %v3127_v49, %v3343_v13  ;;  %v3695_v4 = vsel %vm4524_vm13, %v3131_v54, %v3347_v19  ;;  %vm1333_vm9 = vcmp.ge.f32.partialorder %v4499_v9, 0.0  ;;  %vm1334_vm12 = vcmp.ge.f32.partialorder %v4501_v29, 0.0  ;;  %v4527_v49 = vld [vmem:[#allocation35_spill] sm:$0xff]  ;;  %v4529_v13 = vld [vmem:[#allocation36_spill] sm:$0xff] }
 0x267   : > { %vm4526_vm10 = vcmp.ge.f32.partialorder %v3135_v48, 0.0  ;;  %vm4528_vm15 = vcmp.ge.f32.partialorder %v3139_v52, 0.0  ;;  %vm4530_vm13 = vcmp.ge.f32.partialorder %v3143_v62, 0.0  ;;  %vm4532_vm14 = vcmp.ge.f32.partialorder %v3147_v5, 0.0 }
 0x268   : > { %v3705_v40 = vsel %vm4526_vm10, %v3135_v48, %v4525_v38  ;;  %v3711_v54 = vsel %vm4528_vm15, %v3139_v52, %v4527_v49  ;;  %v3717_v19 = vsel %vm4530_vm13, %v3143_v62, %v4529_v13  ;;  %v3723_v63 = vsel %vm4532_vm14, %v3147_v5, %v4531_v36  ;;  %v4533_v48 = vld [vmem:[#allocation38_spill] sm:$0xff]  ;;  %v4535_v52 = vld [vmem:[#allocation39_spill] sm:$0xff]  ;;  %v4537_v62 = vld [vmem:[#allocation40_spill] sm:$0xff] }
 0x269   : > { %vm4534_vm10 = vcmp.ge.f32.partialorder %v3151_v60, 0.0  ;;  %vm4536_vm15 = vcmp.ge.f32.partialorder %v3155_v2, 0.0  ;;  %vm4538_vm13 = vcmp.ge.f32.partialorder %v3159_v14, 0.0  ;;  %v4539_v5 = vld [vmem:[#allocation41_spill] sm:$0xff]  ;;  %vm4540_vm14 = vcmp.ge.f32.partialorder %v3163_v21, 0.0 }
 0x26a   : > { %v3729_v24 = vsel %vm4534_vm10, %v3151_v60, %v4533_v48  ;;  %v3735_v39 = vsel %vm4536_vm15, %v3155_v2, %v4535_v52  ;;  %v3741_v38 = vsel %vm4538_vm13, %v3159_v14, %v4537_v62  ;;  %v3747_v49 = vsel %vm4540_vm14, %v3163_v21, %v4539_v5  ;;  %v4541_v60 = vld [vmem:[#allocation42_spill] sm:$0xff]  ;;  %v4543_v2 = vld [vmem:[#allocation43_spill] sm:$0xff]  ;;  %v4545_v14 = vld [vmem:[#allocation44_spill] sm:$0xff] }
 0x26b   : > { %vm4542_vm10 = vcmp.ge.f32.partialorder %v3167_v12, 0.0  ;;  %vm4544_vm15 = vcmp.ge.f32.partialorder %v3171_v18, 0.0  ;;  %vm4546_vm13 = vcmp.ge.f32.partialorder %v3175_v30, 0.0  ;;  %v4547_v21 = vld [vmem:[#allocation45_spill] sm:$0xff]  ;;  %vm4548_vm14 = vcmp.ge.f32.partialorder %v3179_v37, 0.0 }
 0x26c   : > { %v3753_v13 = vsel %vm4542_vm10, %v3167_v12, %v4541_v60  ;;  %v3759_v36 = vsel %vm4544_vm15, %v3171_v18, %v4543_v2  ;;  %v3765_v48 = vsel %vm4546_vm13, %v3175_v30, %v4545_v14  ;;  %v3771_v52 = vsel %vm4548_vm14, %v3179_v37, %v4547_v21  ;;  %v4549_v12 = vld [vmem:[#allocation46_spill] sm:$0xff]  ;;  %v4551_v18 = vld [vmem:[#allocation47_spill] sm:$0xff]  ;;  %v4553_v30 = vld [vmem:[#allocation48_spill] sm:$0xff] }
 0x26d   : > { %vm4550_vm10 = vcmp.ge.f32.partialorder %v3183_v28, 0.0  ;;  %vm4552_vm15 = vcmp.ge.f32.partialorder %v3187_v34, 0.0  ;;  %vm4554_vm13 = vcmp.ge.f32.partialorder %v3191_v53, 0.0  ;;  %v4555_v37 = vld [vmem:[#allocation49_spill] sm:$0xff]  ;;  %vm4556_vm14 = vcmp.ge.f32.partialorder %v3195_v1, 0.0 }
 0x26e   : > { %v3777_v62 = vsel %vm4550_vm10, %v3183_v28, %v4549_v12  ;;  %v3783_v5 = vsel %vm4552_vm15, %v3187_v34, %v4551_v18  ;;  %v3789_v60 = vsel %vm4554_vm13, %v3191_v53, %v4553_v30  ;;  %v3795_v2 = vsel %vm4556_vm14, %v3195_v1, %v4555_v37  ;;  %v4557_v28 = vld [vmem:[#allocation50_spill] sm:$0xff]  ;;  %v4560_v34 = vld [vmem:[#allocation51_spill] sm:$0xff]  ;;  %v4563_v53 = vld [vmem:[#allocation52_spill] sm:$0xff] }
 0x26f   : > { %vm1722_vm10 = vcmask 257024   ;;  %v3801_v14 = vsel %vm4558_vm11, %v3199_v50, %v4557_v28  ;;  %vm4561_vm15 = vcmp.ge.f32.partialorder %v3203_v51, 0.0  ;;  %v4564_v12 = vld [vmem:[#allocation29_spill] sm:$0xff]  ;;  %v4568_v30 = vld [vmem:[#allocation20_spill] sm:$0xff]  ;;  %v4571_v50 = vld [vmem:[#allocation54_spill] sm:$0xff] }
 0x270   : > { %4559 = vst [vmem:[#allocation3_spill] sm:$0xff] %v3801_v14  ;;  %v3807_v21 = vsel %vm4561_vm15, %v3203_v51, %v4560_v34  ;;  %vm4565_vm13 = vcmp.ge.f32.partialorder %v4564_v12, 0.0  ;;  %v4567_v1 = vld [vmem:[#allocation53_spill] sm:$0xff]  ;;  %vm4569_vm14 = vcmp.ge.f32.partialorder %v4568_v30, 0.0  ;;  %v4575_v51 = vld [vmem:[#allocation55_spill] sm:$0xff]  ;;  %v4576_v34 = vld [vmem:[#allocation22_spill] sm:$0xff] }
 0x271   : > { %4562 = vst [vmem:[#allocation5_spill] sm:$0xff] %v3807_v21  ;;  %v3813_v18 = vsel %vm4565_vm13, %v4564_v12, %v4563_v53  ;;  %v3819_v37 = vsel %vm4569_vm14, %v4568_v30, %v4567_v1  ;;  %v4572_v28 = vld [vmem:[#allocation21_spill] sm:$0xff]  ;;  %vm4577_vm15 = vcmp.ge.f32.partialorder %v4576_v34, 0.0  ;;  %v4578_v53 = vld [vmem:[#allocation56_spill] sm:$0xff]  ;;  %v4579_v12 = vld [vmem:[#allocation23_spill] sm:$0xff] }
 0x272   : > { %4566 = vst [vmem:[#allocation4_spill] sm:$0xff] %v3813_v18  ;;  %4570 = vst [vmem:[#allocation6_spill] sm:$0xff] %v3819_v37  ;;  %vm4573_vm11 = vcmp.ge.f32.partialorder %v4572_v28, 0.0  ;;  %v3831_v21 = vsel %vm4577_vm15, %v4576_v34, %v4575_v51  ;;  %vm4580_vm13 = vcmp.ge.f32.partialorder %v4579_v12, 0.0  ;;  %v4581_v1 = vld [vmem:[#allocation57_spill] sm:$0xff]  ;;  %v4582_v30 = vld [vmem:[#allocation11_spill] sm:$0xff] }
 0x273   : > { %v3825_v14 = vsel %vm4573_vm11, %v4572_v28, %v4571_v50  ;;  %v3837_v18 = vsel %vm4580_vm13, %v4579_v12, %v4578_v53  ;;  %vm4583_vm14 = vcmp.ge.f32.partialorder %v4582_v30, 0.0  ;;  %v4585_v50 = vld [vmem:[#allocation58_spill] sm:$0xff]  ;;  %v4586_v28 = vld [vmem:[#allocation9_spill] sm:$0xff]  ;;  %v4588_v51 = vld [vmem:[#allocation59_spill] sm:$0xff]  ;;  %vm4589_vm15 = vcmp.ge.f32.partialorder %v3235_v23, 0.0 }
 0x274   : > { %4574 = vst [vmem:[#allocation8_spill] sm:$0xff] %v3825_v14  ;;  %v3843_v37 = vsel %vm4583_vm14, %v4582_v30, %v4581_v1  ;;  %vm4587_vm11 = vcmp.ge.f32.partialorder %v4586_v28, 0.0  ;;  %v3855_v34 = vsel %vm4589_vm15, %v3235_v23, %v4588_v51  ;;  %v4590_v53 = vld [vmem:[#allocation60_spill] sm:$0xff]  ;;  %vm4591_vm13 = vcmp.ge.f32.partialorder %v3239_v43, 0.0  ;;  %v4593_v1 = vld [vmem:[#allocation61_spill] sm:$0xff]  ;;  %v4594_v30 = vld [vmem:[#allocation15_spill] sm:$0xff] }
 0x275   : > { %4584 = vst [vmem:[#allocation7_spill] sm:$0xff] %v3843_v37  ;;  %v3849_v14 = vsel %vm4587_vm11, %v4586_v28, %v4585_v50  ;;  %v3861_v12 = vsel %vm4591_vm13, %v3239_v43, %v4590_v53  ;;  %vm4595_vm14 = vcmp.ge.f32.partialorder %v4594_v30, 0.0  ;;  %v4597_v50 = vld [vmem:[#allocation62_spill] sm:$0xff]  ;;  %v4598_v23 = vld [vmem:[#allocation63_spill] sm:$0xff]  ;;  %v4599_v43 = vld [vmem:[#allocation64_spill] sm:$0xff] }
 0x276   : > { %4592 = vst [vmem:[#allocation24_spill] sm:$0xff] %v3861_v12  ;;  %v3867_v37 = vsel %vm4595_vm14, %v4594_v30, %v4593_v1  ;;  %v3873_v28 = vsel %vm1317_vm0, %v3247_v61, %v4597_v50  ;;  %v3879_v51 = vsel %vm1318_vm1, %v3251_v10, %v4598_v23  ;;  %v4600_v53 = vld [vmem:[#allocation12_spill] sm:$0xff]  ;;  %v4602_v1 = vld [vmem:[#allocation65_spill] sm:$0xff]  ;;  %v4603_v30 = vld [vmem:[#allocation14_spill] sm:$0xff]  ;;  %vm4613_vm0 = vcmp.ge.f32.partialorder %v3033_v32, 0.0 }
 0x277   : > { %4596 = vst [vmem:[#allocation25_spill] sm:$0xff] %v3867_v37  ;;  %vm4601_vm11 = vcmp.ge.f32.partialorder %v4600_v53, 0.0  ;;  %vm4604_vm15 = vcmp.ge.f32.partialorder %v4603_v30, 0.0  ;;  %v4605_v61 = vld [vmem:[#allocation66_spill] sm:$0xff]  ;;  %v4606_v10 = vld [vmem:[#allocation67_spill] sm:$0xff]  ;;  %vm4615_vm1 = vcmp.ge.f32.partialorder %v3037_v25, 0.0 }
 0x278   : > { %v3885_v12 = vsel %vm4601_vm11, %v4600_v53, %v4599_v43  ;;  %v3891_v37 = vsel %vm4604_vm15, %v4603_v30, %v4602_v1  ;;  %v3897_v50 = vsel %vm1321_vm4, %v3263_v44, %v4605_v61  ;;  %v3903_v23 = vsel %vm1322_vm3, %v3267_v35, %v4606_v10  ;;  %v4607_v43 = vld [vmem:[#allocation68_spill] sm:$0xff]  ;;  %v4608_v1 = vld [vmem:[#allocation69_spill] sm:$0xff]  ;;  %v4609_v44 = vld [vmem:[#allocation70_spill] sm:$0xff] }
 0x279   : > { %v3909_v53 = vsel %vm1323_vm2, %v3271_v45, %v4607_v43  ;;  %v3915_v30 = vsel %vm1324_vm5, %v3275_v11, %v4608_v1  ;;  %v3921_v61 = vsel %vm1325_vm6, %v3279_v31, %v4609_v44  ;;  %v4610_v35 = vld [vmem:[#allocation71_spill] sm:$0xff]  ;;  %v4611_v45 = vld [vmem:[#allocation72_spill] sm:$0xff]  ;;  %v4612_v11 = vld [vmem:[#allocation73_spill] sm:$0xff]  ;;  %vm4617_vm2 = vcmp.ge.f32.partialorder %v4493_v55, 0.0 }
 0x27a   : > { %v3927_v10 = vsel %vm1326_vm7, %v3283_v8, %v4610_v35  ;;  %v3933_v43 = vsel %vm1327_vm8, %v3029_v42, %v4611_v45  ;;  %v3939_v1 = vsel %vm4613_vm0, %v3033_v32, %v4612_v11  ;;  %v4614_v31 = vld [vmem:[#allocation74_spill] sm:$0xff]  ;;  %v4618_v42 = vld [vmem:[#allocation13_spill] sm:$0xff]  ;;  %vm4619_vm3 = vcmp.ge.f32.partialorder %v4495_v27, 0.0  ;;  %v4620_v32 = vld [vmem:[#allocation28_spill] sm:$0xff] }
 0x27b   : > { %v3945_v44 = vsel %vm4615_vm1, %v3037_v25, %v4614_v31  ;;  %v4616_v8 = vld [vmem:[#allocation10_spill] sm:$0xff]  ;;  %v3957_v45 = vsel %vm4619_vm3, %v4495_v27, %v4618_v42  ;;  %vm4621_vm4 = vcmp.ge.f32.partialorder %v4497_v17, 0.0  ;;  %v4623_v27 = vld [vmem:[#allocation16_spill] sm:$0xff]  ;;  %vm4625_vm5 = vcmp.ge.f32.partialorder %v4503_v20, 0.0  ;;  %v4626_v42 = vld [vmem:[#allocation19_spill] sm:$0xff] }
 0x27c   : > { %v3951_v35 = vsel %vm4617_vm2, %v4493_v55, %v4616_v8  ;;  %v3963_v11 = vsel %vm4621_vm4, %v4497_v17, %v4620_v32  ;;  %v4622_v25 = vld [vmem:[#allocation18_spill] sm:$0xff]  ;;  %v3982_v31 = vsel %vm1334_vm12, %v4501_v29, %v4623_v27  ;;  %v4624_v17 = vld [vmem:[#allocation17_spill] sm:$0xff]  ;;  %vm4627_vm6 = vcmp.ge.f32.partialorder %v4505_v57, 0.0 }
 0x27d   : > { %v3976_v55 = vsel %vm1333_vm9, %v4499_v9, %v4622_v25  ;;  %v3988_v8 = vsel %vm4625_vm5, %v4503_v20, %v4624_v17  ;;  %v3994_v9 = vsel %vm4627_vm6, %v4505_v57, %v4626_v42  ;;  %v1984_v32 = vpack.c.bf16 %v3593_v0, %v3593_v0  ;;  %v4631_v17 = vld [vmem:[#allocation6_spill] sm:$0xff] }
 0x27e   : > { %v1985_v29 = vpack.c.bf16 %v3599_v59, %v3599_v59  ;;  %v1986_v25 = vpack.c.bf16 %v3605_v16, %v3605_v16  ;;  %v1987_v20 = vpack.c.bf16 %v3611_v47, %v3611_v47  ;;  %v1988_v27 = vpack.c.bf16 %v3621_v22, %v3621_v22 }
 0x27f   : > { %v1989_v57 = vpack.c.bf16 %v3627_v7, %v3627_v7  ;;  %v1990_v0 = vpack.c.bf16 %v3633_v46, %v3633_v46  ;;  %v1991_v59 = vpack.c.bf16 %v3639_v58, %v3639_v58  ;;  %v1992_v16 = vpack.c.bf16 %v3649_v3, %v3649_v3  ;;  %1723 = vst.msk [vmem:[%s3970_s27] sm:$0xf] %vm1722_vm10, %v1984_v32  ;;  %v4632_v32 = vld [vmem:[#allocation8_spill] sm:$0xff] }
 0x280   : > { %v1993_v47 = vpack.c.bf16 %v3655_v33, %v3655_v33  ;;  %v1994_v22 = vpack.c.bf16 %v3661_v6, %v3661_v6  ;;  %v1995_v7 = vpack.c.bf16 %v3667_v26, %v3667_v26  ;;  %1724 = vst.msk [vmem:[%s3970_s27 + $0x4] sm:$0xf] %vm1722_vm10, %v1985_v29  ;;  %1725 = vst.msk [vmem:[%s3970_s27 + $0x8] sm:$0xf] %vm1722_vm10, %v1986_v25 }
 0x281   : > { %1726 = vst.msk [vmem:[%s3970_s27 + $0xc] sm:$0xf] %vm1722_vm10, %v1987_v20  ;;  %v1996_v46 = vpack.c.bf16 %v3677_v15, %v3677_v15  ;;  %v1997_v58 = vpack.c.bf16 %v3683_v41, %v3683_v41  ;;  %v1998_v3 = vpack.c.bf16 %v3689_v56, %v3689_v56  ;;  %v1999_v33 = vpack.c.bf16 %v3695_v4, %v3695_v4 }
 0x282   : > { %1727 = vst.msk [vmem:[%s3970_s27 + $0x10] sm:$0xf] %vm1722_vm10, %v1988_v27  ;;  %1728 = vst.msk [vmem:[%s3970_s27 + $0x14] sm:$0xf] %vm1722_vm10, %v1989_v57  ;;  %v2000_v6 = vpack.c.bf16 %v3705_v40, %v3705_v40  ;;  %v2001_v26 = vpack.c.bf16 %v3711_v54, %v3711_v54  ;;  %v2002_v15 = vpack.c.bf16 %v3717_v19, %v3717_v19  ;;  %v4633_v27 = vld [vmem:[#allocation7_spill] sm:$0xff] }
 0x283   : > { %1729 = vst.msk [vmem:[%s3970_s27 + $0x18] sm:$0xf] %vm1722_vm10, %v1990_v0  ;;  %1730 = vst.msk [vmem:[%s3970_s27 + $0x1c] sm:$0xf] %vm1722_vm10, %v1991_v59  ;;  %v2003_v41 = vpack.c.bf16 %v3723_v63, %v3723_v63  ;;  %v2004_v56 = vpack.c.bf16 %v3729_v24, %v3729_v24  ;;  %v2005_v4 = vpack.c.bf16 %v3735_v39, %v3735_v39  ;;  %v4634_v0 = vld [vmem:[#allocation24_spill] sm:$0xff] }
 0x284   : > { %1731 = vst.msk [vmem:[%s3970_s27 + $0x20] sm:$0xf] %vm1722_vm10, %v1992_v16  ;;  %1732 = vst.msk [vmem:[%s3970_s27 + $0x24] sm:$0xf] %vm1722_vm10, %v1993_v47  ;;  %v2006_v40 = vpack.c.bf16 %v3741_v38, %v3741_v38  ;;  %v2007_v54 = vpack.c.bf16 %v3747_v49, %v3747_v49  ;;  %v2008_v19 = vpack.c.bf16 %v3753_v13, %v3753_v13  ;;  %v4635_v16 = vld [vmem:[#allocation25_spill] sm:$0xff] }
 0x285   : > { %1733 = vst.msk [vmem:[%s3970_s27 + $0x28] sm:$0xf] %vm1722_vm10, %v1994_v22  ;;  %1734 = vst.msk [vmem:[%s3970_s27 + $0x2c] sm:$0xf] %vm1722_vm10, %v1995_v7  ;;  %v2009_v63 = vpack.c.bf16 %v3759_v36, %v3759_v36  ;;  %v2010_v24 = vpack.c.bf16 %v3765_v48, %v3765_v48  ;;  %v2011_v39 = vpack.c.bf16 %v3771_v52, %v3771_v52  ;;  %v4628_v48 = vld [vmem:[#allocation3_spill] sm:$0xff] }
 0x286   : > { %1735 = vst.msk [vmem:[%s3970_s27 + $0x30] sm:$0xf] %vm1722_vm10, %v1996_v46  ;;  %1736 = vst.msk [vmem:[%s3970_s27 + $0x34] sm:$0xf] %vm1722_vm10, %v1997_v58  ;;  %v2012_v38 = vpack.c.bf16 %v3777_v62, %v3777_v62  ;;  %v2013_v49 = vpack.c.bf16 %v3783_v5, %v3783_v5  ;;  %v2014_v13 = vpack.c.bf16 %v3789_v60, %v3789_v60  ;;  %v4629_v62 = vld [vmem:[#allocation5_spill] sm:$0xff]  ;;  %v4630_v60 = vld [vmem:[#allocation4_spill] sm:$0xff] }
 0x287   : > { %1737 = vst.msk [vmem:[%s3970_s27 + $0x38] sm:$0xf] %vm1722_vm10, %v1998_v3  ;;  %1738 = vst.msk [vmem:[%s3970_s27 + $0x3c] sm:$0xf] %vm1722_vm10, %v1999_v33  ;;  %v2015_v36 = vpack.c.bf16 %v3795_v2, %v3795_v2  ;;  %v2016_v52 = vpack.c.bf16 %v4628_v48, %v4628_v48  ;;  %v2017_v5 = vpack.c.bf16 %v4629_v62, %v4629_v62 }
 0x288   : > { %1739 = vst.msk [vmem:[%s3970_s27 + $0x40] sm:$0xf] %vm1722_vm10, %v2000_v6  ;;  %1740 = vst.msk [vmem:[%s3970_s27 + $0x44] sm:$0xf] %vm1722_vm10, %v2001_v26  ;;  %v2018_v2 = vpack.c.bf16 %v4630_v60, %v4630_v60  ;;  %v2019_v42 = vpack.c.bf16 %v4631_v17, %v4631_v17  ;;  %v2020_v29 = vpack.c.bf16 %v4632_v32, %v4632_v32 }
 0x289   : > { %1741 = vst.msk [vmem:[%s3970_s27 + $0x48] sm:$0xf] %vm1722_vm10, %v2002_v15  ;;  %1742 = vst.msk [vmem:[%s3970_s27 + $0x4c] sm:$0xf] %vm1722_vm10, %v2003_v41  ;;  %v2021_v25 = vpack.c.bf16 %v3831_v21, %v3831_v21  ;;  %v2022_v20 = vpack.c.bf16 %v3837_v18, %v3837_v18  ;;  %v2023_v57 = vpack.c.bf16 %v4633_v27, %v4633_v27 }
 0x28a   : > { %1743 = vst.msk [vmem:[%s3970_s27 + $0x50] sm:$0xf] %vm1722_vm10, %v2004_v56  ;;  %1744 = vst.msk [vmem:[%s3970_s27 + $0x54] sm:$0xf] %vm1722_vm10, %v2005_v4  ;;  %v2024_v21 = vpack.c.bf16 %v3849_v14, %v3849_v14  ;;  %v2025_v18 = vpack.c.bf16 %v3855_v34, %v3855_v34  ;;  %v2026_v59 = vpack.c.bf16 %v4634_v0, %v4634_v0 }
 0x28b   : > { %1745 = vst.msk [vmem:[%s3970_s27 + $0x58] sm:$0xf] %vm1722_vm10, %v2006_v40  ;;  %1746 = vst.msk [vmem:[%s3970_s27 + $0x5c] sm:$0xf] %vm1722_vm10, %v2007_v54  ;;  %v2027_v47 = vpack.c.bf16 %v4635_v16, %v4635_v16  ;;  %v2028_v14 = vpack.c.bf16 %v3873_v28, %v3873_v28  ;;  %v2029_v34 = vpack.c.bf16 %v3879_v51, %v3879_v51 }
 0x28c   : > { %1747 = vst.msk [vmem:[%s3970_s27 + $0x60] sm:$0xf] %vm1722_vm10, %v2008_v19  ;;  %1748 = vst.msk [vmem:[%s3970_s27 + $0x64] sm:$0xf] %vm1722_vm10, %v2009_v63  ;;  %v2030_v22 = vpack.c.bf16 %v3885_v12, %v3885_v12  ;;  %v2031_v7 = vpack.c.bf16 %v3891_v37, %v3891_v37  ;;  %v2032_v28 = vpack.c.bf16 %v3897_v50, %v3897_v50 }
 0x28d   : > { %1749 = vst.msk [vmem:[%s3970_s27 + $0x68] sm:$0xf] %vm1722_vm10, %v2010_v24  ;;  %1750 = vst.msk [vmem:[%s3970_s27 + $0x6c] sm:$0xf] %vm1722_vm10, %v2011_v39  ;;  %v2033_v12 = vpack.c.bf16 %v3903_v23, %v3903_v23  ;;  %v2034_v37 = vpack.c.bf16 %v3909_v53, %v3909_v53  ;;  %v2035_v51 = vpack.c.bf16 %v3915_v30, %v3915_v30 }
 0x28e   : > { %1751 = vst.msk [vmem:[%s3970_s27 + $0x70] sm:$0xf] %vm1722_vm10, %v2012_v38  ;;  %1752 = vst.msk [vmem:[%s3970_s27 + $0x74] sm:$0xf] %vm1722_vm10, %v2013_v49  ;;  %v2036_v50 = vpack.c.bf16 %v3921_v61, %v3921_v61  ;;  %v2037_v23 = vpack.c.bf16 %v3927_v10, %v3927_v10  ;;  %v2038_v53 = vpack.c.bf16 %v3933_v43, %v3933_v43 }
 0x28f   : > { %1753 = vst.msk [vmem:[%s3970_s27 + $0x78] sm:$0xf] %vm1722_vm10, %v2014_v13  ;;  %1754 = vst.msk [vmem:[%s3970_s27 + $0x7c] sm:$0xf] %vm1722_vm10, %v2015_v36  ;;  %v2039_v30 = vpack.c.bf16 %v3939_v1, %v3939_v1  ;;  %v2040_v61 = vpack.c.bf16 %v3945_v44, %v3945_v44  ;;  %v2041_v10 = vpack.c.bf16 %v3951_v35, %v3951_v35 }
 0x290   : > { %1755 = vst.msk [vmem:[%s3970_s27 + $0x80] sm:$0xf] %vm1722_vm10, %v2016_v52  ;;  %1756 = vst.msk [vmem:[%s3970_s27 + $0x84] sm:$0xf] %vm1722_vm10, %v2017_v5  ;;  %v2042_v43 = vpack.c.bf16 %v3957_v45, %v3957_v45  ;;  %v2043_v1 = vpack.c.bf16 %v3963_v11, %v3963_v11  ;;  %v2044_v44 = vpack.c.bf16 %v3976_v55, %v3976_v55 }
 0x291   : > { %1757 = vst.msk [vmem:[%s3970_s27 + $0x88] sm:$0xf] %vm1722_vm10, %v2018_v2  ;;  %1758 = vst.msk [vmem:[%s3970_s27 + $0x8c] sm:$0xf] %vm1722_vm10, %v2019_v42  ;;  %v2045_v35 = vpack.c.bf16 %v3982_v31, %v3982_v31  ;;  %v2046_v45 = vpack.c.bf16 %v3988_v8, %v3988_v8  ;;  %v2047_v11 = vpack.c.bf16 %v3994_v9, %v3994_v9 }
 0x292   : > { %1759 = vst.msk [vmem:[%s3970_s27 + $0x90] sm:$0xf] %vm1722_vm10, %v2020_v29  ;;  %1760 = vst.msk [vmem:[%s3970_s27 + $0x94] sm:$0xf] %vm1722_vm10, %v2021_v25 }
 0x293   : > { %1761 = vst.msk [vmem:[%s3970_s27 + $0x98] sm:$0xf] %vm1722_vm10, %v2022_v20  ;;  %1762 = vst.msk [vmem:[%s3970_s27 + $0x9c] sm:$0xf] %vm1722_vm10, %v2023_v57 }
 0x294   : > { %1763 = vst.msk [vmem:[%s3970_s27 + $0xa0] sm:$0xf] %vm1722_vm10, %v2024_v21  ;;  %1764 = vst.msk [vmem:[%s3970_s27 + $0xa4] sm:$0xf] %vm1722_vm10, %v2025_v18 }
 0x295   : > { %1765 = vst.msk [vmem:[%s3970_s27 + $0xa8] sm:$0xf] %vm1722_vm10, %v2026_v59  ;;  %1766 = vst.msk [vmem:[%s3970_s27 + $0xac] sm:$0xf] %vm1722_vm10, %v2027_v47 }
 0x296   : > { %1767 = vst.msk [vmem:[%s3970_s27 + $0xb0] sm:$0xf] %vm1722_vm10, %v2028_v14  ;;  %1768 = vst.msk [vmem:[%s3970_s27 + $0xb4] sm:$0xf] %vm1722_vm10, %v2029_v34 }
 0x297   : > { %1769 = vst.msk [vmem:[%s3970_s27 + $0xb8] sm:$0xf] %vm1722_vm10, %v2030_v22  ;;  %1770 = vst.msk [vmem:[%s3970_s27 + $0xbc] sm:$0xf] %vm1722_vm10, %v2031_v7 }
 0x298   : > { %1771 = vst.msk [vmem:[%s3970_s27 + $0xc0] sm:$0xf] %vm1722_vm10, %v2032_v28  ;;  %1772 = vst.msk [vmem:[%s3970_s27 + $0xc4] sm:$0xf] %vm1722_vm10, %v2033_v12 }
 0x299   : > { %1773 = vst.msk [vmem:[%s3970_s27 + $0xc8] sm:$0xf] %vm1722_vm10, %v2034_v37  ;;  %1774 = vst.msk [vmem:[%s3970_s27 + $0xcc] sm:$0xf] %vm1722_vm10, %v2035_v51 }
 0x29a   : > { %1775 = vst.msk [vmem:[%s3970_s27 + $0xd0] sm:$0xf] %vm1722_vm10, %v2036_v50  ;;  %1776 = vst.msk [vmem:[%s3970_s27 + $0xd4] sm:$0xf] %vm1722_vm10, %v2037_v23 }
 0x29b   : > { %1777 = vst.msk [vmem:[%s3970_s27 + $0xd8] sm:$0xf] %vm1722_vm10, %v2038_v53  ;;  %1778 = vst.msk [vmem:[%s3970_s27 + $0xdc] sm:$0xf] %vm1722_vm10, %v2039_v30 }
 0x29c   : > { %1779 = vst.msk [vmem:[%s3970_s27 + $0xe0] sm:$0xf] %vm1722_vm10, %v2040_v61  ;;  %1780 = vst.msk [vmem:[%s3970_s27 + $0xe4] sm:$0xf] %vm1722_vm10, %v2041_v10 }
 0x29d   : > { %1781 = vst.msk [vmem:[%s3970_s27 + $0xe8] sm:$0xf] %vm1722_vm10, %v2042_v43  ;;  %1782 = vst.msk [vmem:[%s3970_s27 + $0xec] sm:$0xf] %vm1722_vm10, %v2043_v1 }
 0x29e   : > { %1783 = vst.msk [vmem:[%s3970_s27 + $0xf0] sm:$0xf] %vm1722_vm10, %v2044_v44  ;;  %1784 = vst.msk [vmem:[%s3970_s27 + $0xf4] sm:$0xf] %vm1722_vm10, %v2045_v35 }
 0x29f   : > { %1785 = vst.msk [vmem:[%s3970_s27 + $0xf8] sm:$0xf] %vm1722_vm10, %v2046_v45  ;;  %1786 = vst.msk [vmem:[%s3970_s27 + $0xfc] sm:$0xf] %vm1722_vm10, %v2047_v11 }
 0x2a0 PF: > { %s14_s14 = sadd.s32 1, %s2205_s14  }
 0x2a1   : > { %p11_p4 = scmp.ge.s32.totalorder %s14_s14, 4  }
 0x2a3   :  { %13 = sbr.rel (!%p11_p4) target bundleno = 2 (0x2), region = 62 }

// kernel: custom_unet_forward.6
= control target key start
LH: loop header
LB: loop body
LE: loop exit
PB: predicated region body
PF: predicated region fallthrough
CT: control target
= control target key end

     0   :  { %s1650_s14 = smov 0   ;;  %s1901_s0 = inlined_call_operand.vmem [shape: bf16[128,864], index: 0, kind: input, shape index: {}]   ;;  %s1902_s1 = inlined_call_operand.vmem [shape: bf16[864,64], index: 1, kind: input, shape index: {}]   ;;  %s1903_s2 = inlined_call_operand.<no memory space> [shape: f32[1], index: 2, kind: input, shape index: {}]   ;;  %s1904_s3 = inlined_call_operand.vmem [shape: bf16[128,64], index: 3, kind: output, shape index: {}]  }
   0x1   :  { %8 = sst [smem:[#allocation2]] %s1903_s2 }
   0x2 LB: > { %s1251_s15 = sadd.s32 4294967295, %s1625_s14   ;;  %p1255_p0 = scmp.ge.s32.totalorder %s1625_s14, 1  ;;  %s1625_s14 = sphi %s1650_s14, %s14_s14  }
   0x3   : > { %p140_p1 = scmp.lt.s32.totalorder %s1625_s14, 3 }
   0x5   : > { %p141_p2 = pnand %p1255_p0, %p140_p1 }
   0x6   : > { %v1523_v0 = vld [vmem:[%s1902_s1 + $0x40] sm:$0xff] (!%p141_p2)   ;;  %v1527_v4 = vld [vmem:[%s1902_s1 + $0x48] sm:$0xff] (!%p141_p2)   ;;  %v1531_v8 = vld [vmem:[%s1902_s1 + $0x50] sm:$0xff] (!%p141_p2)   ;;  %s1256_s19 = sshll.u32 (!%p141_p2), %s1251_s15, 3  ;;  %vm783_vm0 = vcmask (!%p141_p2), 785408   ;;  %vm1056_vm1 = vcmask (!%p141_p2), 523264  }
   0x7   : > { %144 = sbr.rel (%p141_p2) target bundleno = 394 (0x18a), region = 32  ;;  %v1524_v1 = vld [vmem:[%s1902_s1 + $0xc0] sm:$0xff] (!%p141_p2)   ;;  %1364 = vmatprep.subr.bf16.mxu0 (!%p141_p2), %v1523_v0  ;;  %v1528_v5 = vld [vmem:[%s1902_s1 + $0xc8] sm:$0xff] (!%p141_p2)   ;;  %v1532_v9 = vld [vmem:[%s1902_s1 + $0xd0] sm:$0xff] (!%p141_p2)   ;;  %p166_p3 = scmp.lt.s32.totalorder (!%p141_p2), %s1256_s19, 15  ;;  %vm1186_vm2 = vcmask (!%p141_p2), 519168  }
   0x8   : > { %v1525_v2 = vld [vmem:[%s1902_s1] sm:$0xff] (!%p141_p2)   ;;  %1404 = vmatprep.subr.bf16.mxu1 (!%p141_p2), %v1524_v1  ;;  %v1529_v6 = vld [vmem:[%s1902_s1 + $0x8] sm:$0xff] (!%p141_p2)   ;;  %v1533_v10 = vld [vmem:[%s1902_s1 + $0x10] sm:$0xff] (!%p141_p2)  }
   0x9   : > { %v1526_v3 = vld [vmem:[%s1902_s1 + $0x80] sm:$0xff] (!%p141_p2)   ;;  %1365 = vmatpush3.bf16.msra.mxu0 (!%p141_p2), %v1525_v2  ;;  %v1530_v7 = vld [vmem:[%s1902_s1 + $0x88] sm:$0xff] (!%p141_p2)   ;;  %v1534_v11 = vld [vmem:[%s1902_s1 + $0x90] sm:$0xff] (!%p141_p2)  }
   0xa   : > { %1405 = vmatpush3.bf16.msra.mxu1 (!%p141_p2), %v1526_v3  ;;  %1366 = vmatprep.subr.bf16.mxu0 (!%p141_p2), %v1527_v4  ;;  %v1535_v12 = vld [vmem:[%s1902_s1 + $0x58] sm:$0xff] (!%p141_p2)   ;;  %v1539_v16 = vld [vmem:[%s1902_s1 + $0x60] sm:$0xff] (!%p141_p2)   ;;  %v1543_v20 = vld [vmem:[%s1902_s1 + $0x68] sm:$0xff] (!%p141_p2)  }
   0xb   : > { %1406 = vmatprep.subr.bf16.mxu1 (!%p141_p2), %v1528_v5  ;;  %v1536_v13 = vld [vmem:[%s1902_s1 + $0xd8] sm:$0xff] (!%p141_p2)   ;;  %v1540_v17 = vld [vmem:[%s1902_s1 + $0xe0] sm:$0xff] (!%p141_p2)   ;;  %v1544_v21 = vld [vmem:[%s1902_s1 + $0xe8] sm:$0xff] (!%p141_p2)  }
   0xc   : > { %v1537_v14 = vld [vmem:[%s1902_s1 + $0x18] sm:$0xff] (!%p141_p2)   ;;  %v1541_v18 = vld [vmem:[%s1902_s1 + $0x20] sm:$0xff] (!%p141_p2)   ;;  %v1545_v22 = vld [vmem:[%s1902_s1 + $0x28] sm:$0xff] (!%p141_p2)  }
   0xd   : > { %1367 = vmatpush3.bf16.msra.mxu0 (!%p141_p2), %v1529_v6  ;;  %v1538_v15 = vld [vmem:[%s1902_s1 + $0x98] sm:$0xff] (!%p141_p2)   ;;  %v1542_v19 = vld [vmem:[%s1902_s1 + $0xa0] sm:$0xff] (!%p141_p2)   ;;  %v1546_v23 = vld [vmem:[%s1902_s1 + $0xa8] sm:$0xff] (!%p141_p2)  }
   0xe   : > { %1407 = vmatpush3.bf16.msra.mxu1 %v1530_v7  ;;  %1368 = vmatprep.subr.bf16.mxu0 %v1531_v8  ;;  %s1906_s19 = smov (!%p166_p3, %s1256_s19), 15  ;;  %v1547_v24 = vld [vmem:[%s1902_s1 + $0x70] sm:$0xff]   ;;  %v1551_v28 = vld [vmem:[%s1902_s1 + $0x78] sm:$0xff]   ;;  %v1561_v36 = vld [vmem:[%s1902_s1 + $0x140] sm:$0xff]  }
   0xf   : > { %1408 = vmatprep.subr.bf16.mxu1 %v1532_v9  ;;  %v1548_v25 = vld [vmem:[%s1902_s1 + $0xf0] sm:$0xff]   ;;  %s1514_s16 = smul.u32 28, %s1906_s19  ;;  %v1552_v29 = vld [vmem:[%s1902_s1 + $0xf8] sm:$0xff]   ;;  %v1562_v37 = vld [vmem:[%s1902_s1 + $0x100] sm:$0xff]   ;;  %s1259_s25 = sshll.u32 %s1906_s19, 2 }
  0x10   : > { %v1549_v26 = vld [vmem:[%s1902_s1 + $0x30] sm:$0xff]   ;;  %v1553_v30 = vld [vmem:[%s1902_s1 + $0x38] sm:$0xff]   ;;  %v1563_v38 = vld [vmem:[%s1902_s1 + $0x148] sm:$0xff]   ;;  %s176_s19 = scalar_lea.vmem %s1904_s3, %s1259_s25 }
  0x11   : > { %1369 = vmatpush3.bf16.msra.mxu0 %v1533_v10  ;;  %v1550_v27 = vld [vmem:[%s1902_s1 + $0xb0] sm:$0xff]   ;;  %s1756_s27 = scalar_lea.vmem %s1901_s0, %s1514_s16  ;;  %v1554_v31 = vld [vmem:[%s1902_s1 + $0xb8] sm:$0xff]   ;;  %v1564_v39 = vld [vmem:[%s1902_s1 + $0x108] sm:$0xff]  }
  0x12   : > { %1409 = vmatpush3.bf16.msra.mxu1 %v1534_v11  ;;  %1370 = vmatprep.subr.bf16.mxu0 %v1535_v12  ;;  %v1555_v32 = vld [vmem:[%s1756_s27] ss:$28 sps:$4 sm:$0xff]   ;;  %v1558_v34 = vld [vmem:[%s1756_s27 + $0x8] ss:$28 sps:$4 sm:$0xff]   ;;  %v1569_v42 = vld [vmem:[%s1756_s27 + $0x38] ss:$28 sps:$4 sm:$0xff]  }
  0x13   : > { %1410 = vmatprep.subr.bf16.mxu1 %v1536_v13  ;;  %v1557_v33 = vld [vmem:[%s1756_s27 + $0x4] ss:$28 sps:$4 sm:$0xff]   ;;  %v1560_v35 = vld [vmem:[%s1756_s27 + $0xc] ss:$28 sps:$4 sm:$0xff]   ;;  %v1565_v40 = vld [vmem:[%s1756_s27 + $0x3c] ss:$28 sps:$4 sm:$0xff]  }
  0x14   : > { %828 = vmatprep.mubr.bf16.mxu0 %v1557_v33  ;;  %893 = vmatprep.mubr.bf16.mxu1 %v1560_v35  ;;  %v1567_v41 = vld [vmem:[%s1756_s27 + $0x44] ss:$28 sps:$4 sm:$0xff]   ;;  %v1571_v44 = vld [vmem:[%s1902_s1 + $0x150] sm:$0xff]   ;;  %v1573_v46 = vld [vmem:[%s1902_s1 + $0x158] sm:$0xff]  }
  0x15   : > { %1371 = vmatpush3.bf16.msra.mxu0 %v1537_v14  ;;  %v1570_v43 = vld [vmem:[%s1756_s27 + $0x40] ss:$28 sps:$4 sm:$0xff]   ;;  %v1572_v45 = vld [vmem:[%s1902_s1 + $0x110] sm:$0xff]   ;;  %v1583_v54 = vld [vmem:[%s1902_s1 + $0x188] sm:$0xff]  }
  0x16   : > { %1411 = vmatpush3.bf16.msra.mxu1 %v1538_v15  ;;  %1372 = vmatprep.subr.bf16.mxu0 %v1539_v16  ;;  %v1574_v47 = vld [vmem:[%s1902_s1 + $0x180] sm:$0xff]   ;;  %v1575_v48 = vld [vmem:[%s1902_s1 + $0x118] sm:$0xff]   ;;  %v1576_v49 = vld [vmem:[%s1756_s27 + $0x74] ss:$28 sps:$4 sm:$0xff]  }
  0x17   : > { %1412 = vmatprep.subr.bf16.mxu1 %v1540_v17  ;;  %v1578_v50 = vld [vmem:[%s1756_s27 + $0x7c] ss:$28 sps:$4 sm:$0xff]   ;;  %v1580_v51 = vld [vmem:[%s1756_s27 + $0x70] ss:$28 sps:$4 sm:$0xff]   ;;  %v1582_v53 = vld [vmem:[%s1902_s1 + $0x160] sm:$0xff]  }
  0x18   : > { %v1581_v52 = vld [vmem:[%s1756_s27 + $0x78] ss:$28 sps:$4 sm:$0xff]   ;;  %v1584_v55 = vld [vmem:[%s1902_s1 + $0x120] sm:$0xff]   ;;  %v1585_v56 = vld [vmem:[%s1902_s1 + $0x168] sm:$0xff]  }
  0x19   : > { %1373 = vmatpush3.bf16.msra.mxu0 %v1541_v18  ;;  %v1586_v57 = vld [vmem:[%s1902_s1 + $0x190] sm:$0xff]   ;;  %v1587_v58 = vld [vmem:[%s1902_s1 + $0x128] sm:$0xff]   ;;  %v1595_v0 = vld [vmem:[%s1902_s1 + $0x198] sm:$0xff]  }
  0x1a   : > { %1413 = vmatpush3.bf16.msra.mxu1 %v1542_v19  ;;  %1374 = vmatprep.subr.bf16.mxu0 %v1543_v20  ;;  %v1588_v59 = vld [vmem:[%s1756_s27 + $0xac] ss:$28 sps:$4 sm:$0xff]   ;;  %v1590_v60 = vld [vmem:[%s1756_s27 + $0xb4] ss:$28 sps:$4 sm:$0xff]   ;;  %v1597_v2 = vld [vmem:[%s1902_s1 + $0x178] sm:$0xff]  }
  0x1b   : > { %1414 = vmatprep.subr.bf16.mxu1 %v1544_v21  ;;  %v1592_v61 = vld [vmem:[%s1756_s27 + $0xa8] ss:$28 sps:$4 sm:$0xff]   ;;  %v1593_v62 = vld [vmem:[%s1756_s27 + $0xb0] ss:$28 sps:$4 sm:$0xff]   ;;  %v1599_v4 = vld [vmem:[%s1902_s1 + $0x138] sm:$0xff]  }
  0x1c   : > { %v1594_v63 = vld [vmem:[%s1902_s1 + $0x170] sm:$0xff]   ;;  %v1598_v3 = vld [vmem:[%s1902_s1 + $0x1a0] sm:$0xff]   ;;  %v1603_v7 = vld [vmem:[%s1902_s1 + $0x1a8] sm:$0xff]  }
  0x1d   : > { %1375 = vmatpush3.bf16.msra.mxu0 %v1545_v22  ;;  %v1596_v1 = vld [vmem:[%s1902_s1 + $0x130] sm:$0xff]   ;;  %v1606_v9 = vld [vmem:[%s1756_s27 + $0x4c] ss:$28 sps:$4 sm:$0xff]   ;;  %v1609_v13 = vld [vmem:[%s1756_s27 + $0x84] ss:$28 sps:$4 sm:$0xff]  }
  0x1e   : > { %1415 = vmatpush3.bf16.msra.mxu1 %v1546_v23  ;;  %1376 = vmatprep.subr.bf16.mxu0 %v1547_v24  ;;  %v1600_v5 = vld [vmem:[%s1756_s27 + $0x10] ss:$28 sps:$4 sm:$0xff]   ;;  %v1604_v8 = vld [vmem:[%s1756_s27 + $0x18] ss:$28 sps:$4 sm:$0xff]   ;;  %v1612_v11 = vld [vmem:[%s1756_s27 + $0x88] ss:$28 sps:$4 sm:$0xff]  }
  0x1f   : > { %1416 = vmatprep.subr.bf16.mxu1 %v1548_v25  ;;  %v1602_v6 = vld [vmem:[%s1756_s27 + $0x14] ss:$28 sps:$4 sm:$0xff]   ;;  %v1608_v12 = vld [vmem:[%s1756_s27 + $0x48] ss:$28 sps:$4 sm:$0xff]   ;;  %v1613_v14 = vld [vmem:[%s1756_s27 + $0xc0] ss:$28 sps:$4 sm:$0xff]  }
  0x20   : > { %v1605_v10 = vld [vmem:[%s1756_s27 + $0x50] ss:$28 sps:$4 sm:$0xff]   ;;  %v1611_v15 = vld [vmem:[%s1756_s27 + $0x80] ss:$28 sps:$4 sm:$0xff]   ;;  %v1616_v17 = vld [vmem:[%s1756_s27 + $0xb8] ss:$28 sps:$4 sm:$0xff]  }
  0x21   : > { %1377 = vmatpush3.bf16.msra.mxu0 %v1549_v26  ;;  %v1614_v16 = vld [vmem:[%s1756_s27 + $0xbc] ss:$28 sps:$4 sm:$0xff]   ;;  %s1128_s27 = sld [smem:[#allocation2]] }
  0x22   : > { %1417 = vmatpush3.bf16.msra.mxu1 %v1550_v27  ;;  %1378 = vmatprep.subr.bf16.mxu0 %v1551_v28 }
  0x23   : > { %1418 = vmatprep.subr.bf16.mxu1 %v1552_v29 }
  0x25   : > { %1379 = vmatpush3.bf16.msra.mxu0 %v1553_v30 }
  0x26   : > { %1419 = vmatpush3.bf16.msra.mxu1 %v1554_v31  ;;  %1444 = vmatprep.subr.bf16.mxu0 %v1561_v36 }
  0x27   : > { %1494 = vmatprep.subr.bf16.mxu1 %v1574_v47 }
  0x28   : > { %829 = vmatmul.mubr.bf16.vlgmr.msra.gmra.mrb[0].mxu0 %v1555_v32 }
  0x29   : > { %894 = vmatmul.mubr.bf16.vlgmr.msra.gmra.mrb[0].mxu1 %v1558_v34  ;;  %1445 = vmatpush3.bf16.msra.mxu0 %v1562_v37 }
  0x2a   : > { %1446 = vmatprep.subr.bf16.mxu0 %v1563_v38  ;;  %836 = vmatprep.mubr.bf16.mxu0 %v1565_v40 }
  0x2b   : > { %901 = vmatprep.mubr.bf16.mxu1 %v1567_v41  ;;  %1495 = vmatpush3.bf16.msra.mxu1 %v1574_v47 }
  0x2c   : > { %1496 = vmatprep.subr.bf16.mxu1 %v1583_v54 }
  0x2d   : > { %1447 = vmatpush3.bf16.msra.mxu0 %v1564_v39 }
  0x2e   : > { %1448 = vmatprep.subr.bf16.mxu0 %v1571_v44 }
  0x2f   : > { %1497 = vmatpush3.bf16.msra.mxu1 %v1583_v54 }
  0x30   : > { %837 = vmatmul.mubr.bf16.gmra.mrb[4].mxu0 %v1569_v42  ;;  %1498 = vmatprep.subr.bf16.mxu1 %v1586_v57 }
  0x31   : > { %902 = vmatmul.mubr.bf16.gmra.mrb[4].mxu1 %v1570_v43  ;;  %1449 = vmatpush3.bf16.msra.mxu0 %v1572_v45 }
  0x32   : > { %1450 = vmatprep.subr.bf16.mxu0 %v1573_v46  ;;  %844 = vmatprep.mubr.bf16.mxu0 %v1576_v49 }
  0x33   : > { %909 = vmatprep.mubr.bf16.mxu1 %v1578_v50  ;;  %1499 = vmatpush3.bf16.msra.mxu1 %v1586_v57 }
  0x34   : > { %1500 = vmatprep.subr.bf16.mxu1 %v1595_v0 }
  0x35   : > { %1451 = vmatpush3.bf16.msra.mxu0 %v1575_v48 }
  0x36   : > { %1452 = vmatprep.subr.bf16.mxu0 %v1582_v53 }
  0x37   : > { %1501 = vmatpush3.bf16.msra.mxu1 %v1595_v0 }
  0x38   : > { %845 = vmatmul.mubr.bf16.gmra.mrb[8].mxu0 %v1580_v51  ;;  %1502 = vmatprep.subr.bf16.mxu1 %v1598_v3 }
  0x39   : > { %910 = vmatmul.mubr.bf16.gmra.mrb[8].mxu1 %v1581_v52  ;;  %1453 = vmatpush3.bf16.msra.mxu0 %v1584_v55 }
  0x3a   : > { %1454 = vmatprep.subr.bf16.mxu0 %v1585_v56  ;;  %852 = vmatprep.mubr.bf16.mxu0 %v1588_v59 }
  0x3b   : > { %917 = vmatprep.mubr.bf16.mxu1 %v1590_v60  ;;  %1503 = vmatpush3.bf16.msra.mxu1 %v1598_v3 }
  0x3c   : > { %1504 = vmatprep.subr.bf16.mxu1 %v1603_v7 }
  0x3d   : > { %1455 = vmatpush3.bf16.msra.mxu0 %v1587_v58 }
  0x3e   : > { %1456 = vmatprep.subr.bf16.mxu0 %v1594_v63 }
  0x3f   : > { %1505 = vmatpush3.bf16.msra.mxu1 %v1603_v7 }
  0x40   : > { %853 = vmatmul.mubr.bf16.gmra.mrb[12].mxu0 %v1592_v61 }
  0x41   : > { %918 = vmatmul.mubr.bf16.gmra.mrb[12].mxu1 %v1593_v62  ;;  %1457 = vmatpush3.bf16.msra.mxu0 %v1596_v1 }
  0x42   : > { %1458 = vmatprep.subr.bf16.mxu0 %v1597_v2  ;;  %958 = vmatprep.mubr.bf16.mxu0 %v1602_v6 }
  0x43   : > { %1506 = vmatprep.mubr.msk.bf16.mxu1 %vm783_vm0, %v1604_v8 }
  0x45   : > { %1459 = vmatpush3.bf16.msra.mxu0 %v1599_v4 }
  0x48   : > { %959 = vmatmul.mubr.bf16.vlgmr.msra.gmra.mrb[16].mxu0 %v1600_v5 }
  0x49   : > { %966 = vmatprep.mubr.bf16.mxu0 %v1606_v9  ;;  %1507 = vmatmul.mubr.msk.bf16.vlgmr.msra.gmra.mrb[16].mxu1 %vm783_vm0, %v1605_v10 }
  0x4a   : > { %1510 = vmatprep.mubr.msk.bf16.mxu1 %vm783_vm0, %v1612_v11 }
  0x50   : > { %967 = vmatmul.mubr.bf16.gmra.mrb[20].mxu0 %v1608_v12 }
  0x51   : > { %974 = vmatprep.mubr.bf16.mxu0 %v1609_v13  ;;  %1511 = vmatmul.mubr.msk.bf16.gmra.mrb[20].mxu1 %vm783_vm0, %v1613_v14 }
  0x58   : > { %975 = vmatmul.mubr.bf16.gmra.mrb[24].mxu0 %v1611_v15 }
  0x59   : > { %982 = vmatprep.mubr.bf16.mxu0 %v1614_v16 }
  0x60   : > { %983 = vmatmul.mubr.bf16.gmra.mrb[28].mxu0 %v1616_v17 }
  0xfb   : > { %v1380_v18 = vpop.f32.mrb[0].mxu0 }
  0xfc   : > { %v1420_v19 = vpop.f32.mrb[0].mxu1  ;;  %v1381_v20 = vpop.f32.mrb[1].mxu0 }
  0xfd   : > { %v1382_v21 = vadd.f32 %v1381_v20, %v1380_v18  ;;  %v1421_v22 = vpop.f32.mrb[1].mxu1  ;;  %v1383_v23 = vpop.f32.mrb[2].mxu0 }
  0xfe   : > { %v1422_v24 = vadd.f32 %v1421_v22, %v1420_v19  ;;  %v1423_v25 = vpop.f32.mrb[2].mxu1  ;;  %v1384_v26 = vpop.f32.mrb[3].mxu0 }
  0xff   : > { %v1385_v27 = vadd.f32 %v1384_v26, %v1383_v23  ;;  %v1424_v28 = vpop.f32.mrb[3].mxu1 }
 0x100   : > { %v896_v29 = vadd.f32 %v1422_v24, %v1382_v21  ;;  %v1425_v30 = vadd.f32 %v1424_v28, %v1423_v25 }
 0x102   : > { %v899_v31 = vadd.f32 %v1425_v30, %v1385_v27 }
 0x103   : > { %v1386_v32 = vpop.f32.mrb[4].mxu0 }
 0x104   : > { %v1426_v33 = vpop.f32.mrb[4].mxu1  ;;  %v1387_v34 = vpop.f32.mrb[5].mxu0 }
 0x105   : > { %v1388_v35 = vadd.f32 %v1387_v34, %v1386_v32  ;;  %v1427_v36 = vpop.f32.mrb[5].mxu1  ;;  %v1389_v37 = vpop.f32.mrb[6].mxu0 }
 0x106   : > { %v1428_v38 = vadd.f32 %v1427_v36, %v1426_v33  ;;  %v1429_v39 = vpop.f32.mrb[6].mxu1  ;;  %v1390_v40 = vpop.f32.mrb[7].mxu0 }
 0x107   : > { %v1391_v41 = vadd.f32 %v1390_v40, %v1389_v37  ;;  %v1430_v42 = vpop.f32.mrb[7].mxu1 }
 0x108   : > { %v904_v43 = vadd.f32 %v1428_v38, %v1388_v35  ;;  %v1431_v44 = vadd.f32 %v1430_v42, %v1429_v39 }
 0x10a   : > { %v907_v45 = vadd.f32 %v1431_v44, %v1391_v41 }
 0x10b   : > { %v1392_v46 = vpop.f32.mrb[8].mxu0 }
 0x10c   : > { %v1432_v47 = vpop.f32.mrb[8].mxu1  ;;  %v1393_v48 = vpop.f32.mrb[9].mxu0 }
 0x10d   : > { %v1394_v49 = vadd.f32 %v1393_v48, %v1392_v46  ;;  %v1433_v50 = vpop.f32.mrb[9].mxu1  ;;  %v1395_v51 = vpop.f32.mrb[10].mxu0 }
 0x10e   : > { %v1434_v52 = vadd.f32 %v1433_v50, %v1432_v47  ;;  %v1435_v53 = vpop.f32.mrb[10].mxu1  ;;  %v1396_v54 = vpop.f32.mrb[11].mxu0 }
 0x10f   : > { %v1397_v55 = vadd.f32 %v1396_v54, %v1395_v51  ;;  %v1436_v56 = vpop.f32.mrb[11].mxu1 }
 0x110   : > { %v912_v57 = vadd.f32 %v1434_v52, %v1394_v49  ;;  %v1437_v58 = vadd.f32 %v1436_v56, %v1435_v53 }
 0x112   : > { %v915_v59 = vadd.f32 %v1437_v58, %v1397_v55 }
 0x113   : > { %v1398_v60 = vpop.f32.mrb[12].mxu0 }
 0x114   : > { %v1438_v61 = vpop.f32.mrb[12].mxu1  ;;  %v1399_v62 = vpop.f32.mrb[13].mxu0 }
 0x115   : > { %v1400_v63 = vadd.f32 %v1399_v62, %v1398_v60  ;;  %v1439_v0 = vpop.f32.mrb[13].mxu1  ;;  %v1401_v1 = vpop.f32.mrb[14].mxu0 }
 0x116   : > { %v1440_v2 = vadd.f32 %v1439_v0, %v1438_v61  ;;  %v1441_v3 = vpop.f32.mrb[14].mxu1  ;;  %v1402_v4 = vpop.f32.mrb[15].mxu0 }
 0x117   : > { %v1403_v5 = vadd.f32 %v1402_v4, %v1401_v1  ;;  %v1442_v6 = vpop.f32.mrb[15].mxu1 }
 0x118   : > { %v920_v7 = vadd.f32 %v1440_v2, %v1400_v63  ;;  %v1443_v8 = vadd.f32 %v1442_v6, %v1441_v3 }
 0x11a   : > { %v923_v9 = vadd.f32 %v1443_v8, %v1403_v5 }
 0x11b   : > { %v1460_v10 = vpop.f32.mrb[16].mxu0 }
 0x11c   : > { %v1461_v11 = vpop.f32.mrb[17].mxu0  ;;  %v1508_v16 = vpop.f32.mrb[16].mxu1 }
 0x11d   : > { %v1462_v12 = vadd.f32 %v1461_v11, %v1460_v10  ;;  %v1463_v13 = vpop.f32.mrb[18].mxu0  ;;  %v1025_v18 = vpop.f32.mrb[17].mxu1 }
 0x11e   : > { %v1464_v14 = vpop.f32.mrb[19].mxu0  ;;  %v1509_v20 = vpop.f32.mrb[18].mxu1 }
 0x11f   : > { %v1465_v15 = vadd.f32 %v1464_v14, %v1463_v13  ;;  %v961_v17 = vadd.f32 %v1462_v12, %v896_v29  ;;  %v1028_v22 = vpop.f32.mrb[19].mxu1 }
 0x121   : > { %v1026_v19 = vadd.f32 %v1025_v18, %v961_v17  ;;  %v964_v21 = vadd.f32 %v1465_v15, %v899_v31 }
 0x123   : > { %v1029_v23 = vadd.f32 %v1028_v22, %v964_v21  ;;  %v1466_v24 = vpop.f32.mrb[20].mxu0  ;;  %v1057_v26 = vsel %vm1056_vm1, %v1026_v19, 0.0 }
 0x124   : > { %v1467_v25 = vpop.f32.mrb[21].mxu0  ;;  %v1512_v29 = vpop.f32.mrb[20].mxu1 }
 0x125   : > { %v1058_v27 = vsel %vm1056_vm1, %v1029_v23, 0.0  ;;  %v1468_v28 = vadd.f32 %v1467_v25, %v1466_v24  ;;  %v1469_v30 = vpop.f32.mrb[22].mxu0  ;;  %v1041_v36 = vpop.f32.mrb[21].mxu1 }
 0x126   : > { %v1059_v32 = vadd.f32 %v1058_v27, %v1057_v26  ;;  %v1470_v33 = vpop.f32.mrb[23].mxu0  ;;  %v1513_v31 = vpop.f32.mrb[22].mxu1 }
 0x127   : > { %v969_v34 = vadd.f32 %v1468_v28, %v904_v43  ;;  %v1471_v35 = vadd.f32 %v1470_v33, %v1469_v30  ;;  %v1044_v39 = vpop.f32.mrb[23].mxu1 }
 0x129   : > { %v1034_v37 = vadd.f32 %v1508_v16, %v969_v34  ;;  %v972_v38 = vadd.f32 %v1471_v35, %v907_v45 }
 0x12b   : > { %v1060_v40 = vsel %vm1056_vm1, %v1034_v37, 0.0  ;;  %v1037_v41 = vadd.f32 %v1509_v20, %v972_v38  ;;  %v1472_v42 = vpop.f32.mrb[24].mxu0 }
 0x12c   : > { %v1473_v44 = vpop.f32.mrb[25].mxu0  ;;  %v1061_v46 = vadd.f32 %v1060_v40, %v1059_v32 }
 0x12d   : > { %v1474_v47 = vadd.f32 %v1473_v44, %v1472_v42  ;;  %v1475_v48 = vpop.f32.mrb[26].mxu0  ;;  %v1062_v49 = vsel %vm1056_vm1, %v1037_v41, 0.0 }
 0x12e   : > { %v1476_v50 = vpop.f32.mrb[27].mxu0  ;;  %v1063_v51 = vadd.f32 %v1062_v49, %v1061_v46 }
 0x12f   : > { %v1477_v43 = vadd.f32 %v1476_v50, %v1475_v48  ;;  %v977_v52 = vadd.f32 %v1474_v47, %v912_v57 }
 0x131   : > { %v1042_v53 = vadd.f32 %v1041_v36, %v977_v52  ;;  %v980_v54 = vadd.f32 %v1477_v43, %v915_v59 }
 0x133   : > { %v1064_v45 = vsel %vm1056_vm1, %v1042_v53, 0.0  ;;  %v1045_v55 = vadd.f32 %v1044_v39, %v980_v54  ;;  %v1478_v56 = vpop.f32.mrb[28].mxu0 }
 0x134   : > { %v1065_v58 = vadd.f32 %v1064_v45, %v1063_v51  ;;  %v1479_v60 = vpop.f32.mrb[29].mxu0 }
 0x135   : > { %v1066_v61 = vsel %vm1056_vm1, %v1045_v55, 0.0  ;;  %v1480_v62 = vadd.f32 %v1479_v60, %v1478_v56  ;;  %v1481_v63 = vpop.f32.mrb[30].mxu0  ;;  %v1137_v56 = vstv %s1128_s27 }
 0x136   : > { %v1067_v0 = vadd.f32 %v1066_v61, %v1065_v58  ;;  %v1482_v1 = vpop.f32.mrb[31].mxu0 }
 0x137   : > { %v985_v2 = vadd.f32 %v1480_v62, %v920_v7  ;;  %v1483_v3 = vadd.f32 %v1482_v1, %v1481_v63 }
 0x139   : > { %v1050_v4 = vadd.f32 %v1512_v29, %v985_v2  ;;  %v988_v5 = vadd.f32 %v1483_v3, %v923_v9 }
 0x13b   : > { %v1068_v57 = vsel %vm1056_vm1, %v1050_v4, 0.0  ;;  %v1053_v6 = vadd.f32 %v1513_v31, %v988_v5 }
 0x13c   : > { %v1069_v59 = vadd.f32 %v1068_v57, %v1067_v0 }
 0x13d   : > { %v1070_v8 = vsel %vm1056_vm1, %v1053_v6, 0.0 }
 0x13e   : > { %v1071_v10 = vadd.f32 %v1070_v8, %v1069_v59 }
 0x140   : > { %v1072_v11 = vrot.slane %v1071_v10, 4 }
 0x142   : > { %v1073_v12 = vadd.f32 %v1072_v11, %v1071_v10 }
 0x144   : > { %v1074_v13 = vrot.slane %v1073_v12, 2 }
 0x146   : > { %v1075_v14 = vadd.f32 %v1074_v13, %v1073_v12 }
 0x148   : > { %v1076_v15 = vrot.slane %v1075_v14, 1 }
 0x14a   : > { %v1077_v16 = vadd.f32 %v1076_v15, %v1075_v14 }
 0x14c   : > { %v1079_v17 = vmul.f32 0.015625, %v1077_v16 }
 0x14e   : > { %v1080_v18 = vsub.f32 %v1026_v19, %v1079_v17  ;;  %v1081_v20 = vsub.f32 %v1029_v23, %v1079_v17  ;;  %v1082_v7 = vsub.f32 %v1034_v37, %v1079_v17  ;;  %v1083_v21 = vsub.f32 %v1037_v41, %v1079_v17 }
 0x14f   : > { %v1084_v22 = vsub.f32 %v1042_v53, %v1079_v17  ;;  %v1085_v9 = vsub.f32 %v1045_v55, %v1079_v17  ;;  %v1086_v24 = vsub.f32 %v1050_v4, %v1079_v17  ;;  %v1087_v25 = vsub.f32 %v1053_v6, %v1079_v17 }
 0x150   : > { %v1088_v26 = vmul.f32 %v1080_v18, %v1080_v18  ;;  %v1089_v27 = vmul.f32 %v1081_v20, %v1081_v20  ;;  %v1090_v28 = vmul.f32 %v1082_v7, %v1082_v7  ;;  %v1091_v30 = vmul.f32 %v1083_v21, %v1083_v21 }
 0x151   : > { %v1092_v35 = vmul.f32 %v1084_v22, %v1084_v22  ;;  %v1093_v23 = vmul.f32 %v1085_v9, %v1085_v9  ;;  %v1094_v38 = vmul.f32 %v1086_v24, %v1086_v24  ;;  %v1095_v40 = vmul.f32 %v1087_v25, %v1087_v25 }
 0x152   : > { %v1096_v32 = vsel %vm1056_vm1, %v1088_v26, 0.0  ;;  %v1097_v33 = vsel %vm1056_vm1, %v1089_v27, 0.0  ;;  %v1099_v29 = vsel %vm1056_vm1, %v1090_v28, 0.0  ;;  %v1101_v36 = vsel %vm1056_vm1, %v1091_v30, 0.0 }
 0x153   : > { %v1098_v34 = vadd.f32 %v1097_v33, %v1096_v32  ;;  %v1103_v31 = vsel %vm1056_vm1, %v1092_v35, 0.0  ;;  %v1105_v41 = vsel %vm1056_vm1, %v1093_v23, 0.0  ;;  %v1107_v44 = vsel %vm1056_vm1, %v1094_v38, 0.0 }
 0x154   : > { %v1109_v47 = vsel %vm1056_vm1, %v1095_v40, 0.0 }
 0x155   : > { %v1100_v19 = vadd.f32 %v1099_v29, %v1098_v34 }
 0x157   : > { %v1102_v37 = vadd.f32 %v1101_v36, %v1100_v19 }
 0x159   : > { %v1104_v39 = vadd.f32 %v1103_v31, %v1102_v37 }
 0x15b   : > { %v1106_v42 = vadd.f32 %v1105_v41, %v1104_v39 }
 0x15d   : > { %v1108_v46 = vadd.f32 %v1107_v44, %v1106_v42 }
 0x15f   : > { %v1110_v48 = vadd.f32 %v1109_v47, %v1108_v46 }
 0x161   : > { %v1111_v49 = vrot.slane %v1110_v48, 4 }
 0x163   : > { %v1112_v50 = vadd.f32 %v1111_v49, %v1110_v48 }
 0x165   : > { %v1113_v51 = vrot.slane %v1112_v50, 2 }
 0x167   : > { %v1114_v43 = vadd.f32 %v1113_v51, %v1112_v50 }
 0x169   : > { %v1115_v52 = vrot.slane %v1114_v43, 1 }
 0x16b   : > { %v1116_v53 = vadd.f32 %v1115_v52, %v1114_v43 }
 0x16d   : > { %v1117_v54 = vmul.f32 0.015625, %v1116_v53 }
 0x16f   : > { %v1118_v45 = vadd.f32 1e-05, %v1117_v54 }
 0x171   : > { %1617 = vrsqrt.f32 %v1118_v45 }
 0x17b   : > { %v1618_v55 = vpop.eup %1617 }
 0x17c   : > { %v1120_v58 = vmul.f32 %v1618_v55, %v1080_v18  ;;  %v1121_v60 = vmul.f32 %v1618_v55, %v1081_v20  ;;  %v1122_v61 = vmul.f32 %v1618_v55, %v1082_v7  ;;  %v1123_v62 = vmul.f32 %v1618_v55, %v1083_v21 }
 0x17d   : > { %v1124_v63 = vmul.f32 %v1618_v55, %v1084_v22  ;;  %v1125_v0 = vmul.f32 %v1618_v55, %v1085_v9  ;;  %v1126_v1 = vmul.f32 %v1618_v55, %v1086_v24  ;;  %v1127_v2 = vmul.f32 %v1618_v55, %v1087_v25 }
 0x17e   : > { %vm1129_vm3 = vcmp.ge.f32.partialorder %v1120_v58, 0.0  ;;  %vm1130_vm4 = vcmp.ge.f32.partialorder %v1121_v60, 0.0  ;;  %vm1131_vm5 = vcmp.ge.f32.partialorder %v1122_v61, 0.0  ;;  %vm1132_vm6 = vcmp.ge.f32.partialorder %v1123_v62, 0.0 }
 0x17f   : > { %vm1133_vm7 = vcmp.ge.f32.partialorder %v1124_v63, 0.0  ;;  %vm1134_vm8 = vcmp.ge.f32.partialorder %v1125_v0, 0.0  ;;  %vm1135_vm9 = vcmp.ge.f32.partialorder %v1126_v1, 0.0  ;;  %vm1136_vm10 = vcmp.ge.f32.partialorder %v1127_v2, 0.0 }
 0x180   : > { %v1138_v3 = vmul.f32 %v1137_v56, %v1120_v58  ;;  %v1139_v4 = vmul.f32 %v1137_v56, %v1121_v60  ;;  %v1140_v5 = vmul.f32 %v1137_v56, %v1122_v61  ;;  %v1141_v57 = vmul.f32 %v1137_v56, %v1123_v62 }
 0x181   : > { %v1142_v6 = vmul.f32 %v1137_v56, %v1124_v63  ;;  %v1143_v59 = vmul.f32 %v1137_v56, %v1125_v0  ;;  %v1144_v8 = vmul.f32 %v1137_v56, %v1126_v1  ;;  %v1145_v10 = vmul.f32 %v1137_v56, %v1127_v2 }
 0x182   : > { %v1146_v11 = vsel %vm1129_vm3, %v1120_v58, %v1138_v3  ;;  %v1147_v12 = vsel %vm1130_vm4, %v1121_v60, %v1139_v4  ;;  %v1148_v13 = vsel %vm1131_vm5, %v1122_v61, %v1140_v5  ;;  %v1149_v14 = vsel %vm1132_vm6, %v1123_v62, %v1141_v57 }
 0x183   : > { %v1150_v15 = vsel %vm1133_vm7, %v1124_v63, %v1142_v6  ;;  %v1151_v16 = vsel %vm1134_vm8, %v1125_v0, %v1143_v59  ;;  %v1152_v17 = vsel %vm1135_vm9, %v1126_v1, %v1144_v8  ;;  %v1153_v18 = vsel %vm1136_vm10, %v1127_v2, %v1145_v10 }
 0x184   : > { %v1356_v20 = vpack.c.bf16 %v1146_v11, %v1146_v11  ;;  %v1357_v7 = vpack.c.bf16 %v1147_v12, %v1147_v12  ;;  %v1358_v21 = vpack.c.bf16 %v1148_v13, %v1148_v13  ;;  %v1359_v22 = vpack.c.bf16 %v1149_v14, %v1149_v14 }
 0x185   : > { %v1360_v9 = vpack.c.bf16 %v1150_v15, %v1150_v15  ;;  %v1361_v24 = vpack.c.bf16 %v1151_v16, %v1151_v16  ;;  %v1362_v25 = vpack.c.bf16 %v1152_v17, %v1152_v17  ;;  %v1363_v26 = vpack.c.bf16 %v1153_v18, %v1153_v18 }
 0x186   : > { %1187 = vst.msk [vmem:[%s176_s19] sm:$0xf] %vm1186_vm2, %v1356_v20  ;;  %1188 = vst.msk [vmem:[%s176_s19 + $0x4] sm:$0xf] %vm1186_vm2, %v1357_v7 }
 0x187   : > { %1189 = vst.msk [vmem:[%s176_s19 + $0x8] sm:$0xf] %vm1186_vm2, %v1358_v21  ;;  %1190 = vst.msk [vmem:[%s176_s19 + $0xc] sm:$0xf] %vm1186_vm2, %v1359_v22 }
 0x188   : > { %1191 = vst.msk [vmem:[%s176_s19 + $0x10] sm:$0xf] %vm1186_vm2, %v1360_v9  ;;  %1192 = vst.msk [vmem:[%s176_s19 + $0x14] sm:$0xf] %vm1186_vm2, %v1361_v24 }
 0x189   : > { %1193 = vst.msk [vmem:[%s176_s19 + $0x18] sm:$0xf] %vm1186_vm2, %v1362_v25  ;;  %1194 = vst.msk [vmem:[%s176_s19 + $0x1c] sm:$0xf] %vm1186_vm2, %v1363_v26 }
 0x18a PF: > { %s14_s14 = sadd.s32 1, %s1625_s14  }
 0x18b   : > { %p11_p4 = scmp.ge.s32.totalorder %s14_s14, 4  }
 0x18d   :  { %13 = sbr.rel (!%p11_p4) target bundleno = 2 (0x2), region = 62 }

// kernel: custom_unet_forward.7
= control target key start
LH: loop header
LB: loop body
LE: loop exit
PB: predicated region body
PF: predicated region fallthrough
CT: control target
= control target key end

     0   :  { %s2714_s14 = smov 0   ;;  %s3144_s0 = inlined_call_operand.vmem [shape: bf16[128,1728], index: 0, kind: input, shape index: {}]   ;;  %s3145_s1 = inlined_call_operand.vmem [shape: bf16[1728,128], index: 1, kind: input, shape index: {}]   ;;  %s3146_s2 = inlined_call_operand.<no memory space> [shape: f32[1], index: 2, kind: input, shape index: {}]   ;;  %s3147_s3 = inlined_call_operand.vmem [shape: bf16[128,128], index: 3, kind: output, shape index: {}]  }
   0x1   :  { %8 = sst [smem:[#allocation2]] %s3146_s2 }
   0x2 LB: > { %s2020_s15 = sadd.s32 4294967295, %s2688_s14   ;;  %p2024_p0 = scmp.ge.s32.totalorder %s2688_s14, 1  ;;  %s2688_s14 = sphi %s2714_s14, %s14_s14  }
   0x3   : > { %p140_p1 = scmp.lt.s32.totalorder %s2688_s14, 3 }
   0x5   : > { %p141_p2 = pnand %p2024_p0, %p140_p1 }
   0x6   : > { %v2488_v0 = vld [vmem:[%s3145_s1 + $0x40] sm:$0xff] (!%p141_p2)   ;;  %v2490_v2 = vld [vmem:[%s3145_s1 + $0x48] sm:$0xff] (!%p141_p2)   ;;  %v2492_v4 = vld [vmem:[%s3145_s1 + $0x50] sm:$0xff] (!%p141_p2)   ;;  %s2025_s25 = sshll.u32 (!%p141_p2), %s2020_s15, 3  ;;  %vm1375_vm0 = vcmask (!%p141_p2), 523264  }
   0x7   : > { %144 = sbr.rel (%p141_p2) target bundleno = 453 (0x1c5), region = 32  ;;  %v2489_v1 = vld [vmem:[%s3145_s1] sm:$0xff] (!%p141_p2)   ;;  %2238 = vmatprep.subr.bf16.mxu1 (!%p141_p2), %v2488_v0  ;;  %v2491_v3 = vld [vmem:[%s3145_s1 + $0x8] sm:$0xff] (!%p141_p2)   ;;  %v2493_v5 = vld [vmem:[%s3145_s1 + $0x10] sm:$0xff] (!%p141_p2)   ;;  %p166_p3 = scmp.lt.s32.totalorder (!%p141_p2), %s2025_s25, 15 }
   0x8   : > { %2239 = vmatpush3.bf16.msra.mxu1 (!%p141_p2), %v2489_v1  ;;  %v2494_v6 = vld [vmem:[%s3145_s1 + $0x58] sm:$0xff] (!%p141_p2)   ;;  %v2498_v8 = vld [vmem:[%s3145_s1 + $0x140] sm:$0xff] (!%p141_p2)   ;;  %v2502_v12 = vld [vmem:[%s3145_s1 + $0x148] sm:$0xff] (!%p141_p2)  }
   0x9   : > { %2240 = vmatprep.subr.bf16.mxu1 (!%p141_p2), %v2490_v2  ;;  %v2495_v7 = vld [vmem:[%s3145_s1 + $0x18] sm:$0xff] (!%p141_p2)   ;;  %v2496_v9 = vld [vmem:[%s3145_s1 + $0x60] sm:$0xff] (!%p141_p2)   ;;  %2318 = vmatprep.subr.bf16.mxu0 (!%p141_p2), %v2498_v8  ;;  %v2499_v13 = vld [vmem:[%s3145_s1 + $0x68] sm:$0xff] (!%p141_p2)  }
   0xa   : > { %v2500_v10 = vld [vmem:[%s3145_s1 + $0x100] sm:$0xff] (!%p141_p2)   ;;  %v2504_v14 = vld [vmem:[%s3145_s1 + $0x108] sm:$0xff] (!%p141_p2)   ;;  %v2506_v16 = vld [vmem:[%s3145_s1 + $0x150] sm:$0xff] (!%p141_p2)  }
   0xb   : > { %v2497_v11 = vld [vmem:[%s3145_s1 + $0x20] sm:$0xff] (!%p141_p2)   ;;  %2319 = vmatpush3.bf16.msra.mxu0 (!%p141_p2), %v2500_v10  ;;  %v2501_v15 = vld [vmem:[%s3145_s1 + $0x28] sm:$0xff] (!%p141_p2)   ;;  %v2503_v17 = vld [vmem:[%s3145_s1 + $0x70] sm:$0xff] (!%p141_p2)  }
   0xc   : > { %2241 = vmatpush3.bf16.msra.mxu1 (!%p141_p2), %v2491_v3  ;;  %2320 = vmatprep.subr.bf16.mxu0 (!%p141_p2), %v2502_v12  ;;  %v2508_v18 = vld [vmem:[%s3145_s1 + $0x110] sm:$0xff] (!%p141_p2)   ;;  %v2507_v20 = vld [vmem:[%s3145_s1 + $0x78] sm:$0xff] (!%p141_p2)   ;;  %v2514_v25 = vld [vmem:[%s3145_s1 + $0xc0] sm:$0xff] (!%p141_p2)  }
   0xd   : > { %2242 = vmatprep.subr.bf16.mxu1 (!%p141_p2), %v2492_v4  ;;  %v2505_v19 = vld [vmem:[%s3145_s1 + $0x30] sm:$0xff] (!%p141_p2)   ;;  %v2513_v22 = vld [vmem:[%s3145_s1 + $0x158] sm:$0xff] (!%p141_p2)   ;;  %v2517_v27 = vld [vmem:[%s3145_s1 + $0x160] sm:$0xff] (!%p141_p2)  }
   0xe   : > { %s3149_s25 = smov (!%p166_p3, %s2025_s25), 15  ;;  %v2509_v23 = vld [vmem:[%s3145_s1 + $0x38] sm:$0xff]   ;;  %v2516_v28 = vld [vmem:[%s3145_s1 + $0x80] sm:$0xff]   ;;  %v2518_v30 = vld [vmem:[%s3145_s1 + $0xc8] sm:$0xff]  }
   0xf   : > { %s2478_s19 = smul.u32 56, %s3149_s25  ;;  %2321 = vmatpush3.bf16.msra.mxu0 %v2504_v14  ;;  %v2515_v24 = vld [vmem:[%s3145_s1 + $0x118] sm:$0xff]   ;;  %v2519_v29 = vld [vmem:[%s3145_s1 + $0x120] sm:$0xff]   ;;  %v2523_v32 = vld [vmem:[%s3145_s1 + $0x168] sm:$0xff]   ;;  %s2028_s8 = sshll.u32 %s3149_s25, 2 }
  0x10   : > { %2243 = vmatpush3.bf16.msra.mxu1 %v2493_v5  ;;  %2322 = vmatprep.subr.bf16.mxu0 %v2506_v16  ;;  %v2520_v33 = vld [vmem:[%s3145_s1 + $0x88] sm:$0xff]   ;;  %v2525_v36 = vld [vmem:[%s3145_s1 + $0xd0] sm:$0xff]   ;;  %v2529_v40 = vld [vmem:[%s3145_s1 + $0xd8] sm:$0xff]   ;;  %s176_s25 = scalar_lea.vmem %s3147_s3, %s2028_s8 }
  0x11   : > { %2244 = vmatprep.subr.bf16.mxu1 %v2494_v6  ;;  %s2785_s4 = scalar_lea.vmem %s3144_s0, %s2478_s19  ;;  %v2526_v34 = vld [vmem:[%s3145_s1 + $0x128] sm:$0xff]   ;;  %v2528_v37 = vld [vmem:[%s3145_s1 + $0x170] sm:$0xff]   ;;  %v2531_v42 = vld [vmem:[%s3145_s1 + $0x98] sm:$0xff]  }
  0x12   : > { %v2512_v21 = vld [vmem:[%s2785_s4 + $0x4] ss:$56 sps:$4 sm:$0xff]   ;;  %v2510_v26 = vld [vmem:[%s2785_s4] ss:$56 sps:$4 sm:$0xff]   ;;  %v2521_v31 = vld [vmem:[%s2785_s4 + $0x74] ss:$56 sps:$4 sm:$0xff]  }
  0x13   : > { %2323 = vmatpush3.bf16.msra.mxu0 %v2508_v18  ;;  %1420 = vmatprep.mubr.bf16.mxu1 %v2512_v21  ;;  %v2524_v35 = vld [vmem:[%s2785_s4 + $0x70] ss:$56 sps:$4 sm:$0xff]   ;;  %v2532_v41 = vld [vmem:[%s2785_s4 + $0xe4] ss:$56 sps:$4 sm:$0xff]   ;;  %v2535_v45 = vld [vmem:[%s2785_s4 + $0xe0] ss:$56 sps:$4 sm:$0xff]  }
  0x14   : > { %2245 = vmatpush3.bf16.msra.mxu1 %v2495_v7  ;;  %2324 = vmatprep.subr.bf16.mxu0 %v2513_v22  ;;  %v2527_v38 = vld [vmem:[%s3145_s1 + $0x90] sm:$0xff]   ;;  %v2534_v43 = vld [vmem:[%s3145_s1 + $0x178] sm:$0xff]   ;;  %v2536_v44 = vld [vmem:[%s3145_s1 + $0xe0] sm:$0xff]  }
  0x15   : > { %2246 = vmatprep.subr.bf16.mxu1 %v2496_v9  ;;  %v2530_v39 = vld [vmem:[%s3145_s1 + $0x130] sm:$0xff]   ;;  %v2537_v46 = vld [vmem:[%s3145_s1 + $0x138] sm:$0xff]   ;;  %v2538_v47 = vld [vmem:[%s3145_s1 + $0xa0] sm:$0xff]  }
  0x16   : > { %v2539_v48 = vld [vmem:[%s2785_s4 + $0x10] ss:$56 sps:$4 sm:$0xff]   ;;  %v2541_v49 = vld [vmem:[%s2785_s4 + $0x14] ss:$56 sps:$4 sm:$0xff]   ;;  %v2542_v50 = vld [vmem:[%s3145_s1 + $0x240] sm:$0xff]  }
  0x17   : > { %2325 = vmatpush3.bf16.msra.mxu0 %v2515_v24  ;;  %1550 = vmatprep.mubr.bf16.mxu0 %v2541_v49  ;;  %v2543_v51 = vld [vmem:[%s3145_s1 + $0xe8] sm:$0xff]   ;;  %v2544_v52 = vld [vmem:[%s3145_s1 + $0x200] sm:$0xff]   ;;  %v2550_v57 = vld [vmem:[%s3145_s1 + $0xf0] sm:$0xff]  }
  0x18   : > { %2247 = vmatpush3.bf16.msra.mxu1 %v2497_v11  ;;  %2326 = vmatprep.subr.bf16.mxu0 %v2517_v27  ;;  %v2545_v53 = vld [vmem:[%s3145_s1 + $0xa8] sm:$0xff]   ;;  %v2552_v59 = vld [vmem:[%s3145_s1 + $0xb0] sm:$0xff]   ;;  %v2553_v60 = vld [vmem:[%s2785_s4 + $0x84] ss:$56 sps:$4 sm:$0xff]  }
  0x19   : > { %2248 = vmatprep.subr.bf16.mxu1 %v2499_v13  ;;  %v2546_v54 = vld [vmem:[%s2785_s4 + $0x154] ss:$56 sps:$4 sm:$0xff]   ;;  %v2549_v56 = vld [vmem:[%s2785_s4 + $0x150] ss:$56 sps:$4 sm:$0xff]   ;;  %v2556_v62 = vld [vmem:[%s3145_s1 + $0xf8] sm:$0xff]  }
  0x1a   : > { %v2548_v55 = vld [vmem:[%s3145_s1 + $0x248] sm:$0xff]   ;;  %v2555_v61 = vld [vmem:[%s3145_s1 + $0x250] sm:$0xff]   ;;  %v2557_v63 = vld [vmem:[%s2785_s4 + $0x80] ss:$56 sps:$4 sm:$0xff]  }
  0x1b   : > { %2327 = vmatpush3.bf16.msra.mxu0 %v2519_v29  ;;  %v2551_v58 = vld [vmem:[%s3145_s1 + $0x208] sm:$0xff]   ;;  %v2558_v0 = vld [vmem:[%s3145_s1 + $0x210] sm:$0xff]   ;;  %v2559_v1 = vld [vmem:[%s3145_s1 + $0xb8] sm:$0xff]  }
  0x1c   : > { %2249 = vmatpush3.bf16.msra.mxu1 %v2501_v15  ;;  %2328 = vmatprep.subr.bf16.mxu0 %v2523_v32  ;;  %v2560_v2 = vld [vmem:[%s2785_s4 + $0x8] ss:$56 sps:$4 sm:$0xff]   ;;  %v2562_v3 = vld [vmem:[%s2785_s4 + $0xc] ss:$56 sps:$4 sm:$0xff]   ;;  %v2563_v4 = vld [vmem:[%s3145_s1 + $0x258] sm:$0xff]  }
  0x1d   : > { %2250 = vmatprep.subr.bf16.mxu1 %v2503_v17  ;;  %v2564_v5 = vld [vmem:[%s3145_s1 + $0x1c0] sm:$0xff]   ;;  %v2565_v6 = vld [vmem:[%s3145_s1 + $0x218] sm:$0xff]   ;;  %v2567_v8 = vld [vmem:[%s2785_s4 + $0xf4] ss:$56 sps:$4 sm:$0xff]  }
  0x1e   : > { %v2566_v7 = vld [vmem:[%s3145_s1 + $0x180] sm:$0xff]   ;;  %v2570_v10 = vld [vmem:[%s2785_s4 + $0xf0] ss:$56 sps:$4 sm:$0xff]   ;;  %v2574_v14 = vld [vmem:[%s2785_s4 + $0x7c] ss:$56 sps:$4 sm:$0xff]  }
  0x1f   : > { %2329 = vmatpush3.bf16.msra.mxu0 %v2526_v34  ;;  %v2569_v9 = vld [vmem:[%s3145_s1 + $0x260] sm:$0xff]   ;;  %v2571_v11 = vld [vmem:[%s3145_s1 + $0x1c8] sm:$0xff]   ;;  %v2577_v16 = vld [vmem:[%s2785_s4 + $0x78] ss:$56 sps:$4 sm:$0xff]   ;;  %v2690_v34 = vmov 0  }
  0x20   : > { %2251 = vmatpush3.bf16.msra.mxu1 %v2505_v19  ;;  %2330 = vmatprep.subr.bf16.mxu0 %v2528_v37  ;;  %v2572_v12 = vld [vmem:[%s3145_s1 + $0x220] sm:$0xff]   ;;  %v2573_v13 = vld [vmem:[%s3145_s1 + $0x188] sm:$0xff]   ;;  %v2578_v17 = vld [vmem:[%s3145_s1 + $0x1d0] sm:$0xff]  }
  0x21   : > { %2252 = vmatprep.subr.bf16.mxu1 %v2507_v20  ;;  %v2576_v15 = vld [vmem:[%s3145_s1 + $0x268] sm:$0xff]   ;;  %v2580_v19 = vld [vmem:[%s3145_s1 + $0x190] sm:$0xff]   ;;  %v2581_v20 = vld [vmem:[%s2785_s4 + $0x164] ss:$56 sps:$4 sm:$0xff]  }
  0x22   : > { %v2579_v18 = vld [vmem:[%s3145_s1 + $0x228] sm:$0xff]   ;;  %v2583_v21 = vld [vmem:[%s3145_s1 + $0x270] sm:$0xff]   ;;  %v2584_v22 = vld [vmem:[%s2785_s4 + $0x160] ss:$56 sps:$4 sm:$0xff]  }
  0x23   : > { %2331 = vmatpush3.bf16.msra.mxu0 %v2530_v39  ;;  %v2586_v24 = vld [vmem:[%s3145_s1 + $0x230] sm:$0xff]   ;;  %v2590_v27 = vld [vmem:[%s3145_s1 + $0x278] sm:$0xff]   ;;  %v2592_v29 = vld [vmem:[%s3145_s1 + $0x1e0] sm:$0xff]  }
  0x24   : > { %2253 = vmatpush3.bf16.msra.mxu1 %v2509_v23  ;;  %2332 = vmatprep.subr.bf16.mxu0 %v2534_v43  ;;  %v2585_v23 = vld [vmem:[%s3145_s1 + $0x1d8] sm:$0xff]   ;;  %v2600_v37 = vld [vmem:[%s3145_s1 + $0x1a8] sm:$0xff]  }
  0x25   : > { %2278 = vmatprep.subr.bf16.mxu1 %v2514_v25  ;;  %v2587_v25 = vld [vmem:[%s3145_s1 + $0x198] sm:$0xff]  }
  0x26   : > { %v2595_v32 = vld [vmem:[%s2785_s4 + $0x20] ss:$56 sps:$4 sm:$0xff]  }
  0x27   : > { %1421 = vmatmul.mubr.bf16.vlgmr.msra.gmra.mrb[0].mxu1 %v2510_v26  ;;  %2333 = vmatpush3.bf16.msra.mxu0 %v2537_v46  ;;  %v2588_v26 = vld [vmem:[%s2785_s4 + $0xec] ss:$56 sps:$4 sm:$0xff]   ;;  %v2603_v39 = vld [vmem:[%s2785_s4 + $0x158] ss:$56 sps:$4 sm:$0xff]  }
  0x28   : > { %2279 = vmatpush3.bf16.msra.mxu1 %v2516_v28  ;;  %1428 = vmatprep.mubr.bf16.mxu1 %v2521_v31  ;;  %v2591_v28 = vld [vmem:[%s2785_s4 + $0xe8] ss:$56 sps:$4 sm:$0xff]   ;;  %v2607_v43 = vld [vmem:[%s3145_s1 + $0x1f8] sm:$0xff]  }
  0x29   : > { %2280 = vmatprep.subr.bf16.mxu1 %v2518_v30  ;;  %2398 = vmatprep.subr.bf16.mxu0 %v2542_v50  ;;  %v2593_v30 = vld [vmem:[%s3145_s1 + $0x238] sm:$0xff]   ;;  %v2594_v31 = vld [vmem:[%s3145_s1 + $0x1a0] sm:$0xff]  }
  0x2a   : > { %1551 = vmatmul.mubr.bf16.vlgmr.msra.gmra.mrb[0].mxu0 %v2539_v48  ;;  %v2610_v46 = vld [vmem:[%s2785_s4 + $0x18] ss:$56 sps:$4 sm:$0xff]   ;;  %v2613_v48 = vld [vmem:[%s3145_s1 + $0x2c0] sm:$0xff]  }
  0x2b   : > { %2399 = vmatpush3.bf16.msra.mxu0 %v2544_v52  ;;  %1558 = vmatprep.mubr.bf16.mxu0 %v2553_v60  ;;  %v2614_v49 = vld [vmem:[%s3145_s1 + $0x318] sm:$0xff]   ;;  %v2615_v50 = vld [vmem:[%s3145_s1 + $0x280] sm:$0xff]   ;;  %v2627_v60 = vld [vmem:[%s2785_s4 + $0x90] ss:$56 sps:$4 sm:$0xff]  }
  0x2c   : > { %2281 = vmatpush3.bf16.msra.mxu1 %v2520_v33  ;;  %2400 = vmatprep.subr.bf16.mxu0 %v2548_v55  ;;  %v2597_v33 = vld [vmem:[%s2785_s4 + $0x24] ss:$56 sps:$4 sm:$0xff]   ;;  %v2621_v55 = vld [vmem:[%s2785_s4 + $0x88] ss:$56 sps:$4 sm:$0xff]  }
  0x2d   : > { %2282 = vmatprep.subr.bf16.mxu1 %v2525_v36  ;;  %v2599_v36 = vld [vmem:[%s3145_s1 + $0x300] sm:$0xff]  }
  0x2e   : > { %v2617_v52 = vld [vmem:[%s3145_s1 + $0x320] sm:$0xff]  }
  0x2f   : > { %1429 = vmatmul.mubr.bf16.gmra.mrb[4].mxu1 %v2524_v35  ;;  %2401 = vmatpush3.bf16.msra.mxu0 %v2551_v58  ;;  %v2598_v35 = vld [vmem:[%s3145_s1 + $0x1e8] sm:$0xff]  }
  0x30   : > { %2283 = vmatpush3.bf16.msra.mxu1 %v2527_v38  ;;  %1436 = vmatprep.mubr.bf16.mxu1 %v2532_v41  ;;  %v2601_v38 = vld [vmem:[%s2785_s4 + $0x15c] ss:$56 sps:$4 sm:$0xff]   ;;  %v2605_v41 = vld [vmem:[%s3145_s1 + $0x308] sm:$0xff]  }
  0x31   : > { %2284 = vmatprep.subr.bf16.mxu1 %v2529_v40  ;;  %2402 = vmatprep.subr.bf16.mxu0 %v2555_v61  ;;  %v2604_v40 = vld [vmem:[%s3145_s1 + $0x1f0] sm:$0xff]   ;;  %v2628_v61 = vld [vmem:[%s3145_s1 + $0x2d8] sm:$0xff]  }
  0x32   : > { %1559 = vmatmul.mubr.bf16.gmra.mrb[4].mxu0 %v2557_v63  ;;  %v2624_v58 = vld [vmem:[%s2785_s4 + $0x94] ss:$56 sps:$4 sm:$0xff]   ;;  %v2630_v63 = vld [vmem:[%s3145_s1 + $0x298] sm:$0xff]  }
  0x33   : > { %2403 = vmatpush3.bf16.msra.mxu0 %v2558_v0  ;;  %1566 = vmatprep.mubr.bf16.mxu0 %v2567_v8  ;;  %v2631_v0 = vld [vmem:[%s2785_s4 + $0xfc] ss:$56 sps:$4 sm:$0xff]   ;;  %v2641_v8 = vld [vmem:[%s3145_s1 + $0x340] sm:$0xff]  }
  0x34   : > { %2285 = vmatpush3.bf16.msra.mxu1 %v2531_v42  ;;  %2404 = vmatprep.subr.bf16.mxu0 %v2563_v4  ;;  %v2606_v42 = vld [vmem:[%s3145_s1 + $0x1b0] sm:$0xff]   ;;  %v2636_v4 = vld [vmem:[%s2785_s4 + $0x104] ss:$56 sps:$4 sm:$0xff]  }
  0x35   : > { %2286 = vmatprep.subr.bf16.mxu1 %v2536_v44  ;;  %v2608_v44 = vld [vmem:[%s3145_s1 + $0x310] sm:$0xff]  }
  0x37   : > { %1437 = vmatmul.mubr.bf16.gmra.mrb[8].mxu1 %v2535_v45  ;;  %2405 = vmatpush3.bf16.msra.mxu0 %v2565_v6  ;;  %v2609_v45 = vld [vmem:[%s3145_s1 + $0x1b8] sm:$0xff]  }
  0x38   : > { %2287 = vmatpush3.bf16.msra.mxu1 %v2538_v47  ;;  %1444 = vmatprep.mubr.bf16.mxu1 %v2546_v54  ;;  %v2612_v47 = vld [vmem:[%s2785_s4 + $0x1c] ss:$56 sps:$4 sm:$0xff]   ;;  %v2619_v54 = vld [vmem:[%s2785_s4 + $0x8c] ss:$56 sps:$4 sm:$0xff]   ;;  %v2639_v6 = vld [vmem:[%s2785_s4 + $0x100] ss:$56 sps:$4 sm:$0xff]  }
  0x39   : > { %2288 = vmatprep.subr.bf16.mxu1 %v2543_v51  ;;  %2406 = vmatprep.subr.bf16.mxu0 %v2569_v9  ;;  %v2616_v51 = vld [vmem:[%s3145_s1 + $0x2c8] sm:$0xff]  }
  0x3a   : > { %1567 = vmatmul.mubr.bf16.gmra.mrb[8].mxu0 %v2570_v10  ;;  %v2642_v9 = vld [vmem:[%s3145_s1 + $0x2a8] sm:$0xff]  }
  0x3b   : > { %2407 = vmatpush3.bf16.msra.mxu0 %v2572_v12  ;;  %1574 = vmatprep.mubr.bf16.mxu0 %v2581_v20  ;;  %v2643_v10 = vld [vmem:[%s2785_s4 + $0x16c] ss:$56 sps:$4 sm:$0xff]   ;;  %v2646_v12 = vld [vmem:[%s3145_s1 + $0x2f0] sm:$0xff]   ;;  %v2655_v20 = vld [vmem:[%s2785_s4 + $0x28] ss:$56 sps:$4 sm:$0xff]  }
  0x3c   : > { %2289 = vmatpush3.bf16.msra.mxu1 %v2545_v53  ;;  %2408 = vmatprep.subr.bf16.mxu0 %v2576_v15  ;;  %v2618_v53 = vld [vmem:[%s3145_s1 + $0x288] sm:$0xff]   ;;  %v2650_v15 = vld [vmem:[%s3145_s1 + $0x2b0] sm:$0xff]  }
  0x3d   : > { %2290 = vmatprep.subr.bf16.mxu1 %v2550_v57  ;;  %v2623_v57 = vld [vmem:[%s3145_s1 + $0x328] sm:$0xff]  }
  0x3f   : > { %1445 = vmatmul.mubr.bf16.gmra.mrb[12].mxu1 %v2549_v56  ;;  %2409 = vmatpush3.bf16.msra.mxu0 %v2579_v18  ;;  %v2622_v56 = vld [vmem:[%s3145_s1 + $0x2d0] sm:$0xff]  }
  0x40   : > { %2291 = vmatpush3.bf16.msra.mxu1 %v2552_v59  ;;  %1485 = vmatprep.mubr.bf16.mxu1 %v2562_v3  ;;  %v2626_v59 = vld [vmem:[%s3145_s1 + $0x290] sm:$0xff]   ;;  %v2635_v3 = vld [vmem:[%s3145_s1 + $0x338] sm:$0xff]  }
  0x41   : > { %2292 = vmatprep.subr.bf16.mxu1 %v2556_v62  ;;  %2410 = vmatprep.subr.bf16.mxu0 %v2583_v21  ;;  %v2629_v62 = vld [vmem:[%s3145_s1 + $0x330] sm:$0xff]   ;;  %v2657_v21 = vld [vmem:[%s2785_s4 + $0x2c] ss:$56 sps:$4 sm:$0xff]  }
  0x42   : > { %1575 = vmatmul.mubr.bf16.gmra.mrb[12].mxu0 %v2584_v22  ;;  %v2653_v18 = vld [vmem:[%s3145_s1 + $0x350] sm:$0xff]   ;;  %v2658_v22 = vld [vmem:[%s3145_s1 + $0x358] sm:$0xff]  }
  0x43   : > { %2411 = vmatpush3.bf16.msra.mxu0 %v2586_v24  ;;  %1680 = vmatprep.mubr.bf16.mxu0 %v2597_v33  ;;  %v2661_v24 = vld [vmem:[%s2785_s4 + $0x34] ss:$56 sps:$4 sm:$0xff]   ;;  %v2673_v33 = vld [vmem:[%s2785_s4 + $0x110] ss:$56 sps:$4 sm:$0xff]  }
  0x44   : > { %2293 = vmatpush3.bf16.msra.mxu1 %v2559_v1  ;;  %2412 = vmatprep.subr.bf16.mxu0 %v2590_v27  ;;  %v2633_v1 = vld [vmem:[%s2785_s4 + $0xf8] ss:$56 sps:$4 sm:$0xff]  }
  0x45   : > { %2358 = vmatprep.subr.bf16.mxu1 %v2564_v5  ;;  %v2638_v5 = vld [vmem:[%s3145_s1 + $0x2a0] sm:$0xff]   ;;  %v2664_v27 = vld [vmem:[%s2785_s4 + $0x98] ss:$56 sps:$4 sm:$0xff]  }
  0x47   : > { %1486 = vmatmul.mubr.bf16.vlgmr.msra.gmra.mrb[16].mxu1 %v2560_v2  ;;  %2413 = vmatpush3.bf16.msra.mxu0 %v2593_v30  ;;  %v2634_v2 = vld [vmem:[%s3145_s1 + $0x2e0] sm:$0xff]   ;;  %v2671_v30 = vld [vmem:[%s2785_s4 + $0x114] ss:$56 sps:$4 sm:$0xff]  }
  0x48   : > { %2359 = vmatpush3.bf16.msra.mxu1 %v2566_v7  ;;  %1493 = vmatprep.mubr.bf16.mxu1 %v2574_v14  ;;  %v2640_v7 = vld [vmem:[%s3145_s1 + $0x2e8] sm:$0xff]  }
  0x49   : > { %2360 = vmatprep.subr.bf16.mxu1 %v2571_v11  ;;  %1778 = vmatprep.subr.bf16.mxu0 %v2690_v34  ;;  %v2645_v11 = vld [vmem:[%s2785_s4 + $0x168] ss:$56 sps:$4 sm:$0xff]   ;;  %v2648_v14 = vld [vmem:[%s2785_s4 + $0x174] ss:$56 sps:$4 sm:$0xff]  }
  0x4a   : > { %1681 = vmatmul.mubr.bf16.vlgmr.msra.gmra.mrb[16].mxu0 %v2595_v32  ;;  %v2674_v32 = vld [vmem:[%s2785_s4 + $0x17c] ss:$56 sps:$4 sm:$0xff]  }
  0x4b   : > { %1779 = vmatpush1.bf16.msra.mxu0 %v2599_v36  ;;  %1688 = vmatprep.mubr.bf16.mxu0 %v2624_v58  ;;  %v2679_v36 = vld [vmem:[%s2785_s4 + $0x180] ss:$56 sps:$4 sm:$0xff]  }
  0x4c   : > { %2361 = vmatpush3.bf16.msra.mxu1 %v2573_v13  ;;  %1780 = vmatprep.subr.bf16.mxu0 %v2690_v34  ;;  %v2647_v13 = vld [vmem:[%s3145_s1 + $0x348] sm:$0xff]  }
  0x4d   : > { %2362 = vmatprep.subr.bf16.mxu1 %v2578_v17  ;;  %v2652_v17 = vld [vmem:[%s3145_s1 + $0x2f8] sm:$0xff]  }
  0x4f   : > { %1494 = vmatmul.mubr.bf16.gmra.mrb[20].mxu1 %v2577_v16  ;;  %1781 = vmatpush1.bf16.msra.mxu0 %v2605_v41  ;;  %v2651_v16 = vld [vmem:[%s2785_s4 + $0x170] ss:$56 sps:$4 sm:$0xff]  }
  0x50   : > { %2363 = vmatpush3.bf16.msra.mxu1 %v2580_v19  ;;  %1501 = vmatprep.mubr.bf16.mxu1 %v2588_v26  ;;  %v2654_v19 = vld [vmem:[%s3145_s1 + $0x2b8] sm:$0xff]  }
  0x51   : > { %2364 = vmatprep.subr.bf16.mxu1 %v2585_v23  ;;  %1782 = vmatprep.subr.bf16.mxu0 %v2690_v34  ;;  %v2659_v23 = vld [vmem:[%s2785_s4 + $0x30] ss:$56 sps:$4 sm:$0xff]   ;;  %v2665_v26 = vld [vmem:[%s2785_s4 + $0xa4] ss:$56 sps:$4 sm:$0xff]  }
  0x52   : > { %1689 = vmatmul.mubr.bf16.gmra.mrb[20].mxu0 %v2627_v60 }
  0x53   : > { %1783 = vmatpush1.bf16.msra.mxu0 %v2608_v44  ;;  %1696 = vmatprep.mubr.bf16.mxu0 %v2636_v4 }
  0x54   : > { %2365 = vmatpush3.bf16.msra.mxu1 %v2587_v25  ;;  %1784 = vmatprep.subr.bf16.mxu0 %v2690_v34  ;;  %v2662_v25 = vld [vmem:[%s2785_s4 + $0x9c] ss:$56 sps:$4 sm:$0xff]  }
  0x55   : > { %2366 = vmatprep.subr.bf16.mxu1 %v2592_v29  ;;  %v2667_v29 = vld [vmem:[%s2785_s4 + $0xa0] ss:$56 sps:$4 sm:$0xff]  }
  0x57   : > { %1502 = vmatmul.mubr.bf16.gmra.mrb[24].mxu1 %v2591_v28  ;;  %1785 = vmatpush1.bf16.msra.mxu0 %v2614_v49  ;;  %v2668_v28 = vld [vmem:[%s2785_s4 + $0x10c] ss:$56 sps:$4 sm:$0xff]  }
  0x58   : > { %2367 = vmatpush3.bf16.msra.mxu1 %v2594_v31  ;;  %1509 = vmatprep.mubr.bf16.mxu1 %v2601_v38  ;;  %v2670_v31 = vld [vmem:[%s2785_s4 + $0x108] ss:$56 sps:$4 sm:$0xff]  }
  0x59   : > { %2368 = vmatprep.subr.bf16.mxu1 %v2598_v35  ;;  %1786 = vmatprep.subr.bf16.mxu0 %v2690_v34  ;;  %v2676_v35 = vld [vmem:[%s2785_s4 + $0x178] ss:$56 sps:$4 sm:$0xff]  }
  0x5a   : > { %1697 = vmatmul.mubr.bf16.gmra.mrb[24].mxu0 %v2639_v6 }
  0x5b   : > { %1787 = vmatpush1.bf16.msra.mxu0 %v2617_v52  ;;  %1704 = vmatprep.mubr.bf16.mxu0 %v2648_v14 }
  0x5c   : > { %2369 = vmatpush3.bf16.msra.mxu1 %v2600_v37  ;;  %1788 = vmatprep.subr.bf16.mxu0 %v2690_v34 }
  0x5d   : > { %2370 = vmatprep.subr.bf16.mxu1 %v2604_v40 }
  0x5f   : > { %1510 = vmatmul.mubr.bf16.gmra.mrb[28].mxu1 %v2603_v39  ;;  %1789 = vmatpush1.bf16.msra.mxu0 %v2623_v57 }
  0x60   : > { %2371 = vmatpush3.bf16.msra.mxu1 %v2606_v42  ;;  %1615 = vmatprep.mubr.bf16.mxu1 %v2612_v47 }
  0x61   : > { %2372 = vmatprep.subr.bf16.mxu1 %v2607_v43  ;;  %1790 = vmatprep.subr.bf16.mxu0 %v2690_v34 }
  0x62   : > { %1705 = vmatmul.mubr.bf16.gmra.mrb[28].mxu0 %v2651_v16 }
  0x63   : > { %1791 = vmatpush1.bf16.msra.mxu0 %v2629_v62  ;;  %2193 = vmatprep.mubr.msk.bf16.mxu0 %vm1375_vm0, %v2661_v24 }
  0x64   : > { %2373 = vmatpush3.bf16.msra.mxu1 %v2609_v45  ;;  %1792 = vmatprep.subr.bf16.mxu0 %v2690_v34 }
  0x65   : > { %2438 = vmatprep.subr.bf16.mxu1 %v2613_v48 }
  0x67   : > { %1616 = vmatmul.mubr.bf16.vlgmr.msra.gmra.mrb[32].mxu1 %v2610_v46  ;;  %1793 = vmatpush1.bf16.msra.mxu0 %v2635_v3 }
  0x68   : > { %2439 = vmatpush3.bf16.msra.mxu1 %v2615_v50  ;;  %1623 = vmatprep.mubr.bf16.mxu1 %v2619_v54 }
  0x69   : > { %2440 = vmatprep.subr.bf16.mxu1 %v2616_v51  ;;  %1794 = vmatprep.subr.bf16.mxu0 %v2690_v34 }
  0x6b   : > { %1795 = vmatpush1.bf16.msra.mxu0 %v2641_v8 }
  0x6c   : > { %2441 = vmatpush3.bf16.msra.mxu1 %v2618_v53  ;;  %1796 = vmatprep.subr.bf16.mxu0 %v2690_v34 }
  0x6d   : > { %2442 = vmatprep.subr.bf16.mxu1 %v2622_v56 }
  0x6f   : > { %1624 = vmatmul.mubr.bf16.gmra.mrb[36].mxu1 %v2621_v55  ;;  %1797 = vmatpush1.bf16.msra.mxu0 %v2647_v13 }
  0x70   : > { %2443 = vmatpush3.bf16.msra.mxu1 %v2626_v59  ;;  %1631 = vmatprep.mubr.bf16.mxu1 %v2631_v0 }
  0x71   : > { %2444 = vmatprep.subr.bf16.mxu1 %v2628_v61  ;;  %1798 = vmatprep.subr.bf16.mxu0 %v2690_v34 }
  0x73   : > { %1799 = vmatpush1.bf16.msra.mxu0 %v2653_v18 }
  0x74   : > { %2445 = vmatpush3.bf16.msra.mxu1 %v2630_v63  ;;  %1800 = vmatprep.subr.bf16.mxu0 %v2690_v34  ;;  %v2677_v34 = vld [vmem:[%s2785_s4 + $0x184] ss:$56 sps:$4 sm:$0xff]   ;;  %s1898_s4 = sld [smem:[#allocation2]] }
  0x75   : > { %2446 = vmatprep.subr.bf16.mxu1 %v2634_v2 }
  0x77   : > { %1632 = vmatmul.mubr.bf16.gmra.mrb[40].mxu1 %v2633_v1  ;;  %1801 = vmatpush1.bf16.msra.mxu0 %v2658_v22 }
  0x78   : > { %2447 = vmatpush3.bf16.msra.mxu1 %v2638_v5  ;;  %1639 = vmatprep.mubr.bf16.mxu1 %v2643_v10 }
  0x79   : > { %2448 = vmatprep.subr.bf16.mxu1 %v2640_v7 }
  0x7a   : > { %1811 = vmatmul.mubr.bf16.vlgmr.msra.gmra.mrb[32].mxu0 %v2659_v23 }
  0x7b   : > { %2194 = vmatprep.mubr.msk.bf16.mxu0 %vm1375_vm0, %v2665_v26 }
  0x7c   : > { %2449 = vmatpush3.bf16.msra.mxu1 %v2642_v9 }
  0x7d   : > { %2450 = vmatprep.subr.bf16.mxu1 %v2646_v12 }
  0x7f   : > { %1640 = vmatmul.mubr.bf16.gmra.mrb[44].mxu1 %v2645_v11 }
  0x80   : > { %2451 = vmatpush3.bf16.msra.mxu1 %v2650_v15  ;;  %1745 = vmatprep.mubr.bf16.mxu1 %v2657_v21 }
  0x81   : > { %2452 = vmatprep.subr.bf16.mxu1 %v2652_v17 }
  0x82   : > { %1819 = vmatmul.mubr.bf16.gmra.mrb[36].mxu0 %v2667_v29 }
  0x83   : > { %2195 = vmatprep.mubr.msk.bf16.mxu0 %vm1375_vm0, %v2671_v30 }
  0x84   : > { %2453 = vmatpush3.bf16.msra.mxu1 %v2654_v19 }
  0x87   : > { %1746 = vmatmul.mubr.bf16.vlgmr.msra.gmra.mrb[48].mxu1 %v2655_v20 }
  0x88   : > { %1753 = vmatprep.mubr.bf16.mxu1 %v2662_v25 }
  0x8a   : > { %1827 = vmatmul.mubr.bf16.gmra.mrb[40].mxu0 %v2673_v33 }
  0x8b   : > { %2196 = vmatprep.mubr.msk.bf16.mxu0 %vm1375_vm0, %v2677_v34 }
  0x8f   : > { %1754 = vmatmul.mubr.bf16.gmra.mrb[52].mxu1 %v2664_v27 }
  0x90   : > { %1761 = vmatprep.mubr.bf16.mxu1 %v2668_v28 }
  0x92   : > { %1835 = vmatmul.mubr.bf16.gmra.mrb[44].mxu0 %v2679_v36 }
  0x97   : > { %1762 = vmatmul.mubr.bf16.gmra.mrb[56].mxu1 %v2670_v31 }
  0x98   : > { %1769 = vmatprep.mubr.bf16.mxu1 %v2674_v32 }
  0x9f   : > { %1770 = vmatmul.mubr.bf16.gmra.mrb[60].mxu1 %v2676_v35 }
  0xfa   : > { %v2254_v37 = vpop.f32.mrb[0].mxu1 }
  0xfb   : > { %v2255_v38 = vpop.f32.mrb[1].mxu1 }
  0xfc   : > { %v2256_v39 = vadd.f32 %v2255_v38, %v2254_v37  ;;  %v2257_v40 = vpop.f32.mrb[2].mxu1 }
  0xfd   : > { %v2258_v41 = vpop.f32.mrb[3].mxu1  ;;  %v2334_v51 = vpop.f32.mrb[0].mxu0 }
  0xfe   : > { %v2259_v42 = vadd.f32 %v2258_v41, %v2257_v40  ;;  %v2335_v54 = vpop.f32.mrb[1].mxu0 }
  0xff   : > { %v2336_v56 = vadd.f32 %v2335_v54, %v2334_v51  ;;  %v2337_v57 = vpop.f32.mrb[2].mxu0 }
 0x100   : > { %v2338_v59 = vpop.f32.mrb[3].mxu0 }
 0x101   : > { %v2339_v60 = vadd.f32 %v2338_v59, %v2337_v57 }
 0x102   : > { %v2260_v43 = vpop.f32.mrb[4].mxu1 }
 0x103   : > { %v2261_v44 = vpop.f32.mrb[5].mxu1 }
 0x104   : > { %v2262_v45 = vadd.f32 %v2261_v44, %v2260_v43  ;;  %v2263_v46 = vpop.f32.mrb[6].mxu1 }
 0x105   : > { %v2264_v47 = vpop.f32.mrb[7].mxu1  ;;  %v2340_v2 = vpop.f32.mrb[4].mxu0 }
 0x106   : > { %v2265_v48 = vadd.f32 %v2264_v47, %v2263_v46  ;;  %v2341_v4 = vpop.f32.mrb[5].mxu0 }
 0x107   : > { %v2342_v5 = vadd.f32 %v2341_v4, %v2340_v2  ;;  %v2343_v6 = vpop.f32.mrb[6].mxu0 }
 0x108   : > { %v2344_v7 = vpop.f32.mrb[7].mxu0 }
 0x109   : > { %v2345_v8 = vadd.f32 %v2344_v7, %v2343_v6 }
 0x10a   : > { %v2266_v49 = vpop.f32.mrb[8].mxu1 }
 0x10b   : > { %v2267_v50 = vpop.f32.mrb[9].mxu1 }
 0x10c   : > { %v2268_v52 = vadd.f32 %v2267_v50, %v2266_v49  ;;  %v2269_v53 = vpop.f32.mrb[10].mxu1 }
 0x10d   : > { %v2270_v55 = vpop.f32.mrb[11].mxu1  ;;  %v2346_v16 = vpop.f32.mrb[8].mxu0 }
 0x10e   : > { %v2271_v58 = vadd.f32 %v2270_v55, %v2269_v53  ;;  %v2347_v18 = vpop.f32.mrb[9].mxu0 }
 0x10f   : > { %v2348_v20 = vadd.f32 %v2347_v18, %v2346_v16  ;;  %v2349_v21 = vpop.f32.mrb[10].mxu0 }
 0x110   : > { %v2350_v22 = vpop.f32.mrb[11].mxu0 }
 0x111   : > { %v2351_v24 = vadd.f32 %v2350_v22, %v2349_v21 }
 0x112   : > { %v2272_v61 = vpop.f32.mrb[12].mxu1 }
 0x113   : > { %v2273_v62 = vpop.f32.mrb[13].mxu1 }
 0x114   : > { %v3126_v63 = vadd.f32 %v2273_v62, %v2272_v61  ;;  %v2275_v0 = vpop.f32.mrb[14].mxu1 }
 0x115   : > { %v2276_v1 = vpop.f32.mrb[15].mxu1  ;;  %v2352_v33 = vpop.f32.mrb[12].mxu0 }
 0x116   : > { %v2277_v3 = vadd.f32 %v2276_v1, %v2275_v0  ;;  %v2353_v35 = vpop.f32.mrb[13].mxu0 }
 0x117   : > { %v2354_v36 = vadd.f32 %v2353_v35, %v2352_v33  ;;  %v2355_v37 = vpop.f32.mrb[14].mxu0 }
 0x11a   : > { %v2294_v9 = vpop.f32.mrb[16].mxu1 }
 0x11b   : > { %v2295_v10 = vpop.f32.mrb[17].mxu1 }
 0x11c   : > { %v2296_v11 = vadd.f32 %v2295_v10, %v2294_v9  ;;  %v2297_v12 = vpop.f32.mrb[18].mxu1 }
 0x11d   : > { %v2298_v13 = vpop.f32.mrb[19].mxu1 }
 0x11e   : > { %v1488_v14 = vadd.f32 %v2296_v11, %v2256_v39  ;;  %v2299_v15 = vadd.f32 %v2298_v13, %v2297_v12  ;;  %v2356_v39 = vpop.f32.mrb[15].mxu0 }
 0x11f   : > { %v2357_v40 = vadd.f32 %v2356_v39, %v2355_v37  ;;  %v2414_v50 = vpop.f32.mrb[16].mxu0 }
 0x120   : > { %v1491_v17 = vadd.f32 %v2299_v15, %v2259_v42  ;;  %v1553_v19 = vadd.f32 %v2336_v56, %v1488_v14 }
 0x122   : > { %v1556_v23 = vadd.f32 %v2339_v60, %v1491_v17  ;;  %v2300_v25 = vpop.f32.mrb[20].mxu1 }
 0x123   : > { %v2301_v26 = vpop.f32.mrb[21].mxu1 }
 0x124   : > { %v2302_v27 = vadd.f32 %v2301_v26, %v2300_v25  ;;  %v2303_v28 = vpop.f32.mrb[22].mxu1 }
 0x125   : > { %v2304_v29 = vpop.f32.mrb[23].mxu1 }
 0x126   : > { %v1496_v30 = vadd.f32 %v2302_v27, %v2262_v45  ;;  %v2305_v31 = vadd.f32 %v2304_v29, %v2303_v28  ;;  %v2415_v45 = vpop.f32.mrb[17].mxu0 }
 0x127   : > { %v2417_v54 = vpop.f32.mrb[18].mxu0 }
 0x128   : > { %v1499_v32 = vadd.f32 %v2305_v31, %v2265_v48  ;;  %v1561_v34 = vadd.f32 %v2342_v5, %v1496_v30  ;;  %v2416_v48 = vadd.f32 %v2415_v45, %v2414_v50  ;;  %v2418_v55 = vpop.f32.mrb[19].mxu0 }
 0x129   : > { %v2419_v57 = vadd.f32 %v2418_v55, %v2417_v54  ;;  %v2420_v17 = vpop.f32.mrb[20].mxu0 }
 0x12a   : > { %v1564_v38 = vadd.f32 %v2345_v8, %v1499_v32  ;;  %v2306_v41 = vpop.f32.mrb[24].mxu1 }
 0x12b   : > { %v2307_v42 = vpop.f32.mrb[25].mxu1 }
 0x12c   : > { %v2308_v43 = vadd.f32 %v2307_v42, %v2306_v41  ;;  %v2309_v44 = vpop.f32.mrb[26].mxu1 }
 0x12d   : > { %v2310_v46 = vpop.f32.mrb[27].mxu1 }
 0x12e   : > { %v1504_v47 = vadd.f32 %v2308_v43, %v2268_v52  ;;  %v2311_v49 = vadd.f32 %v2310_v46, %v2309_v44 }
 0x130   : > { %v1507_v51 = vadd.f32 %v2311_v49, %v2271_v58  ;;  %v1569_v53 = vadd.f32 %v2348_v20, %v1504_v47 }
 0x132   : > { %v1572_v56 = vadd.f32 %v2351_v24, %v1507_v51  ;;  %v2312_v59 = vpop.f32.mrb[28].mxu1 }
 0x133   : > { %v2313_v60 = vpop.f32.mrb[29].mxu1 }
 0x134   : > { %v2314_v61 = vadd.f32 %v2313_v60, %v2312_v59  ;;  %v2315_v62 = vpop.f32.mrb[30].mxu1 }
 0x135   : > { %v2316_v0 = vpop.f32.mrb[31].mxu1 }
 0x136   : > { %v1512_v1 = vadd.f32 %v2314_v61, %v3126_v63  ;;  %v2317_v2 = vadd.f32 %v2316_v0, %v2315_v62  ;;  %v2421_v63 = vpop.f32.mrb[21].mxu0 }
 0x137   : > { %v2423_v22 = vpop.f32.mrb[22].mxu0 }
 0x138   : > { %v1515_v4 = vadd.f32 %v2317_v2, %v2277_v3  ;;  %v1577_v52 = vadd.f32 %v2354_v36, %v1512_v1  ;;  %v2422_v3 = vadd.f32 %v2421_v63, %v2420_v17  ;;  %v2424_v26 = vpop.f32.mrb[23].mxu0 }
 0x139   : > { %v2425_v27 = vadd.f32 %v2424_v26, %v2423_v22  ;;  %v2426_v33 = vpop.f32.mrb[24].mxu0 }
 0x13a   : > { %v1580_v5 = vadd.f32 %v2357_v40, %v1515_v4  ;;  %v2374_v6 = vpop.f32.mrb[32].mxu1  ;;  %v2427_v36 = vpop.f32.mrb[25].mxu0 }
 0x13b   : > { %v2375_v58 = vpop.f32.mrb[33].mxu1  ;;  %v2428_v40 = vadd.f32 %v2427_v36, %v2426_v33  ;;  %v2429_v41 = vpop.f32.mrb[26].mxu0 }
 0x13c   : > { %v2376_v7 = vadd.f32 %v2375_v58, %v2374_v6  ;;  %v2377_v8 = vpop.f32.mrb[34].mxu1  ;;  %v2430_v42 = vpop.f32.mrb[27].mxu0 }
 0x13d   : > { %v2378_v9 = vpop.f32.mrb[35].mxu1  ;;  %v2431_v44 = vadd.f32 %v2430_v42, %v2429_v41  ;;  %v2432_v51 = vpop.f32.mrb[28].mxu0 }
 0x13e   : > { %v1618_v10 = vadd.f32 %v2376_v7, %v1553_v19  ;;  %v2379_v11 = vadd.f32 %v2378_v9, %v2377_v8 }
 0x140   : > { %v1621_v12 = vadd.f32 %v2379_v11, %v1556_v23  ;;  %v1683_v13 = vadd.f32 %v2416_v48, %v1618_v10  ;;  %v2433_v48 = vpop.f32.mrb[29].mxu0 }
 0x141   : > { %v2435_v59 = vpop.f32.mrb[30].mxu0 }
 0x142   : > { %v2380_v14 = vpop.f32.mrb[36].mxu1  ;;  %v1686_v15 = vadd.f32 %v2419_v57, %v1621_v12  ;;  %v2434_v57 = vadd.f32 %v2433_v48, %v2432_v51 }
 0x143   : > { %v2381_v16 = vpop.f32.mrb[37].mxu1 }
 0x144   : > { %v2382_v18 = vadd.f32 %v2381_v16, %v2380_v14  ;;  %v2383_v20 = vpop.f32.mrb[38].mxu1 }
 0x145   : > { %v2384_v21 = vpop.f32.mrb[39].mxu1 }
 0x146   : > { %v1626_v24 = vadd.f32 %v2382_v18, %v1561_v34  ;;  %v2385_v25 = vadd.f32 %v2384_v21, %v2383_v20 }
 0x148   : > { %v1629_v28 = vadd.f32 %v2385_v25, %v1564_v38  ;;  %v1691_v29 = vadd.f32 %v2422_v3, %v1626_v24 }
 0x14a   : > { %v1694_v19 = vadd.f32 %v2425_v27, %v1629_v28  ;;  %v2386_v30 = vpop.f32.mrb[40].mxu1 }
 0x14b   : > { %v2387_v23 = vpop.f32.mrb[41].mxu1 }
 0x14c   : > { %v2388_v31 = vadd.f32 %v2387_v23, %v2386_v30  ;;  %v2389_v32 = vpop.f32.mrb[42].mxu1 }
 0x14d   : > { %v2390_v35 = vpop.f32.mrb[43].mxu1 }
 0x14e   : > { %v1634_v37 = vadd.f32 %v2388_v31, %v1569_v53  ;;  %v2391_v39 = vadd.f32 %v2390_v35, %v2389_v32  ;;  %v2436_v53 = vpop.f32.mrb[31].mxu0 }
 0x14f   : > { %v2437_v62 = vadd.f32 %v2436_v53, %v2435_v59  ;;  %v1812_v6 = vpop.f32.mrb[32].mxu0 }
 0x150   : > { %v1637_v43 = vadd.f32 %v2391_v39, %v1572_v56  ;;  %v1699_v34 = vadd.f32 %v2428_v40, %v1634_v37  ;;  %v1814_v7 = vpop.f32.mrb[33].mxu0 }
 0x151   : > { %v1815_v10 = vpop.f32.mrb[34].mxu0 }
 0x152   : > { %v1702_v46 = vadd.f32 %v2431_v44, %v1637_v43  ;;  %v2392_v47 = vpop.f32.mrb[44].mxu1  ;;  %v1817_v11 = vpop.f32.mrb[35].mxu0 }
 0x153   : > { %v2393_v38 = vpop.f32.mrb[45].mxu1 }
 0x154   : > { %v2394_v49 = vadd.f32 %v2393_v38, %v2392_v47  ;;  %v2395_v50 = vpop.f32.mrb[46].mxu1 }
 0x155   : > { %v2396_v45 = vpop.f32.mrb[47].mxu1  ;;  %v1820_v63 = vpop.f32.mrb[36].mxu0 }
 0x156   : > { %v1642_v54 = vadd.f32 %v2394_v49, %v1577_v52  ;;  %v2397_v55 = vadd.f32 %v2396_v45, %v2395_v50  ;;  %v1822_v3 = vpop.f32.mrb[37].mxu0 }
 0x157   : > { %v1823_v25 = vpop.f32.mrb[38].mxu0 }
 0x158   : > { %v1645_v60 = vadd.f32 %v2397_v55, %v1580_v5  ;;  %v1707_v61 = vadd.f32 %v2434_v57, %v1642_v54  ;;  %v1825_v26 = vpop.f32.mrb[39].mxu0 }
 0x15a   : > { %v1710_v0 = vadd.f32 %v2437_v62, %v1645_v60  ;;  %v2454_v56 = vpop.f32.mrb[48].mxu1 }
 0x15b   : > { %v2455_v1 = vpop.f32.mrb[49].mxu1 }
 0x15c   : > { %v2456_v2 = vadd.f32 %v2455_v1, %v2454_v56  ;;  %v2457_v4 = vpop.f32.mrb[50].mxu1 }
 0x15d   : > { %v2458_v58 = vpop.f32.mrb[51].mxu1  ;;  %v1828_v35 = vpop.f32.mrb[40].mxu0 }
 0x15e   : > { %v2459_v8 = vadd.f32 %v2458_v58, %v2457_v4  ;;  %v1748_v9 = vadd.f32 %v2456_v2, %v1683_v13  ;;  %v1830_v37 = vpop.f32.mrb[41].mxu0 }
 0x15f   : > { %v1831_v41 = vpop.f32.mrb[42].mxu0 }
 0x160   : > { %v1813_v52 = vadd.f32 %v1812_v6, %v1748_v9  ;;  %v1751_v12 = vadd.f32 %v2459_v8, %v1686_v15  ;;  %v1833_v42 = vpop.f32.mrb[43].mxu0 }
 0x162   : > { %v1816_v14 = vadd.f32 %v1815_v10, %v1751_v12  ;;  %v2460_v16 = vpop.f32.mrb[52].mxu1 }
 0x163   : > { %v2461_v17 = vpop.f32.mrb[53].mxu1 }
 0x164   : > { %v1843_v5 = vadd.f32 %v1816_v14, %v1813_v52  ;;  %v2462_v18 = vadd.f32 %v2461_v17, %v2460_v16  ;;  %v2463_v20 = vpop.f32.mrb[54].mxu1 }
 0x165   : > { %v2464_v21 = vpop.f32.mrb[55].mxu1  ;;  %v1836_v45 = vpop.f32.mrb[44].mxu0 }
 0x166   : > { %v2465_v22 = vadd.f32 %v2464_v21, %v2463_v20  ;;  %v1756_v24 = vadd.f32 %v2462_v18, %v1691_v29  ;;  %v1838_v54 = vpop.f32.mrb[45].mxu0 }
 0x167   : > { %v1839_v59 = vpop.f32.mrb[46].mxu0 }
 0x168   : > { %v1821_v27 = vadd.f32 %v1820_v63, %v1756_v24  ;;  %v1759_v28 = vadd.f32 %v2465_v22, %v1694_v19  ;;  %v1841_v53 = vpop.f32.mrb[47].mxu0 }
 0x16a   : > { %v1844_v13 = vadd.f32 %v1843_v5, %v1821_v27  ;;  %v1824_v30 = vadd.f32 %v1823_v25, %v1759_v28  ;;  %v2466_v23 = vpop.f32.mrb[56].mxu1 }
 0x16b   : > { %v2467_v31 = vpop.f32.mrb[57].mxu1 }
 0x16c   : > { %v1845_v15 = vadd.f32 %v1844_v13, %v1824_v30  ;;  %v2468_v32 = vadd.f32 %v2467_v31, %v2466_v23  ;;  %v2469_v33 = vpop.f32.mrb[58].mxu1 }
 0x16d   : > { %v2470_v36 = vpop.f32.mrb[59].mxu1 }
 0x16e   : > { %v2471_v39 = vadd.f32 %v2470_v36, %v2469_v33  ;;  %v1764_v40 = vadd.f32 %v2468_v32, %v1699_v34 }
 0x170   : > { %v1829_v43 = vadd.f32 %v1828_v35, %v1764_v40  ;;  %v1767_v29 = vadd.f32 %v2471_v39, %v1702_v46  ;;  %v1907_v39 = vstv %s1898_s4 }
 0x172   : > { %v1846_v44 = vadd.f32 %v1845_v15, %v1829_v43  ;;  %v1832_v47 = vadd.f32 %v1831_v41, %v1767_v29  ;;  %v2472_v38 = vpop.f32.mrb[60].mxu1 }
 0x173   : > { %v2473_v19 = vpop.f32.mrb[61].mxu1 }
 0x174   : > { %v1847_v49 = vadd.f32 %v1846_v44, %v1832_v47  ;;  %v2474_v50 = vadd.f32 %v2473_v19, %v2472_v38  ;;  %v2475_v51 = vpop.f32.mrb[62].mxu1 }
 0x175   : > { %v2476_v48 = vpop.f32.mrb[63].mxu1 }
 0x176   : > { %v2477_v55 = vadd.f32 %v2476_v48, %v2475_v51  ;;  %v1772_v57 = vadd.f32 %v2474_v50, %v1707_v61 }
 0x178   : > { %v1837_v60 = vadd.f32 %v1836_v45, %v1772_v57  ;;  %v1775_v34 = vadd.f32 %v2477_v55, %v1710_v0 }
 0x17a   : > { %v1848_v62 = vadd.f32 %v1847_v49, %v1837_v60  ;;  %v1840_v56 = vadd.f32 %v1839_v59, %v1775_v34 }
 0x17c   : > { %v1849_v1 = vadd.f32 %v1848_v62, %v1840_v56 }
 0x17e   : > { %v1850_v46 = vrot.slane %v1849_v1, 4 }
 0x180   : > { %v1851_v2 = vadd.f32 %v1850_v46, %v1849_v1 }
 0x182   : > { %v1852_v4 = vrot.slane %v1851_v2, 2 }
 0x184   : > { %v1853_v6 = vadd.f32 %v1852_v4, %v1851_v2 }
 0x186   : > { %v1854_v58 = vrot.slane %v1853_v6, 1 }
 0x188   : > { %v1855_v7 = vadd.f32 %v1854_v58, %v1853_v6 }
 0x18a   : > { %v1857_v8 = vmul.f32 0.015625, %v1855_v7 }
 0x18c   : > { %v1858_v9 = vsub.f32 %v1813_v52, %v1857_v8  ;;  %v1859_v10 = vsub.f32 %v1816_v14, %v1857_v8  ;;  %v1860_v11 = vsub.f32 %v1821_v27, %v1857_v8  ;;  %v1861_v12 = vsub.f32 %v1824_v30, %v1857_v8 }
 0x18d   : > { %v1862_v16 = vsub.f32 %v1829_v43, %v1857_v8  ;;  %v1863_v61 = vsub.f32 %v1832_v47, %v1857_v8  ;;  %v1864_v17 = vsub.f32 %v1837_v60, %v1857_v8  ;;  %v1865_v5 = vsub.f32 %v1840_v56, %v1857_v8 }
 0x18e   : > { %v1866_v18 = vmul.f32 %v1858_v9, %v1858_v9  ;;  %v1867_v0 = vmul.f32 %v1859_v10, %v1859_v10  ;;  %v1868_v20 = vmul.f32 %v1860_v11, %v1860_v11  ;;  %v1869_v21 = vmul.f32 %v1861_v12, %v1861_v12 }
 0x18f   : > { %v1870_v22 = vmul.f32 %v1862_v16, %v1862_v16  ;;  %v1871_v25 = vmul.f32 %v1863_v61, %v1863_v61  ;;  %v1872_v28 = vmul.f32 %v1864_v17, %v1864_v17  ;;  %v1873_v52 = vmul.f32 %v1865_v5, %v1865_v5 }
 0x190   : > { %v1874_v63 = vadd.f32 %v1867_v0, %v1866_v18 }
 0x192   : > { %v1875_v3 = vadd.f32 %v1874_v63, %v1868_v20 }
 0x194   : > { %v1876_v24 = vadd.f32 %v1875_v3, %v1869_v21 }
 0x196   : > { %v1877_v26 = vadd.f32 %v1876_v24, %v1870_v22 }
 0x198   : > { %v1878_v13 = vadd.f32 %v1877_v26, %v1871_v25 }
 0x19a   : > { %v1879_v14 = vadd.f32 %v1878_v13, %v1872_v28 }
 0x19c   : > { %v1880_v27 = vadd.f32 %v1879_v14, %v1873_v52 }
 0x19e   : > { %v1881_v30 = vrot.slane %v1880_v27, 4 }
 0x1a0   : > { %v1882_v23 = vadd.f32 %v1881_v30, %v1880_v27 }
 0x1a2   : > { %v1883_v31 = vrot.slane %v1882_v23, 2 }
 0x1a4   : > { %v1884_v15 = vadd.f32 %v1883_v31, %v1882_v23 }
 0x1a6   : > { %v1885_v32 = vrot.slane %v1884_v15, 1 }
 0x1a8   : > { %v1886_v33 = vadd.f32 %v1885_v32, %v1884_v15 }
 0x1aa   : > { %v1887_v35 = vmul.f32 0.015625, %v1886_v33 }
 0x1ac   : > { %v1888_v36 = vadd.f32 1e-05, %v1887_v35 }
 0x1ae   : > { %2680 = vrsqrt.f32 %v1888_v36 }
 0x1b8   : > { %v2681_v37 = vpop.eup %2680 }
 0x1b9   : > { %v1890_v40 = vmul.f32 %v2681_v37, %v1858_v9  ;;  %v1891_v41 = vmul.f32 %v2681_v37, %v1859_v10  ;;  %v1892_v42 = vmul.f32 %v2681_v37, %v1860_v11  ;;  %v1893_v43 = vmul.f32 %v2681_v37, %v1861_v12 }
 0x1ba   : > { %v1894_v29 = vmul.f32 %v2681_v37, %v1862_v16  ;;  %v1895_v44 = vmul.f32 %v2681_v37, %v1863_v61  ;;  %v1896_v47 = vmul.f32 %v2681_v37, %v1864_v17  ;;  %v1897_v38 = vmul.f32 %v2681_v37, %v1865_v5 }
 0x1bb   : > { %vm1899_vm1 = vcmp.ge.f32.partialorder %v1890_v40, 0.0  ;;  %vm1900_vm2 = vcmp.ge.f32.partialorder %v1891_v41, 0.0  ;;  %vm1901_vm3 = vcmp.ge.f32.partialorder %v1892_v42, 0.0  ;;  %vm1902_vm4 = vcmp.ge.f32.partialorder %v1893_v43, 0.0 }
 0x1bc   : > { %vm1903_vm5 = vcmp.ge.f32.partialorder %v1894_v29, 0.0  ;;  %vm1904_vm6 = vcmp.ge.f32.partialorder %v1895_v44, 0.0  ;;  %vm1905_vm7 = vcmp.ge.f32.partialorder %v1896_v47, 0.0  ;;  %vm1906_vm8 = vcmp.ge.f32.partialorder %v1897_v38, 0.0 }
 0x1bd   : > { %v1908_v19 = vmul.f32 %v1907_v39, %v1890_v40  ;;  %v1909_v49 = vmul.f32 %v1907_v39, %v1891_v41  ;;  %v1910_v50 = vmul.f32 %v1907_v39, %v1892_v42  ;;  %v1911_v51 = vmul.f32 %v1907_v39, %v1893_v43 }
 0x1be   : > { %v1912_v45 = vmul.f32 %v1907_v39, %v1894_v29  ;;  %v1913_v48 = vmul.f32 %v1907_v39, %v1895_v44  ;;  %v1914_v54 = vmul.f32 %v1907_v39, %v1896_v47  ;;  %v1915_v55 = vmul.f32 %v1907_v39, %v1897_v38 }
 0x1bf   : > { %v1916_v57 = vsel %vm1899_vm1, %v1890_v40, %v1908_v19  ;;  %v1917_v59 = vsel %vm1900_vm2, %v1891_v41, %v1909_v49  ;;  %v1918_v53 = vsel %vm1901_vm3, %v1892_v42, %v1910_v50  ;;  %v1919_v60 = vsel %vm1902_vm4, %v1893_v43, %v1911_v51 }
 0x1c0   : > { %v1920_v34 = vsel %vm1903_vm5, %v1894_v29, %v1912_v45  ;;  %v1921_v62 = vsel %vm1904_vm6, %v1895_v44, %v1913_v48  ;;  %v1922_v56 = vsel %vm1905_vm7, %v1896_v47, %v1914_v54  ;;  %v1923_v1 = vsel %vm1906_vm8, %v1897_v38, %v1915_v55 }
 0x1c1   : > { %v2218_v46 = vpack.c.bf16 %v1917_v59, %v1916_v57  ;;  %v2223_v2 = vpack.c.bf16 %v1919_v60, %v1918_v53  ;;  %v2228_v4 = vpack.c.bf16 %v1921_v62, %v1920_v34  ;;  %v2233_v6 = vpack.c.bf16 %v1923_v1, %v1922_v56 }
 0x1c3   : > { %2219 = vst [vmem:[%s176_s25] sm:$0xff] %v2218_v46   ;;  %2235 = vst [vmem:[%s176_s25 + $0x8] sm:$0xff] %v2223_v2  }
 0x1c4   : > { %2236 = vst [vmem:[%s176_s25 + $0x10] sm:$0xff] %v2228_v4   ;;  %2237 = vst [vmem:[%s176_s25 + $0x18] sm:$0xff] %v2233_v6  }
 0x1c5 PF: > { %s14_s14 = sadd.s32 1, %s2688_s14  }
 0x1c6   : > { %p11_p4 = scmp.ge.s32.totalorder %s14_s14, 4  }
 0x1c8   :  { %13 = sbr.rel (!%p11_p4) target bundleno = 2 (0x2), region = 62 }

// kernel: custom_unet_forward.8
= control target key start
LH: loop header
LB: loop body
LE: loop exit
PB: predicated region body
PF: predicated region fallthrough
CT: control target
= control target key end

     0   :  { %s3642_s20 = smov 0   ;;  %s4578_s0 = inlined_call_operand.vmem [shape: bf16[128,1536], index: 0, kind: input, shape index: {}]   ;;  %s4579_s1 = inlined_call_operand.vmem [shape: bf16[1536,256], index: 1, kind: input, shape index: {}]   ;;  %s4580_s2 = inlined_call_operand.vmem [shape: f32[256,32], index: 2, kind: input, shape index: {}]   ;;  %s4581_s3 = inlined_call_operand.vmem [shape: f32[32,256], index: 3, kind: input, shape index: {}]   ;;  %s4582_s4 = inlined_call_operand.<no memory space> [shape: f32[1], index: 4, kind: input, shape index: {}]   ;;  %s4583_s5 = inlined_call_operand.vmem [shape: bf16[128,256], index: 5, kind: output, shape index: {}]  }
   0x1   :  { %10 = sst [smem:[#allocation2]] %s4582_s4 }
   0x2 LB: > { %s2725_s21 = sadd.s32 4294967295, %s3606_s20   ;;  %p2729_p0 = scmp.ge.s32.totalorder %s3606_s20, 1  ;;  %s3606_s20 = sphi %s3642_s20, %s16_s20  }
   0x3   : > { %p190_p1 = scmp.lt.s32.totalorder %s3606_s20, 3 }
   0x5   : > { %p191_p2 = pnand %p2729_p0, %p190_p1 }
   0x6   : > { %v3236_v0 = vld [vmem:[%s4579_s1 + $0x4] ss:$8 sps:$4 sm:$0xff] (!%p191_p2)   ;;  %v3240_v2 = vld [vmem:[%s4579_s1] ss:$8 sps:$4 sm:$0xff] (!%p191_p2)   ;;  %v3242_v4 = vld [vmem:[%s4579_s1 + $0x14] ss:$8 sps:$4 sm:$0xff] (!%p191_p2)  }
   0x7   : > { %194 = sbr.rel (%p191_p2) target bundleno = 1385 (0x569), region = 40  ;;  %v3238_v1 = vld [vmem:[%s4579_s1 + $0x304] ss:$8 sps:$4 sm:$0xff] (!%p191_p2)   ;;  %1674 = vmatprep.subr.bf16.mxu1 (!%p191_p2), %v3236_v0  ;;  %v3241_v3 = vld [vmem:[%s4579_s1 + $0x300] ss:$8 sps:$4 sm:$0xff] (!%p191_p2)   ;;  %s2730_s8 = sshll.u32 (!%p191_p2), %s2725_s21, 3 }
   0x8   : > { %1893 = vmatprep.subr.bf16.mxu0 (!%p191_p2), %v3238_v1  ;;  %1675 = vmatpush1.bf16.msra.mxu1 (!%p191_p2), %v3240_v2  ;;  %v3244_v5 = vld [vmem:[%s4579_s1 + $0x314] ss:$8 sps:$4 sm:$0xff] (!%p191_p2)   ;;  %v3246_v6 = vld [vmem:[%s4579_s1 + $0x10] ss:$8 sps:$4 sm:$0xff] (!%p191_p2)   ;;  %v3248_v8 = vld [vmem:[%s4579_s1 + $0x24] ss:$8 sps:$4 sm:$0xff] (!%p191_p2)  }
   0x9   : > { %1894 = vmatpush1.bf16.msra.mxu0 (!%p191_p2), %v3241_v3  ;;  %1676 = vmatprep.subr.bf16.mxu1 (!%p191_p2), %v3242_v4  ;;  %v3247_v7 = vld [vmem:[%s4579_s1 + $0x310] ss:$8 sps:$4 sm:$0xff] (!%p191_p2)   ;;  %v3250_v9 = vld [vmem:[%s4579_s1 + $0x324] ss:$8 sps:$4 sm:$0xff] (!%p191_p2)   ;;  %v3252_v10 = vld [vmem:[%s4579_s1 + $0x20] ss:$8 sps:$4 sm:$0xff] (!%p191_p2)  }
   0xa   : > { %1895 = vmatprep.subr.bf16.mxu0 (!%p191_p2), %v3244_v5  ;;  %v3253_v11 = vld [vmem:[%s4579_s1 + $0x320] ss:$8 sps:$4 sm:$0xff] (!%p191_p2)   ;;  %v3254_v12 = vld [vmem:[%s4579_s1 + $0x34] ss:$8 sps:$4 sm:$0xff] (!%p191_p2)   ;;  %v3258_v14 = vld [vmem:[%s4579_s1 + $0x30] ss:$8 sps:$4 sm:$0xff] (!%p191_p2)  }
   0xb   : > { %v3256_v13 = vld [vmem:[%s4579_s1 + $0x334] ss:$8 sps:$4 sm:$0xff] (!%p191_p2)   ;;  %v3259_v15 = vld [vmem:[%s4579_s1 + $0x330] ss:$8 sps:$4 sm:$0xff] (!%p191_p2)   ;;  %v3260_v16 = vld [vmem:[%s4579_s1 + $0x44] ss:$8 sps:$4 sm:$0xff] (!%p191_p2)  }
   0xc   : > { %1677 = vmatpush1.bf16.msra.mxu1 (!%p191_p2), %v3246_v6  ;;  %v3262_v17 = vld [vmem:[%s4579_s1 + $0x344] ss:$8 sps:$4 sm:$0xff] (!%p191_p2)   ;;  %v3264_v18 = vld [vmem:[%s4579_s1 + $0x40] ss:$8 sps:$4 sm:$0xff] (!%p191_p2)   ;;  %v3266_v20 = vld [vmem:[%s4579_s1 + $0x54] ss:$8 sps:$4 sm:$0xff] (!%p191_p2)  }
   0xd   : > { %1896 = vmatpush1.bf16.msra.mxu0 (!%p191_p2), %v3247_v7  ;;  %1678 = vmatprep.subr.bf16.mxu1 (!%p191_p2), %v3248_v8  ;;  %v3265_v19 = vld [vmem:[%s4579_s1 + $0x340] ss:$8 sps:$4 sm:$0xff] (!%p191_p2)   ;;  %v3268_v21 = vld [vmem:[%s4579_s1 + $0x354] ss:$8 sps:$4 sm:$0xff] (!%p191_p2)   ;;  %v3270_v22 = vld [vmem:[%s4579_s1 + $0x50] ss:$8 sps:$4 sm:$0xff] (!%p191_p2)  }
   0xe   : > { %1897 = vmatprep.subr.bf16.mxu0 %v3250_v9  ;;  %v3271_v23 = vld [vmem:[%s4579_s1 + $0x350] ss:$8 sps:$4 sm:$0xff]   ;;  %v3272_v24 = vld [vmem:[%s4579_s1 + $0x64] ss:$8 sps:$4 sm:$0xff]   ;;  %v3276_v26 = vld [vmem:[%s4579_s1 + $0x60] ss:$8 sps:$4 sm:$0xff]  }
   0xf   : > { %v3274_v25 = vld [vmem:[%s4579_s1 + $0x364] ss:$8 sps:$4 sm:$0xff]   ;;  %v3277_v27 = vld [vmem:[%s4579_s1 + $0x360] ss:$8 sps:$4 sm:$0xff]   ;;  %v3278_v28 = vld [vmem:[%s4579_s1 + $0x74] ss:$8 sps:$4 sm:$0xff]  }
  0x10   : > { %1679 = vmatpush1.bf16.msra.mxu1 %v3252_v10  ;;  %v3280_v29 = vld [vmem:[%s4579_s1 + $0x374] ss:$8 sps:$4 sm:$0xff]   ;;  %v3282_v30 = vld [vmem:[%s4579_s1 + $0x70] ss:$8 sps:$4 sm:$0xff]   ;;  %v3284_v32 = vld [vmem:[%s4579_s1 + $0x84] ss:$8 sps:$4 sm:$0xff]  }
  0x11   : > { %1898 = vmatpush1.bf16.msra.mxu0 %v3253_v11  ;;  %1680 = vmatprep.subr.bf16.mxu1 %v3254_v12  ;;  %v3283_v31 = vld [vmem:[%s4579_s1 + $0x370] ss:$8 sps:$4 sm:$0xff]   ;;  %p221_p3 = scmp.lt.s32.totalorder %s2730_s8, 15  ;;  %v3286_v33 = vld [vmem:[%s4579_s1 + $0x384] ss:$8 sps:$4 sm:$0xff]   ;;  %vm2249_vm0 = vcmask 261120  }
  0x12   : > { %1899 = vmatprep.subr.bf16.mxu0 %v3256_v13  ;;  %v3288_v34 = vld [vmem:[%s4579_s1 + $0x80] ss:$8 sps:$4 sm:$0xff]   ;;  %v3290_v36 = vld [vmem:[%s4579_s1 + $0x94] ss:$8 sps:$4 sm:$0xff]   ;;  %v3294_v38 = vld [vmem:[%s4579_s1 + $0x90] ss:$8 sps:$4 sm:$0xff]  }
  0x13   : > { %v3289_v35 = vld [vmem:[%s4579_s1 + $0x380] ss:$8 sps:$4 sm:$0xff]   ;;  %s4585_s8 = smov (!%p221_p3, %s2730_s8), 15  ;;  %v3292_v37 = vld [vmem:[%s4579_s1 + $0x394] ss:$8 sps:$4 sm:$0xff]  }
  0x14   : > { %1681 = vmatpush1.bf16.msra.mxu1 %v3258_v14  ;;  %v3295_v39 = vld [vmem:[%s4579_s1 + $0x390] ss:$8 sps:$4 sm:$0xff]   ;;  %v3296_v40 = vld [vmem:[%s4579_s1 + $0xa4] ss:$8 sps:$4 sm:$0xff]   ;;  %s3226_s6 = smul.u32 48, %s4585_s8  ;;  %s2987_s23 = sshll.u32 %s4585_s8, 3 }
  0x15   : > { %1900 = vmatpush1.bf16.msra.mxu0 %v3259_v15  ;;  %1682 = vmatprep.subr.bf16.mxu1 %v3260_v16  ;;  %v3298_v41 = vld [vmem:[%s4579_s1 + $0x3a4] ss:$8 sps:$4 sm:$0xff]   ;;  %v3300_v42 = vld [vmem:[%s4579_s1 + $0xa0] ss:$8 sps:$4 sm:$0xff]   ;;  %v3302_v44 = vld [vmem:[%s4579_s1 + $0xb4] ss:$8 sps:$4 sm:$0xff]   ;;  %s232_s8 = scalar_lea.vmem %s4583_s5, %s2987_s23 }
  0x16   : > { %1901 = vmatprep.subr.bf16.mxu0 %v3262_v17  ;;  %v3301_v43 = vld [vmem:[%s4579_s1 + $0x3a0] ss:$8 sps:$4 sm:$0xff]   ;;  %s3793_s17 = scalar_lea.vmem %s4578_s0, %s3226_s6  ;;  %v3304_v45 = vld [vmem:[%s4579_s1 + $0x3b4] ss:$8 sps:$4 sm:$0xff]   ;;  %v3306_v46 = vld [vmem:[%s4579_s1 + $0xb0] ss:$8 sps:$4 sm:$0xff]  }
  0x17   : > { %v3307_v47 = vld [vmem:[%s4579_s1 + $0x3b0] ss:$8 sps:$4 sm:$0xff]   ;;  %v3334_v48 = vld [vmem:[%s3793_s17 + $0x4] ss:$48 sps:$4 sm:$0xff]   ;;  %v3340_v51 = vld [vmem:[%s3793_s17 + $0x1c] ss:$48 sps:$4 sm:$0xff]  }
  0x18   : > { %1683 = vmatpush1.bf16.msra.mxu1 %v3264_v18  ;;  %v3308_v49 = vld [vmem:[%s4579_s1 + $0xc4] ss:$8 sps:$4 sm:$0xff]   ;;  %1706 = vmatprep.mubr.bf16.mxu1 %v3334_v48  ;;  %v3312_v52 = vld [vmem:[%s4579_s1 + $0xc0] ss:$8 sps:$4 sm:$0xff]   ;;  %v3314_v54 = vld [vmem:[%s4579_s1 + $0xd4] ss:$8 sps:$4 sm:$0xff]  }
  0x19   : > { %1902 = vmatpush1.bf16.msra.mxu0 %v3265_v19  ;;  %1684 = vmatprep.subr.bf16.mxu1 %v3266_v20  ;;  %v3310_v50 = vld [vmem:[%s4579_s1 + $0x3c4] ss:$8 sps:$4 sm:$0xff]   ;;  %v3313_v53 = vld [vmem:[%s4579_s1 + $0x3c0] ss:$8 sps:$4 sm:$0xff]   ;;  %v3316_v55 = vld [vmem:[%s4579_s1 + $0x3d4] ss:$8 sps:$4 sm:$0xff]  }
  0x1a   : > { %1903 = vmatprep.subr.bf16.mxu0 %v3268_v21  ;;  %1925 = vmatprep.mubr.bf16.mxu0 %v3340_v51  ;;  %v3318_v56 = vld [vmem:[%s4579_s1 + $0xd0] ss:$8 sps:$4 sm:$0xff]   ;;  %v3320_v58 = vld [vmem:[%s4579_s1 + $0xe4] ss:$8 sps:$4 sm:$0xff]   ;;  %v3324_v60 = vld [vmem:[%s4579_s1 + $0xe0] ss:$8 sps:$4 sm:$0xff]  }
  0x1b   : > { %v3319_v57 = vld [vmem:[%s4579_s1 + $0x3d0] ss:$8 sps:$4 sm:$0xff]   ;;  %v3322_v59 = vld [vmem:[%s4579_s1 + $0x3e4] ss:$8 sps:$4 sm:$0xff]   ;;  %v3325_v61 = vld [vmem:[%s4579_s1 + $0x3e0] ss:$8 sps:$4 sm:$0xff]  }
  0x1c   : > { %1685 = vmatpush1.bf16.msra.mxu1 %v3270_v22  ;;  %v3326_v62 = vld [vmem:[%s4579_s1 + $0xf4] ss:$8 sps:$4 sm:$0xff]   ;;  %v3330_v0 = vld [vmem:[%s4579_s1 + $0xf0] ss:$8 sps:$4 sm:$0xff]   ;;  %v3337_v2 = vld [vmem:[%s4579_s1 + $0x104] ss:$8 sps:$4 sm:$0xff]  }
  0x1d   : > { %1904 = vmatpush1.bf16.msra.mxu0 %v3271_v23  ;;  %1686 = vmatprep.subr.bf16.mxu1 %v3272_v24  ;;  %v3328_v63 = vld [vmem:[%s4579_s1 + $0x3f4] ss:$8 sps:$4 sm:$0xff]   ;;  %v3331_v1 = vld [vmem:[%s4579_s1 + $0x3f0] ss:$8 sps:$4 sm:$0xff]   ;;  %v3343_v3 = vld [vmem:[%s4579_s1 + $0x404] ss:$8 sps:$4 sm:$0xff]  }
  0x1e   : > { %1905 = vmatprep.subr.bf16.mxu0 %v3274_v25  ;;  %v3332_v4 = vld [vmem:[%s3793_s17] ss:$48 sps:$4 sm:$0xff]   ;;  %v3338_v6 = vld [vmem:[%s3793_s17 + $0x18] ss:$48 sps:$4 sm:$0xff]   ;;  %v3346_v8 = vld [vmem:[%s4579_s1 + $0x114] ss:$8 sps:$4 sm:$0xff]  }
  0x1f   : > { %v3335_v5 = vld [vmem:[%s4579_s1 + $0x100] ss:$8 sps:$4 sm:$0xff]   ;;  %v3349_v9 = vld [vmem:[%s4579_s1 + $0x414] ss:$8 sps:$4 sm:$0xff]   ;;  %v3344_v10 = vld [vmem:[%s4579_s1 + $0x110] ss:$8 sps:$4 sm:$0xff]  }
  0x20   : > { %1687 = vmatpush1.bf16.msra.mxu1 %v3276_v26  ;;  %v3341_v7 = vld [vmem:[%s4579_s1 + $0x400] ss:$8 sps:$4 sm:$0xff]   ;;  %v3347_v11 = vld [vmem:[%s4579_s1 + $0x410] ss:$8 sps:$4 sm:$0xff]   ;;  %v3352_v12 = vld [vmem:[%s4579_s1 + $0x124] ss:$8 sps:$4 sm:$0xff]  }
  0x21   : > { %1906 = vmatpush1.bf16.msra.mxu0 %v3277_v27  ;;  %1688 = vmatprep.subr.bf16.mxu1 %v3278_v28  ;;  %v3355_v13 = vld [vmem:[%s4579_s1 + $0x424] ss:$8 sps:$4 sm:$0xff]   ;;  %v3350_v14 = vld [vmem:[%s4579_s1 + $0x120] ss:$8 sps:$4 sm:$0xff]   ;;  %v3358_v16 = vld [vmem:[%s4579_s1 + $0x134] ss:$8 sps:$4 sm:$0xff]  }
  0x22   : > { %1907 = vmatprep.subr.bf16.mxu0 %v3280_v29  ;;  %v3353_v15 = vld [vmem:[%s4579_s1 + $0x420] ss:$8 sps:$4 sm:$0xff]   ;;  %v3398_v17 = vld [vmem:[%s3793_s17 + $0x64] ss:$48 sps:$4 sm:$0xff]   ;;  %v3356_v19 = vld [vmem:[%s4579_s1 + $0x130] ss:$8 sps:$4 sm:$0xff]  }
  0x23   : > { %v3361_v18 = vld [vmem:[%s4579_s1 + $0x434] ss:$8 sps:$4 sm:$0xff]   ;;  %v3359_v20 = vld [vmem:[%s4579_s1 + $0x430] ss:$8 sps:$4 sm:$0xff]   ;;  %v3364_v22 = vld [vmem:[%s4579_s1 + $0x144] ss:$8 sps:$4 sm:$0xff]  }
  0x24   : > { %1689 = vmatpush1.bf16.msra.mxu1 %v3282_v30  ;;  %v3403_v21 = vld [vmem:[%s3793_s17 + $0x7c] ss:$48 sps:$4 sm:$0xff]   ;;  %v3408_v24 = vld [vmem:[%s3793_s17 + $0x60] ss:$48 sps:$4 sm:$0xff]   ;;  %v3409_v25 = vld [vmem:[%s3793_s17 + $0x78] ss:$48 sps:$4 sm:$0xff]  }
  0x25   : > { %1908 = vmatpush1.bf16.msra.mxu0 %v3283_v31  ;;  %1690 = vmatprep.subr.bf16.mxu1 %v3284_v32  ;;  %v3367_v23 = vld [vmem:[%s4579_s1 + $0x444] ss:$8 sps:$4 sm:$0xff]   ;;  %v3362_v26 = vld [vmem:[%s4579_s1 + $0x140] ss:$8 sps:$4 sm:$0xff]   ;;  %v3370_v28 = vld [vmem:[%s4579_s1 + $0x154] ss:$8 sps:$4 sm:$0xff]  }
  0x26   : > { %1909 = vmatprep.subr.bf16.mxu0 %v3286_v33  ;;  %v3365_v27 = vld [vmem:[%s4579_s1 + $0x440] ss:$8 sps:$4 sm:$0xff]   ;;  %v3416_v29 = vld [vmem:[%s3793_s17 + $0xc4] ss:$48 sps:$4 sm:$0xff]   ;;  %v3368_v31 = vld [vmem:[%s4579_s1 + $0x150] ss:$8 sps:$4 sm:$0xff]  }
  0x27   : > { %v3373_v30 = vld [vmem:[%s4579_s1 + $0x454] ss:$8 sps:$4 sm:$0xff]   ;;  %v3371_v32 = vld [vmem:[%s4579_s1 + $0x450] ss:$8 sps:$4 sm:$0xff]   ;;  %v3389_v51 = vld [vmem:[%s4579_s1 + $0x480] ss:$8 sps:$4 sm:$0xff]  }
  0x28   : > { %1691 = vmatpush1.bf16.msra.mxu1 %v3288_v34  ;;  %v3421_v33 = vld [vmem:[%s3793_s17 + $0xdc] ss:$48 sps:$4 sm:$0xff]   ;;  %v3444_v48 = vld [vmem:[%s3793_s17 + $0x120] ss:$48 sps:$4 sm:$0xff]  }
  0x29   : > { %1910 = vmatpush1.bf16.msra.mxu0 %v3289_v35  ;;  %1692 = vmatprep.subr.bf16.mxu1 %v3290_v36  ;;  %v3376_v34 = vld [vmem:[%s4579_s1 + $0x164] ss:$8 sps:$4 sm:$0xff]   ;;  %v3426_v36 = vld [vmem:[%s3793_s17 + $0xc0] ss:$48 sps:$4 sm:$0xff]  }
  0x2a   : > { %1911 = vmatprep.subr.bf16.mxu0 %v3292_v37  ;;  %v3379_v35 = vld [vmem:[%s4579_s1 + $0x464] ss:$8 sps:$4 sm:$0xff]   ;;  %v3427_v37 = vld [vmem:[%s3793_s17 + $0xd8] ss:$48 sps:$4 sm:$0xff]  }
  0x2c   : > { %1693 = vmatpush1.bf16.msra.mxu1 %v3294_v38  ;;  %v3374_v38 = vld [vmem:[%s4579_s1 + $0x160] ss:$8 sps:$4 sm:$0xff]  }
  0x2d   : > { %1912 = vmatpush1.bf16.msra.mxu0 %v3295_v39  ;;  %1694 = vmatprep.subr.bf16.mxu1 %v3296_v40  ;;  %v3377_v39 = vld [vmem:[%s4579_s1 + $0x460] ss:$8 sps:$4 sm:$0xff]   ;;  %v3382_v40 = vld [vmem:[%s4579_s1 + $0x174] ss:$8 sps:$4 sm:$0xff]  }
  0x2e   : > { %1913 = vmatprep.subr.bf16.mxu0 %v3298_v41  ;;  %v3434_v41 = vld [vmem:[%s3793_s17 + $0x124] ss:$48 sps:$4 sm:$0xff]  }
  0x30   : > { %1695 = vmatpush1.bf16.msra.mxu1 %v3300_v42  ;;  %v3385_v42 = vld [vmem:[%s4579_s1 + $0x474] ss:$8 sps:$4 sm:$0xff]  }
  0x31   : > { %1914 = vmatpush1.bf16.msra.mxu0 %v3301_v43  ;;  %1696 = vmatprep.subr.bf16.mxu1 %v3302_v44  ;;  %v3380_v43 = vld [vmem:[%s4579_s1 + $0x170] ss:$8 sps:$4 sm:$0xff]  }
  0x32   : > { %1915 = vmatprep.subr.bf16.mxu0 %v3304_v45  ;;  %v3383_v44 = vld [vmem:[%s4579_s1 + $0x470] ss:$8 sps:$4 sm:$0xff]   ;;  %v3439_v45 = vld [vmem:[%s3793_s17 + $0x13c] ss:$48 sps:$4 sm:$0xff]  }
  0x34   : > { %1697 = vmatpush1.bf16.msra.mxu1 %v3306_v46  ;;  %v3388_v46 = vld [vmem:[%s4579_s1 + $0x184] ss:$8 sps:$4 sm:$0xff]  }
  0x35   : > { %1916 = vmatpush1.bf16.msra.mxu0 %v3307_v47  ;;  %1698 = vmatprep.subr.bf16.mxu1 %v3308_v49  ;;  %v3391_v47 = vld [vmem:[%s4579_s1 + $0x484] ss:$8 sps:$4 sm:$0xff]   ;;  %v3445_v49 = vld [vmem:[%s3793_s17 + $0x138] ss:$48 sps:$4 sm:$0xff]  }
  0x36   : > { %1917 = vmatprep.subr.bf16.mxu0 %v3310_v50  ;;  %v3386_v50 = vld [vmem:[%s4579_s1 + $0x180] ss:$8 sps:$4 sm:$0xff]  }
  0x38   : > { %1699 = vmatpush1.bf16.msra.mxu1 %v3312_v52  ;;  %v3394_v52 = vld [vmem:[%s4579_s1 + $0x194] ss:$8 sps:$4 sm:$0xff]  }
  0x39   : > { %1918 = vmatpush1.bf16.msra.mxu0 %v3313_v53  ;;  %1700 = vmatprep.subr.bf16.mxu1 %v3314_v54  ;;  %v3397_v53 = vld [vmem:[%s4579_s1 + $0x494] ss:$8 sps:$4 sm:$0xff]  }
  0x3a   : > { %1919 = vmatprep.subr.bf16.mxu0 %v3316_v55  ;;  %v3454_v54 = vld [vmem:[%s3793_s17 + $0xc] ss:$48 sps:$4 sm:$0xff]   ;;  %v3392_v55 = vld [vmem:[%s4579_s1 + $0x190] ss:$8 sps:$4 sm:$0xff]  }
  0x3c   : > { %1701 = vmatpush1.bf16.msra.mxu1 %v3318_v56  ;;  %v3395_v56 = vld [vmem:[%s4579_s1 + $0x490] ss:$8 sps:$4 sm:$0xff]  }
  0x3d   : > { %1920 = vmatpush1.bf16.msra.mxu0 %v3319_v57  ;;  %1702 = vmatprep.subr.bf16.mxu1 %v3320_v58  ;;  %v3460_v57 = vld [vmem:[%s3793_s17 + $0x24] ss:$48 sps:$4 sm:$0xff]  }
  0x3e   : > { %1921 = vmatprep.subr.bf16.mxu0 %v3322_v59  ;;  %v3402_v58 = vld [vmem:[%s4579_s1 + $0x1a4] ss:$8 sps:$4 sm:$0xff]  }
  0x3f   : > { %v3407_v59 = vld [vmem:[%s4579_s1 + $0x4a4] ss:$8 sps:$4 sm:$0xff]  }
  0x40   : > { %1703 = vmatpush1.bf16.msra.mxu1 %v3324_v60  ;;  %v3400_v60 = vld [vmem:[%s4579_s1 + $0x1a0] ss:$8 sps:$4 sm:$0xff]  }
  0x41   : > { %1922 = vmatpush1.bf16.msra.mxu0 %v3325_v61  ;;  %1704 = vmatprep.subr.bf16.mxu1 %v3326_v62  ;;  %v3405_v61 = vld [vmem:[%s4579_s1 + $0x4a0] ss:$8 sps:$4 sm:$0xff]   ;;  %v3412_v62 = vld [vmem:[%s4579_s1 + $0x1b4] ss:$8 sps:$4 sm:$0xff]  }
  0x42   : > { %1923 = vmatprep.subr.bf16.mxu0 %v3328_v63  ;;  %v3415_v63 = vld [vmem:[%s4579_s1 + $0x4b4] ss:$8 sps:$4 sm:$0xff]  }
  0x44   : > { %1705 = vmatpush1.bf16.msra.mxu1 %v3330_v0  ;;  %v3410_v0 = vld [vmem:[%s4579_s1 + $0x1b0] ss:$8 sps:$4 sm:$0xff]  }
  0x45   : > { %1924 = vmatpush1.bf16.msra.mxu0 %v3331_v1  ;;  %1747 = vmatprep.subr.bf16.mxu1 %v3337_v2  ;;  %v3413_v1 = vld [vmem:[%s4579_s1 + $0x4b0] ss:$8 sps:$4 sm:$0xff]   ;;  %v3420_v2 = vld [vmem:[%s4579_s1 + $0x1c4] ss:$8 sps:$4 sm:$0xff]  }
  0x46   : > { %1966 = vmatprep.subr.bf16.mxu0 %v3343_v3  ;;  %v3425_v3 = vld [vmem:[%s4579_s1 + $0x4c4] ss:$8 sps:$4 sm:$0xff]  }
  0x47   : > { %1707 = vmatmul.mubr.bf16.vlgmr.msra.gmra.mrb[0].mxu1 %v3332_v4  ;;  %v3418_v4 = vld [vmem:[%s4579_s1 + $0x1c0] ss:$8 sps:$4 sm:$0xff]  }
  0x48   : > { %1926 = vmatmul.mubr.bf16.vlgmr.msra.gmra.mrb[0].mxu0 %v3338_v6  ;;  %1748 = vmatpush1.bf16.msra.mxu1 %v3335_v5  ;;  %v3423_v5 = vld [vmem:[%s4579_s1 + $0x4c0] ss:$8 sps:$4 sm:$0xff]   ;;  %v3430_v6 = vld [vmem:[%s4579_s1 + $0x1d4] ss:$8 sps:$4 sm:$0xff]  }
  0x49   : > { %1967 = vmatpush1.bf16.msra.mxu0 %v3341_v7  ;;  %1749 = vmatprep.subr.bf16.mxu1 %v3346_v8  ;;  %v3433_v7 = vld [vmem:[%s4579_s1 + $0x4d4] ss:$8 sps:$4 sm:$0xff]   ;;  %v3428_v8 = vld [vmem:[%s4579_s1 + $0x1d0] ss:$8 sps:$4 sm:$0xff]  }
  0x4a   : > { %1968 = vmatprep.subr.bf16.mxu0 %v3349_v9  ;;  %1716 = vmatprep.mubr.bf16.mxu1 %v3398_v17  ;;  %v3431_v9 = vld [vmem:[%s4579_s1 + $0x4d0] ss:$8 sps:$4 sm:$0xff]  }
  0x4b   : > { %1935 = vmatprep.mubr.bf16.mxu0 %v3403_v21  ;;  %v3449_v17 = vld [vmem:[%s4579_s1 + $0x4f0] ss:$8 sps:$4 sm:$0xff]   ;;  %v3455_v21 = vld [vmem:[%s4579_s1 + $0x200] ss:$8 sps:$4 sm:$0xff]  }
  0x4c   : > { %1750 = vmatpush1.bf16.msra.mxu1 %v3344_v10  ;;  %v3438_v10 = vld [vmem:[%s4579_s1 + $0x1e4] ss:$8 sps:$4 sm:$0xff]  }
  0x4d   : > { %1969 = vmatpush1.bf16.msra.mxu0 %v3347_v11  ;;  %1751 = vmatprep.subr.bf16.mxu1 %v3352_v12  ;;  %v3443_v11 = vld [vmem:[%s4579_s1 + $0x4e4] ss:$8 sps:$4 sm:$0xff]   ;;  %v3436_v12 = vld [vmem:[%s4579_s1 + $0x1e0] ss:$8 sps:$4 sm:$0xff]  }
  0x4e   : > { %1970 = vmatprep.subr.bf16.mxu0 %v3355_v13  ;;  %v3441_v13 = vld [vmem:[%s4579_s1 + $0x4e0] ss:$8 sps:$4 sm:$0xff]  }
  0x4f   : > { %1717 = vmatmul.mubr.bf16.gmra.mrb[4].mxu1 %v3408_v24  ;;  %v3466_v24 = vld [vmem:[%s4579_s1 + $0x214] ss:$8 sps:$4 sm:$0xff]  }
  0x50   : > { %1752 = vmatpush1.bf16.msra.mxu1 %v3350_v14  ;;  %1936 = vmatmul.mubr.bf16.gmra.mrb[4].mxu0 %v3409_v25  ;;  %v3448_v14 = vld [vmem:[%s4579_s1 + $0x1f4] ss:$8 sps:$4 sm:$0xff]  }
  0x51   : > { %1971 = vmatpush1.bf16.msra.mxu0 %v3353_v15  ;;  %1753 = vmatprep.subr.bf16.mxu1 %v3358_v16  ;;  %v3451_v15 = vld [vmem:[%s4579_s1 + $0x4f4] ss:$8 sps:$4 sm:$0xff]   ;;  %v3446_v16 = vld [vmem:[%s4579_s1 + $0x1f0] ss:$8 sps:$4 sm:$0xff]  }
  0x52   : > { %1972 = vmatprep.subr.bf16.mxu0 %v3361_v18  ;;  %1726 = vmatprep.mubr.bf16.mxu1 %v3416_v29  ;;  %v3457_v18 = vld [vmem:[%s4579_s1 + $0x204] ss:$8 sps:$4 sm:$0xff]   ;;  %v3469_v25 = vld [vmem:[%s4579_s1 + $0x514] ss:$8 sps:$4 sm:$0xff]   ;;  %v3467_v29 = vld [vmem:[%s4579_s1 + $0x510] ss:$8 sps:$4 sm:$0xff]  }
  0x53   : > { %1945 = vmatprep.mubr.bf16.mxu0 %v3421_v33  ;;  %v3522_v33 = vld [vmem:[%s3793_s17 + $0x68] ss:$48 sps:$4 sm:$0xff]  }
  0x54   : > { %1754 = vmatpush1.bf16.msra.mxu1 %v3356_v19  ;;  %v3463_v19 = vld [vmem:[%s4579_s1 + $0x504] ss:$8 sps:$4 sm:$0xff]  }
  0x55   : > { %1973 = vmatpush1.bf16.msra.mxu0 %v3359_v20  ;;  %1755 = vmatprep.subr.bf16.mxu1 %v3364_v22  ;;  %v3452_v20 = vld [vmem:[%s3793_s17 + $0x8] ss:$48 sps:$4 sm:$0xff]   ;;  %v3458_v22 = vld [vmem:[%s3793_s17 + $0x20] ss:$48 sps:$4 sm:$0xff]  }
  0x56   : > { %1974 = vmatprep.subr.bf16.mxu0 %v3367_v23  ;;  %v3461_v23 = vld [vmem:[%s4579_s1 + $0x500] ss:$8 sps:$4 sm:$0xff]  }
  0x57   : > { %1727 = vmatmul.mubr.bf16.gmra.mrb[8].mxu1 %v3426_v36  ;;  %v3478_v36 = vld [vmem:[%s4579_s1 + $0x234] ss:$8 sps:$4 sm:$0xff]  }
  0x58   : > { %1756 = vmatpush1.bf16.msra.mxu1 %v3362_v26  ;;  %1946 = vmatmul.mubr.bf16.gmra.mrb[8].mxu0 %v3427_v37  ;;  %v3518_v26 = vld [vmem:[%s3793_s17 + $0x6c] ss:$48 sps:$4 sm:$0xff]  }
  0x59   : > { %1975 = vmatpush1.bf16.msra.mxu0 %v3365_v27  ;;  %1757 = vmatprep.subr.bf16.mxu1 %v3370_v28  ;;  %v3520_v27 = vld [vmem:[%s3793_s17 + $0x84] ss:$48 sps:$4 sm:$0xff]   ;;  %v3464_v28 = vld [vmem:[%s4579_s1 + $0x210] ss:$8 sps:$4 sm:$0xff]  }
  0x5a   : > { %1976 = vmatprep.subr.bf16.mxu0 %v3373_v30  ;;  %1736 = vmatprep.mubr.bf16.mxu1 %v3434_v41  ;;  %v3472_v30 = vld [vmem:[%s4579_s1 + $0x224] ss:$8 sps:$4 sm:$0xff]   ;;  %v3481_v37 = vld [vmem:[%s4579_s1 + $0x534] ss:$8 sps:$4 sm:$0xff]   ;;  %v3479_v41 = vld [vmem:[%s4579_s1 + $0x530] ss:$8 sps:$4 sm:$0xff]  }
  0x5b   : > { %1955 = vmatprep.mubr.bf16.mxu0 %v3439_v45  ;;  %v3540_v45 = vld [vmem:[%s3793_s17 + $0xc8] ss:$48 sps:$4 sm:$0xff]  }
  0x5c   : > { %1758 = vmatpush1.bf16.msra.mxu1 %v3368_v31  ;;  %v3475_v31 = vld [vmem:[%s4579_s1 + $0x524] ss:$8 sps:$4 sm:$0xff]  }
  0x5d   : > { %1977 = vmatpush1.bf16.msra.mxu0 %v3371_v32  ;;  %1759 = vmatprep.subr.bf16.mxu1 %v3376_v34  ;;  %v3470_v32 = vld [vmem:[%s4579_s1 + $0x220] ss:$8 sps:$4 sm:$0xff]  }
  0x5e   : > { %1978 = vmatprep.subr.bf16.mxu0 %v3379_v35  ;;  %v3526_v34 = vld [vmem:[%s3793_s17 + $0x80] ss:$48 sps:$4 sm:$0xff]  }
  0x5f   : > { %1737 = vmatmul.mubr.bf16.gmra.mrb[12].mxu1 %v3444_v48  ;;  %v3473_v35 = vld [vmem:[%s4579_s1 + $0x520] ss:$8 sps:$4 sm:$0xff]   ;;  %v3490_v48 = vld [vmem:[%s4579_s1 + $0x254] ss:$8 sps:$4 sm:$0xff]  }
  0x60   : > { %1760 = vmatpush1.bf16.msra.mxu1 %v3374_v38  ;;  %1956 = vmatmul.mubr.bf16.gmra.mrb[12].mxu0 %v3445_v49  ;;  %v3536_v38 = vld [vmem:[%s3793_s17 + $0xcc] ss:$48 sps:$4 sm:$0xff]  }
  0x61   : > { %1979 = vmatpush1.bf16.msra.mxu0 %v3377_v39  ;;  %1761 = vmatprep.subr.bf16.mxu1 %v3382_v40  ;;  %v3538_v39 = vld [vmem:[%s3793_s17 + $0xe4] ss:$48 sps:$4 sm:$0xff]   ;;  %v3476_v40 = vld [vmem:[%s4579_s1 + $0x230] ss:$8 sps:$4 sm:$0xff]  }
  0x62   : > { %1980 = vmatprep.subr.bf16.mxu0 %v3385_v42  ;;  %1779 = vmatprep.mubr.bf16.mxu1 %v3454_v54  ;;  %v3484_v42 = vld [vmem:[%s4579_s1 + $0x244] ss:$8 sps:$4 sm:$0xff]   ;;  %v3493_v49 = vld [vmem:[%s4579_s1 + $0x554] ss:$8 sps:$4 sm:$0xff]  }
  0x63   : > { %1998 = vmatprep.mubr.bf16.mxu0 %v3460_v57  ;;  %v3496_v54 = vld [vmem:[%s4579_s1 + $0x264] ss:$8 sps:$4 sm:$0xff]   ;;  %v3497_v57 = vld [vmem:[%s4579_s1 + $0x560] ss:$8 sps:$4 sm:$0xff]  }
  0x64   : > { %1762 = vmatpush1.bf16.msra.mxu1 %v3380_v43  ;;  %v3487_v43 = vld [vmem:[%s4579_s1 + $0x544] ss:$8 sps:$4 sm:$0xff]  }
  0x65   : > { %1981 = vmatpush1.bf16.msra.mxu0 %v3383_v44  ;;  %1763 = vmatprep.subr.bf16.mxu1 %v3388_v46  ;;  %v3482_v44 = vld [vmem:[%s4579_s1 + $0x240] ss:$8 sps:$4 sm:$0xff]  }
  0x66   : > { %1982 = vmatprep.subr.bf16.mxu0 %v3391_v47  ;;  %v3544_v46 = vld [vmem:[%s3793_s17 + $0xe0] ss:$48 sps:$4 sm:$0xff]  }
  0x67   : > { %v3485_v47 = vld [vmem:[%s4579_s1 + $0x540] ss:$8 sps:$4 sm:$0xff]  }
  0x68   : > { %1764 = vmatpush1.bf16.msra.mxu1 %v3386_v50  ;;  %v3554_v50 = vld [vmem:[%s3793_s17 + $0x12c] ss:$48 sps:$4 sm:$0xff]  }
  0x69   : > { %1983 = vmatpush1.bf16.msra.mxu0 %v3389_v51  ;;  %1765 = vmatprep.subr.bf16.mxu1 %v3394_v52  ;;  %v3556_v51 = vld [vmem:[%s3793_s17 + $0x144] ss:$48 sps:$4 sm:$0xff]   ;;  %v3488_v52 = vld [vmem:[%s4579_s1 + $0x250] ss:$8 sps:$4 sm:$0xff]  }
  0x6a   : > { %1984 = vmatprep.subr.bf16.mxu0 %v3397_v53  ;;  %v3491_v53 = vld [vmem:[%s4579_s1 + $0x550] ss:$8 sps:$4 sm:$0xff]  }
  0x6c   : > { %1766 = vmatpush1.bf16.msra.mxu1 %v3392_v55  ;;  %v3499_v55 = vld [vmem:[%s4579_s1 + $0x564] ss:$8 sps:$4 sm:$0xff]  }
  0x6d   : > { %1985 = vmatpush1.bf16.msra.mxu0 %v3395_v56  ;;  %1767 = vmatprep.subr.bf16.mxu1 %v3402_v58  ;;  %v3494_v56 = vld [vmem:[%s4579_s1 + $0x260] ss:$8 sps:$4 sm:$0xff]  }
  0x6e   : > { %1986 = vmatprep.subr.bf16.mxu0 %v3407_v59  ;;  %v3558_v58 = vld [vmem:[%s3793_s17 + $0x128] ss:$48 sps:$4 sm:$0xff]   ;;  %v3562_v59 = vld [vmem:[%s3793_s17 + $0x140] ss:$48 sps:$4 sm:$0xff]  }
  0x70   : > { %1768 = vmatpush1.bf16.msra.mxu1 %v3400_v60  ;;  %v3502_v60 = vld [vmem:[%s4579_s1 + $0x274] ss:$8 sps:$4 sm:$0xff]  }
  0x71   : > { %1987 = vmatpush1.bf16.msra.mxu0 %v3405_v61  ;;  %1769 = vmatprep.subr.bf16.mxu1 %v3412_v62  ;;  %v3505_v61 = vld [vmem:[%s4579_s1 + $0x574] ss:$8 sps:$4 sm:$0xff]  }
  0x72   : > { %1988 = vmatprep.subr.bf16.mxu0 %v3415_v63  ;;  %v3574_v62 = vld [vmem:[%s3793_s17 + $0x14] ss:$48 sps:$4 sm:$0xff]   ;;  %v3577_v63 = vld [vmem:[%s3793_s17 + $0x2c] ss:$48 sps:$4 sm:$0xff]  }
  0x74   : > { %1770 = vmatpush1.bf16.msra.mxu1 %v3410_v0  ;;  %v3500_v0 = vld [vmem:[%s4579_s1 + $0x270] ss:$8 sps:$4 sm:$0xff]  }
  0x75   : > { %1989 = vmatpush1.bf16.msra.mxu0 %v3413_v1  ;;  %1771 = vmatprep.subr.bf16.mxu1 %v3420_v2  ;;  %v3503_v1 = vld [vmem:[%s4579_s1 + $0x570] ss:$8 sps:$4 sm:$0xff]   ;;  %v3508_v2 = vld [vmem:[%s4579_s1 + $0x284] ss:$8 sps:$4 sm:$0xff]  }
  0x76   : > { %1990 = vmatprep.subr.bf16.mxu0 %v3425_v3  ;;  %v3511_v3 = vld [vmem:[%s4579_s1 + $0x584] ss:$8 sps:$4 sm:$0xff]  }
  0x78   : > { %1772 = vmatpush1.bf16.msra.mxu1 %v3418_v4  ;;  %v3506_v4 = vld [vmem:[%s4579_s1 + $0x280] ss:$8 sps:$4 sm:$0xff]  }
  0x79   : > { %1991 = vmatpush1.bf16.msra.mxu0 %v3423_v5  ;;  %1773 = vmatprep.subr.bf16.mxu1 %v3430_v6  ;;  %v3509_v5 = vld [vmem:[%s4579_s1 + $0x580] ss:$8 sps:$4 sm:$0xff]   ;;  %v3514_v6 = vld [vmem:[%s4579_s1 + $0x294] ss:$8 sps:$4 sm:$0xff]  }
  0x7a   : > { %1992 = vmatprep.subr.bf16.mxu0 %v3433_v7  ;;  %v3517_v7 = vld [vmem:[%s4579_s1 + $0x594] ss:$8 sps:$4 sm:$0xff]  }
  0x7c   : > { %1774 = vmatpush1.bf16.msra.mxu1 %v3428_v8  ;;  %v3512_v8 = vld [vmem:[%s4579_s1 + $0x290] ss:$8 sps:$4 sm:$0xff]  }
  0x7d   : > { %1993 = vmatpush1.bf16.msra.mxu0 %v3431_v9  ;;  %1775 = vmatprep.subr.bf16.mxu1 %v3438_v10  ;;  %v3515_v9 = vld [vmem:[%s4579_s1 + $0x590] ss:$8 sps:$4 sm:$0xff]   ;;  %v3525_v10 = vld [vmem:[%s4579_s1 + $0x2a4] ss:$8 sps:$4 sm:$0xff]  }
  0x7e   : > { %1994 = vmatprep.subr.bf16.mxu0 %v3443_v11  ;;  %v3529_v11 = vld [vmem:[%s4579_s1 + $0x5a4] ss:$8 sps:$4 sm:$0xff]  }
  0x80   : > { %1776 = vmatpush1.bf16.msra.mxu1 %v3436_v12  ;;  %v3523_v12 = vld [vmem:[%s4579_s1 + $0x2a0] ss:$8 sps:$4 sm:$0xff]  }
  0x81   : > { %1995 = vmatpush1.bf16.msra.mxu0 %v3441_v13  ;;  %1777 = vmatprep.subr.bf16.mxu1 %v3448_v14  ;;  %v3527_v13 = vld [vmem:[%s4579_s1 + $0x5a0] ss:$8 sps:$4 sm:$0xff]   ;;  %v3532_v14 = vld [vmem:[%s4579_s1 + $0x2b4] ss:$8 sps:$4 sm:$0xff]  }
  0x82   : > { %1996 = vmatprep.subr.bf16.mxu0 %v3451_v15  ;;  %v3535_v15 = vld [vmem:[%s4579_s1 + $0x5b4] ss:$8 sps:$4 sm:$0xff]  }
  0x84   : > { %1778 = vmatpush1.bf16.msra.mxu1 %v3446_v16  ;;  %v3530_v16 = vld [vmem:[%s4579_s1 + $0x2b0] ss:$8 sps:$4 sm:$0xff]  }
  0x85   : > { %1997 = vmatpush1.bf16.msra.mxu0 %v3449_v17  ;;  %1820 = vmatprep.subr.bf16.mxu1 %v3457_v18  ;;  %v3533_v17 = vld [vmem:[%s4579_s1 + $0x5b0] ss:$8 sps:$4 sm:$0xff]   ;;  %v3543_v18 = vld [vmem:[%s4579_s1 + $0x2c4] ss:$8 sps:$4 sm:$0xff]  }
  0x86   : > { %2039 = vmatprep.subr.bf16.mxu0 %v3463_v19  ;;  %v3547_v19 = vld [vmem:[%s4579_s1 + $0x5c4] ss:$8 sps:$4 sm:$0xff]  }
  0x87   : > { %1780 = vmatmul.mubr.bf16.vlgmr.msra.gmra.mrb[0].mxu1 %v3452_v20  ;;  %v3541_v20 = vld [vmem:[%s4579_s1 + $0x2c0] ss:$8 sps:$4 sm:$0xff]  }
  0x88   : > { %1999 = vmatmul.mubr.bf16.vlgmr.msra.gmra.mrb[0].mxu0 %v3458_v22  ;;  %1821 = vmatpush1.bf16.msra.mxu1 %v3455_v21  ;;  %v3545_v21 = vld [vmem:[%s4579_s1 + $0x5c0] ss:$8 sps:$4 sm:$0xff]   ;;  %v3550_v22 = vld [vmem:[%s4579_s1 + $0x2d4] ss:$8 sps:$4 sm:$0xff]  }
  0x89   : > { %2040 = vmatpush1.bf16.msra.mxu0 %v3461_v23  ;;  %1822 = vmatprep.subr.bf16.mxu1 %v3466_v24  ;;  %v3553_v23 = vld [vmem:[%s4579_s1 + $0x5d4] ss:$8 sps:$4 sm:$0xff]   ;;  %v3548_v24 = vld [vmem:[%s4579_s1 + $0x2d0] ss:$8 sps:$4 sm:$0xff]  }
  0x8a   : > { %2041 = vmatprep.subr.bf16.mxu0 %v3469_v25  ;;  %1789 = vmatprep.mubr.bf16.mxu1 %v3518_v26  ;;  %v3551_v25 = vld [vmem:[%s4579_s1 + $0x5d0] ss:$8 sps:$4 sm:$0xff]   ;;  %v3561_v26 = vld [vmem:[%s4579_s1 + $0x2e4] ss:$8 sps:$4 sm:$0xff]  }
  0x8b   : > { %2008 = vmatprep.mubr.bf16.mxu0 %v3520_v27  ;;  %v3565_v27 = vld [vmem:[%s4579_s1 + $0x5e4] ss:$8 sps:$4 sm:$0xff]  }
  0x8c   : > { %1823 = vmatpush1.bf16.msra.mxu1 %v3464_v28  ;;  %v3559_v28 = vld [vmem:[%s4579_s1 + $0x2e0] ss:$8 sps:$4 sm:$0xff]  }
  0x8d   : > { %2042 = vmatpush1.bf16.msra.mxu0 %v3467_v29  ;;  %1824 = vmatprep.subr.bf16.mxu1 %v3472_v30  ;;  %v3563_v29 = vld [vmem:[%s4579_s1 + $0x5e0] ss:$8 sps:$4 sm:$0xff]   ;;  %v3568_v30 = vld [vmem:[%s4579_s1 + $0x2f4] ss:$8 sps:$4 sm:$0xff]  }
  0x8e   : > { %2043 = vmatprep.subr.bf16.mxu0 %v3475_v31  ;;  %v3571_v31 = vld [vmem:[%s4579_s1 + $0x5f4] ss:$8 sps:$4 sm:$0xff]  }
  0x8f   : > { %1790 = vmatmul.mubr.bf16.gmra.mrb[4].mxu1 %v3522_v33  ;;  %v3569_v33 = vld [vmem:[%s4579_s1 + $0x5f0] ss:$8 sps:$4 sm:$0xff]  }
  0x90   : > { %2009 = vmatmul.mubr.bf16.gmra.mrb[4].mxu0 %v3526_v34  ;;  %1825 = vmatpush1.bf16.msra.mxu1 %v3470_v32  ;;  %v3566_v32 = vld [vmem:[%s4579_s1 + $0x2f0] ss:$8 sps:$4 sm:$0xff]  }
  0x91   : > { %2044 = vmatpush1.bf16.msra.mxu0 %v3473_v35  ;;  %1826 = vmatprep.subr.bf16.mxu1 %v3478_v36  ;;  %v3572_v34 = vld [vmem:[%s3793_s17 + $0x10] ss:$48 sps:$4 sm:$0xff]   ;;  %v3575_v35 = vld [vmem:[%s3793_s17 + $0x28] ss:$48 sps:$4 sm:$0xff]   ;;  %v3578_v36 = vld [vmem:[%s3793_s17 + $0x74] ss:$48 sps:$4 sm:$0xff]  }
  0x92   : > { %2045 = vmatprep.subr.bf16.mxu0 %v3481_v37  ;;  %1799 = vmatprep.mubr.bf16.mxu1 %v3536_v38  ;;  %v3580_v37 = vld [vmem:[%s3793_s17 + $0x8c] ss:$48 sps:$4 sm:$0xff]   ;;  %v3582_v38 = vld [vmem:[%s3793_s17 + $0x70] ss:$48 sps:$4 sm:$0xff]  }
  0x93   : > { %2018 = vmatprep.mubr.bf16.mxu0 %v3538_v39  ;;  %v3583_v39 = vld [vmem:[%s3793_s17 + $0x88] ss:$48 sps:$4 sm:$0xff]  }
  0x94   : > { %1827 = vmatpush1.bf16.msra.mxu1 %v3476_v40  ;;  %v3584_v40 = vld [vmem:[%s3793_s17 + $0xd4] ss:$48 sps:$4 sm:$0xff]  }
  0x95   : > { %2046 = vmatpush1.bf16.msra.mxu0 %v3479_v41  ;;  %1828 = vmatprep.subr.bf16.mxu1 %v3484_v42  ;;  %v3586_v41 = vld [vmem:[%s3793_s17 + $0xec] ss:$48 sps:$4 sm:$0xff]   ;;  %v3588_v42 = vld [vmem:[%s3793_s17 + $0xd0] ss:$48 sps:$4 sm:$0xff]  }
  0x96   : > { %2047 = vmatprep.subr.bf16.mxu0 %v3487_v43  ;;  %v3589_v43 = vld [vmem:[%s3793_s17 + $0xe8] ss:$48 sps:$4 sm:$0xff]  }
  0x97   : > { %1800 = vmatmul.mubr.bf16.gmra.mrb[8].mxu1 %v3540_v45  ;;  %v3592_v45 = vld [vmem:[%s3793_s17 + $0x14c] ss:$48 sps:$4 sm:$0xff]  }
  0x98   : > { %2019 = vmatmul.mubr.bf16.gmra.mrb[8].mxu0 %v3544_v46  ;;  %1829 = vmatpush1.bf16.msra.mxu1 %v3482_v44  ;;  %v3590_v44 = vld [vmem:[%s3793_s17 + $0x134] ss:$48 sps:$4 sm:$0xff]   ;;  %v3594_v46 = vld [vmem:[%s3793_s17 + $0x130] ss:$48 sps:$4 sm:$0xff]  }
  0x99   : > { %2048 = vmatpush1.bf16.msra.mxu0 %v3485_v47  ;;  %1830 = vmatprep.subr.bf16.mxu1 %v3490_v48  ;;  %v3595_v47 = vld [vmem:[%s3793_s17 + $0x148] ss:$48 sps:$4 sm:$0xff]   ;;  %v2154_v48 = vld [vmem:[%s4580_s2 + $0x80] sm:$0xff]  ;;  %s2561_s17 = sld [smem:[#allocation2]] }
  0x9a   : > { %2049 = vmatprep.subr.bf16.mxu0 %v3493_v49  ;;  %1809 = vmatprep.mubr.bf16.mxu1 %v3554_v50  ;;  %v2155_v49 = vld [vmem:[%s4580_s2 + $0x88] sm:$0xff] }
  0x9b   : > { %2028 = vmatprep.mubr.bf16.mxu0 %v3556_v51  ;;  %v3066_v50 = vpack.c.bf16 %v2155_v49, %v2154_v48  ;;  %v2138_v51 = vld [vmem:[%s4580_s2] sm:$0xff] }
  0x9c   : > { %1831 = vmatpush1.bf16.msra.mxu1 %v3488_v52  ;;  %v2139_v52 = vld [vmem:[%s4580_s2 + $0x8] sm:$0xff] }
  0x9d   : > { %2050 = vmatpush1.bf16.msra.mxu0 %v3491_v53  ;;  %1832 = vmatprep.subr.bf16.mxu1 %v3496_v54  ;;  %v3068_v53 = vpack.c.bf16 %v2139_v52, %v2138_v51  ;;  %v2156_v54 = vld [vmem:[%s4580_s2 + $0x90] sm:$0xff] }
  0x9e   : > { %2051 = vmatprep.subr.bf16.mxu0 %v3499_v55  ;;  %v2157_v55 = vld [vmem:[%s4580_s2 + $0x98] sm:$0xff] }
  0x9f   : > { %1810 = vmatmul.mubr.bf16.gmra.mrb[12].mxu1 %v3558_v58  ;;  %v2141_v58 = vld [vmem:[%s4580_s2 + $0x18] sm:$0xff] }
  0xa0   : > { %2029 = vmatmul.mubr.bf16.gmra.mrb[12].mxu0 %v3562_v59  ;;  %1833 = vmatpush1.bf16.msra.mxu1 %v3494_v56  ;;  %v3070_v56 = vpack.c.bf16 %v2157_v55, %v2156_v54 }
  0xa1   : > { %2052 = vmatpush1.bf16.msra.mxu0 %v3497_v57  ;;  %1834 = vmatprep.subr.bf16.mxu1 %v3502_v60  ;;  %v2140_v57 = vld [vmem:[%s4580_s2 + $0x10] sm:$0xff]  ;;  %v2158_v60 = vld [vmem:[%s4580_s2 + $0xa0] sm:$0xff] }
  0xa2   : > { %2053 = vmatprep.subr.bf16.mxu0 %v3505_v61  ;;  %1852 = vmatprep.mubr.bf16.mxu1 %v3574_v62  ;;  %v3072_v59 = vpack.c.bf16 %v2141_v58, %v2140_v57  ;;  %v2159_v61 = vld [vmem:[%s4580_s2 + $0xa8] sm:$0xff] }
  0xa3   : > { %2071 = vmatprep.mubr.bf16.mxu0 %v3577_v63  ;;  %v3074_v62 = vpack.c.bf16 %v2159_v61, %v2158_v60  ;;  %v2142_v63 = vld [vmem:[%s4580_s2 + $0x20] sm:$0xff] }
  0xa4   : > { %1835 = vmatpush1.bf16.msra.mxu1 %v3500_v0  ;;  %v2143_v0 = vld [vmem:[%s4580_s2 + $0x28] sm:$0xff] }
  0xa5   : > { %2054 = vmatpush1.bf16.msra.mxu0 %v3503_v1  ;;  %1836 = vmatprep.subr.bf16.mxu1 %v3508_v2  ;;  %v3076_v1 = vpack.c.bf16 %v2143_v0, %v2142_v63  ;;  %v2160_v2 = vld [vmem:[%s4580_s2 + $0xb0] sm:$0xff] }
  0xa6   : > { %2055 = vmatprep.subr.bf16.mxu0 %v3511_v3  ;;  %v2161_v3 = vld [vmem:[%s4580_s2 + $0xb8] sm:$0xff] }
  0xa8   : > { %1837 = vmatpush1.bf16.msra.mxu1 %v3506_v4  ;;  %v3078_v4 = vpack.c.bf16 %v2161_v3, %v2160_v2 }
  0xa9   : > { %2056 = vmatpush1.bf16.msra.mxu0 %v3509_v5  ;;  %1838 = vmatprep.subr.bf16.mxu1 %v3514_v6  ;;  %v2144_v5 = vld [vmem:[%s4580_s2 + $0x30] sm:$0xff]  ;;  %v2145_v6 = vld [vmem:[%s4580_s2 + $0x38] sm:$0xff] }
  0xaa   : > { %2057 = vmatprep.subr.bf16.mxu0 %v3517_v7  ;;  %v3080_v7 = vpack.c.bf16 %v2145_v6, %v2144_v5 }
  0xac   : > { %1839 = vmatpush1.bf16.msra.mxu1 %v3512_v8  ;;  %v2162_v8 = vld [vmem:[%s4580_s2 + $0xc0] sm:$0xff] }
  0xad   : > { %2058 = vmatpush1.bf16.msra.mxu0 %v3515_v9  ;;  %1840 = vmatprep.subr.bf16.mxu1 %v3525_v10  ;;  %v2163_v9 = vld [vmem:[%s4580_s2 + $0xc8] sm:$0xff] }
  0xae   : > { %2059 = vmatprep.subr.bf16.mxu0 %v3529_v11  ;;  %v3082_v10 = vpack.c.bf16 %v2163_v9, %v2162_v8  ;;  %v2146_v11 = vld [vmem:[%s4580_s2 + $0x40] sm:$0xff] }
  0xb0   : > { %1841 = vmatpush1.bf16.msra.mxu1 %v3523_v12  ;;  %v2147_v12 = vld [vmem:[%s4580_s2 + $0x48] sm:$0xff] }
  0xb1   : > { %2060 = vmatpush1.bf16.msra.mxu0 %v3527_v13  ;;  %1842 = vmatprep.subr.bf16.mxu1 %v3532_v14  ;;  %v3084_v13 = vpack.c.bf16 %v2147_v12, %v2146_v11  ;;  %v2164_v14 = vld [vmem:[%s4580_s2 + $0xd0] sm:$0xff] }
  0xb2   : > { %2061 = vmatprep.subr.bf16.mxu0 %v3535_v15  ;;  %v2165_v15 = vld [vmem:[%s4580_s2 + $0xd8] sm:$0xff] }
  0xb4   : > { %1843 = vmatpush1.bf16.msra.mxu1 %v3530_v16  ;;  %v3086_v16 = vpack.c.bf16 %v2165_v15, %v2164_v14 }
  0xb5   : > { %2062 = vmatpush1.bf16.msra.mxu0 %v3533_v17  ;;  %1844 = vmatprep.subr.bf16.mxu1 %v3543_v18  ;;  %v2148_v17 = vld [vmem:[%s4580_s2 + $0x50] sm:$0xff]  ;;  %v2149_v18 = vld [vmem:[%s4580_s2 + $0x58] sm:$0xff] }
  0xb6   : > { %2063 = vmatprep.subr.bf16.mxu0 %v3547_v19  ;;  %v3088_v19 = vpack.c.bf16 %v2149_v18, %v2148_v17 }
  0xb8   : > { %1845 = vmatpush1.bf16.msra.mxu1 %v3541_v20  ;;  %v2166_v20 = vld [vmem:[%s4580_s2 + $0xe0] sm:$0xff] }
  0xb9   : > { %2064 = vmatpush1.bf16.msra.mxu0 %v3545_v21  ;;  %1846 = vmatprep.subr.bf16.mxu1 %v3550_v22  ;;  %v2167_v21 = vld [vmem:[%s4580_s2 + $0xe8] sm:$0xff] }
  0xba   : > { %2065 = vmatprep.subr.bf16.mxu0 %v3553_v23  ;;  %v3090_v22 = vpack.c.bf16 %v2167_v21, %v2166_v20  ;;  %v2150_v23 = vld [vmem:[%s4580_s2 + $0x60] sm:$0xff] }
  0xbc   : > { %1847 = vmatpush1.bf16.msra.mxu1 %v3548_v24  ;;  %v2151_v24 = vld [vmem:[%s4580_s2 + $0x68] sm:$0xff] }
  0xbd   : > { %2066 = vmatpush1.bf16.msra.mxu0 %v3551_v25  ;;  %1848 = vmatprep.subr.bf16.mxu1 %v3561_v26  ;;  %v3092_v25 = vpack.c.bf16 %v2151_v24, %v2150_v23  ;;  %v2168_v26 = vld [vmem:[%s4580_s2 + $0xf0] sm:$0xff] }
  0xbe   : > { %2067 = vmatprep.subr.bf16.mxu0 %v3565_v27  ;;  %v2169_v27 = vld [vmem:[%s4580_s2 + $0xf8] sm:$0xff] }
  0xc0   : > { %1849 = vmatpush1.bf16.msra.mxu1 %v3559_v28  ;;  %v3094_v28 = vpack.c.bf16 %v2169_v27, %v2168_v26 }
  0xc1   : > { %2068 = vmatpush1.bf16.msra.mxu0 %v3563_v29  ;;  %1850 = vmatprep.subr.bf16.mxu1 %v3568_v30  ;;  %v2152_v29 = vld [vmem:[%s4580_s2 + $0x70] sm:$0xff]  ;;  %v2153_v30 = vld [vmem:[%s4580_s2 + $0x78] sm:$0xff] }
  0xc2   : > { %2069 = vmatprep.subr.bf16.mxu0 %v3571_v31  ;;  %v3096_v31 = vpack.c.bf16 %v2153_v30, %v2152_v29 }
  0xc4   : > { %1851 = vmatpush1.bf16.msra.mxu1 %v3566_v32  ;;  %v2242_v32 = vld [vmem:[%s4581_s3 + $0x8] sm:$0xff] }
  0xc5   : > { %2070 = vmatpush1.bf16.msra.mxu0 %v3569_v33  ;;  %3067 = vmatprep.subr.bf16.mxu1 %v3066_v50  ;;  %v2244_v33 = vld [vmem:[%s4581_s3 + $0x18] sm:$0xff] }
  0xc6   : > { %3107 = vmatprep.subr.bf16.mxu0 %v3066_v50 }
  0xc7   : > { %1853 = vmatmul.mubr.bf16.vlgmr.msra.gmra.mrb[0].mxu1 %v3572_v34  ;;  %v3098_v34 = vpack.c.bf16 %v2244_v33, %v2242_v32 }
  0xc8   : > { %2072 = vmatmul.mubr.bf16.vlgmr.msra.gmra.mrb[0].mxu0 %v3575_v35  ;;  %1862 = vmatprep.mubr.bf16.mxu1 %v3578_v36 }
  0xc9   : > { %2081 = vmatprep.mubr.bf16.mxu0 %v3580_v37  ;;  %3069 = vmatpush3.bf16.msra.mxu1 %v3068_v53 }
  0xca   : > { %3109 = vmatpush3.bf16.msra.mxu0 %v3068_v53  ;;  %3071 = vmatprep.subr.bf16.mxu1 %v3070_v56 }
  0xcb   : > { %3111 = vmatprep.subr.bf16.mxu0 %v3070_v56 }
  0xcd   : > { %3073 = vmatpush3.bf16.msra.mxu1 %v3072_v59 }
  0xce   : > { %3113 = vmatpush3.bf16.msra.mxu0 %v3072_v59  ;;  %3075 = vmatprep.subr.bf16.mxu1 %v3074_v62 }
  0xcf   : > { %1863 = vmatmul.mubr.bf16.gmra.mrb[4].mxu1 %v3582_v38  ;;  %3115 = vmatprep.subr.bf16.mxu0 %v3074_v62 }
  0xd0   : > { %2082 = vmatmul.mubr.bf16.gmra.mrb[4].mxu0 %v3583_v39  ;;  %1872 = vmatprep.mubr.bf16.mxu1 %v3584_v40 }
  0xd1   : > { %2091 = vmatprep.mubr.bf16.mxu0 %v3586_v41  ;;  %3077 = vmatpush3.bf16.msra.mxu1 %v3076_v1 }
  0xd2   : > { %3117 = vmatpush3.bf16.msra.mxu0 %v3076_v1  ;;  %3079 = vmatprep.subr.bf16.mxu1 %v3078_v4 }
  0xd3   : > { %3119 = vmatprep.subr.bf16.mxu0 %v3078_v4 }
  0xd5   : > { %3081 = vmatpush3.bf16.msra.mxu1 %v3080_v7 }
  0xd6   : > { %3121 = vmatpush3.bf16.msra.mxu0 %v3080_v7  ;;  %3083 = vmatprep.subr.bf16.mxu1 %v3082_v10 }
  0xd7   : > { %1873 = vmatmul.mubr.bf16.gmra.mrb[8].mxu1 %v3588_v42  ;;  %3123 = vmatprep.subr.bf16.mxu0 %v3082_v10 }
  0xd8   : > { %2092 = vmatmul.mubr.bf16.gmra.mrb[8].mxu0 %v3589_v43  ;;  %1882 = vmatprep.mubr.bf16.mxu1 %v3590_v44 }
  0xd9   : > { %2101 = vmatprep.mubr.bf16.mxu0 %v3592_v45  ;;  %3085 = vmatpush3.bf16.msra.mxu1 %v3084_v13 }
  0xda   : > { %3125 = vmatpush3.bf16.msra.mxu0 %v3084_v13  ;;  %3087 = vmatprep.subr.bf16.mxu1 %v3086_v16 }
  0xdb   : > { %3127 = vmatprep.subr.bf16.mxu0 %v3086_v16 }
  0xdd   : > { %3089 = vmatpush3.bf16.msra.mxu1 %v3088_v19 }
  0xde   : > { %3129 = vmatpush3.bf16.msra.mxu0 %v3088_v19  ;;  %3091 = vmatprep.subr.bf16.mxu1 %v3090_v22 }
  0xdf   : > { %1883 = vmatmul.mubr.bf16.gmra.mrb[12].mxu1 %v3594_v46  ;;  %3131 = vmatprep.subr.bf16.mxu0 %v3090_v22 }
  0xe0   : > { %2102 = vmatmul.mubr.bf16.gmra.mrb[12].mxu0 %v3595_v47 }
  0xe1   : > { %3093 = vmatpush3.bf16.msra.mxu1 %v3092_v25 }
  0xe2   : > { %3133 = vmatpush3.bf16.msra.mxu0 %v3092_v25  ;;  %3095 = vmatprep.subr.bf16.mxu1 %v3094_v28 }
  0xe3   : > { %3135 = vmatprep.subr.bf16.mxu0 %v3094_v28 }
  0xe5   : > { %3097 = vmatpush3.bf16.msra.mxu1 %v3096_v31 }
  0xe6   : > { %3137 = vmatpush3.bf16.msra.mxu0 %v3096_v31  ;;  %3099 = vmatprep.subr.bf16.mxu1 %v3098_v34 }
  0xe7   : > { %3139 = vmatprep.subr.bf16.mxu0 %v3098_v34 }
 0x19a   : > { %v1854_v35 = vpop.f32.mrb[0].mxu1 }
 0x19b   : > { %v2073_v36 = vpop.f32.mrb[0].mxu0  ;;  %v1856_v38 = vpop.f32.mrb[1].mxu1 }
 0x19c   : > { %v4386_v37 = vadd.f32 %v2073_v36, %v1854_v35  ;;  %v2075_v39 = vpop.f32.mrb[1].mxu0  ;;  %v1858_v41 = vpop.f32.mrb[2].mxu1 }
 0x19d   : > { %v4388_v40 = vadd.f32 %v2075_v39, %v1856_v38  ;;  %v2077_v42 = vpop.f32.mrb[2].mxu0  ;;  %v1860_v44 = vpop.f32.mrb[3].mxu1 }
 0x19e   : > { %v4390_v43 = vadd.f32 %v2077_v42, %v1858_v41  ;;  %v2079_v45 = vpop.f32.mrb[3].mxu0 }
 0x19f   : > { %v4392_v46 = vadd.f32 %v2079_v45, %v1860_v44  ;;  %v2241_v45 = vld [vmem:[%s4581_s3] sm:$0xff] }
 0x1a0   : > { %v2112_v59 = vadd.f32 %v4390_v43, %v4386_v37 }
 0x1a1   : > { %v2125_v60 = vadd.f32 %v4392_v46, %v4388_v40 }
 0x1a2   : > { %v1864_v47 = vpop.f32.mrb[4].mxu1 }
 0x1a3   : > { %v2083_v48 = vpop.f32.mrb[4].mxu0  ;;  %v1866_v50 = vpop.f32.mrb[5].mxu1 }
 0x1a4   : > { %v4394_v49 = vadd.f32 %v2083_v48, %v1864_v47  ;;  %v2085_v51 = vpop.f32.mrb[5].mxu0  ;;  %v1868_v53 = vpop.f32.mrb[6].mxu1  ;;  %v2243_v47 = vld [vmem:[%s4581_s3 + $0x10] sm:$0xff] }
 0x1a5   : > { %v4396_v52 = vadd.f32 %v2085_v51, %v1866_v50  ;;  %v2087_v54 = vpop.f32.mrb[6].mxu0  ;;  %v1870_v56 = vpop.f32.mrb[7].mxu1  ;;  %v4440_v51 = vpack.c.bf16 %v2243_v47, %v2241_v45 }
 0x1a6   : > { %v4398_v55 = vadd.f32 %v2087_v54, %v1868_v53  ;;  %v2089_v57 = vpop.f32.mrb[7].mxu0  ;;  %v2113_v61 = vadd.f32 %v4394_v49, %v2112_v59  ;;  %v2246_v54 = vld [vmem:[%s4581_s3 + $0x28] sm:$0xff]  ;;  %v2245_v59 = vld [vmem:[%s4581_s3 + $0x20] sm:$0xff] }
 0x1a7   : > { %v4400_v58 = vadd.f32 %v2089_v57, %v1870_v56  ;;  %v2126_v62 = vadd.f32 %v4396_v52, %v2125_v60  ;;  %v2248_v56 = vld [vmem:[%s4581_s3 + $0x38] sm:$0xff]  ;;  %v2247_v60 = vld [vmem:[%s4581_s3 + $0x30] sm:$0xff] }
 0x1a8   : > { %v2114_v7 = vadd.f32 %v4398_v55, %v2113_v61  ;;  %v4449_v57 = vpack.c.bf16 %v2248_v56, %v2246_v54  ;;  %v4457_v61 = vpack.c.bf16 %v2247_v60, %v2245_v59 }
 0x1a9   : > { %v2127_v11 = vadd.f32 %v4400_v58, %v2126_v62  ;;  %v3608_v62 = vmov 0.0  }
 0x1aa   : > { %v1874_v63 = vpop.f32.mrb[8].mxu1 }
 0x1ab   : > { %v2093_v0 = vpop.f32.mrb[8].mxu0  ;;  %v1876_v2 = vpop.f32.mrb[9].mxu1 }
 0x1ac   : > { %v4408_v1 = vadd.f32 %v2093_v0, %v1874_v63  ;;  %v2095_v3 = vpop.f32.mrb[9].mxu0  ;;  %v1878_v5 = vpop.f32.mrb[10].mxu1 }
 0x1ad   : > { %v4410_v4 = vadd.f32 %v2095_v3, %v1876_v2  ;;  %v2097_v6 = vpop.f32.mrb[10].mxu0  ;;  %v1880_v9 = vpop.f32.mrb[11].mxu1 }
 0x1ae   : > { %v4413_v8 = vadd.f32 %v2097_v6, %v1878_v5  ;;  %v2099_v10 = vpop.f32.mrb[11].mxu0  ;;  %v2115_v13 = vadd.f32 %v4408_v1, %v2114_v7  ;;  %v2324_v5 = vlaneseq }
 0x1af   : > { %v4416_v12 = vadd.f32 %v2099_v10, %v1880_v9  ;;  %v2128_v14 = vadd.f32 %v4410_v4, %v2127_v11 }
 0x1b0   : > { %v2116_v17 = vadd.f32 %v4413_v8, %v2115_v13  ;;  %v2325_v6 = vshrl.u32 %v2324_v5, 7 }
 0x1b1   : > { %v2129_v21 = vadd.f32 %v4416_v12, %v2128_v14 }
 0x1b2   : > { %v1884_v15 = vpop.f32.mrb[12].mxu1  ;;  %v4463_v7 = vsub.s32 0, %v2325_v6 }
 0x1b3   : > { %v2103_v16 = vpop.f32.mrb[12].mxu0  ;;  %v1886_v19 = vpop.f32.mrb[13].mxu1 }
 0x1b4   : > { %v4421_v18 = vadd.f32 %v2103_v16, %v1884_v15  ;;  %v2105_v20 = vpop.f32.mrb[13].mxu0  ;;  %v1888_v23 = vpop.f32.mrb[14].mxu1 }
 0x1b5   : > { %v4424_v22 = vadd.f32 %v2105_v20, %v1886_v19  ;;  %v2107_v24 = vpop.f32.mrb[14].mxu0  ;;  %v1890_v27 = vpop.f32.mrb[15].mxu1 }
 0x1b6   : > { %v2117_v25 = vadd.f32 %v4421_v18, %v2116_v17  ;;  %v4427_v26 = vadd.f32 %v2107_v24, %v1888_v23  ;;  %v2109_v28 = vpop.f32.mrb[15].mxu0 }
 0x1b7   : > { %v2130_v29 = vadd.f32 %v4424_v22, %v2129_v21  ;;  %v4430_v30 = vadd.f32 %v2109_v28, %v1890_v27 }
 0x1b8   : > { %v2118_v31 = vadd.f32 %v4427_v26, %v2117_v25 }
 0x1b9   : > { %v2131_v32 = vadd.f32 %v4430_v30, %v2130_v29 }
 0x1ba   : > { %v2119_v33 = vrot.slane %v2118_v31, 4 }
 0x1bb   : > { %v2132_v34 = vrot.slane %v2131_v32, 4 }
 0x1bc   : > { %v2120_v35 = vadd.f32 %v2119_v33, %v2118_v31 }
 0x1bd   : > { %v2133_v36 = vadd.f32 %v2132_v34, %v2131_v32 }
 0x1be   : > { %v2121_v38 = vrot.slane %v2120_v35, 2 }
 0x1bf   : > { %v2134_v39 = vrot.slane %v2133_v36, 2 }
 0x1c0   : > { %v2122_v41 = vadd.f32 %v2121_v38, %v2120_v35 }
 0x1c1   : > { %v2135_v42 = vadd.f32 %v2134_v39, %v2133_v36 }
 0x1c2   : > { %v2123_v44 = vrot.slane %v2122_v41, 1 }
 0x1c3   : > { %v2136_v48 = vrot.slane %v2135_v42, 1 }
 0x1c4   : > { %v2124_v53 = vadd.f32 %v2123_v44, %v2122_v41 }
 0x1c5   : > { %v2137_v50 = vadd.f32 %v2136_v48, %v2135_v42 }
 0x1c7   : > { %2234 = vmatprep.mubr.f32.mxu1 %v2137_v50 }
 0x1c8   : > { %2235 = vmatmul.mubr.f32.vlgmr.msra.gmra.mrb[16].mxu1 %v2124_v53 }
 0x1c9   : > { %3101 = vmatpush1.bf16.msra.mxu1 %v4440_v51  ;;  %2317 = vmatprep.mubr.f32.mxu1 %v3608_v62 }
 0x1ca   : > { %3103 = vmatprep.subr.bf16.mxu1 %v4449_v57 }
 0x1cd   : > { %3105 = vmatpush1.bf16.msra.mxu1 %v4457_v61 }
 0x29b   : > { %v3028_v63 = vpop.f32.mrb[16].mxu1 }
 0x29c   : > { %v3029_v0 = vpop.f32.mrb[17].mxu1 }
 0x29d   : > { %v3030_v2 = vadd.f32 %v3029_v0, %v3028_v63 }
 0x29f   : > { %v2240_v3 = vmul.f32 0.001953125, %v3030_v2 }
 0x2a1   : > { %2975 = vmatmul.mubr.msk.f32.vlgmr.msra.gmra.mrb[18].mxu1 %vm2249_vm0, %v2240_v3 }
 0x374   : > { %v2319_v9 = vpop.f32.mrb[18].mxu1 }
 0x375   : > { %v2327_v10 = vrot.slane %v2319_v9, %v4463_v7  ;;  %v2321_v11 = vpop.f32.mrb[19].mxu1 }
 0x376   : > { %v2331_v13 = vrot.slane %v2321_v11, %v4463_v7 }
 0x377   : > { %v4477_v17 = vsub.f32 %v4386_v37, %v2327_v10  ;;  %v4480_v19 = vsub.f32 %v4390_v43, %v2327_v10  ;;  %v4498_v23 = vsub.f32 %v4398_v55, %v2327_v10  ;;  %v4510_v27 = vsub.f32 %v4408_v1, %v2327_v10 }
 0x378   : > { %v4468_v14 = vsub.f32 %v4388_v40, %v2331_v13  ;;  %v4471_v15 = vsub.f32 %v4392_v46, %v2331_v13  ;;  %v4474_v16 = vsub.f32 %v4396_v52, %v2331_v13  ;;  %v4483_v20 = vsub.f32 %v4400_v58, %v2331_v13 }
 0x379   : > { %v4490_v46 = vsub.f32 %v4394_v49, %v2327_v10  ;;  %v4493_v52 = vsub.f32 %v4410_v4, %v2331_v13  ;;  %v2348_v58 = vmul.f32 %v4477_v17, %v4477_v17  ;;  %v2350_v24 = vmul.f32 %v4480_v19, %v4480_v19 }
 0x37a   : > { %v2349_v21 = vmul.f32 %v4468_v14, %v4468_v14  ;;  %v2351_v40 = vmul.f32 %v4471_v15, %v4471_v15  ;;  %v2353_v37 = vmul.f32 %v4474_v16, %v4474_v16  ;;  %v4505_v25 = vsub.f32 %v4416_v12, %v2331_v13 }
 0x37b   : > { %v2355_v49 = vmul.f32 %v4483_v20, %v4483_v20  ;;  %v2352_v55 = vmul.f32 %v4490_v46, %v4490_v46  ;;  %v2364_v28 = vadd.f32 %v2350_v24, %v2348_v58  ;;  %v4515_v29 = vsub.f32 %v4424_v22, %v2331_v13 }
 0x37c   : > { %v2377_v43 = vadd.f32 %v2351_v40, %v2349_v21  ;;  %v2357_v31 = vmul.f32 %v4493_v52, %v4493_v52  ;;  %v2342_v12 = vsub.f32 %v4413_v8, %v2327_v10  ;;  %v2354_v33 = vmul.f32 %v4498_v23, %v4498_v23 }
 0x37d   : > { %v2365_v34 = vadd.f32 %v2364_v28, %v2352_v55  ;;  %v4523_v1 = vsub.f32 %v4430_v30, %v2331_v13  ;;  %v2359_v35 = vmul.f32 %v4505_v25, %v4505_v25  ;;  %v2344_v22 = vsub.f32 %v4421_v18, %v2327_v10 }
 0x37e   : > { %v2378_v4 = vadd.f32 %v2377_v43, %v2353_v37  ;;  %v2356_v38 = vmul.f32 %v4510_v27, %v4510_v27  ;;  %v2361_v8 = vmul.f32 %v4515_v29, %v4515_v29  ;;  %v2346_v42 = vsub.f32 %v4427_v26, %v2327_v10 }
 0x37f   : > { %v2366_v39 = vadd.f32 %v2365_v34, %v2354_v33  ;;  %v2358_v44 = vmul.f32 %v2342_v12, %v2342_v12  ;;  %v2363_v30 = vmul.f32 %v4523_v1, %v4523_v1  ;;  %v2360_v48 = vmul.f32 %v2344_v22, %v2344_v22 }
 0x380   : > { %v2379_v32 = vadd.f32 %v2378_v4, %v2355_v49  ;;  %v2362_v18 = vmul.f32 %v2346_v42, %v2346_v42 }
 0x381   : > { %v2367_v45 = vadd.f32 %v2366_v39, %v2356_v38 }
 0x382   : > { %v2380_v36 = vadd.f32 %v2379_v32, %v2357_v31 }
 0x383   : > { %v2368_v50 = vadd.f32 %v2367_v45, %v2358_v44 }
 0x384   : > { %v2381_v41 = vadd.f32 %v2380_v36, %v2359_v35 }
 0x385   : > { %v2369_v54 = vadd.f32 %v2368_v50, %v2360_v48 }
 0x386   : > { %v2382_v47 = vadd.f32 %v2381_v41, %v2361_v8 }
 0x387   : > { %v2370_v59 = vadd.f32 %v2369_v54, %v2362_v18 }
 0x388   : > { %v2383_v53 = vadd.f32 %v2382_v47, %v2363_v30 }
 0x389   : > { %v2371_v63 = vrot.slane %v2370_v59, 4 }
 0x38a   : > { %v2384_v56 = vrot.slane %v2383_v53, 4 }
 0x38b   : > { %v2372_v2 = vadd.f32 %v2371_v63, %v2370_v59 }
 0x38c   : > { %v2385_v60 = vadd.f32 %v2384_v56, %v2383_v53 }
 0x38d   : > { %v2373_v5 = vrot.slane %v2372_v2, 2 }
 0x38e   : > { %v2386_v0 = vrot.slane %v2385_v60, 2 }
 0x38f   : > { %v2374_v6 = vadd.f32 %v2373_v5, %v2372_v2 }
 0x390   : > { %v2387_v3 = vadd.f32 %v2386_v0, %v2385_v60 }
 0x391   : > { %v2375_v10 = vrot.slane %v2374_v6, 1 }
 0x392   : > { %v2388_v26 = vrot.slane %v2387_v3, 1 }
 0x393   : > { %v2376_v11 = vadd.f32 %v2375_v10, %v2374_v6 }
 0x394   : > { %v2389_v9 = vadd.f32 %v2388_v26, %v2387_v3 }
 0x396   : > { %2454 = vmatprep.mubr.f32.mxu0 %v2389_v9 }
 0x397   : > { %2455 = vmatmul.mubr.f32.vlgmr.msra.gmra.mrb[16].mxu0 %v2376_v11 }
 0x398   : > { %3141 = vmatpush1.bf16.msra.mxu0 %v4440_v51  ;;  %2528 = vmatprep.mubr.f32.mxu0 %v3608_v62 }
 0x399   : > { %3143 = vmatprep.subr.bf16.mxu0 %v4449_v57  ;;  %v2578_v57 = vstv %s2561_s17 }
 0x39c   : > { %3145 = vmatpush1.bf16.msra.mxu0 %v4457_v61 }
 0x46a   : > { %v3063_v13 = vpop.f32.mrb[16].mxu0 }
 0x46b   : > { %v3064_v21 = vpop.f32.mrb[17].mxu0 }
 0x46c   : > { %v3065_v40 = vadd.f32 %v3064_v21, %v3063_v13 }
 0x46e   : > { %v2460_v37 = vmul.f32 0.001953125, %v3065_v40 }
 0x470   : > { %2976 = vmatmul.mubr.msk.f32.vlgmr.msra.gmra.mrb[18].mxu0 %vm2249_vm0, %v2460_v37 }
 0x543   : > { %v2530_v43 = vpop.f32.mrb[18].mxu0 }
 0x544   : > { %v2531_v58 = vadd.f32 1e-05, %v2530_v43  ;;  %v2532_v24 = vpop.f32.mrb[19].mxu0 }
 0x545   : > { %v2533_v49 = vadd.f32 1e-05, %v2532_v24 }
 0x546   : > { %3596 = vrsqrt.f32 %v2531_v58 }
 0x547   : > { %3598 = vrsqrt.f32 %v2533_v49 }
 0x550   : > { %v3597_v51 = vpop.eup %3596 }
 0x551   : > { %v3599_v4 = vpop.eup %3598  ;;  %v2540_v62 = vrot.slane %v3597_v51, %v4463_v7 }
 0x552   : > { %v2544_v61 = vrot.slane %v3599_v4, %v4463_v7 }
 0x553   : > { %v2545_v55 = vmul.f32 %v2540_v62, %v4477_v17  ;;  %v2547_v28 = vmul.f32 %v2540_v62, %v4480_v19  ;;  %v2549_v31 = vmul.f32 %v2540_v62, %v4490_v46  ;;  %v2551_v32 = vmul.f32 %v2540_v62, %v4498_v23 }
 0x554   : > { %v2553_v33 = vmul.f32 %v2540_v62, %v4510_v27  ;;  %v2555_v34 = vmul.f32 %v2540_v62, %v2342_v12  ;;  %v2557_v35 = vmul.f32 %v2540_v62, %v2344_v22  ;;  %v2559_v36 = vmul.f32 %v2540_v62, %v2346_v42 }
 0x555   : > { %vm2562_vm1 = vcmp.ge.f32.partialorder %v2545_v55, 0.0  ;;  %vm2564_vm2 = vcmp.ge.f32.partialorder %v2547_v28, 0.0  ;;  %vm2566_vm3 = vcmp.ge.f32.partialorder %v2549_v31, 0.0  ;;  %vm2568_vm4 = vcmp.ge.f32.partialorder %v2551_v32, 0.0 }
 0x556   : > { %vm2570_vm5 = vcmp.ge.f32.partialorder %v2553_v33, 0.0  ;;  %vm2572_vm6 = vcmp.ge.f32.partialorder %v2555_v34, 0.0  ;;  %vm2574_vm7 = vcmp.ge.f32.partialorder %v2557_v35, 0.0  ;;  %vm2576_vm8 = vcmp.ge.f32.partialorder %v2559_v36, 0.0 }
 0x557   : > { %v2579_v7 = vmul.f32 %v2578_v57, %v2545_v55  ;;  %v2581_v17 = vmul.f32 %v2578_v57, %v2547_v28  ;;  %v2583_v19 = vmul.f32 %v2578_v57, %v2549_v31  ;;  %v2585_v38 = vmul.f32 %v2578_v57, %v2551_v32 }
 0x558   : > { %v2587_v46 = vmul.f32 %v2578_v57, %v2553_v33  ;;  %v2589_v39 = vmul.f32 %v2578_v57, %v2555_v34  ;;  %v2591_v23 = vmul.f32 %v2578_v57, %v2557_v35  ;;  %v2593_v8 = vmul.f32 %v2578_v57, %v2559_v36 }
 0x559   : > { %v2595_v27 = vsel %vm2562_vm1, %v2545_v55, %v2579_v7  ;;  %v2597_v12 = vsel %vm2564_vm2, %v2547_v28, %v2581_v17  ;;  %v2599_v22 = vsel %vm2566_vm3, %v2549_v31, %v2583_v19  ;;  %v2601_v41 = vsel %vm2568_vm4, %v2551_v32, %v2585_v38 }
 0x55a   : > { %v2603_v42 = vsel %vm2570_vm5, %v2553_v33, %v2587_v46  ;;  %v2605_v44 = vsel %vm2572_vm6, %v2555_v34, %v2589_v39  ;;  %v2607_v45 = vsel %vm2574_vm7, %v2557_v35, %v2591_v23  ;;  %v2609_v30 = vsel %vm2576_vm8, %v2559_v36, %v2593_v8 }
 0x55b   : > { %v2546_v47 = vmul.f32 %v2544_v61, %v4468_v14  ;;  %v2548_v48 = vmul.f32 %v2544_v61, %v4471_v15  ;;  %v2550_v50 = vmul.f32 %v2544_v61, %v4474_v16  ;;  %v2552_v53 = vmul.f32 %v2544_v61, %v4483_v20 }
 0x55c   : > { %v2554_v18 = vmul.f32 %v2544_v61, %v4493_v52  ;;  %v2556_v54 = vmul.f32 %v2544_v61, %v4505_v25  ;;  %v2558_v56 = vmul.f32 %v2544_v61, %v4515_v29  ;;  %v2560_v59 = vmul.f32 %v2544_v61, %v4523_v1 }
 0x55d   : > { %vm2563_vm9 = vcmp.ge.f32.partialorder %v2546_v47, 0.0  ;;  %vm2565_vm10 = vcmp.ge.f32.partialorder %v2548_v48, 0.0  ;;  %vm2567_vm11 = vcmp.ge.f32.partialorder %v2550_v50, 0.0  ;;  %vm2569_vm12 = vcmp.ge.f32.partialorder %v2552_v53, 0.0 }
 0x55e   : > { %vm2571_vm13 = vcmp.ge.f32.partialorder %v2554_v18, 0.0  ;;  %vm2573_vm14 = vcmp.ge.f32.partialorder %v2556_v54, 0.0  ;;  %vm2575_vm15 = vcmp.ge.f32.partialorder %v2558_v56, 0.0  ;;  %vm2577_vm0 = vcmp.ge.f32.partialorder %v2560_v59, 0.0 }
 0x55f   : > { %v2580_v14 = vmul.f32 %v2578_v57, %v2546_v47  ;;  %v2582_v15 = vmul.f32 %v2578_v57, %v2548_v48  ;;  %v2584_v16 = vmul.f32 %v2578_v57, %v2550_v50  ;;  %v2586_v20 = vmul.f32 %v2578_v57, %v2552_v53 }
 0x560   : > { %v2588_v52 = vmul.f32 %v2578_v57, %v2554_v18  ;;  %v2590_v60 = vmul.f32 %v2578_v57, %v2556_v54  ;;  %v2592_v25 = vmul.f32 %v2578_v57, %v2558_v56  ;;  %v2594_v63 = vmul.f32 %v2578_v57, %v2560_v59 }
 0x561   : > { %v2596_v29 = vsel %vm2563_vm9, %v2546_v47, %v2580_v14  ;;  %v2598_v1 = vsel %vm2565_vm10, %v2548_v48, %v2582_v15  ;;  %v2600_v0 = vsel %vm2567_vm11, %v2550_v50, %v2584_v16  ;;  %v2602_v2 = vsel %vm2569_vm12, %v2552_v53, %v2586_v20 }
 0x562   : > { %v2604_v3 = vsel %vm2571_vm13, %v2554_v18, %v2588_v52  ;;  %v2606_v5 = vsel %vm2573_vm14, %v2556_v54, %v2590_v60  ;;  %v2608_v26 = vsel %vm2575_vm15, %v2558_v56, %v2592_v25  ;;  %v2610_v6 = vsel %vm2577_vm0, %v2560_v59, %v2594_v63 }
 0x563   : > { %v2988_v9 = vpack.c.bf16 %v2596_v29, %v2595_v27  ;;  %v2989_v10 = vpack.c.bf16 %v2598_v1, %v2597_v12  ;;  %v2990_v11 = vpack.c.bf16 %v2600_v0, %v2599_v22  ;;  %v2991_v13 = vpack.c.bf16 %v2602_v2, %v2601_v41 }
 0x564   : > { %v2992_v21 = vpack.c.bf16 %v2604_v3, %v2603_v42  ;;  %v2993_v40 = vpack.c.bf16 %v2606_v5, %v2605_v44  ;;  %v2994_v37 = vpack.c.bf16 %v2608_v26, %v2607_v45  ;;  %v2995_v43 = vpack.c.bf16 %v2610_v6, %v2609_v30 }
 0x565   : > { %2659 = vst [vmem:[%s232_s8] sm:$0xff] %v2988_v9  ;;  %2660 = vst [vmem:[%s232_s8 + $0x8] sm:$0xff] %v2989_v10 }
 0x566   : > { %2661 = vst [vmem:[%s232_s8 + $0x10] sm:$0xff] %v2990_v11  ;;  %2662 = vst [vmem:[%s232_s8 + $0x18] sm:$0xff] %v2991_v13 }
 0x567   : > { %2663 = vst [vmem:[%s232_s8 + $0x20] sm:$0xff] %v2992_v21  ;;  %2664 = vst [vmem:[%s232_s8 + $0x28] sm:$0xff] %v2993_v40 }
 0x568   : > { %2665 = vst [vmem:[%s232_s8 + $0x30] sm:$0xff] %v2994_v37  ;;  %2666 = vst [vmem:[%s232_s8 + $0x38] sm:$0xff] %v2995_v43 }
 0x569 PF: > { %s16_s20 = sadd.s32 1, %s3606_s20  }
 0x56a   : > { %p13_p4 = scmp.ge.s32.totalorder %s16_s20, 4  }
 0x56c   :  { %15 = sbr.rel (!%p13_p4) target bundleno = 2 (0x2), region = 70 }

// kernel: custom_unet_forward.9
= control target key start
LH: loop header
LB: loop body
LE: loop exit
PB: predicated region body
PF: predicated region fallthrough
CT: control target
= control target key end

     0   :  { %s1582_s12 = smov 0   ;;  %s1755_s0 = inlined_call_operand.vmem [shape: bf16[8,512], index: 0, kind: input, shape index: {}]   ;;  %s1756_s1 = inlined_call_operand.vmem [shape: bf16[1024,512], index: 1, kind: input, shape index: {}]   ;;  %s1757_s2 = inlined_call_operand.vmem [shape: f32[8,1], index: 2, kind: input, shape index: {}]   ;;  %s1758_s3 = inlined_call_operand.vmem [shape: f32[16,512], index: 3, kind: output, shape index: {}]  }
   0x1 LB: > { %s1588_s13 = sadd.s32 4294967295, %s1559_s12   ;;  %p1193_p0 = scmp.ge.s32.totalorder %s1559_s12, 1  ;;  %s1559_s12 = sphi %s1582_s12, %s13_s12  }
   0x2   : > { %p139_p1 = scmp.lt.s32.totalorder %s1559_s12, 3 }
   0x4   : > { %p140_p2 = pnand %p1193_p0, %p139_p1 }
   0x5   : > { %s1194_s14 = sshll.u32 (!%p140_p2), %s1588_s13, 6  ;;  %v1596_v0 = vld [vmem:[%s1755_s0] sm:$0xff] (!%p140_p2)  ;;  %v1561_v10 = vmov (!%p140_p2), 0   ;;  %p171_p4 = scmp.lt.s32.totalorder (!%p140_p2), %s1588_s13, 1 }
   0x6   : > { %143 = sbr.rel (%p140_p2) target bundleno = 361 (0x169), region = 32  ;;  %p165_p3 = scmp.lt.s32.totalorder (!%p140_p2), %s1194_s14, 127  ;;  %v1200_v1 = vcombine.high (!%p140_p2), %v1596_v0, %v1596_v0  ;;  %1356 = vset.pattern.permute.xlu0 (!%p140_p2), %v1561_v10 }
   0x8   : > { %998 = vmatprep.mubr.bf16.mxu0 (!%p140_p2), %v1200_v1  ;;  %1080 = vmatprep.mubr.bf16.mxu1 (!%p140_p2), %v1200_v1 }
   0xd   : > { %s1760_s14 = smov (!%p165_p3, %s1194_s14), 127  ;;  %s1762_s13 = smov (!%p171_p4, %s1588_s13), 1 }
   0xe   : > { %s1333_s17 = sshll.u32 %s1760_s14, 4  ;;  %s1334_s25 = sshll.u32 %s1762_s13, 5 }
   0xf   : > { %s1603_s20 = scalar_lea.vmem %s1756_s1, %s1333_s17  ;;  %s175_s28 = scalar_lea.vmem %s1758_s3, %s1334_s25 }
  0x10   : > { %v1357_v2 = vld [vmem:[%s1603_s20 + $0x4] ss:$16 sps:$4 sm:$0xff]   ;;  %v1359_v3 = vld [vmem:[%s1603_s20 + $0xc] ss:$16 sps:$4 sm:$0xff]   ;;  %v1361_v4 = vld [vmem:[%s1603_s20] ss:$16 sps:$4 sm:$0xff]  }
  0x11   : > { %966 = vmatprep.subr.bf16.mxu0 %v1357_v2  ;;  %v1362_v5 = vld [vmem:[%s1603_s20 + $0x8] ss:$16 sps:$4 sm:$0xff]   ;;  %1048 = vmatprep.subr.bf16.mxu1 %v1359_v3  ;;  %v1363_v6 = vld [vmem:[%s1603_s20 + $0x24] ss:$16 sps:$4 sm:$0xff]   ;;  %v1365_v7 = vld [vmem:[%s1603_s20 + $0x2c] ss:$16 sps:$4 sm:$0xff]  }
  0x12   : > { %967 = vmatpush1.bf16.msra.mxu0 %v1361_v4  ;;  %1049 = vmatpush1.bf16.msra.mxu1 %v1362_v5  ;;  %v1367_v8 = vld [vmem:[%s1603_s20 + $0x20] ss:$16 sps:$4 sm:$0xff]   ;;  %v1368_v9 = vld [vmem:[%s1603_s20 + $0x28] ss:$16 sps:$4 sm:$0xff]   ;;  %v1369_v11 = vld [vmem:[%s1603_s20 + $0x44] ss:$16 sps:$4 sm:$0xff]  }
  0x13   : > { %968 = vmatprep.subr.bf16.mxu0 %v1363_v6  ;;  %1050 = vmatprep.subr.bf16.mxu1 %v1365_v7  ;;  %v1371_v12 = vld [vmem:[%s1603_s20 + $0x4c] ss:$16 sps:$4 sm:$0xff]   ;;  %v1373_v13 = vld [vmem:[%s1603_s20 + $0x40] ss:$16 sps:$4 sm:$0xff]   ;;  %v1374_v14 = vld [vmem:[%s1603_s20 + $0x48] ss:$16 sps:$4 sm:$0xff]   ;;  %v1199_v7 = vcombine.low %v1596_v0, %v1596_v0 }
  0x14   : > { %v1375_v15 = vld [vmem:[%s1603_s20 + $0x64] ss:$16 sps:$4 sm:$0xff]   ;;  %v1377_v16 = vld [vmem:[%s1603_s20 + $0x6c] ss:$16 sps:$4 sm:$0xff]   ;;  %v1379_v17 = vld [vmem:[%s1603_s20 + $0x60] ss:$16 sps:$4 sm:$0xff]  }
  0x15   : > { %v1380_v18 = vld [vmem:[%s1603_s20 + $0x68] ss:$16 sps:$4 sm:$0xff]   ;;  %v1381_v19 = vld [vmem:[%s1603_s20 + $0x84] ss:$16 sps:$4 sm:$0xff]   ;;  %v1383_v20 = vld [vmem:[%s1603_s20 + $0x8c] ss:$16 sps:$4 sm:$0xff]  }
  0x16   : > { %969 = vmatpush1.bf16.msra.mxu0 %v1367_v8  ;;  %1051 = vmatpush1.bf16.msra.mxu1 %v1368_v9  ;;  %v1385_v21 = vld [vmem:[%s1603_s20 + $0x80] ss:$16 sps:$4 sm:$0xff]   ;;  %v1386_v22 = vld [vmem:[%s1603_s20 + $0x88] ss:$16 sps:$4 sm:$0xff]   ;;  %v1387_v23 = vld [vmem:[%s1603_s20 + $0xa4] ss:$16 sps:$4 sm:$0xff]  }
  0x17   : > { %970 = vmatprep.subr.bf16.mxu0 %v1369_v11  ;;  %1052 = vmatprep.subr.bf16.mxu1 %v1371_v12  ;;  %v1389_v24 = vld [vmem:[%s1603_s20 + $0xac] ss:$16 sps:$4 sm:$0xff]   ;;  %v1391_v25 = vld [vmem:[%s1603_s20 + $0xa0] ss:$16 sps:$4 sm:$0xff]   ;;  %v1392_v26 = vld [vmem:[%s1603_s20 + $0xa8] ss:$16 sps:$4 sm:$0xff]  }
  0x18   : > { %v1393_v27 = vld [vmem:[%s1603_s20 + $0xc4] ss:$16 sps:$4 sm:$0xff]   ;;  %v1395_v28 = vld [vmem:[%s1603_s20 + $0xcc] ss:$16 sps:$4 sm:$0xff]   ;;  %v1397_v29 = vld [vmem:[%s1603_s20 + $0xc0] ss:$16 sps:$4 sm:$0xff]  }
  0x19   : > { %v1398_v30 = vld [vmem:[%s1603_s20 + $0xc8] ss:$16 sps:$4 sm:$0xff]   ;;  %v1399_v31 = vld [vmem:[%s1603_s20 + $0xe4] ss:$16 sps:$4 sm:$0xff]   ;;  %v1401_v32 = vld [vmem:[%s1603_s20 + $0xec] ss:$16 sps:$4 sm:$0xff]  }
  0x1a   : > { %971 = vmatpush1.bf16.msra.mxu0 %v1373_v13  ;;  %1053 = vmatpush1.bf16.msra.mxu1 %v1374_v14  ;;  %v1403_v33 = vld [vmem:[%s1603_s20 + $0xe0] ss:$16 sps:$4 sm:$0xff]   ;;  %v1404_v34 = vld [vmem:[%s1603_s20 + $0xe8] ss:$16 sps:$4 sm:$0xff]   ;;  %v1405_v35 = vld [vmem:[%s1603_s20 + $0x104] ss:$16 sps:$4 sm:$0xff]  }
  0x1b   : > { %972 = vmatprep.subr.bf16.mxu0 %v1375_v15  ;;  %1054 = vmatprep.subr.bf16.mxu1 %v1377_v16  ;;  %v1407_v36 = vld [vmem:[%s1603_s20 + $0x10c] ss:$16 sps:$4 sm:$0xff]   ;;  %v1409_v37 = vld [vmem:[%s1603_s20 + $0x100] ss:$16 sps:$4 sm:$0xff]   ;;  %v1410_v38 = vld [vmem:[%s1603_s20 + $0x108] ss:$16 sps:$4 sm:$0xff]  }
  0x1c   : > { %v1411_v39 = vld [vmem:[%s1603_s20 + $0x124] ss:$16 sps:$4 sm:$0xff]   ;;  %v1413_v40 = vld [vmem:[%s1603_s20 + $0x12c] ss:$16 sps:$4 sm:$0xff]   ;;  %v1415_v41 = vld [vmem:[%s1603_s20 + $0x120] ss:$16 sps:$4 sm:$0xff]  }
  0x1d   : > { %v1416_v42 = vld [vmem:[%s1603_s20 + $0x128] ss:$16 sps:$4 sm:$0xff]   ;;  %v1417_v43 = vld [vmem:[%s1603_s20 + $0x144] ss:$16 sps:$4 sm:$0xff]   ;;  %v1419_v44 = vld [vmem:[%s1603_s20 + $0x14c] ss:$16 sps:$4 sm:$0xff]  }
  0x1e   : > { %973 = vmatpush1.bf16.msra.mxu0 %v1379_v17  ;;  %1055 = vmatpush1.bf16.msra.mxu1 %v1380_v18  ;;  %v1421_v45 = vld [vmem:[%s1603_s20 + $0x140] ss:$16 sps:$4 sm:$0xff]   ;;  %v1422_v46 = vld [vmem:[%s1603_s20 + $0x148] ss:$16 sps:$4 sm:$0xff]   ;;  %v1423_v47 = vld [vmem:[%s1603_s20 + $0x164] ss:$16 sps:$4 sm:$0xff]  }
  0x1f   : > { %974 = vmatprep.subr.bf16.mxu0 %v1381_v19  ;;  %1056 = vmatprep.subr.bf16.mxu1 %v1383_v20  ;;  %v1425_v48 = vld [vmem:[%s1603_s20 + $0x16c] ss:$16 sps:$4 sm:$0xff]   ;;  %v1427_v49 = vld [vmem:[%s1603_s20 + $0x160] ss:$16 sps:$4 sm:$0xff]   ;;  %v1428_v50 = vld [vmem:[%s1603_s20 + $0x168] ss:$16 sps:$4 sm:$0xff]  }
  0x20   : > { %v1429_v51 = vld [vmem:[%s1603_s20 + $0x184] ss:$16 sps:$4 sm:$0xff]   ;;  %v1431_v52 = vld [vmem:[%s1603_s20 + $0x18c] ss:$16 sps:$4 sm:$0xff]   ;;  %v1433_v53 = vld [vmem:[%s1603_s20 + $0x180] ss:$16 sps:$4 sm:$0xff]  }
  0x21   : > { %v1434_v54 = vld [vmem:[%s1603_s20 + $0x188] ss:$16 sps:$4 sm:$0xff]   ;;  %v1435_v55 = vld [vmem:[%s1603_s20 + $0x1a4] ss:$16 sps:$4 sm:$0xff]   ;;  %v1437_v56 = vld [vmem:[%s1603_s20 + $0x1ac] ss:$16 sps:$4 sm:$0xff]  }
  0x22   : > { %975 = vmatpush1.bf16.msra.mxu0 %v1385_v21  ;;  %1057 = vmatpush1.bf16.msra.mxu1 %v1386_v22  ;;  %v1439_v57 = vld [vmem:[%s1603_s20 + $0x1a0] ss:$16 sps:$4 sm:$0xff]   ;;  %v1440_v58 = vld [vmem:[%s1603_s20 + $0x1a8] ss:$16 sps:$4 sm:$0xff]   ;;  %v1441_v59 = vld [vmem:[%s1603_s20 + $0x1c4] ss:$16 sps:$4 sm:$0xff]  }
  0x23   : > { %976 = vmatprep.subr.bf16.mxu0 %v1387_v23  ;;  %1058 = vmatprep.subr.bf16.mxu1 %v1389_v24  ;;  %v1443_v60 = vld [vmem:[%s1603_s20 + $0x1cc] ss:$16 sps:$4 sm:$0xff]   ;;  %v1445_v61 = vld [vmem:[%s1603_s20 + $0x1c0] ss:$16 sps:$4 sm:$0xff]   ;;  %v1446_v62 = vld [vmem:[%s1603_s20 + $0x1c8] ss:$16 sps:$4 sm:$0xff]  }
  0x24   : > { %v1447_v63 = vld [vmem:[%s1603_s20 + $0x1e4] ss:$16 sps:$4 sm:$0xff]   ;;  %v1449_v1 = vld [vmem:[%s1603_s20 + $0x1ec] ss:$16 sps:$4 sm:$0xff]   ;;  %v1451_v2 = vld [vmem:[%s1603_s20 + $0x1e0] ss:$16 sps:$4 sm:$0xff]  }
  0x25   : > { %v1452_v3 = vld [vmem:[%s1603_s20 + $0x1e8] ss:$16 sps:$4 sm:$0xff]   ;;  %v1457_v4 = vld [vmem:[%s1603_s20 + $0x204] ss:$16 sps:$4 sm:$0xff]   ;;  %v1460_v5 = vld [vmem:[%s1603_s20 + $0x20c] ss:$16 sps:$4 sm:$0xff]  }
  0x26   : > { %977 = vmatpush1.bf16.msra.mxu0 %v1391_v25  ;;  %1059 = vmatpush1.bf16.msra.mxu1 %v1392_v26  ;;  %v1674_v6 = vld [vmem:[%s1755_s0 + $0x8] sm:$0xff]  ;;  %v1455_v8 = vld [vmem:[%s1603_s20 + $0x200] ss:$16 sps:$4 sm:$0xff]   ;;  %v1463_v10 = vld [vmem:[%s1603_s20 + $0x224] ss:$16 sps:$4 sm:$0xff]  }
  0x27   : > { %978 = vmatprep.subr.bf16.mxu0 %v1393_v27  ;;  %1060 = vmatprep.subr.bf16.mxu1 %v1395_v28  ;;  %v1458_v9 = vld [vmem:[%s1603_s20 + $0x208] ss:$16 sps:$4 sm:$0xff]   ;;  %v1466_v11 = vld [vmem:[%s1603_s20 + $0x22c] ss:$16 sps:$4 sm:$0xff]   ;;  %v1202_v12 = vcombine.high %v1674_v6, %v1674_v6  ;;  %v1461_v13 = vld [vmem:[%s1603_s20 + $0x220] ss:$16 sps:$4 sm:$0xff]  }
  0x28   : > { %v1464_v0 = vld [vmem:[%s1603_s20 + $0x228] ss:$16 sps:$4 sm:$0xff]   ;;  %v1469_v14 = vld [vmem:[%s1603_s20 + $0x244] ss:$16 sps:$4 sm:$0xff]   ;;  %v1472_v15 = vld [vmem:[%s1603_s20 + $0x24c] ss:$16 sps:$4 sm:$0xff]  }
  0x29   : > { %v1467_v16 = vld [vmem:[%s1603_s20 + $0x240] ss:$16 sps:$4 sm:$0xff]   ;;  %v1470_v17 = vld [vmem:[%s1603_s20 + $0x248] ss:$16 sps:$4 sm:$0xff]   ;;  %v1475_v18 = vld [vmem:[%s1603_s20 + $0x264] ss:$16 sps:$4 sm:$0xff]  }
  0x2a   : > { %979 = vmatpush1.bf16.msra.mxu0 %v1397_v29  ;;  %1061 = vmatpush1.bf16.msra.mxu1 %v1398_v30  ;;  %v1478_v19 = vld [vmem:[%s1603_s20 + $0x26c] ss:$16 sps:$4 sm:$0xff]   ;;  %v1473_v20 = vld [vmem:[%s1603_s20 + $0x260] ss:$16 sps:$4 sm:$0xff]   ;;  %v1476_v21 = vld [vmem:[%s1603_s20 + $0x268] ss:$16 sps:$4 sm:$0xff]  }
  0x2b   : > { %980 = vmatprep.subr.bf16.mxu0 %v1399_v31  ;;  %1062 = vmatprep.subr.bf16.mxu1 %v1401_v32  ;;  %v1481_v22 = vld [vmem:[%s1603_s20 + $0x284] ss:$16 sps:$4 sm:$0xff]   ;;  %v1484_v23 = vld [vmem:[%s1603_s20 + $0x28c] ss:$16 sps:$4 sm:$0xff]   ;;  %v1479_v24 = vld [vmem:[%s1603_s20 + $0x280] ss:$16 sps:$4 sm:$0xff]  }
  0x2c   : > { %v1482_v25 = vld [vmem:[%s1603_s20 + $0x288] ss:$16 sps:$4 sm:$0xff]   ;;  %v1487_v26 = vld [vmem:[%s1603_s20 + $0x2a4] ss:$16 sps:$4 sm:$0xff]   ;;  %v1490_v27 = vld [vmem:[%s1603_s20 + $0x2ac] ss:$16 sps:$4 sm:$0xff]  }
  0x2d   : > { %v1485_v28 = vld [vmem:[%s1603_s20 + $0x2a0] ss:$16 sps:$4 sm:$0xff]   ;;  %v1488_v29 = vld [vmem:[%s1603_s20 + $0x2a8] ss:$16 sps:$4 sm:$0xff]   ;;  %v1493_v30 = vld [vmem:[%s1603_s20 + $0x2c4] ss:$16 sps:$4 sm:$0xff]  }
  0x2e   : > { %981 = vmatpush1.bf16.msra.mxu0 %v1403_v33  ;;  %1063 = vmatpush1.bf16.msra.mxu1 %v1404_v34  ;;  %v1496_v31 = vld [vmem:[%s1603_s20 + $0x2cc] ss:$16 sps:$4 sm:$0xff]   ;;  %v306_v32 = vld [vmem:[%s1757_s2] sm:$0xff]  ;;  %v1494_v34 = vld [vmem:[%s1603_s20 + $0x2c8] ss:$16 sps:$4 sm:$0xff]  }
  0x2f   : > { %982 = vmatprep.subr.bf16.mxu0 %v1405_v35  ;;  %1064 = vmatprep.subr.bf16.mxu1 %v1407_v36  ;;  %v1491_v33 = vld [vmem:[%s1603_s20 + $0x2c0] ss:$16 sps:$4 sm:$0xff]   ;;  %v1499_v35 = vld [vmem:[%s1603_s20 + $0x2e4] ss:$16 sps:$4 sm:$0xff]   ;;  %v1502_v36 = vld [vmem:[%s1603_s20 + $0x2ec] ss:$16 sps:$4 sm:$0xff]  }
  0x30   : > { %309 = vperm.xlu0 %1356, %v306_v32  }
  0x32   : > { %983 = vmatpush1.bf16.msra.mxu0 %v1409_v37  ;;  %1065 = vmatpush1.bf16.msra.mxu1 %v1410_v38  ;;  %v1497_v37 = vld [vmem:[%s1603_s20 + $0x2e0] ss:$16 sps:$4 sm:$0xff]   ;;  %v1500_v38 = vld [vmem:[%s1603_s20 + $0x2e8] ss:$16 sps:$4 sm:$0xff]  }
  0x33   : > { %984 = vmatprep.subr.bf16.mxu0 %v1411_v39  ;;  %1066 = vmatprep.subr.bf16.mxu1 %v1413_v40  ;;  %v1505_v39 = vld [vmem:[%s1603_s20 + $0x304] ss:$16 sps:$4 sm:$0xff]   ;;  %v1508_v40 = vld [vmem:[%s1603_s20 + $0x30c] ss:$16 sps:$4 sm:$0xff]  }
  0x36   : > { %985 = vmatpush1.bf16.msra.mxu0 %v1415_v41  ;;  %1067 = vmatpush1.bf16.msra.mxu1 %v1416_v42  ;;  %v1503_v41 = vld [vmem:[%s1603_s20 + $0x300] ss:$16 sps:$4 sm:$0xff]   ;;  %v1506_v42 = vld [vmem:[%s1603_s20 + $0x308] ss:$16 sps:$4 sm:$0xff]  }
  0x37   : > { %986 = vmatprep.subr.bf16.mxu0 %v1417_v43  ;;  %1068 = vmatprep.subr.bf16.mxu1 %v1419_v44  ;;  %v1511_v43 = vld [vmem:[%s1603_s20 + $0x324] ss:$16 sps:$4 sm:$0xff]   ;;  %v1514_v44 = vld [vmem:[%s1603_s20 + $0x32c] ss:$16 sps:$4 sm:$0xff]  }
  0x3a   : > { %987 = vmatpush1.bf16.msra.mxu0 %v1421_v45  ;;  %1069 = vmatpush1.bf16.msra.mxu1 %v1422_v46  ;;  %v1509_v45 = vld [vmem:[%s1603_s20 + $0x320] ss:$16 sps:$4 sm:$0xff]   ;;  %v1512_v46 = vld [vmem:[%s1603_s20 + $0x328] ss:$16 sps:$4 sm:$0xff]  }
  0x3b   : > { %988 = vmatprep.subr.bf16.mxu0 %v1423_v47  ;;  %1070 = vmatprep.subr.bf16.mxu1 %v1425_v48  ;;  %v1517_v47 = vld [vmem:[%s1603_s20 + $0x344] ss:$16 sps:$4 sm:$0xff]   ;;  %v1520_v48 = vld [vmem:[%s1603_s20 + $0x34c] ss:$16 sps:$4 sm:$0xff]  }
  0x3e   : > { %989 = vmatpush1.bf16.msra.mxu0 %v1427_v49  ;;  %1071 = vmatpush1.bf16.msra.mxu1 %v1428_v50  ;;  %v1515_v49 = vld [vmem:[%s1603_s20 + $0x340] ss:$16 sps:$4 sm:$0xff]   ;;  %v1518_v50 = vld [vmem:[%s1603_s20 + $0x348] ss:$16 sps:$4 sm:$0xff]  }
  0x3f   : > { %990 = vmatprep.subr.bf16.mxu0 %v1429_v51  ;;  %1072 = vmatprep.subr.bf16.mxu1 %v1431_v52  ;;  %v1523_v51 = vld [vmem:[%s1603_s20 + $0x364] ss:$16 sps:$4 sm:$0xff]   ;;  %v1526_v52 = vld [vmem:[%s1603_s20 + $0x36c] ss:$16 sps:$4 sm:$0xff]  }
  0x42   : > { %991 = vmatpush1.bf16.msra.mxu0 %v1433_v53  ;;  %1073 = vmatpush1.bf16.msra.mxu1 %v1434_v54  ;;  %v1521_v53 = vld [vmem:[%s1603_s20 + $0x360] ss:$16 sps:$4 sm:$0xff]   ;;  %v1524_v54 = vld [vmem:[%s1603_s20 + $0x368] ss:$16 sps:$4 sm:$0xff]  }
  0x43   : > { %992 = vmatprep.subr.bf16.mxu0 %v1435_v55  ;;  %1074 = vmatprep.subr.bf16.mxu1 %v1437_v56  ;;  %v1529_v55 = vld [vmem:[%s1603_s20 + $0x384] ss:$16 sps:$4 sm:$0xff]   ;;  %v1532_v56 = vld [vmem:[%s1603_s20 + $0x38c] ss:$16 sps:$4 sm:$0xff]  }
  0x46   : > { %993 = vmatpush1.bf16.msra.mxu0 %v1439_v57  ;;  %1075 = vmatpush1.bf16.msra.mxu1 %v1440_v58  ;;  %v1527_v57 = vld [vmem:[%s1603_s20 + $0x380] ss:$16 sps:$4 sm:$0xff]   ;;  %v1530_v58 = vld [vmem:[%s1603_s20 + $0x388] ss:$16 sps:$4 sm:$0xff]  }
  0x47   : > { %994 = vmatprep.subr.bf16.mxu0 %v1441_v59  ;;  %1076 = vmatprep.subr.bf16.mxu1 %v1443_v60  ;;  %v1535_v59 = vld [vmem:[%s1603_s20 + $0x3a4] ss:$16 sps:$4 sm:$0xff]   ;;  %v1538_v60 = vld [vmem:[%s1603_s20 + $0x3ac] ss:$16 sps:$4 sm:$0xff]  }
  0x4a   : > { %995 = vmatpush1.bf16.msra.mxu0 %v1445_v61  ;;  %1077 = vmatpush1.bf16.msra.mxu1 %v1446_v62  ;;  %v1533_v61 = vld [vmem:[%s1603_s20 + $0x3a0] ss:$16 sps:$4 sm:$0xff]   ;;  %v1536_v62 = vld [vmem:[%s1603_s20 + $0x3a8] ss:$16 sps:$4 sm:$0xff]  }
  0x4b   : > { %996 = vmatprep.subr.bf16.mxu0 %v1447_v63  ;;  %1078 = vmatprep.subr.bf16.mxu1 %v1449_v1  ;;  %v1541_v63 = vld [vmem:[%s1603_s20 + $0x3c4] ss:$16 sps:$4 sm:$0xff]   ;;  %v1544_v1 = vld [vmem:[%s1603_s20 + $0x3cc] ss:$16 sps:$4 sm:$0xff]  }
  0x4e   : > { %997 = vmatpush1.bf16.msra.mxu0 %v1451_v2  ;;  %1079 = vmatpush1.bf16.msra.mxu1 %v1452_v3  ;;  %v1539_v2 = vld [vmem:[%s1603_s20 + $0x3c0] ss:$16 sps:$4 sm:$0xff]   ;;  %v1542_v3 = vld [vmem:[%s1603_s20 + $0x3c8] ss:$16 sps:$4 sm:$0xff]  }
  0x4f   : > { %1007 = vmatprep.subr.bf16.mxu0 %v1457_v4  ;;  %1089 = vmatprep.subr.bf16.mxu1 %v1460_v5  ;;  %v1547_v4 = vld [vmem:[%s1603_s20 + $0x3e4] ss:$16 sps:$4 sm:$0xff]   ;;  %v1550_v5 = vld [vmem:[%s1603_s20 + $0x3ec] ss:$16 sps:$4 sm:$0xff]  }
  0x51   : > { %999 = vmatmul.mubr.bf16.vlgmr.msra.gmra.mrb[0].mxu0 %v1199_v7  ;;  %1081 = vmatmul.mubr.bf16.vlgmr.msra.gmra.mrb[0].mxu1 %v1199_v7  ;;  %v1545_v7 = vld [vmem:[%s1603_s20 + $0x3e0] ss:$16 sps:$4 sm:$0xff]  }
  0x52   : > { %1008 = vmatpush1.bf16.msra.mxu0 %v1455_v8  ;;  %1090 = vmatpush1.bf16.msra.mxu1 %v1458_v9  ;;  %v1548_v8 = vld [vmem:[%s1603_s20 + $0x3e8] ss:$16 sps:$4 sm:$0xff]   ;;  %v1201_v9 = vcombine.low %v1674_v6, %v1674_v6 }
  0x53   : > { %1009 = vmatprep.subr.bf16.mxu0 %v1463_v10  ;;  %1091 = vmatprep.subr.bf16.mxu1 %v1466_v11 }
  0x54   : > { %1039 = vmatprep.mubr.bf16.mxu0 %v1202_v12  ;;  %1121 = vmatprep.mubr.bf16.mxu1 %v1202_v12 }
  0x56   : > { %1010 = vmatpush1.bf16.msra.mxu0 %v1461_v13  ;;  %1092 = vmatpush1.bf16.msra.mxu1 %v1464_v0 }
  0x57   : > { %1011 = vmatprep.subr.bf16.mxu0 %v1469_v14  ;;  %1093 = vmatprep.subr.bf16.mxu1 %v1472_v15 }
  0x5a   : > { %1012 = vmatpush1.bf16.msra.mxu0 %v1467_v16  ;;  %1094 = vmatpush1.bf16.msra.mxu1 %v1470_v17 }
  0x5b   : > { %1013 = vmatprep.subr.bf16.mxu0 %v1475_v18  ;;  %1095 = vmatprep.subr.bf16.mxu1 %v1478_v19 }
  0x5e   : > { %1014 = vmatpush1.bf16.msra.mxu0 %v1473_v20  ;;  %1096 = vmatpush1.bf16.msra.mxu1 %v1476_v21 }
  0x5f   : > { %1015 = vmatprep.subr.bf16.mxu0 %v1481_v22  ;;  %1097 = vmatprep.subr.bf16.mxu1 %v1484_v23 }
  0x62   : > { %1016 = vmatpush1.bf16.msra.mxu0 %v1479_v24  ;;  %1098 = vmatpush1.bf16.msra.mxu1 %v1482_v25 }
  0x63   : > { %1017 = vmatprep.subr.bf16.mxu0 %v1487_v26  ;;  %1099 = vmatprep.subr.bf16.mxu1 %v1490_v27 }
  0x66   : > { %1018 = vmatpush1.bf16.msra.mxu0 %v1485_v28  ;;  %1100 = vmatpush1.bf16.msra.mxu1 %v1488_v29 }
  0x67   : > { %1019 = vmatprep.subr.bf16.mxu0 %v1493_v30  ;;  %1101 = vmatprep.subr.bf16.mxu1 %v1496_v31 }
  0x6a   : > { %1020 = vmatpush1.bf16.msra.mxu0 %v1491_v33  ;;  %1102 = vmatpush1.bf16.msra.mxu1 %v1494_v34 }
  0x6b   : > { %1021 = vmatprep.subr.bf16.mxu0 %v1499_v35  ;;  %1103 = vmatprep.subr.bf16.mxu1 %v1502_v36 }
  0x6e   : > { %1022 = vmatpush1.bf16.msra.mxu0 %v1497_v37  ;;  %1104 = vmatpush1.bf16.msra.mxu1 %v1500_v38 }
  0x6f   : > { %1023 = vmatprep.subr.bf16.mxu0 %v1505_v39  ;;  %1105 = vmatprep.subr.bf16.mxu1 %v1508_v40 }
  0x72   : > { %1024 = vmatpush1.bf16.msra.mxu0 %v1503_v41  ;;  %1106 = vmatpush1.bf16.msra.mxu1 %v1506_v42 }
  0x73   : > { %1025 = vmatprep.subr.bf16.mxu0 %v1511_v43  ;;  %1107 = vmatprep.subr.bf16.mxu1 %v1514_v44 }
  0x76   : > { %1026 = vmatpush1.bf16.msra.mxu0 %v1509_v45  ;;  %1108 = vmatpush1.bf16.msra.mxu1 %v1512_v46 }
  0x77   : > { %1027 = vmatprep.subr.bf16.mxu0 %v1517_v47  ;;  %1109 = vmatprep.subr.bf16.mxu1 %v1520_v48 }
  0x7a   : > { %1028 = vmatpush1.bf16.msra.mxu0 %v1515_v49  ;;  %1110 = vmatpush1.bf16.msra.mxu1 %v1518_v50 }
  0x7b   : > { %1029 = vmatprep.subr.bf16.mxu0 %v1523_v51  ;;  %1111 = vmatprep.subr.bf16.mxu1 %v1526_v52 }
  0x7e   : > { %1030 = vmatpush1.bf16.msra.mxu0 %v1521_v53  ;;  %1112 = vmatpush1.bf16.msra.mxu1 %v1524_v54 }
  0x7f   : > { %1031 = vmatprep.subr.bf16.mxu0 %v1529_v55  ;;  %1113 = vmatprep.subr.bf16.mxu1 %v1532_v56 }
  0x82   : > { %1032 = vmatpush1.bf16.msra.mxu0 %v1527_v57  ;;  %1114 = vmatpush1.bf16.msra.mxu1 %v1530_v58 }
  0x83   : > { %1033 = vmatprep.subr.bf16.mxu0 %v1535_v59  ;;  %1115 = vmatprep.subr.bf16.mxu1 %v1538_v60 }
  0x86   : > { %1034 = vmatpush1.bf16.msra.mxu0 %v1533_v61  ;;  %1116 = vmatpush1.bf16.msra.mxu1 %v1536_v62 }
  0x87   : > { %1035 = vmatprep.subr.bf16.mxu0 %v1541_v63  ;;  %1117 = vmatprep.subr.bf16.mxu1 %v1544_v1 }
  0x8a   : > { %1036 = vmatpush1.bf16.msra.mxu0 %v1539_v2  ;;  %1118 = vmatpush1.bf16.msra.mxu1 %v1542_v3 }
  0x8b   : > { %1037 = vmatprep.subr.bf16.mxu0 %v1547_v4  ;;  %1119 = vmatprep.subr.bf16.mxu1 %v1550_v5 }
  0x8e   : > { %1038 = vmatpush1.bf16.msra.mxu0 %v1545_v7  ;;  %1120 = vmatpush1.bf16.msra.mxu1 %v1548_v8 }
  0x91   : > { %1040 = vmatmul.mubr.bf16.vlgmr.msra.gmra.mrb[0].mxu0 %v1201_v9  ;;  %1122 = vmatmul.mubr.bf16.vlgmr.msra.gmra.mrb[0].mxu1 %v1201_v9 }
  0xaf   : > { %v310_v10 = vpop.permute.xlu0 %309 }
 0x164   : > { %v1041_v11 = vpop.f32.mrb[0].mxu0  ;;  %v1123_v12 = vpop.f32.mrb[0].mxu1 }
 0x165   : > { %v1335_v13 = vadd.f32 %v1041_v11, %v310_v10  ;;  %v1337_v0 = vadd.f32 %v1123_v12, %v310_v10  ;;  %v1043_v14 = vpop.f32.mrb[1].mxu0  ;;  %v1125_v15 = vpop.f32.mrb[1].mxu1 }
 0x166   : > { %v1336_v16 = vadd.f32 %v1043_v14, %v310_v10  ;;  %v1338_v6 = vadd.f32 %v1125_v15, %v310_v10  ;;  %v1045_v17 = vpop.f32.mrb[2].mxu0  ;;  %v1127_v18 = vpop.f32.mrb[2].mxu1 }
 0x167   : > { %1130 = vst [vmem:[%s175_s28] sm:$0xff] %v1335_v13  ;;  %1132 = vst [vmem:[%s175_s28 + $0x10] sm:$0xff] %v1337_v0  ;;  %v1046_v19 = vpop.f32.mrb[3].mxu0  ;;  %v1128_v20 = vpop.f32.mrb[3].mxu1 }
 0x168   : > { %1131 = vst [vmem:[%s175_s28 + $0x8] sm:$0xff] %v1336_v16  ;;  %1133 = vst [vmem:[%s175_s28 + $0x18] sm:$0xff] %v1338_v6 }
 0x169 PF: > { %s13_s12 = sadd.s32 1, %s1559_s12  }
 0x16a   : > { %p10_p5 = scmp.ge.s32.totalorder %s13_s12, 4  }
 0x16c   :  { %12 = sbr.rel (!%p10_p5) target bundleno = 1 (0x1), region = 62 }

</bundles_post_ra>
